<compile_context>
chip_gen: v7x
topology: tpu7x:2x2x1
jax: 0.10.0
libtpu: 0.0.40
codegen_flags: <defaults>
</compile_context>

<pallas_src>
import functools

import numpy as np
import jax
import jax.numpy as jnp
from jax.experimental import pallas as pl
from jax.experimental.pallas import tpu as pltpu

EPS = 1e-5


# -----------------------------------------------------------------------------
# In-kernel helpers.
# -----------------------------------------------------------------------------
def _zero_pad_border(ref, nb, h, w):
    """Zero the 1-pixel spatial border of a (nb, h+2, w+2, c) VMEM scratch.

    Re-done every grid step (not just on step 0) so it stays correct when the
    "parallel" batch axis is sharded across the two v7x TensorCores (each core
    owns its own scratch and may never see grid step 0).
    """
    c = ref.shape[-1]
    dt = ref.dtype
    ref[:, 0:1, :, :] = jnp.zeros((nb, 1, w + 2, c), dt)
    ref[:, h + 1:h + 2, :, :] = jnp.zeros((nb, 1, w + 2, c), dt)
    ref[:, :, 0:1, :] = jnp.zeros((nb, h + 2, 1, c), dt)
    ref[:, :, w + 1:w + 2, :] = jnp.zeros((nb, h + 2, 1, c), dt)


def _im2col_3x3(xp, nb, h, w):
    """(nb, h+2, w+2, c) padded bf16 image -> (nb*h*w, 9*c) bf16 patch tile.

    Column order is (tap k = dy*3+dx, channel c), matching the (9*c, cout)
    weight layout produced in the wrapper, so each conv is a single matmul.
    """
    c = xp.shape[-1]
    taps = []
    for k in range(9):
        dy, dx = divmod(k, 3)
        taps.append(xp[:, dy:dy + h, dx:dx + w, :].reshape(nb * h * w, c))
    return jnp.concatenate(taps, axis=-1)


# --------------------- kernel 1: conv1 BatchNorm statistics -------------------
def _bn_stats_kernel(xin_ref, w1_ref, sum_ref, sq_ref, xp_ref, *, nb, h, w):
    # conv1 bias is omitted on purpose: training-mode BatchNorm subtracts the
    # batch mean right afterwards, so the bias cancels exactly.
    _zero_pad_border(xp_ref, nb, h, w)
    xp_ref[:, 1:h + 1, 1:w + 1, :] = xin_ref[...]              # bf16, no cast
    p1 = _im2col_3x3(xp_ref[...], nb, h, w)                    # (nb*h*w, 9*Cin)
    z1 = jnp.dot(p1, w1_ref[...], preferred_element_type=jnp.float32)
    sum_ref[0] = jnp.sum(z1, axis=0, keepdims=True)
    sq_ref[0] = jnp.sum(z1 * z1, axis=0, keepdims=True)


# ------- kernel 2: fused conv1 + BN(affine) + ReLU + conv2 + ReLU + CAM -------
def _exit_main_kernel(xin_ref, w1_ref, s1_ref, t1_ref, w2_ref, b2_ref,
                      wcam_ref, bcam_ref,
                      camin_ref, cam_ref, logits_ref, pooled_ref,
                      xp_ref, hp_ref, *, nb, h, w, hid):
    npix = h * w

    # --- conv1 (one im2col matmul) + folded BN scale/shift + ReLU -------------
    _zero_pad_border(xp_ref, nb, h, w)
    xp_ref[:, 1:h + 1, 1:w + 1, :] = xin_ref[...]              # bf16
    p1 = _im2col_3x3(xp_ref[...], nb, h, w)                    # (nb*npix, 9*Cin)
    z1 = jnp.dot(p1, w1_ref[...], preferred_element_type=jnp.float32)
    h1 = jnp.maximum(z1 * s1_ref[...] + t1_ref[...], 0.0)      # f32 elementwise
    h1 = h1.astype(jnp.bfloat16)                               # single cast

    # --- conv2 (one im2col matmul) + bias + ReLU -------------------------------
    _zero_pad_border(hp_ref, nb, h, w)
    hp_ref[:, 1:h + 1, 1:w + 1, :] = h1.reshape(nb, h, w, hid)
    p2 = _im2col_3x3(hp_ref[...], nb, h, w)                    # (nb*npix, 9*hid)
    z2 = jnp.dot(p2, w2_ref[...], preferred_element_type=jnp.float32) + b2_ref[...]
    cam_in = jnp.maximum(z2, 0.0)                              # (nb*npix, cam_hid)

    # --- CAM (1x1 conv == matmul) ----------------------------------------------
    cam = jnp.dot(cam_in.astype(jnp.bfloat16), wcam_ref[...],
                  preferred_element_type=jnp.float32) + bcam_ref[...]

    cam_hid = cam_in.shape[-1]
    out_dims = cam.shape[-1]
    cam_in_b = cam_in.reshape(nb, npix, cam_hid)
    cam_b = cam.reshape(nb, npix, out_dims)

    # Channel-major, lane-dense outputs (NCHW is a free reshape in the wrapper).
    camin_ref[...] = jnp.transpose(cam_in_b, (0, 2, 1))        # (nb, cam_hid, npix)
    cam_ref[...] = jnp.transpose(cam_b, (0, 2, 1))             # (nb, out_dims, npix)

    # adaptive_avg_pool2d(., 1): one batched in-kernel reduction per block.
    logits_ref[...] = jnp.mean(cam_b, axis=1, keepdims=True)
    pooled_ref[...] = jnp.mean(cam_in_b, axis=1, keepdims=True)


# ---------------------------------- sizing -------------------------------------
def _per_image_vmem_bytes(h, w, cin, hid, cam_hid, out_dims):
    npix = h * w
    pads = (h + 2) * (w + 2)
    b = 2 * npix * cin * 2                        # double-buffered bf16 input block
    b += pads * (cin + hid) * 2                   # padded VMEM scratches (bf16)
    b += npix * 9 * (cin + hid) * 2               # im2col tiles (bf16)
    b += 4 * npix * hid * 4                       # conv1/BN/ReLU f32 temps
    b += 4 * npix * cam_hid * 4                   # conv2/ReLU f32 temps
    b += 2 * npix * out_dims * 4                  # cam f32 temps
    b += 4 * npix * (cam_hid + out_dims) * 4      # double-buffered outs + transposes
    return b


def _vmem_capacity_bytes():
    try:
        cap = getattr(pltpu.get_tpu_info(), "vmem_capacity_bytes", None)
        if cap:
            return int(cap)
    except Exception:
        pass
    return 64 << 20                               # conservative: v7x per-TC VMEM


def _pick_batch_block(batch, per_image_bytes, budget):
    """Largest divisor of `batch` that fits the VMEM budget, keeping the grid
    length >= 2 when possible (feeds both v7x TensorCores)."""
    cap = max(1, int(budget // max(per_image_bytes, 1)))
    best = 1
    for d in range(1, batch + 1):
        if batch % d != 0 or d > cap:
            continue
        if batch // d >= 2 or batch == 1:
            best = d
    return best


# ---------------------------------- wrapper -----------------------------------
def exit_module_forward(x_nchw, params):
    B, Cin, H, W = x_nchw.shape
    hid = params["conv1_w"].shape[0]
    cam_hid = params["conv2_w"].shape[0]
    out_dims = params["cam_w"].shape[0]
    npix = H * W

    # --- batch-block / VMEM sizing --------------------------------------------
    vmem_cap = _vmem_capacity_bytes()
    per_img = _per_image_vmem_bytes(H, W, Cin, hid, cam_hid, out_dims)
    nb = _pick_batch_block(B, per_img, budget=int(vmem_cap * 0.45))
    nblk = B // nb
    weight_bytes = 2 * (9 * Cin * hid + 9 * hid * cam_hid + cam_hid * out_dims) * 2
    vmem_limit = int(min(max(per_img * nb + weight_bytes + (8 << 20), 32 << 20),
                         int(vmem_cap * 0.9)))
    cparams = pltpu.CompilerParams(dimension_semantics=("parallel",),
                                   vmem_limit_bytes=vmem_limit)

    # --- layout glue (no HBM pad: zero-padding happens in VMEM in the kernels) -
    x_nhwc = jnp.transpose(x_nchw, (0, 2, 3, 1)).astype(jnp.bfloat16)
    w1 = jnp.transpose(params["conv1_w"], (2, 3, 1, 0)) \
            .reshape(9 * Cin, hid).astype(jnp.bfloat16)
    w2 = jnp.transpose(params["conv2_w"], (2, 3, 1, 0)) \
            .reshape(9 * hid, cam_hid).astype(jnp.bfloat16)
    wcam = jnp.transpose(params["cam_w"], (2, 3, 1, 0)) \
            .reshape(cam_hid, out_dims).astype(jnp.bfloat16)
    b2 = params["conv2_b"].reshape(1, cam_hid).astype(jnp.float32)
    bcam = params["cam_b"].reshape(1, out_dims).astype(jnp.float32)

    # --- pass 1: per-block conv1 channel sums / sums-of-squares ----------------
    sums, sqs = pl.pallas_call(
        functools.partial(_bn_stats_kernel, nb=nb, h=H, w=W),
        grid=(nblk,),
        in_specs=[
            pl.BlockSpec((nb, H, W, Cin), lambda b: (b, 0, 0, 0)),
            pl.BlockSpec((9 * Cin, hid), lambda b: (0, 0)),
        ],
        out_specs=(
            pl.BlockSpec((1, 1, hid), lambda b: (b, 0, 0)),
            pl.BlockSpec((1, 1, hid), lambda b: (b, 0, 0)),
        ),
        out_shape=(
            jax.ShapeDtypeStruct((nblk, 1, hid), jnp.float32),
            jax.ShapeDtypeStruct((nblk, 1, hid), jnp.float32),
        ),
        scratch_shapes=[pltpu.VMEM((nb, H + 2, W + 2, Cin), jnp.bfloat16)],
        compiler_params=cparams,
    )(x_nhwc, w1)

    # Fold BatchNorm2d (training stats, biased variance) into scale/shift.
    # TODO(synk): E[z^2]-mu^2 in f32 can lose precision for large-mean
    #             activations vs. the reference two-pass (z-mu)^2 form.
    cnt = float(B * npix)
    mean = jnp.sum(sums[:, 0, :], axis=0) / cnt
    var = jnp.maximum(jnp.sum(sqs[:, 0, :], axis=0) / cnt - mean * mean, 0.0)
    scale_v = params["bn1_g"] * jax.lax.rsqrt(var + EPS)
    shift_v = params["bn1_b"] - mean * scale_v
    scale = scale_v.reshape(1, hid).astype(jnp.float32)
    shift = shift_v.reshape(1, hid).astype(jnp.float32)

    # --- pass 2: fused conv1+BN+ReLU+conv2+ReLU+CAM + per-image pooling --------
    camin_cm, cam_cm, logits3, pooled3 = pl.pallas_call(
        functools.partial(_exit_main_kernel, nb=nb, h=H, w=W, hid=hid),
        grid=(nblk,),
        in_specs=[
            pl.BlockSpec((nb, H, W, Cin), lambda b: (b, 0, 0, 0)),
            pl.BlockSpec((9 * Cin, hid), lambda b: (0, 0)),
            pl.BlockSpec((1, hid), lambda b: (0, 0)),
            pl.BlockSpec((1, hid), lambda b: (0, 0)),
            pl.BlockSpec((9 * hid, cam_hid), lambda b: (0, 0)),
            pl.BlockSpec((1, cam_hid), lambda b: (0, 0)),
            pl.BlockSpec((cam_hid, out_dims), lambda b: (0, 0)),
            pl.BlockSpec((1, out_dims), lambda b: (0, 0)),
        ],
        out_specs=(
            pl.BlockSpec((nb, cam_hid, npix), lambda b: (b, 0, 0)),
            pl.BlockSpec((nb, out_dims, npix), lambda b: (b, 0, 0)),
            pl.BlockSpec((nb, 1, out_dims), lambda b: (b, 0, 0)),
            pl.BlockSpec((nb, 1, cam_hid), lambda b: (b, 0, 0)),
        ),
        out_shape=(
            jax.ShapeDtypeStruct((B, cam_hid, npix), jnp.float32),
            jax.ShapeDtypeStruct((B, out_dims, npix), jnp.float32),
            jax.ShapeDtypeStruct((B, 1, out_dims), jnp.float32),
            jax.ShapeDtypeStruct((B, 1, cam_hid), jnp.float32),
        ),
        scratch_shapes=[
            pltpu.VMEM((nb, H + 2, W + 2, Cin), jnp.bfloat16),
            pltpu.VMEM((nb, H + 2, W + 2, hid), jnp.bfloat16),
        ],
        compiler_params=cparams,
    )(x_nhwc, w1, scale, shift, w2, b2, wcam, bcam)

    # Channel-major kernel outputs -> NCHW is a free reshape (no transposes).
    cam_in_nchw = camin_cm.reshape(B, cam_hid, H, W)
    cam_nchw = cam_cm.reshape(B, out_dims, H, W)
    logits = logits3[:, 0, :]                                  # (B, out_dims)
    pooled = pooled3[:, 0, :]                                  # (B, cam_hid)

    # --- SimpleGate: tiny (B, cam_hid) MLP; plain jnp (XLA fuses it for free) --
    # NOTE: training-mode BN1d over the batch requires B >= 2 (as in PyTorch).
    g = pooled @ params["gate_w1"].T.astype(jnp.float32) + params["gate_b1"]
    mu = jnp.mean(g, axis=0, keepdims=True)
    gvar = jnp.mean((g - mu) ** 2, axis=0, keepdims=True)
    g = (g - mu) * jax.lax.rsqrt(gvar + EPS) * params["gate_bn_g"] + params["gate_bn_b"]
    g = jnp.maximum(g, 0.0)
    g = g @ params["gate_w2"].T.astype(jnp.float32) + params["gate_b2"]
    gates = jax.nn.sigmoid(g)[:, 0]

    return {
        "exit_in": x_nchw,
        "cam_in": cam_in_nchw,
        "cam": cam_nchw,
        # explicit shapes (B, out_dims) / (B,): torch's .squeeze() would also
        # collapse the batch dim when B == 1.
        "logits": logits,
        "gates": gates,
    }


# ----------------------- pure-JAX reference (for checking) --------------------
def reference_forward(x, p):
    def conv(xx, w, b, pad):
        y = jax.lax.conv_general_dilated(
            xx, w, (1, 1), ((pad, pad), (pad, pad)),
            dimension_numbers=("NCHW", "OIHW", "NCHW"))
        return y + b[None, :, None, None]

    def bn2d(xx, g, b):
        mu = jnp.mean(xx, axis=(0, 2, 3), keepdims=True)
        var = jnp.mean((xx - mu) ** 2, axis=(0, 2, 3), keepdims=True)
        return (xx - mu) / jnp.sqrt(var + EPS) * g[None, :, None, None] \
            + b[None, :, None, None]

    h = jnp.maximum(bn2d(conv(x, p["conv1_w"], p["conv1_b"], 1),
                         p["bn1_g"], p["bn1_b"]), 0.0)
    h = conv(h, p["conv2_w"], p["conv2_b"], 1)
    cam_in = jnp.maximum(h, 0.0)
    cam = conv(cam_in, p["cam_w"], p["cam_b"], 0)
    logits = jnp.mean(cam, axis=(2, 3))
    pooled = jnp.mean(cam_in, axis=(2, 3))
    g = pooled @ p["gate_w1"].T + p["gate_b1"]
    mu = jnp.mean(g, axis=0, keepdims=True)
    var = jnp.mean((g - mu) ** 2, axis=0, keepdims=True)
    g = (g - mu) / jnp.sqrt(var + EPS) * p["gate_bn_g"] + p["gate_bn_b"]
    g = jnp.maximum(g, 0.0)
    g = g @ p["gate_w2"].T + p["gate_b2"]
    return {"cam_in": cam_in, "cam": cam,
            "logits": jnp.squeeze(logits),
            "gates": jnp.squeeze(jax.nn.sigmoid(g))}


if __name__ == "__main__":
    B, Cin, H, W = 2, 4, 16, 16
    hid, cam_hid, out_dims, ghid = 8, 8, 6, 16     # cam_hid defaults to hid_dims

    key = jax.random.PRNGKey(0)
    ks = jax.random.split(key, 13)
    params = {
        "conv1_w": 0.1 * jax.random.normal(ks[0], (hid, Cin, 3, 3), jnp.float32),
        "conv1_b": 0.1 * jax.random.normal(ks[1], (hid,), jnp.float32),
        "bn1_g": 1.0 + 0.1 * jax.random.normal(ks[2], (hid,), jnp.float32),
        "bn1_b": 0.1 * jax.random.normal(ks[3], (hid,), jnp.float32),
        "conv2_w": 0.1 * jax.random.normal(ks[4], (cam_hid, hid, 3, 3), jnp.float32),
        "conv2_b": 0.1 * jax.random.normal(ks[5], (cam_hid,), jnp.float32),
        "cam_w": 0.1 * jax.random.normal(ks[6], (out_dims, cam_hid, 1, 1), jnp.float32),
        "cam_b": 0.1 * jax.random.normal(ks[7], (out_dims,), jnp.float32),
        "gate_w1": 0.1 * jax.random.normal(ks[8], (ghid, cam_hid), jnp.float32),
        "gate_b1": 0.1 * jax.random.normal(ks[9], (ghid,), jnp.float32),
        "gate_bn_g": jnp.ones((ghid,), jnp.float32),
        "gate_bn_b": jnp.zeros((ghid,), jnp.float32),
        "gate_w2": 0.1 * jax.random.normal(ks[10], (1, ghid), jnp.float32),
        "gate_b2": 0.1 * jax.random.normal(ks[11], (1,), jnp.float32),
    }
    x = jax.random.normal(ks[12], (B, Cin, H, W), jnp.float32)

    out = jax.jit(exit_module_forward)(x, params)
    out = jax.block_until_ready(out)

    ref = reference_forward(x, params)
    for k in ("cam_in", "cam", "logits", "gates"):
        np.testing.assert_allclose(np.asarray(out[k]), np.asarray(ref[k]),
                                   rtol=5e-2, atol=5e-2)
    assert out["cam_in"].shape == (B, cam_hid, H, W)
    assert out["cam"].shape == (B, out_dims, H, W)
    assert out["logits"].shape == (B, out_dims)
    assert out["gates"].shape == (B,)
    print("KERNEL_OK")
</pallas_src>

<mosaic_0001>
module attributes {stable_mosaic.version = 11 : i64} {
  func.func @_bn_stats_kernel(%arg0: i32, %arg1: memref<1x16x16x4xbf16, #tpu.memory_space<vmem>>, %arg2: memref<36x8xbf16, #tpu.memory_space<vmem>>, %arg3: memref<1x1x8xf32, #tpu.memory_space<vmem>>, %arg4: memref<1x1x8xf32, #tpu.memory_space<vmem>>, %arg5: memref<1x18x18x4xbf16, #tpu.memory_space<vmem>>) attributes {dimension_semantics = [#tpu.dimension_semantics<parallel>], iteration_bounds = array<i64: 2>, scalar_prefetch = 0 : i64, scratch_operands = 1 : i64, tpu.core_type = #tpu.core_type<tc>, window_params = [{transform_indices = @transform_0, window_bounds = array<i64: 1, 16, 16, 4>}, {pipeline_mode = #tpu.pipeline_mode<synchronous>, transform_indices = @transform_1, window_bounds = array<i64: 36, 8>}, {transform_indices = @transform_2, window_bounds = array<i64: 1, 1, 8>}, {transform_indices = @transform_3, window_bounds = array<i64: 1, 1, 8>}]} {
    %cst = arith.constant 0.000000e+00 : bf16
    %0 = vector.broadcast %cst : bf16 to vector<1x1x18x4xbf16>
    %c0 = arith.constant 0 : index
    %c0_0 = arith.constant 0 : index
    %c0_1 = arith.constant 0 : index
    %c0_2 = arith.constant 0 : index
    %1 = vector.load %arg5[%c0, %c0_0, %c0_1, %c0_2] : memref<1x18x18x4xbf16, #tpu.memory_space<vmem>>, vector<1x1x18x4xbf16>
    tpu.vector_store %arg5[%c0, %c0_0, %c0_1, %c0_2], %0 {strides = array<i32>} : memref<1x18x18x4xbf16, #tpu.memory_space<vmem>>, vector<1x1x18x4xbf16>,
    %cst_3 = arith.constant 0.000000e+00 : bf16
    %2 = vector.broadcast %cst_3 : bf16 to vector<1x1x18x4xbf16>
    %c0_4 = arith.constant 0 : index
    %c17 = arith.constant 17 : index
    %c0_5 = arith.constant 0 : index
    %c0_6 = arith.constant 0 : index
    %3 = vector.load %arg5[%c0_4, %c17, %c0_5, %c0_6] : memref<1x18x18x4xbf16, #tpu.memory_space<vmem>>, vector<1x1x18x4xbf16>
    tpu.vector_store %arg5[%c0_4, %c17, %c0_5, %c0_6], %2 {strides = array<i32>} : memref<1x18x18x4xbf16, #tpu.memory_space<vmem>>, vector<1x1x18x4xbf16>,
    %cst_7 = arith.constant 0.000000e+00 : bf16
    %4 = vector.broadcast %cst_7 : bf16 to vector<1x18x1x4xbf16>
    %c0_8 = arith.constant 0 : index
    %c0_9 = arith.constant 0 : index
    %c0_10 = arith.constant 0 : index
    %c0_11 = arith.constant 0 : index
    %5 = vector.load %arg5[%c0_8, %c0_9, %c0_10, %c0_11] : memref<1x18x18x4xbf16, #tpu.memory_space<vmem>>, vector<1x18x1x4xbf16>
    tpu.vector_store %arg5[%c0_8, %c0_9, %c0_10, %c0_11], %4 {strides = array<i32>} : memref<1x18x18x4xbf16, #tpu.memory_space<vmem>>, vector<1x18x1x4xbf16>,
    %cst_12 = arith.constant 0.000000e+00 : bf16
    %6 = vector.broadcast %cst_12 : bf16 to vector<1x18x1x4xbf16>
    %c0_13 = arith.constant 0 : index
    %c0_14 = arith.constant 0 : index
    %c17_15 = arith.constant 17 : index
    %c0_16 = arith.constant 0 : index
    %7 = vector.load %arg5[%c0_13, %c0_14, %c17_15, %c0_16] : memref<1x18x18x4xbf16, #tpu.memory_space<vmem>>, vector<1x18x1x4xbf16>
    tpu.vector_store %arg5[%c0_13, %c0_14, %c17_15, %c0_16], %6 {strides = array<i32>} : memref<1x18x18x4xbf16, #tpu.memory_space<vmem>>, vector<1x18x1x4xbf16>,
    %c0_17 = arith.constant 0 : index
    %c0_18 = arith.constant 0 : index
    %c0_19 = arith.constant 0 : index
    %c0_20 = arith.constant 0 : index
    %8 = vector.load %arg1[%c0_17, %c0_18, %c0_19, %c0_20] : memref<1x16x16x4xbf16, #tpu.memory_space<vmem>>, vector<1x16x16x4xbf16>
    %c0_21 = arith.constant 0 : index
    %c1 = arith.constant 1 : index
    %c1_22 = arith.constant 1 : index
    %c0_23 = arith.constant 0 : index
    %9 = vector.load %arg5[%c0_21, %c1, %c1_22, %c0_23] : memref<1x18x18x4xbf16, #tpu.memory_space<vmem>>, vector<1x16x16x4xbf16>
    tpu.vector_store %arg5[%c0_21, %c1, %c1_22, %c0_23], %8 {strides = array<i32>} : memref<1x18x18x4xbf16, #tpu.memory_space<vmem>>, vector<1x16x16x4xbf16>,
    %c0_24 = arith.constant 0 : index
    %c0_25 = arith.constant 0 : index
    %c0_26 = arith.constant 0 : index
    %c0_27 = arith.constant 0 : index
    %10 = vector.load %arg5[%c0_24, %c0_25, %c0_26, %c0_27] : memref<1x18x18x4xbf16, #tpu.memory_space<vmem>>, vector<1x18x18x4xbf16>
    %11 = vector.extract_strided_slice %10 {offsets = [0, 0, 0, 0], sizes = [1, 16, 16, 4], strides = [1, 1, 1, 1]} : vector<1x18x18x4xbf16> to vector<1x16x16x4xbf16>
    %12 = vector.shape_cast %11 : vector<1x16x16x4xbf16> to vector<256x4xbf16>
    %13 = vector.extract_strided_slice %10 {offsets = [0, 0, 1, 0], sizes = [1, 16, 16, 4], strides = [1, 1, 1, 1]} : vector<1x18x18x4xbf16> to vector<1x16x16x4xbf16>
    %14 = vector.shape_cast %13 : vector<1x16x16x4xbf16> to vector<256x4xbf16>
    %15 = vector.extract_strided_slice %10 {offsets = [0, 0, 2, 0], sizes = [1, 16, 16, 4], strides = [1, 1, 1, 1]} : vector<1x18x18x4xbf16> to vector<1x16x16x4xbf16>
    %16 = vector.shape_cast %15 : vector<1x16x16x4xbf16> to vector<256x4xbf16>
    %17 = vector.extract_strided_slice %10 {offsets = [0, 1, 0, 0], sizes = [1, 16, 16, 4], strides = [1, 1, 1, 1]} : vector<1x18x18x4xbf16> to vector<1x16x16x4xbf16>
    %18 = vector.shape_cast %17 : vector<1x16x16x4xbf16> to vector<256x4xbf16>
    %19 = vector.extract_strided_slice %10 {offsets = [0, 1, 1, 0], sizes = [1, 16, 16, 4], strides = [1, 1, 1, 1]} : vector<1x18x18x4xbf16> to vector<1x16x16x4xbf16>
    %20 = vector.shape_cast %19 : vector<1x16x16x4xbf16> to vector<256x4xbf16>
    %21 = vector.extract_strided_slice %10 {offsets = [0, 1, 2, 0], sizes = [1, 16, 16, 4], strides = [1, 1, 1, 1]} : vector<1x18x18x4xbf16> to vector<1x16x16x4xbf16>
    %22 = vector.shape_cast %21 : vector<1x16x16x4xbf16> to vector<256x4xbf16>
    %23 = vector.extract_strided_slice %10 {offsets = [0, 2, 0, 0], sizes = [1, 16, 16, 4], strides = [1, 1, 1, 1]} : vector<1x18x18x4xbf16> to vector<1x16x16x4xbf16>
    %24 = vector.shape_cast %23 : vector<1x16x16x4xbf16> to vector<256x4xbf16>
    %25 = vector.extract_strided_slice %10 {offsets = [0, 2, 1, 0], sizes = [1, 16, 16, 4], strides = [1, 1, 1, 1]} : vector<1x18x18x4xbf16> to vector<1x16x16x4xbf16>
    %26 = vector.shape_cast %25 : vector<1x16x16x4xbf16> to vector<256x4xbf16>
    %27 = vector.extract_strided_slice %10 {offsets = [0, 2, 2, 0], sizes = [1, 16, 16, 4], strides = [1, 1, 1, 1]} : vector<1x18x18x4xbf16> to vector<1x16x16x4xbf16>
    %28 = vector.shape_cast %27 : vector<1x16x16x4xbf16> to vector<256x4xbf16>
    %29 = tpu.concatenate %12, %14, %16, %18, %20, %22, %24, %26, %28 in 1 : vector<256x4xbf16>, vector<256x4xbf16>, vector<256x4xbf16>, vector<256x4xbf16>, vector<256x4xbf16>, vector<256x4xbf16>, vector<256x4xbf16>, vector<256x4xbf16>, vector<256x4xbf16> -> vector<256x36xbf16>
    %c0_28 = arith.constant 0 : index
    %c0_29 = arith.constant 0 : index
    %30 = vector.load %arg2[%c0_28, %c0_29] : memref<36x8xbf16, #tpu.memory_space<vmem>>, vector<36x8xbf16>
    %cst_30 = arith.constant dense<0.000000e+00> : vector<256x8xf32>
    %31 = tpu.matmul %29, %30, %cst_30 {dimension_numbers = #tpu.dot_dimension_numbers<[1], [0], [0], [1], [0, 0, 1, 1], [], []>} : vector<256x36xbf16>, vector<36x8xbf16>, vector<256x8xf32> -> vector<256x8xf32>
    %cst_31 = arith.constant dense<0.000000e+00> : vector<8xf32>
    %32 = vector.multi_reduction <add>, %31, %cst_31 [0] : vector<256x8xf32> to vector<8xf32>
    %33 = vector.shape_cast %32 : vector<8xf32> to vector<1x8xf32>
    %c0_32 = arith.constant 0 : index
    %c0_33 = arith.constant 0 : index
    %c0_34 = arith.constant 0 : index
    %34 = vector.load %arg3[%c0_32, %c0_33, %c0_34] : memref<1x1x8xf32, #tpu.memory_space<vmem>>, vector<1x1x8xf32>
    %35 = vector.shape_cast %34 : vector<1x1x8xf32> to vector<1x8xf32>
    %36 = vector.shape_cast %33 : vector<1x8xf32> to vector<1x1x8xf32>
    tpu.vector_store %arg3[%c0_32, %c0_33, %c0_34], %36 {strides = array<i32>} : memref<1x1x8xf32, #tpu.memory_space<vmem>>, vector<1x1x8xf32>,
    %37 = arith.mulf %31, %31 : vector<256x8xf32>
    %cst_35 = arith.constant dense<0.000000e+00> : vector<8xf32>
    %38 = vector.multi_reduction <add>, %37, %cst_35 [0] : vector<256x8xf32> to vector<8xf32>
    %39 = vector.shape_cast %38 : vector<8xf32> to vector<1x8xf32>
    %c0_36 = arith.constant 0 : index
    %c0_37 = arith.constant 0 : index
    %c0_38 = arith.constant 0 : index
    %40 = vector.load %arg4[%c0_36, %c0_37, %c0_38] : memref<1x1x8xf32, #tpu.memory_space<vmem>>, vector<1x1x8xf32>
    %41 = vector.shape_cast %40 : vector<1x1x8xf32> to vector<1x8xf32>
    %42 = vector.shape_cast %39 : vector<1x8xf32> to vector<1x1x8xf32>
    tpu.vector_store %arg4[%c0_36, %c0_37, %c0_38], %42 {strides = array<i32>} : memref<1x1x8xf32, #tpu.memory_space<vmem>>, vector<1x1x8xf32>,
    return
  }
  func.func @transform_0(%arg0: i32) -> (i32, i32, i32, i32) {
    %c0_i32 = arith.constant 0 : i32
    %c0_i32_0 = arith.constant 0 : i32
    %c0_i32_1 = arith.constant 0 : i32
    %c0_i32_2 = arith.constant 0 : i32
    return %arg0, %c0_i32, %c0_i32_0, %c0_i32_1 : i32, i32, i32, i32
  }
  func.func @transform_1(%arg0: i32) -> (i32, i32) {
    %c0_i32 = arith.constant 0 : i32
    %c0_i32_0 = arith.constant 0 : i32
    %c0_i32_1 = arith.constant 0 : i32
    return %c0_i32, %c0_i32_0 : i32, i32
  }
  func.func @transform_2(%arg0: i32) -> (i32, i32, i32) {
    %c0_i32 = arith.constant 0 : i32
    %c0_i32_0 = arith.constant 0 : i32
    %c0_i32_1 = arith.constant 0 : i32
    return %arg0, %c0_i32, %c0_i32_0 : i32, i32, i32
  }
  func.func @transform_3(%arg0: i32) -> (i32, i32, i32) {
    %c0_i32 = arith.constant 0 : i32
    %c0_i32_0 = arith.constant 0 : i32
    %c0_i32_1 = arith.constant 0 : i32
    return %arg0, %c0_i32, %c0_i32_0 : i32, i32, i32
  }
}

module attributes {stable_mosaic.version = 11 : i64} {
  func.func @_exit_main_kernel(%arg0: i32, %arg1: memref<1x16x16x4xbf16, #tpu.memory_space<vmem>>, %arg2: memref<36x8xbf16, #tpu.memory_space<vmem>>, %arg3: memref<1x8xf32, #tpu.memory_space<vmem>>, %arg4: memref<1x8xf32, #tpu.memory_space<vmem>>, %arg5: memref<72x8xbf16, #tpu.memory_space<vmem>>, %arg6: memref<1x8xf32, #tpu.memory_space<vmem>>, %arg7: memref<8x6xbf16, #tpu.memory_space<vmem>>, %arg8: memref<1x6xf32, #tpu.memory_space<vmem>>, %arg9: memref<1x8x256xf32, #tpu.memory_space<vmem>>, %arg10: memref<1x6x256xf32, #tpu.memory_space<vmem>>, %arg11: memref<1x1x6xf32, #tpu.memory_space<vmem>>, %arg12: memref<1x1x8xf32, #tpu.memory_space<vmem>>, %arg13: memref<1x18x18x4xbf16, #tpu.memory_space<vmem>>, %arg14: memref<1x18x18x8xbf16, #tpu.memory_space<vmem>>) attributes {dimension_semantics = [#tpu.dimension_semantics<parallel>], iteration_bounds = array<i64: 2>, scalar_prefetch = 0 : i64, scratch_operands = 2 : i64, tpu.core_type = #tpu.core_type<tc>, window_params = [{transform_indices = @transform_0, window_bounds = array<i64: 1, 16, 16, 4>}, {pipeline_mode = #tpu.pipeline_mode<synchronous>, transform_indices = @transform_1, window_bounds = array<i64: 36, 8>}, {pipeline_mode = #tpu.pipeline_mode<synchronous>, transform_indices = @transform_2, window_bounds = array<i64: 1, 8>}, {pipeline_mode = #tpu.pipeline_mode<synchronous>, transform_indices = @transform_3, window_bounds = array<i64: 1, 8>}, {pipeline_mode = #tpu.pipeline_mode<synchronous>, transform_indices = @transform_4, window_bounds = array<i64: 72, 8>}, {pipeline_mode = #tpu.pipeline_mode<synchronous>, transform_indices = @transform_5, window_bounds = array<i64: 1, 8>}, {pipeline_mode = #tpu.pipeline_mode<synchronous>, transform_indices = @transform_6, window_bounds = array<i64: 8, 6>}, {pipeline_mode = #tpu.pipeline_mode<synchronous>, transform_indices = @transform_7, window_bounds = array<i64: 1, 6>}, {transform_indices = @transform_8, window_bounds = array<i64: 1, 8, 256>}, {transform_indices = @transform_9, window_bounds = array<i64: 1, 6, 256>}, {transform_indices = @transform_10, window_bounds = array<i64: 1, 1, 6>}, {transform_indices = @transform_11, window_bounds = array<i64: 1, 1, 8>}]} {
    %cst = arith.constant 0.000000e+00 : bf16
    %0 = vector.broadcast %cst : bf16 to vector<1x1x18x4xbf16>
    %c0 = arith.constant 0 : index
    %c0_0 = arith.constant 0 : index
    %c0_1 = arith.constant 0 : index
    %c0_2 = arith.constant 0 : index
    %1 = vector.load %arg13[%c0, %c0_0, %c0_1, %c0_2] : memref<1x18x18x4xbf16, #tpu.memory_space<vmem>>, vector<1x1x18x4xbf16>
    tpu.vector_store %arg13[%c0, %c0_0, %c0_1, %c0_2], %0 {strides = array<i32>} : memref<1x18x18x4xbf16, #tpu.memory_space<vmem>>, vector<1x1x18x4xbf16>,
    %cst_3 = arith.constant 0.000000e+00 : bf16
    %2 = vector.broadcast %cst_3 : bf16 to vector<1x1x18x4xbf16>
    %c0_4 = arith.constant 0 : index
    %c17 = arith.constant 17 : index
    %c0_5 = arith.constant 0 : index
    %c0_6 = arith.constant 0 : index
    %3 = vector.load %arg13[%c0_4, %c17, %c0_5, %c0_6] : memref<1x18x18x4xbf16, #tpu.memory_space<vmem>>, vector<1x1x18x4xbf16>
    tpu.vector_store %arg13[%c0_4, %c17, %c0_5, %c0_6], %2 {strides = array<i32>} : memref<1x18x18x4xbf16, #tpu.memory_space<vmem>>, vector<1x1x18x4xbf16>,
    %cst_7 = arith.constant 0.000000e+00 : bf16
    %4 = vector.broadcast %cst_7 : bf16 to vector<1x18x1x4xbf16>
    %c0_8 = arith.constant 0 : index
    %c0_9 = arith.constant 0 : index
    %c0_10 = arith.constant 0 : index
    %c0_11 = arith.constant 0 : index
    %5 = vector.load %arg13[%c0_8, %c0_9, %c0_10, %c0_11] : memref<1x18x18x4xbf16, #tpu.memory_space<vmem>>, vector<1x18x1x4xbf16>
    tpu.vector_store %arg13[%c0_8, %c0_9, %c0_10, %c0_11], %4 {strides = array<i32>} : memref<1x18x18x4xbf16, #tpu.memory_space<vmem>>, vector<1x18x1x4xbf16>,
    %cst_12 = arith.constant 0.000000e+00 : bf16
    %6 = vector.broadcast %cst_12 : bf16 to vector<1x18x1x4xbf16>
    %c0_13 = arith.constant 0 : index
    %c0_14 = arith.constant 0 : index
    %c17_15 = arith.constant 17 : index
    %c0_16 = arith.constant 0 : index
    %7 = vector.load %arg13[%c0_13, %c0_14, %c17_15, %c0_16] : memref<1x18x18x4xbf16, #tpu.memory_space<vmem>>, vector<1x18x1x4xbf16>
    tpu.vector_store %arg13[%c0_13, %c0_14, %c17_15, %c0_16], %6 {strides = array<i32>} : memref<1x18x18x4xbf16, #tpu.memory_space<vmem>>, vector<1x18x1x4xbf16>,
    %c0_17 = arith.constant 0 : index
    %c0_18 = arith.constant 0 : index
    %c0_19 = arith.constant 0 : index
    %c0_20 = arith.constant 0 : index
    %8 = vector.load %arg1[%c0_17, %c0_18, %c0_19, %c0_20] : memref<1x16x16x4xbf16, #tpu.memory_space<vmem>>, vector<1x16x16x4xbf16>
    %c0_21 = arith.constant 0 : index
    %c1 = arith.constant 1 : index
    %c1_22 = arith.constant 1 : index
    %c0_23 = arith.constant 0 : index
    %9 = vector.load %arg13[%c0_21, %c1, %c1_22, %c0_23] : memref<1x18x18x4xbf16, #tpu.memory_space<vmem>>, vector<1x16x16x4xbf16>
    tpu.vector_store %arg13[%c0_21, %c1, %c1_22, %c0_23], %8 {strides = array<i32>} : memref<1x18x18x4xbf16, #tpu.memory_space<vmem>>, vector<1x16x16x4xbf16>,
    %c0_24 = arith.constant 0 : index
    %c0_25 = arith.constant 0 : index
    %c0_26 = arith.constant 0 : index
    %c0_27 = arith.constant 0 : index
    %10 = vector.load %arg13[%c0_24, %c0_25, %c0_26, %c0_27] : memref<1x18x18x4xbf16, #tpu.memory_space<vmem>>, vector<1x18x18x4xbf16>
    %11 = vector.extract_strided_slice %10 {offsets = [0, 0, 0, 0], sizes = [1, 16, 16, 4], strides = [1, 1, 1, 1]} : vector<1x18x18x4xbf16> to vector<1x16x16x4xbf16>
    %12 = vector.shape_cast %11 : vector<1x16x16x4xbf16> to vector<256x4xbf16>
    %13 = vector.extract_strided_slice %10 {offsets = [0, 0, 1, 0], sizes = [1, 16, 16, 4], strides = [1, 1, 1, 1]} : vector<1x18x18x4xbf16> to vector<1x16x16x4xbf16>
    %14 = vector.shape_cast %13 : vector<1x16x16x4xbf16> to vector<256x4xbf16>
    %15 = vector.extract_strided_slice %10 {offsets = [0, 0, 2, 0], sizes = [1, 16, 16, 4], strides = [1, 1, 1, 1]} : vector<1x18x18x4xbf16> to vector<1x16x16x4xbf16>
    %16 = vector.shape_cast %15 : vector<1x16x16x4xbf16> to vector<256x4xbf16>
    %17 = vector.extract_strided_slice %10 {offsets = [0, 1, 0, 0], sizes = [1, 16, 16, 4], strides = [1, 1, 1, 1]} : vector<1x18x18x4xbf16> to vector<1x16x16x4xbf16>
    %18 = vector.shape_cast %17 : vector<1x16x16x4xbf16> to vector<256x4xbf16>
    %19 = vector.extract_strided_slice %10 {offsets = [0, 1, 1, 0], sizes = [1, 16, 16, 4], strides = [1, 1, 1, 1]} : vector<1x18x18x4xbf16> to vector<1x16x16x4xbf16>
    %20 = vector.shape_cast %19 : vector<1x16x16x4xbf16> to vector<256x4xbf16>
    %21 = vector.extract_strided_slice %10 {offsets = [0, 1, 2, 0], sizes = [1, 16, 16, 4], strides = [1, 1, 1, 1]} : vector<1x18x18x4xbf16> to vector<1x16x16x4xbf16>
    %22 = vector.shape_cast %21 : vector<1x16x16x4xbf16> to vector<256x4xbf16>
    %23 = vector.extract_strided_slice %10 {offsets = [0, 2, 0, 0], sizes = [1, 16, 16, 4], strides = [1, 1, 1, 1]} : vector<1x18x18x4xbf16> to vector<1x16x16x4xbf16>
    %24 = vector.shape_cast %23 : vector<1x16x16x4xbf16> to vector<256x4xbf16>
    %25 = vector.extract_strided_slice %10 {offsets = [0, 2, 1, 0], sizes = [1, 16, 16, 4], strides = [1, 1, 1, 1]} : vector<1x18x18x4xbf16> to vector<1x16x16x4xbf16>
    %26 = vector.shape_cast %25 : vector<1x16x16x4xbf16> to vector<256x4xbf16>
    %27 = vector.extract_strided_slice %10 {offsets = [0, 2, 2, 0], sizes = [1, 16, 16, 4], strides = [1, 1, 1, 1]} : vector<1x18x18x4xbf16> to vector<1x16x16x4xbf16>
    %28 = vector.shape_cast %27 : vector<1x16x16x4xbf16> to vector<256x4xbf16>
    %29 = tpu.concatenate %12, %14, %16, %18, %20, %22, %24, %26, %28 in 1 : vector<256x4xbf16>, vector<256x4xbf16>, vector<256x4xbf16>, vector<256x4xbf16>, vector<256x4xbf16>, vector<256x4xbf16>, vector<256x4xbf16>, vector<256x4xbf16>, vector<256x4xbf16> -> vector<256x36xbf16>
    %c0_28 = arith.constant 0 : index
    %c0_29 = arith.constant 0 : index
    %30 = vector.load %arg2[%c0_28, %c0_29] : memref<36x8xbf16, #tpu.memory_space<vmem>>, vector<36x8xbf16>
    %cst_30 = arith.constant dense<0.000000e+00> : vector<256x8xf32>
    %31 = tpu.matmul %29, %30, %cst_30 {dimension_numbers = #tpu.dot_dimension_numbers<[1], [0], [0], [1], [0, 0, 1, 1], [], []>} : vector<256x36xbf16>, vector<36x8xbf16>, vector<256x8xf32> -> vector<256x8xf32>
    %c0_31 = arith.constant 0 : index
    %c0_32 = arith.constant 0 : index
    %32 = vector.load %arg3[%c0_31, %c0_32] : memref<1x8xf32, #tpu.memory_space<vmem>>, vector<1x8xf32>
    %33 = vector.broadcast %32 : vector<1x8xf32> to vector<256x8xf32>
    %34 = arith.mulf %31, %33 : vector<256x8xf32>
    %c0_33 = arith.constant 0 : index
    %c0_34 = arith.constant 0 : index
    %35 = vector.load %arg4[%c0_33, %c0_34] : memref<1x8xf32, #tpu.memory_space<vmem>>, vector<1x8xf32>
    %36 = vector.broadcast %35 : vector<1x8xf32> to vector<256x8xf32>
    %37 = arith.addf %34, %36 : vector<256x8xf32>
    %cst_35 = arith.constant 0.000000e+00 : f32
    %38 = vector.broadcast %cst_35 : f32 to vector<256x8xf32>
    %39 = arith.maximumf %37, %38 : vector<256x8xf32>
    %40 = arith.truncf %39 : vector<256x8xf32> to vector<256x8xbf16>
    %cst_36 = arith.constant 0.000000e+00 : bf16
    %41 = vector.broadcast %cst_36 : bf16 to vector<1x1x18x8xbf16>
    %c0_37 = arith.constant 0 : index
    %c0_38 = arith.constant 0 : index
    %c0_39 = arith.constant 0 : index
    %c0_40 = arith.constant 0 : index
    %42 = vector.load %arg14[%c0_37, %c0_38, %c0_39, %c0_40] : memref<1x18x18x8xbf16, #tpu.memory_space<vmem>>, vector<1x1x18x8xbf16>
    tpu.vector_store %arg14[%c0_37, %c0_38, %c0_39, %c0_40], %41 {strides = array<i32>} : memref<1x18x18x8xbf16, #tpu.memory_space<vmem>>, vector<1x1x18x8xbf16>,
    %cst_41 = arith.constant 0.000000e+00 : bf16
    %43 = vector.broadcast %cst_41 : bf16 to vector<1x1x18x8xbf16>
    %c0_42 = arith.constant 0 : index
    %c17_43 = arith.constant 17 : index
    %c0_44 = arith.constant 0 : index
    %c0_45 = arith.constant 0 : index
    %44 = vector.load %arg14[%c0_42, %c17_43, %c0_44, %c0_45] : memref<1x18x18x8xbf16, #tpu.memory_space<vmem>>, vector<1x1x18x8xbf16>
    tpu.vector_store %arg14[%c0_42, %c17_43, %c0_44, %c0_45], %43 {strides = array<i32>} : memref<1x18x18x8xbf16, #tpu.memory_space<vmem>>, vector<1x1x18x8xbf16>,
    %cst_46 = arith.constant 0.000000e+00 : bf16
    %45 = vector.broadcast %cst_46 : bf16 to vector<1x18x1x8xbf16>
    %c0_47 = arith.constant 0 : index
    %c0_48 = arith.constant 0 : index
    %c0_49 = arith.constant 0 : index
    %c0_50 = arith.constant 0 : index
    %46 = vector.load %arg14[%c0_47, %c0_48, %c0_49, %c0_50] : memref<1x18x18x8xbf16, #tpu.memory_space<vmem>>, vector<1x18x1x8xbf16>
    tpu.vector_store %arg14[%c0_47, %c0_48, %c0_49, %c0_50], %45 {strides = array<i32>} : memref<1x18x18x8xbf16, #tpu.memory_space<vmem>>, vector<1x18x1x8xbf16>,
    %cst_51 = arith.constant 0.000000e+00 : bf16
    %47 = vector.broadcast %cst_51 : bf16 to vector<1x18x1x8xbf16>
    %c0_52 = arith.constant 0 : index
    %c0_53 = arith.constant 0 : index
    %c17_54 = arith.constant 17 : index
    %c0_55 = arith.constant 0 : index
    %48 = vector.load %arg14[%c0_52, %c0_53, %c17_54, %c0_55] : memref<1x18x18x8xbf16, #tpu.memory_space<vmem>>, vector<1x18x1x8xbf16>
    tpu.vector_store %arg14[%c0_52, %c0_53, %c17_54, %c0_55], %47 {strides = array<i32>} : memref<1x18x18x8xbf16, #tpu.memory_space<vmem>>, vector<1x18x1x8xbf16>,
    %49 = vector.shape_cast %40 : vector<256x8xbf16> to vector<1x16x16x8xbf16>
    %c0_56 = arith.constant 0 : index
    %c1_57 = arith.constant 1 : index
    %c1_58 = arith.constant 1 : index
    %c0_59 = arith.constant 0 : index
    %50 = vector.load %arg14[%c0_56, %c1_57, %c1_58, %c0_59] : memref<1x18x18x8xbf16, #tpu.memory_space<vmem>>, vector<1x16x16x8xbf16>
    tpu.vector_store %arg14[%c0_56, %c1_57, %c1_58, %c0_59], %49 {strides = array<i32>} : memref<1x18x18x8xbf16, #tpu.memory_space<vmem>>, vector<1x16x16x8xbf16>,
    %c0_60 = arith.constant 0 : index
    %c0_61 = arith.constant 0 : index
    %c0_62 = arith.constant 0 : index
    %c0_63 = arith.constant 0 : index
    %51 = vector.load %arg14[%c0_60, %c0_61, %c0_62, %c0_63] : memref<1x18x18x8xbf16, #tpu.memory_space<vmem>>, vector<1x18x18x8xbf16>
    %52 = vector.extract_strided_slice %51 {offsets = [0, 0, 0, 0], sizes = [1, 16, 16, 8], strides = [1, 1, 1, 1]} : vector<1x18x18x8xbf16> to vector<1x16x16x8xbf16>
    %53 = vector.shape_cast %52 : vector<1x16x16x8xbf16> to vector<256x8xbf16>
    %54 = vector.extract_strided_slice %51 {offsets = [0, 0, 1, 0], sizes = [1, 16, 16, 8], strides = [1, 1, 1, 1]} : vector<1x18x18x8xbf16> to vector<1x16x16x8xbf16>
    %55 = vector.shape_cast %54 : vector<1x16x16x8xbf16> to vector<256x8xbf16>
    %56 = vector.extract_strided_slice %51 {offsets = [0, 0, 2, 0], sizes = [1, 16, 16, 8], strides = [1, 1, 1, 1]} : vector<1x18x18x8xbf16> to vector<1x16x16x8xbf16>
    %57 = vector.shape_cast %56 : vector<1x16x16x8xbf16> to vector<256x8xbf16>
    %58 = vector.extract_strided_slice %51 {offsets = [0, 1, 0, 0], sizes = [1, 16, 16, 8], strides = [1, 1, 1, 1]} : vector<1x18x18x8xbf16> to vector<1x16x16x8xbf16>
    %59 = vector.shape_cast %58 : vector<1x16x16x8xbf16> to vector<256x8xbf16>
    %60 = vector.extract_strided_slice %51 {offsets = [0, 1, 1, 0], sizes = [1, 16, 16, 8], strides = [1, 1, 1, 1]} : vector<1x18x18x8xbf16> to vector<1x16x16x8xbf16>
    %61 = vector.shape_cast %60 : vector<1x16x16x8xbf16> to vector<256x8xbf16>
    %62 = vector.extract_strided_slice %51 {offsets = [0, 1, 2, 0], sizes = [1, 16, 16, 8], strides = [1, 1, 1, 1]} : vector<1x18x18x8xbf16> to vector<1x16x16x8xbf16>
    %63 = vector.shape_cast %62 : vector<1x16x16x8xbf16> to vector<256x8xbf16>
    %64 = vector.extract_strided_slice %51 {offsets = [0, 2, 0, 0], sizes = [1, 16, 16, 8], strides = [1, 1, 1, 1]} : vector<1x18x18x8xbf16> to vector<1x16x16x8xbf16>
    %65 = vector.shape_cast %64 : vector<1x16x16x8xbf16> to vector<256x8xbf16>
    %66 = vector.extract_strided_slice %51 {offsets = [0, 2, 1, 0], sizes = [1, 16, 16, 8], strides = [1, 1, 1, 1]} : vector<1x18x18x8xbf16> to vector<1x16x16x8xbf16>
    %67 = vector.shape_cast %66 : vector<1x16x16x8xbf16> to vector<256x8xbf16>
    %68 = vector.extract_strided_slice %51 {offsets = [0, 2, 2, 0], sizes = [1, 16, 16, 8], strides = [1, 1, 1, 1]} : vector<1x18x18x8xbf16> to vector<1x16x16x8xbf16>
    %69 = vector.shape_cast %68 : vector<1x16x16x8xbf16> to vector<256x8xbf16>
    %70 = tpu.concatenate %53, %55, %57, %59, %61, %63, %65, %67, %69 in 1 : vector<256x8xbf16>, vector<256x8xbf16>, vector<256x8xbf16>, vector<256x8xbf16>, vector<256x8xbf16>, vector<256x8xbf16>, vector<256x8xbf16>, vector<256x8xbf16>, vector<256x8xbf16> -> vector<256x72xbf16>
    %c0_64 = arith.constant 0 : index
    %c0_65 = arith.constant 0 : index
    %71 = vector.load %arg5[%c0_64, %c0_65] : memref<72x8xbf16, #tpu.memory_space<vmem>>, vector<72x8xbf16>
    %cst_66 = arith.constant dense<0.000000e+00> : vector<256x8xf32>
    %72 = tpu.matmul %70, %71, %cst_66 {dimension_numbers = #tpu.dot_dimension_numbers<[1], [0], [0], [1], [0, 0, 1, 1], [], []>} : vector<256x72xbf16>, vector<72x8xbf16>, vector<256x8xf32> -> vector<256x8xf32>
    %c0_67 = arith.constant 0 : index
    %c0_68 = arith.constant 0 : index
    %73 = vector.load %arg6[%c0_67, %c0_68] : memref<1x8xf32, #tpu.memory_space<vmem>>, vector<1x8xf32>
    %74 = vector.broadcast %73 : vector<1x8xf32> to vector<256x8xf32>
    %75 = arith.addf %72, %74 : vector<256x8xf32>
    %cst_69 = arith.constant 0.000000e+00 : f32
    %76 = vector.broadcast %cst_69 : f32 to vector<256x8xf32>
    %77 = arith.maximumf %75, %76 : vector<256x8xf32>
    %78 = arith.truncf %77 : vector<256x8xf32> to vector<256x8xbf16>
    %c0_70 = arith.constant 0 : index
    %c0_71 = arith.constant 0 : index
    %79 = vector.load %arg7[%c0_70, %c0_71] : memref<8x6xbf16, #tpu.memory_space<vmem>>, vector<8x6xbf16>
    %cst_72 = arith.constant dense<0.000000e+00> : vector<256x6xf32>
    %80 = tpu.matmul %78, %79, %cst_72 {dimension_numbers = #tpu.dot_dimension_numbers<[1], [0], [0], [1], [0, 0, 1, 1], [], []>} : vector<256x8xbf16>, vector<8x6xbf16>, vector<256x6xf32> -> vector<256x6xf32>
    %c0_73 = arith.constant 0 : index
    %c0_74 = arith.constant 0 : index
    %81 = vector.load %arg8[%c0_73, %c0_74] : memref<1x6xf32, #tpu.memory_space<vmem>>, vector<1x6xf32>
    %82 = vector.broadcast %81 : vector<1x6xf32> to vector<256x6xf32>
    %83 = arith.addf %80, %82 : vector<256x6xf32>
    %84 = vector.shape_cast %77 : vector<256x8xf32> to vector<1x256x8xf32>
    %85 = vector.shape_cast %83 : vector<256x6xf32> to vector<1x256x6xf32>
    %86 = tpu.transpose %84, [0, 2, 1] : vector<1x256x8xf32> -> vector<1x8x256xf32>
    %c0_75 = arith.constant 0 : index
    %c0_76 = arith.constant 0 : index
    %c0_77 = arith.constant 0 : index
    %87 = vector.load %arg9[%c0_75, %c0_76, %c0_77] : memref<1x8x256xf32, #tpu.memory_space<vmem>>, vector<1x8x256xf32>
    tpu.vector_store %arg9[%c0_75, %c0_76, %c0_77], %86 {strides = array<i32>} : memref<1x8x256xf32, #tpu.memory_space<vmem>>, vector<1x8x256xf32>,
    %88 = tpu.transpose %85, [0, 2, 1] : vector<1x256x6xf32> -> vector<1x6x256xf32>
    %c0_78 = arith.constant 0 : index
    %c0_79 = arith.constant 0 : index
    %c0_80 = arith.constant 0 : index
    %89 = vector.load %arg10[%c0_78, %c0_79, %c0_80] : memref<1x6x256xf32, #tpu.memory_space<vmem>>, vector<1x6x256xf32>
    tpu.vector_store %arg10[%c0_78, %c0_79, %c0_80], %88 {strides = array<i32>} : memref<1x6x256xf32, #tpu.memory_space<vmem>>, vector<1x6x256xf32>,
    %cst_81 = arith.constant dense<0.000000e+00> : vector<1x6xf32>
    %90 = vector.multi_reduction <add>, %85, %cst_81 [1] : vector<1x256x6xf32> to vector<1x6xf32>
    %91 = vector.shape_cast %90 : vector<1x6xf32> to vector<1x1x6xf32>
    %cst_82 = arith.constant 2.560000e+02 : f32
    %92 = vector.broadcast %cst_82 : f32 to vector<1x1x6xf32>
    %93 = arith.divf %91, %92 : vector<1x1x6xf32>
    %c0_83 = arith.constant 0 : index
    %c0_84 = arith.constant 0 : index
    %c0_85 = arith.constant 0 : index
    %94 = vector.load %arg11[%c0_83, %c0_84, %c0_85] : memref<1x1x6xf32, #tpu.memory_space<vmem>>, vector<1x1x6xf32>
    tpu.vector_store %arg11[%c0_83, %c0_84, %c0_85], %93 {strides = array<i32>} : memref<1x1x6xf32, #tpu.memory_space<vmem>>, vector<1x1x6xf32>,
    %cst_86 = arith.constant dense<0.000000e+00> : vector<1x8xf32>
    %95 = vector.multi_reduction <add>, %84, %cst_86 [1] : vector<1x256x8xf32> to vector<1x8xf32>
    %96 = vector.shape_cast %95 : vector<1x8xf32> to vector<1x1x8xf32>
    %cst_87 = arith.constant 2.560000e+02 : f32
    %97 = vector.broadcast %cst_87 : f32 to vector<1x1x8xf32>
    %98 = arith.divf %96, %97 : vector<1x1x8xf32>
    %c0_88 = arith.constant 0 : index
    %c0_89 = arith.constant 0 : index
    %c0_90 = arith.constant 0 : index
    %99 = vector.load %arg12[%c0_88, %c0_89, %c0_90] : memref<1x1x8xf32, #tpu.memory_space<vmem>>, vector<1x1x8xf32>
    tpu.vector_store %arg12[%c0_88, %c0_89, %c0_90], %98 {strides = array<i32>} : memref<1x1x8xf32, #tpu.memory_space<vmem>>, vector<1x1x8xf32>,
    return
  }
  func.func @transform_0(%arg0: i32) -> (i32, i32, i32, i32) {
    %c0_i32 = arith.constant 0 : i32
    %c0_i32_0 = arith.constant 0 : i32
    %c0_i32_1 = arith.constant 0 : i32
    %c0_i32_2 = arith.constant 0 : i32
    return %arg0, %c0_i32, %c0_i32_0, %c0_i32_1 : i32, i32, i32, i32
  }
  func.func @transform_1(%arg0: i32) -> (i32, i32) {
    %c0_i32 = arith.constant 0 : i32
    %c0_i32_0 = arith.constant 0 : i32
    %c0_i32_1 = arith.constant 0 : i32
    return %c0_i32, %c0_i32_0 : i32, i32
  }
  func.func @transform_2(%arg0: i32) -> (i32, i32) {
    %c0_i32 = arith.constant 0 : i32
    %c0_i32_0 = arith.constant 0 : i32
    %c0_i32_1 = arith.constant 0 : i32
    return %c0_i32, %c0_i32_0 : i32, i32
  }
  func.func @transform_3(%arg0: i32) -> (i32, i32) {
    %c0_i32 = arith.constant 0 : i32
    %c0_i32_0 = arith.constant 0 : i32
    %c0_i32_1 = arith.constant 0 : i32
    return %c0_i32, %c0_i32_0 : i32, i32
  }
  func.func @transform_4(%arg0: i32) -> (i32, i32) {
    %c0_i32 = arith.constant 0 : i32
    %c0_i32_0 = arith.constant 0 : i32
    %c0_i32_1 = arith.constant 0 : i32
    return %c0_i32, %c0_i32_0 : i32, i32
  }
  func.func @transform_5(%arg0: i32) -> (i32, i32) {
    %c0_i32 = arith.constant 0 : i32
    %c0_i32_0 = arith.constant 0 : i32
    %c0_i32_1 = arith.constant 0 : i32
    return %c0_i32, %c0_i32_0 : i32, i32
  }
  func.func @transform_6(%arg0: i32) -> (i32, i32) {
    %c0_i32 = arith.constant 0 : i32
    %c0_i32_0 = arith.constant 0 : i32
    %c0_i32_1 = arith.constant 0 : i32
    return %c0_i32, %c0_i32_0 : i32, i32
  }
  func.func @transform_7(%arg0: i32) -> (i32, i32) {
    %c0_i32 = arith.constant 0 : i32
    %c0_i32_0 = arith.constant 0 : i32
    %c0_i32_1 = arith.constant 0 : i32
    return %c0_i32, %c0_i32_0 : i32, i32
  }
  func.func @transform_8(%arg0: i32) -> (i32, i32, i32) {
    %c0_i32 = arith.constant 0 : i32
    %c0_i32_0 = arith.constant 0 : i32
    %c0_i32_1 = arith.constant 0 : i32
    return %arg0, %c0_i32, %c0_i32_0 : i32, i32, i32
  }
  func.func @transform_9(%arg0: i32) -> (i32, i32, i32) {
    %c0_i32 = arith.constant 0 : i32
    %c0_i32_0 = arith.constant 0 : i32
    %c0_i32_1 = arith.constant 0 : i32
    return %arg0, %c0_i32, %c0_i32_0 : i32, i32, i32
  }
  func.func @transform_10(%arg0: i32) -> (i32, i32, i32) {
    %c0_i32 = arith.constant 0 : i32
    %c0_i32_0 = arith.constant 0 : i32
    %c0_i32_1 = arith.constant 0 : i32
    return %arg0, %c0_i32, %c0_i32_0 : i32, i32, i32
  }
  func.func @transform_11(%arg0: i32) -> (i32, i32, i32) {
    %c0_i32 = arith.constant 0 : i32
    %c0_i32_0 = arith.constant 0 : i32
    %c0_i32_1 = arith.constant 0 : i32
    return %arg0, %c0_i32, %c0_i32_0 : i32, i32, i32
  }
}

</mosaic_0001>

<bundles_post_ra>
// kernel: exit_module_forward.2
= control target key start
LH: loop header
LB: loop body
LE: loop exit
PB: predicated region body
PF: predicated region fallthrough
CT: control target
= control target key end

     0   :  { %s2841_s12 = smov 0   ;;  %s4218_s0 = inlined_call_operand.vmem [shape: bf16[2,16,16,4], index: 0, kind: input, shape index: {}]   ;;  %s4219_s1 = inlined_call_operand.vmem [shape: bf16[36,8], index: 1, kind: input, shape index: {}]   ;;  %s4220_s2 = inlined_call_operand.vmem [shape: f32[2,1,8], index: 2, kind: output, shape index: {0}]   ;;  %s4221_s3 = inlined_call_operand.vmem [shape: f32[2,1,8], index: 3, kind: output, shape index: {1}]  }
   0x1 LB: > { %s2601_s13 = sadd.s32 4294967295, %s2810_s12   ;;  %p2605_p0 = scmp.ge.s32.totalorder %s2810_s12, 1  ;;  %s2810_s12 = sphi %s2841_s12, %s14_s12  }
   0x2   : > { %p140_p1 = scmp.lt.s32.totalorder %s2810_s12, 3 }
   0x4   : > { %p141_p2 = pnand %p2605_p0, %p140_p1 }
   0x5   : > { %vm177_vm0 = vcmask (!%p141_p2), 27648   ;;  %vm180_vm1 = vcmask (!%p141_p2), 24576   ;;  %vm187_vm2 = vsmask.f32 (!%p141_p2), 256  ;;  %v2812_v0 = vmov (!%p141_p2), 0   ;;  %p165_p3 = scmp.lt.s32.totalorder (!%p141_p2), %s2601_s13, 1 }
   0x6   : > { %144 = sbr.rel (%p141_p2) target bundleno = 643 (0x283), region = 28  ;;  %178 = vst.msk [vmem:[#allocation2] sm:$0xf] (!%p141_p2), %vm177_vm0, %v2812_v0  ;;  %179 = vst.msk [vmem:[#allocation2 + $0x4] sm:$0xf] (!%p141_p2), %vm177_vm0, %v2812_v0  ;;  %vm1257_vm6 = vcmask (!%p141_p2), 1042432  }
   0x7   : > { %181 = vst.msk [vmem:[#allocation2 + $0x8] sm:$0x1] (!%p141_p2), %vm180_vm1, %v2812_v0  ;;  %vm2854_vm3 = vmand (!%p141_p2), %vm180_vm1, %vm187_vm2  ;;  %vm243_vm4 = vsmask.f32 (!%p141_p2), 7938  ;;  %v192_v2 = vld [vmem:[#allocation2 + $0xc] sm:$0x1] (!%p141_p2) }
   0x8   : > { %183 = vst.msk [vmem:[#allocation2 + $0xcc] sm:$0xf] (!%p141_p2), %vm177_vm0, %v2812_v0  ;;  %184 = vst.msk [vmem:[#allocation2 + $0xd0] sm:$0xf] (!%p141_p2), %vm177_vm0, %v2812_v0  ;;  %v195_v3 = vld [vmem:[#allocation2 + $0x18] sm:$0x1] (!%p141_p2) }
   0x9   : > { %185 = vst.msk [vmem:[#allocation2 + $0xd4] sm:$0x1] (!%p141_p2), %vm180_vm1, %v2812_v0  ;;  %v193_v4 = vsel (!%p141_p2), %vm2854_vm3, 0, %v192_v2  ;;  %v196_v5 = vsel (!%p141_p2), %vm2854_vm3, 0, %v195_v3  ;;  %v198_v6 = vld [vmem:[#allocation2 + $0x24] sm:$0x1] (!%p141_p2)  ;;  %vm2871_vm5 = vmand (!%p141_p2), %vm180_vm1, %vm243_vm4 }
   0xa   : > { %194 = vst [vmem:[#allocation2 + $0xc] sm:$0x1] (!%p141_p2), %v193_v4  ;;  %197 = vst [vmem:[#allocation2 + $0x18] sm:$0x1] (!%p141_p2), %v196_v5  ;;  %v199_v7 = vsel (!%p141_p2), %vm2854_vm3, 0, %v198_v6  ;;  %vm1258_vm7 = vcmask (!%p141_p2), 1046532  }
   0xb   : > { %200 = vst [vmem:[#allocation2 + $0x24] sm:$0x1] (!%p141_p2), %v199_v7  ;;  %v248_v9 = vld [vmem:[#allocation2 + $0x14] sm:$0x1] (!%p141_p2)  ;;  %v251_v10 = vld [vmem:[#allocation2 + $0x20] sm:$0x1] (!%p141_p2)  ;;  %vm2901_vm9 = vmand (!%p141_p2), %vm177_vm0, %vm243_vm4 }
   0xc   : > { %vm331_vm8 = vsmask.f32 (!%p141_p2), 4368  ;;  %v249_v11 = vsel (!%p141_p2), %vm2871_vm5, 0, %v248_v9  ;;  %v252_v12 = vsel (!%p141_p2), %vm2871_vm5, 0, %v251_v10  ;;  %vm822_vm11 = vsmask.f32 (!%p141_p2), 3328  ;;  %vm2922_vm13 = vmor (!%p141_p2), %vm1257_vm6, %vm1258_vm7 }
   0xd   : > { %s4235_s13 = smov (!%p165_p3, %s2601_s13), 1  ;;  %250 = vst [vmem:[#allocation2 + $0x14] sm:$0x1] %v249_v11  ;;  %253 = vst [vmem:[#allocation2 + $0x20] sm:$0x1] %v252_v12  ;;  %s2813_s18 = smov 8  }
   0xe   : > { %s2701_s14 = sshll.u32 %s4235_s13, 7  ;;  %v189_v16 = vld [vmem:[#allocation2] sm:$0x1]  ;;  %v245_v17 = vld [vmem:[#allocation2 + $0x8] sm:$0x1]  ;;  %vm2907_vm10 = vmor %vm187_vm2, %vm331_vm8  ;;  %s2814_s19 = smov 12  }
   0xf   : > { %s2879_s17 = scalar_lea.vmem %s4218_s0, %s2701_s14  ;;  %v2888_v18 = vld [vmem:[#allocation2 + $0x4] sm:$0xf]  ;;  %v190_v19 = vsel %vm2854_vm3, 0, %v189_v16  ;;  %v246_v20 = vsel %vm2871_vm5, 0, %v245_v17  ;;  %vm823_vm12 = vsmask.f32 7440  ;;  %s172_s7 = scalar_lea.vmem %s4220_s2, %s4235_s13 }
  0x10   : > { %v299_v13 = vld [vmem:[%s2879_s17] sm:$0xf]  ;;  %v300_v14 = vld [vmem:[%s2879_s17 + $0x4] sm:$0xf]  ;;  %v301_v15 = vld [vmem:[%s2879_s17 + $0x8] sm:$0xf]  ;;  %s175_s10 = scalar_lea.vmem %s4221_s3, %s4235_s13 }
  0x11   : > { %v1262_v21 = vrot.slane %v2888_v18, 5  ;;  %v334_v22 = vshrl.u32 %v299_v13, 16  ;;  %v302_v23 = vld [vmem:[%s2879_s17 + $0xc] sm:$0xf]  ;;  %191 = vst [vmem:[#allocation2] sm:$0x1] %v190_v19  ;;  %vm2978_vm14 = vmor %vm822_vm11, %vm823_vm12 }
  0x12   : > { %247 = vst [vmem:[#allocation2 + $0x8] sm:$0x1] %v246_v20  ;;  %v337_v24 = vshll.u32 %v299_v13, 16  ;;  %v342_v25 = vshrl.u32 %v300_v14, 16  ;;  %v345_v26 = vshll.u32 %v300_v14, 16  ;;  %v351_v27 = vshrl.u32 %v301_v15, 16 }
  0x13   : > { %v303_v28 = vld [vmem:[%s2879_s17 + $0x10] sm:$0xf]  ;;  %v1264_v29 = vrot.slane %v1262_v21, 4  ;;  %v336_v30 = vrot.slane %v334_v22, 7  ;;  %v656_v31 = vld [vmem:[#allocation2 + $0xc] sm:$0xf] }
  0x14   : > { %v354_v32 = vshll.u32 %v301_v15, 16  ;;  %v359_v33 = vshrl.u32 %v302_v23, 16  ;;  %v344_v35 = vrot.slane %v342_v25, 7  ;;  %v353_v36 = vrot.slane %v351_v27, 7  ;;  %v663_v38 = vld [vmem:[#allocation2 + $0x18] sm:$0xf] }
  0x15   : > { %v362_v37 = vshll.u32 %v302_v23, 16  ;;  %v368_v39 = vshrl.u32 %v303_v28, 16  ;;  %v339_v41 = vor.u32 %v337_v24, %v336_v30  ;;  %v340_v42 = vrot.slane %v336_v30, 4  ;;  %v304_v44 = vld [vmem:[%s2879_s17 + $0x14] sm:$0xf]  ;;  %s2815_s20 = smov 24  }
  0x16   : > { %v361_v43 = vrot.slane %v359_v33, 7  ;;  %v371_v45 = vshll.u32 %v303_v28, 16  ;;  %v347_v46 = vor.u32 %v345_v26, %v344_v35  ;;  %v349_v47 = vrot.slane %v344_v35, 4  ;;  %v670_v58 = vld [vmem:[#allocation2 + $0x24] sm:$0xf]  ;;  %s2816_s21 = smov 4  }
  0x17   : > { %v356_v48 = vor.u32 %v354_v32, %v353_v36  ;;  %v357_v49 = vrot.slane %v353_v36, 4  ;;  %v657_v50 = vsel %vm2901_vm9, %v339_v41, %v656_v31  ;;  %v370_v53 = vrot.slane %v368_v39, 7  ;;  %v660_v7 = vld [vmem:[#allocation2 + $0x14] sm:$0x1]  ;;  %v667_v13 = vld [vmem:[#allocation2 + $0x20] sm:$0x1] }
  0x18   : > { %v364_v51 = vor.u32 %v362_v37, %v361_v43  ;;  %v366_v52 = vrot.slane %v361_v43, 4  ;;  %v348_v54 = vsel %vm2907_vm10, %v340_v42, %v347_v46  ;;  %658 = vst [vmem:[#allocation2 + $0xc] sm:$0xf] %v657_v50  ;;  %v376_v56 = vshrl.u32 %v304_v44, 16  ;;  %v2918_v59 = vld [vmem:[#allocation2] sm:$0xf] }
  0x19   : > { %v664_v55 = vsel %vm2901_vm9, %v356_v48, %v663_v38  ;;  %v379_v57 = vshll.u32 %v304_v44, 16  ;;  %v770_v60 = vld [vmem:[#allocation2 + $0x8] sm:$0x1]  ;;  %659 = vst.msk [vmem:[#allocation2 + $0x10] sm:$0xf] %vm177_vm0, %v348_v54  ;;  %v373_v63 = vor.u32 %v371_v45, %v370_v53  ;;  %v374_v0 = vrot.slane %v370_v53, 4 }
  0x1a   : > { %v365_v62 = vsel %vm2907_vm10, %v357_v49, %v364_v51  ;;  %665 = vst [vmem:[#allocation2 + $0x18] sm:$0xf] %v664_v55  ;;  %v835_v2 = vshll.u32 %v2888_v18, 16  ;;  %v845_v3 = vshll.u32 %v770_v60, 16  ;;  %v2608_v4 = vrot.slane %v2918_v59, 9  ;;  %s2817_s24 = smov 20  }
  0x1b   : > { %v1265_v5 = vrot.slane %v770_v60, 5  ;;  %666 = vst.msk [vmem:[#allocation2 + $0x1c] sm:$0xf] %vm177_vm0, %v365_v62  ;;  %v2932_v6 = vrot.slane %v376_v56, 7  ;;  %v671_v9 = vsel %vm2901_vm9, %v373_v63, %v670_v58  ;;  %v826_v10 = vshrl.u32 %v2918_v59, 16  ;;  %s2818_s25 = smov 32  }
  0x1c   : > { %v829_v11 = vshll.u32 %v2918_v59, 16  ;;  %v2938_v12 = vrot.slane %v835_v2, 5  ;;  %v1263_v14 = vsel %vm2922_vm13, %v2608_v4, %v1262_v21  ;;  %672 = vst [vmem:[#allocation2 + $0x24] sm:$0xf] %v671_v9  ;;  %v254_v19 = vld [vmem:[#allocation2 + $0x2c] sm:$0x1]  ;;  %v661_v21 = vsel %vm2854_vm3, %v349_v47, %v660_v7 }
  0x1d   : > { %v1266_v15 = vsel %vm2922_vm13, %v1264_v29, %v1265_v5  ;;  %v381_v16 = vor.u32 %v379_v57, %v2932_v6  ;;  %v383_v17 = vrot.slane %v2932_v6, 4  ;;  %v201_v20 = vld [vmem:[#allocation2 + $0x30] sm:$0x1]  ;;  %v828_v23 = vrot.slane %v826_v10, 4  ;;  %662 = vst [vmem:[#allocation2 + $0x14] sm:$0x1] %v661_v21 }
  0x1e   : > { %v2658_v22 = vcombine.low %v1263_v14, %v1266_v15  ;;  %v831_v24 = vrot.slane %v829_v11, 5  ;;  %v839_v25 = vshrl.u32 %v2888_v18, 16  ;;  %v847_v27 = vrot.slane %v845_v3, 5  ;;  %s2819_s28 = smov 16   ;;  %s2820_s29 = smov 28  }
  0x1f   : > { %v382_v26 = vsel %vm2907_vm10, %v374_v0, %v381_v16  ;;  %v668_v28 = vsel %vm2854_vm3, %v366_v52, %v667_v13  ;;  %v771_v29 = vld [vmem:[#allocation2 + $0xc] sm:$0xf]  ;;  %v255_v32 = vsel %vm2871_vm5, 0, %v254_v19  ;;  %v202_v33 = vsel %vm2854_vm3, 0, %v201_v20 }
  0x20   : > { %1616 = vrot.lane.b32.xlu1 %v2658_v22, %s2813_s18  ;;  %673 = vst.msk [vmem:[#allocation2 + $0x28] sm:$0xf] %vm177_vm0, %v382_v26  ;;  %v832_v30 = vor.u32 %v831_v24, %v828_v23  ;;  %v841_v31 = vrot.slane %v839_v25, 4  ;;  %669 = vst [vmem:[#allocation2 + $0x20] sm:$0x1] %v668_v28  ;;  %v850_v36 = vshrl.u32 %v771_v29, 16  ;;  %v2626_v39 = vcombine.low %v2918_v59, %v2888_v18 }
  0x21   : > { %v2961_v35 = vld [vmem:[#allocation2 + $0x10] sm:$0xf]  ;;  %v853_v37 = vshll.u32 %v771_v29, 16  ;;  %v774_v38 = vld [vmem:[#allocation2 + $0x18] sm:$0xf]  ;;  %v2609_v58 = vrot.slane %v771_v29, 9 }
  0x22   : > { %256 = vst [vmem:[#allocation2 + $0x2c] sm:$0x1] %v255_v32  ;;  %203 = vst [vmem:[#allocation2 + $0x30] sm:$0x1] %v202_v33  ;;  %v859_v41 = vshll.u32 %v2961_v35, 16  ;;  %v863_v42 = vshrl.u32 %v2961_v35, 16  ;;  %v2968_v43 = vcombine.low %v771_v29, %v2961_v35  ;;  %v842_v55 = vor.u32 %v841_v31, %v2938_v12 }
  0x23   : > { %v775_v44 = vld [vmem:[#allocation2 + $0x1c] sm:$0xf]  ;;  %v874_v45 = vshrl.u32 %v774_v38, 16  ;;  %v2970_v46 = vrot.slane %v850_v36, 4  ;;  %v2972_v47 = vrot.slane %v853_v37, 5  ;;  %v877_v52 = vshll.u32 %v774_v38, 16 }
  0x24   : > { %v887_v48 = vshrl.u32 %v775_v44, 16  ;;  %v2974_v49 = vcombine.low %v774_v38, %v775_v44  ;;  %v2982_v51 = vrot.slane %v863_v42, 4  ;;  %1651 = vrot.lane.b32.xlu0 %v2968_v43, %s2814_s19  ;;  %v777_v53 = vld [vmem:[#allocation2 + $0x24] sm:$0xf]  ;;  %v833_v54 = vrot.slane %v832_v30, 4 }
  0x25   : > { %v898_v56 = vshrl.u32 %v777_v53, 16  ;;  %v901_v57 = vshll.u32 %v777_v53, 16  ;;  %v1269_v60 = vrot.slane %v2961_v35, 5  ;;  %v843_v63 = vrot.slane %v842_v55, 4  ;;  %v2993_v4 = vld [vmem:[#allocation2 + $0x14] sm:$0x1] }
  0x26   : > { %1653 = vrot.lane.b32.xlu1 %v2974_v49, %s2814_s19  ;;  %v838_v62 = vsel %vm2978_vm14, %v833_v54, %v2938_v12  ;;  %v2610_v0 = vrot.slane %v774_v38, 9  ;;  %v1276_v2 = vrot.slane %v775_v44, 5  ;;  %v876_v9 = vrot.slane %v874_v45, 4 }
  0x27   : > { %v778_v3 = vld [vmem:[#allocation2 + $0x28] sm:$0xf]  ;;  %v1270_v5 = vsel %vm2922_vm13, %v2609_v58, %v1269_v60  ;;  %v1271_v7 = vrot.slane %v1269_v60, 4  ;;  %v856_v10 = vor.u32 %v2972_v47, %v2970_v46  ;;  %v848_v13 = vsel %vm2978_vm14, %v843_v63, %v847_v27  ;;  %v776_v15 = vld [vmem:[#allocation2 + $0x20] sm:$0x1] }
  0x28   : > { %1756 = vrot.lane.b32.xlu0 %v2974_v49, %s2815_s20  ;;  %v911_v11 = vshrl.u32 %v778_v3, 16  ;;  %v3001_v12 = vcombine.low %v777_v53, %v778_v3  ;;  %v1272_v14 = vrot.slane %v2993_v4, 5  ;;  %v2642_v19 = vcombine.low %v838_v62, %v848_v13  ;;  %v305_v47 = vld [vmem:[%s2879_s17 + $0x18] sm:$0xf] }
  0x29   : > { %v674_v16 = vld [vmem:[#allocation2 + $0x2c] sm:$0x1]  ;;  %v1277_v20 = vsel %vm2922_vm13, %v2610_v0, %v1276_v2  ;;  %v1278_v22 = vrot.slane %v1276_v2, 4  ;;  %v1279_v23 = vrot.slane %v776_v15, 5  ;;  %v879_v25 = vrot.slane %v877_v52, 5 }
  0x2a   : > { %1758 = vrot.lane.b32.xlu1 %v3001_v12, %s2815_s20  ;;  %v1273_v24 = vsel %vm2922_vm13, %v1271_v7, %v1272_v14  ;;  %v883_v26 = vshll.u32 %v775_v44, 16  ;;  %v889_v21 = vrot.slane %v887_v48, 4  ;;  %v893_v29 = vshll.u32 %v776_v15, 16  ;;  %v2794_v48 = vld [vmem:[%s4219_s1] sm:$0xff]   ;;  %v306_v7 = vld [vmem:[%s2879_s17 + $0x1c] sm:$0xf] }
  0x2b   : > { %v2659_v27 = vcombine.low %v1270_v5, %v1273_v24  ;;  %v1280_v28 = vsel %vm2922_vm13, %v1278_v22, %v1279_v23  ;;  %v675_v30 = vsel %vm2854_vm3, %v383_v17, %v674_v16  ;;  %v880_v32 = vor.u32 %v879_v25, %v876_v9  ;;  %2721 = vmatprep.subr.bf16.mxu0 %v2794_v48  ;;  %v677_v9 = vld [vmem:[#allocation2 + $0x30] sm:$0xf]  ;;  %v204_v16 = vld [vmem:[#allocation2 + $0x3c] sm:$0x1]  ;;  %v308_v24 = vld [vmem:[%s2879_s17 + $0x24] sm:$0xf] }
  0x2c   : > { %1536 = vrot.lane.b32.xlu0 %v2642_v19, %s2816_s21  ;;  %v3019_v31 = vcombine.low %v1277_v20, %v1280_v28  ;;  %v885_v33 = vrot.slane %v883_v26, 5  ;;  %676 = vst [vmem:[#allocation2 + $0x2c] sm:$0x1] %v675_v30  ;;  %v2611_v36 = vrot.slane %v777_v53, 9  ;;  %v895_v37 = vrot.slane %v893_v29, 5  ;;  %2722 = vmatpush3.bf16.msra.mxu0 %v2794_v48  ;;  %v2795_v29 = vld [vmem:[%s4219_s1 + $0x8] sm:$0xff]  }
  0x2d   : > { %v1283_v38 = vrot.slane %v778_v3, 5  ;;  %v900_v42 = vrot.slane %v898_v56, 4  ;;  %v903_v44 = vrot.slane %v901_v57, 5  ;;  %v881_v6 = vrot.slane %v880_v32, 4  ;;  %2759 = vmatprep.subr.bf16.mxu1 %v2794_v48  ;;  %v3047_v19 = vld [vmem:[%s2879_s17 + $0x20] sm:$0xf]  ;;  %2723 = vmatprep.subr.bf16.mxu0 %v2795_v29 }
  0x2e   : > { %1618 = vrot.lane.b32.xlu1 %v2659_v27, %s2813_s18  ;;  %v890_v45 = vor.u32 %v889_v21, %v885_v33  ;;  %v907_v46 = vshll.u32 %v778_v3, 16  ;;  %v913_v17 = vrot.slane %v911_v11, 4  ;;  %v857_v55 = vrot.slane %v856_v10, 4  ;;  %2762 = vmatpush3.bf16.msra.mxu1 %v2794_v48  ;;  %v260_v28 = vld [vmem:[#allocation2 + $0x44] sm:$0x1] }
  0x2f   : > { %v1284_v52 = vsel %vm2922_vm13, %v2611_v36, %v1283_v38  ;;  %v1285_v54 = vrot.slane %v1283_v38, 4  ;;  %v904_v53 = vor.u32 %v903_v44, %v900_v42  ;;  %v886_v56 = vsel %vm2978_vm14, %v881_v6, %v885_v33  ;;  %v207_v6 = vld [vmem:[#allocation2 + $0x48] sm:$0x1]  ;;  %2760 = vmatprep.subr.bf16.mxu1 %v2795_v29 }
  0x30   : > { %1721 = vrot.lane.b32.xlu0 %v2659_v27, %s2817_s24  ;;  %v891_v57 = vrot.slane %v890_v45, 4  ;;  %v909_v58 = vrot.slane %v907_v46, 5  ;;  %v861_v60 = vrot.slane %v859_v41, 5  ;;  %v869_v63 = vshll.u32 %v2993_v4, 16  ;;  %v257_v4 = vld [vmem:[#allocation2 + $0x38] sm:$0x1]  ;;  %2724 = vmatpush3.bf16.msra.mxu0 %v2795_v29 }
  0x31   : > { %v905_v62 = vrot.slane %v904_v53, 4  ;;  %v385_v0 = vshrl.u32 %v305_v47, 16  ;;  %v388_v2 = vshll.u32 %v305_v47, 16  ;;  %v393_v21 = vshrl.u32 %v306_v7, 16  ;;  %v309_v48 = vld [vmem:[%s2879_s17 + $0x28] sm:$0xf] }
  0x32   : > { %1723 = vrot.lane.b32.xlu1 %v3019_v31, %s2817_s24  ;;  %v896_v3 = vsel %vm2978_vm14, %v891_v57, %v895_v37  ;;  %v914_v5 = vor.u32 %v913_v17, %v909_v58  ;;  %v862_v35 = vsel %vm2978_vm14, %v857_v55, %v861_v60  ;;  %v866_v41 = vor.u32 %v2982_v51, %v861_v60  ;;  %v263_v57 = vld [vmem:[#allocation2 + $0x50] sm:$0x1] }
  0x33   : > { %v3042_v10 = vcombine.low %v886_v56, %v896_v3  ;;  %v779_v11 = vld [vmem:[#allocation2 + $0x2c] sm:$0x1]  ;;  %v910_v13 = vsel %vm2978_vm14, %v905_v62, %v909_v58  ;;  %v871_v14 = vrot.slane %v869_v63, 5  ;;  %v387_v15 = vrot.slane %v385_v0, 7  ;;  %2763 = vmatpush3.bf16.msra.mxu1 %v2795_v29  ;;  %v210_v0 = vld [vmem:[#allocation2 + $0x54] sm:$0x1] }
  0x34   : > { %1826 = vrot.lane.b32.xlu0 %v3019_v31, %s2818_s25  ;;  %v1286_v51 = vrot.slane %v779_v11, 5  ;;  %v915_v20 = vrot.slane %v914_v5, 4  ;;  %v917_v22 = vshll.u32 %v779_v11, 16  ;;  %v867_v23 = vrot.slane %v866_v41, 4  ;;  %v310_v56 = vld [vmem:[%s2879_s17 + $0x2c] sm:$0xf] }
  0x35   : > { %v390_v25 = vor.u32 %v388_v2, %v387_v15  ;;  %v391_v26 = vrot.slane %v387_v15, 4  ;;  %v396_v27 = vshll.u32 %v306_v7, 16  ;;  %v258_v36 = vsel %vm2871_vm5, 0, %v257_v4  ;;  %v3090_v41 = vld [vmem:[%s2879_s17 + $0x30] sm:$0xf] }
  0x36   : > { %1688 = vrot.lane.b32.xlu1 %v3042_v10, %s2819_s28  ;;  %v1287_v30 = vsel %vm2922_vm13, %v1285_v54, %v1286_v51  ;;  %v919_v32 = vrot.slane %v917_v22, 5  ;;  %v872_v33 = vsel %vm2978_vm14, %v867_v23, %v871_v14  ;;  %v395_v42 = vrot.slane %v393_v21, 7  ;;  %259 = vst [vmem:[#allocation2 + $0x38] sm:$0x1] %v258_v36 }
  0x37   : > { %v3063_v37 = vcombine.low %v1284_v52, %v1287_v30  ;;  %v3065_v38 = vcombine.low %v862_v35, %v872_v33  ;;  %v678_v44 = vsel %vm2901_vm9, %v390_v25, %v677_v9  ;;  %v205_v46 = vsel %vm2854_vm3, 0, %v204_v16  ;;  %v312_v16 = vld [vmem:[%s2879_s17 + $0x34] sm:$0xf] }
  0x38   : > { %v920_v45 = vsel %vm2978_vm14, %v915_v20, %v919_v32  ;;  %679 = vst [vmem:[#allocation2 + $0x30] sm:$0xf] %v678_v44  ;;  %v402_v17 = vshrl.u32 %v3047_v19, 16  ;;  %v405_v47 = vshll.u32 %v3047_v19, 16  ;;  %v398_v54 = vor.u32 %v396_v27, %v395_v42  ;;  %206 = vst [vmem:[#allocation2 + $0x3c] sm:$0x1] %v205_v46 }
  0x39   : > { %1828 = vrot.lane.b32.xlu0 %v3063_v37, %s2818_s25  ;;  %v3078_v52 = vcombine.low %v910_v13, %v920_v45  ;;  %v400_v53 = vrot.slane %v395_v42, 4  ;;  %v410_v55 = vshrl.u32 %v308_v24, 16  ;;  %v413_v60 = vshll.u32 %v308_v24, 16 }
  0x3a   : > { %v404_v58 = vrot.slane %v402_v17, 7  ;;  %v261_v62 = vsel %vm2871_vm5, 0, %v260_v28  ;;  %v208_v63 = vsel %vm2854_vm3, 0, %v207_v6  ;;  %v399_v2 = vsel %vm2907_vm10, %v391_v26, %v398_v54  ;;  %v266_v6 = vld [vmem:[#allocation2 + $0x5c] sm:$0x1] }
  0x3b   : > { %1793 = vrot.lane.b32.xlu1 %v3078_v52, %s2820_s29  ;;  %v412_v3 = vrot.slane %v410_v55, 7  ;;  %262 = vst [vmem:[#allocation2 + $0x44] sm:$0x1] %v261_v62  ;;  %209 = vst [vmem:[#allocation2 + $0x48] sm:$0x1] %v208_v63  ;;  %v419_v5 = vshrl.u32 %v309_v48, 16 }
  0x3c   : > { %v422_v35 = vshll.u32 %v309_v48, 16  ;;  %680 = vst.msk [vmem:[#allocation2 + $0x34] sm:$0xf] %vm177_vm0, %v399_v2  ;;  %v408_v7 = vrot.slane %v404_v58, 4  ;;  %v427_v9 = vshrl.u32 %v310_v56, 16  ;;  %v430_v4 = vshll.u32 %v310_v56, 16 }
  0x3d   : > { %1538 = vrot.lane.b32.xlu0 %v3065_v38, %s2816_s21  ;;  %v407_v11 = vor.u32 %v405_v47, %v404_v58  ;;  %v415_v13 = vor.u32 %v413_v60, %v412_v3  ;;  %v421_v14 = vrot.slane %v419_v5, 7  ;;  %v264_v15 = vsel %vm2871_vm5, 0, %v263_v57  ;;  %v681_v19 = vld [vmem:[#allocation2 + $0x38] sm:$0x1] }
  0x3e   : > { %v417_v51 = vrot.slane %v412_v3, 4  ;;  %v429_v20 = vrot.slane %v427_v9, 7  ;;  %265 = vst [vmem:[#allocation2 + $0x50] sm:$0x1] %v264_v15  ;;  %v211_v22 = vsel %vm2854_vm3, 0, %v210_v0  ;;  %v436_v23 = vshrl.u32 %v3090_v41, 16 }
  0x3f   : > { %1540 = vrot.lane.b32.xlu1 %v3042_v10, %s2816_s21  ;;  %v3103_v24 = vld [vmem:[#allocation2 + $0x30] sm:$0xf]  ;;  %v682_v25 = vsel %vm2854_vm3, %v400_v53, %v681_v19  ;;  %v416_v26 = vsel %vm2907_vm10, %v408_v7, %v415_v13  ;;  %v424_v21 = vor.u32 %v422_v35, %v421_v14  ;;  %v425_v27 = vrot.slane %v421_v14, 4  ;;  %212 = vst [vmem:[#allocation2 + $0x54] sm:$0x1] %v211_v22 }
  0x40   : > { %v922_v28 = vshrl.u32 %v3103_v24, 16  ;;  %v925_v29 = vshll.u32 %v3103_v24, 16  ;;  %683 = vst [vmem:[#allocation2 + $0x38] sm:$0x1] %v682_v25  ;;  %v684_v30 = vld [vmem:[#allocation2 + $0x3c] sm:$0xf]  ;;  %v432_v32 = vor.u32 %v430_v4, %v429_v20 }
  0x41   : > { %687 = vst.msk [vmem:[#allocation2 + $0x40] sm:$0xf] %vm177_vm0, %v416_v26  ;;  %1686 = vrot.lane.b32.xlu0 %v3065_v38, %s2819_s28  ;;  %v685_v33 = vsel %vm2901_vm9, %v407_v11, %v684_v30  ;;  %v434_v36 = vrot.slane %v429_v20, 4  ;;  %v3116_v42 = vrot.slane %v436_v23, 7  ;;  %v444_v44 = vshrl.u32 %v312_v16, 16 }
  0x42   : > { %v924_v45 = vrot.slane %v922_v28, 4  ;;  %v927_v46 = vrot.slane %v925_v29, 5  ;;  %686 = vst [vmem:[#allocation2 + $0x3c] sm:$0xf] %v685_v33  ;;  %v688_v17 = vld [vmem:[#allocation2 + $0x44] sm:$0x1]  ;;  %v433_v47 = vsel %vm2907_vm10, %v425_v27, %v432_v32 }
  0x43   : > { %v691_v48 = vld [vmem:[#allocation2 + $0x48] sm:$0xf]  ;;  %1542 = vrot.lane.b32.xlu1 %v3078_v52, %s2816_s21  ;;  %v781_v38 = vld [vmem:[#allocation2 + $0x34] sm:$0xf]  ;;  %v689_v54 = vsel %vm2854_vm3, %v417_v51, %v688_v17  ;;  %694 = vst.msk [vmem:[#allocation2 + $0x4c] sm:$0xf] %vm177_vm0, %v433_v47 }
  0x44   : > { %v692_v53 = vsel %vm2901_vm9, %v424_v21, %v691_v48  ;;  %v935_v55 = vshrl.u32 %v781_v38, 16  ;;  %v928_v56 = vor.u32 %v927_v46, %v924_v45  ;;  %v931_v57 = vshll.u32 %v781_v38, 16  ;;  %690 = vst [vmem:[#allocation2 + $0x44] sm:$0x1] %v689_v54 }
  0x45   : > { %693 = vst [vmem:[#allocation2 + $0x48] sm:$0xf] %v692_v53  ;;  %v442_v58 = vrot.slane %v3116_v42, 4  ;;  %1791 = vrot.lane.b32.xlu0 %v3042_v10, %s2820_s29  ;;  %v1290_v60 = vrot.slane %v781_v38, 5  ;;  %v695_v62 = vld [vmem:[#allocation2 + $0x50] sm:$0x1]  ;;  %v3139_v10 = vcombine.low %v3103_v24, %v781_v38 }
  0x46   : > { %v3130_v63 = vrot.slane %v444_v44, 7  ;;  %v447_v0 = vshll.u32 %v312_v16, 16  ;;  %v267_v2 = vsel %vm2871_vm5, 0, %v266_v6  ;;  %v929_v3 = vrot.slane %v928_v56, 4 }
  0x47   : > { %v933_v5 = vrot.slane %v931_v57, 5  ;;  %v937_v35 = vrot.slane %v935_v55, 4  ;;  %v696_v7 = vsel %vm2854_vm3, %v434_v36, %v695_v62  ;;  %268 = vst [vmem:[#allocation2 + $0x5c] sm:$0x1] %v267_v2  ;;  %1622 = vrot.lane.b32.xlu1 %v3063_v37, %s2813_s18  ;;  %v782_v9 = vld [vmem:[#allocation2 + $0x38] sm:$0x1] }
  0x48   : > { %v2612_v4 = vrot.slane %v3103_v24, 9  ;;  %v1292_v11 = vrot.slane %v1290_v60, 4  ;;  %v3142_v13 = vld [vmem:[#allocation2 + $0x40] sm:$0xf]  ;;  %697 = vst [vmem:[#allocation2 + $0x50] sm:$0x1] %v696_v7  ;;  %v449_v14 = vor.u32 %v447_v0, %v3130_v63 }
  0x49   : > { %v938_v15 = vor.u32 %v937_v35, %v933_v5  ;;  %v941_v16 = vshll.u32 %v782_v9, 16  ;;  %v1293_v19 = vrot.slane %v782_v9, 5  ;;  %1620 = vrot.lane.b32.xlu0 %v3019_v31, %s2813_s18  ;;  %v3147_v51 = vld [vmem:[#allocation2 + $0x3c] sm:$0xf]  ;;  %v959_v20 = vshrl.u32 %v3142_v13, 16 }
  0x4a   : > { %v955_v22 = vshll.u32 %v3142_v13, 16  ;;  %v439_v23 = vshll.u32 %v3090_v41, 16  ;;  %v450_v24 = vsel %vm2907_vm10, %v442_v58, %v449_v14  ;;  %v934_v25 = vsel %vm2978_vm14, %v929_v3, %v933_v5  ;;  %v698_v55 = vld [vmem:[#allocation2 + $0x54] sm:$0xf]  ;;  %v213_v2 = vld [vmem:[#allocation2 + $0x60] sm:$0x1] }
  0x4b   : > { %v939_v26 = vrot.slane %v938_v15, 4  ;;  %v943_v21 = vrot.slane %v941_v16, 5  ;;  %v946_v27 = vshrl.u32 %v3147_v51, 16  ;;  %701 = vst.msk [vmem:[#allocation2 + $0x58] sm:$0xf] %vm177_vm0, %v450_v24  ;;  %1657 = vrot.lane.b32.xlu1 %v3139_v10, %s2814_s19  ;;  %v1291_v31 = vsel %vm2922_vm13, %v2612_v4, %v1290_v60 }
  0x4c   : > { %v1294_v41 = vsel %vm2922_vm13, %v1292_v11, %v1293_v19  ;;  %v949_v28 = vshll.u32 %v3147_v51, 16  ;;  %v3165_v29 = vld [vmem:[#allocation2 + $0x44] sm:$0x1]  ;;  %v957_v30 = vrot.slane %v955_v22, 5  ;;  %v961_v36 = vrot.slane %v959_v20, 4 }
  0x4d   : > { %v944_v32 = vsel %vm2978_vm14, %v939_v26, %v943_v21  ;;  %v948_v33 = vrot.slane %v946_v27, 4  ;;  %v965_v44 = vshll.u32 %v3165_v29, 16  ;;  %1655 = vrot.lane.b32.xlu0 %v3001_v12, %s2814_s19  ;;  %v3176_v17 = vcombine.low %v1291_v31, %v1294_v41  ;;  %v3181_v56 = vld [vmem:[#allocation2 + $0x48] sm:$0xf]  ;;  %v3190_v60 = vld [vmem:[#allocation2 + $0x4c] sm:$0xf] }
  0x4e   : > { %v3172_v6 = vcombine.low %v934_v25, %v944_v32  ;;  %v951_v45 = vrot.slane %v949_v28, 5  ;;  %v962_v46 = vor.u32 %v961_v36, %v957_v30  ;;  %v441_v54 = vor.u32 %v439_v23, %v3116_v42  ;;  %v702_v42 = vld [vmem:[#allocation2 + $0x5c] sm:$0x1]  ;;  %v313_v9 = vld [vmem:[%s2879_s17 + $0x38] sm:$0xf] }
  0x4f   : > { %v967_v38 = vrot.slane %v965_v44, 5  ;;  %v451_v57 = vrot.slane %v3130_v63, 4  ;;  %v3188_v58 = vcombine.low %v3147_v51, %v3142_v13  ;;  %v1297_v63 = vrot.slane %v3142_v13, 5  ;;  %v314_v4 = vld [vmem:[%s2879_s17 + $0x3c] sm:$0xf] }
  0x50   : > { %1692 = vrot.lane.b32.xlu1 %v3172_v6, %s2819_s28  ;;  %v952_v47 = vor.u32 %v951_v45, %v948_v33  ;;  %v963_v48 = vrot.slane %v962_v46, 4  ;;  %v699_v0 = vsel %vm2901_vm9, %v441_v54, %v698_v55  ;;  %v970_v3 = vshrl.u32 %v3181_v56, 16  ;;  %v269_v14 = vld [vmem:[#allocation2 + $0x68] sm:$0x1]  ;;  %v216_v15 = vld [vmem:[#allocation2 + $0x6c] sm:$0x1] }
  0x51   : > { %1690 = vrot.lane.b32.xlu0 %v3078_v52, %s2819_s28  ;;  %v973_v5 = vshll.u32 %v3181_v56, 16  ;;  %700 = vst [vmem:[#allocation2 + $0x54] sm:$0xf] %v699_v0  ;;  %v983_v35 = vshrl.u32 %v3190_v60, 16  ;;  %v703_v7 = vsel %vm2854_vm3, %v451_v57, %v702_v42  ;;  %v214_v13 = vsel %vm2854_vm3, 0, %v213_v2 }
  0x52   : > { %v953_v53 = vrot.slane %v952_v47, 4  ;;  %v968_v62 = vsel %vm2978_vm14, %v963_v48, %v967_v38  ;;  %704 = vst [vmem:[#allocation2 + $0x5c] sm:$0x1] %v703_v7  ;;  %v2613_v16 = vrot.slane %v3147_v51, 9  ;;  %v1299_v19 = vrot.slane %v1297_v63, 4 }
  0x53   : > { %v1300_v20 = vrot.slane %v3165_v29, 5  ;;  %215 = vst [vmem:[#allocation2 + $0x60] sm:$0x1] %v214_v13  ;;  %v315_v22 = vld [vmem:[%s2879_s17 + $0x40] sm:$0xf]  ;;  %v972_v23 = vrot.slane %v970_v3, 4 }
  0x54   : > { %1727 = vrot.lane.b32.xlu1 %v3176_v17, %s2817_s24  ;;  %v958_v52 = vsel %vm2978_vm14, %v953_v53, %v957_v30  ;;  %v975_v24 = vrot.slane %v973_v5, 5  ;;  %v453_v25 = vshrl.u32 %v313_v9, 16  ;;  %v461_v26 = vshrl.u32 %v314_v4, 16  ;;  %v316_v21 = vld [vmem:[%s2879_s17 + $0x44] sm:$0xf] }
  0x55   : > { %1725 = vrot.lane.b32.xlu0 %v3063_v37, %s2817_s24  ;;  %v3210_v11 = vcombine.low %v958_v52, %v968_v62  ;;  %v979_v37 = vshll.u32 %v3190_v60, 16  ;;  %v3221_v27 = vld [vmem:[#allocation2 + $0x50] sm:$0x1]  ;;  %v985_v31 = vrot.slane %v983_v35, 4  ;;  %v456_v41 = vshll.u32 %v313_v9, 16 }
  0x56   : > { %v464_v28 = vshll.u32 %v314_v4, 16  ;;  %v270_v51 = vsel %vm2871_vm5, 0, %v269_v14  ;;  %v455_v30 = vrot.slane %v453_v25, 7  ;;  %v463_v32 = vrot.slane %v461_v26, 7  ;;  %v272_v55 = vld [vmem:[#allocation2 + $0x74] sm:$0x1] }
  0x57   : > { %v3227_v29 = vrot.slane %v979_v37, 5  ;;  %271 = vst [vmem:[#allocation2 + $0x68] sm:$0x1] %v270_v51  ;;  %v217_v33 = vsel %vm2854_vm3, 0, %v216_v15  ;;  %v470_v36 = vshrl.u32 %v315_v22, 16  ;;  %v1298_v44 = vsel %vm2922_vm13, %v2613_v16, %v1297_v63 }
  0x58   : > { %1762 = vrot.lane.b32.xlu1 %v3188_v58, %s2815_s20  ;;  %218 = vst [vmem:[#allocation2 + $0x6c] sm:$0x1] %v217_v33  ;;  %v1301_v45 = vsel %vm2922_vm13, %v1299_v19, %v1300_v20  ;;  %v989_v46 = vshll.u32 %v3221_v27, 16  ;;  %v478_v47 = vshrl.u32 %v316_v21, 16  ;;  %v458_v48 = vor.u32 %v456_v41, %v455_v30  ;;  %v3241_v52 = vld [vmem:[#allocation2 + $0x58] sm:$0xf] }
  0x59   : > { %1760 = vrot.lane.b32.xlu0 %v3139_v10, %s2815_s20  ;;  %v459_v38 = vrot.slane %v455_v30, 4  ;;  %v466_v54 = vor.u32 %v464_v28, %v463_v32  ;;  %v473_v53 = vshll.u32 %v315_v22, 16  ;;  %v976_v57 = vor.u32 %v975_v24, %v972_v23  ;;  %v3243_v0 = vld [vmem:[#allocation2 + $0x54] sm:$0xf]  ;;  %v219_v37 = vld [vmem:[#allocation2 + $0x78] sm:$0x1] }
  0x5a   : > { %v986_v42 = vor.u32 %v985_v31, %v3227_v29  ;;  %v468_v62 = vrot.slane %v463_v32, 4  ;;  %v705_v63 = vld [vmem:[#allocation2 + $0x60] sm:$0xf]  ;;  %v472_v5 = vrot.slane %v470_v36, 7  ;;  %v481_v35 = vshll.u32 %v316_v21, 16 }
  0x5b   : > { %v467_v2 = vsel %vm2907_vm10, %v459_v38, %v466_v54  ;;  %v706_v3 = vsel %vm2901_vm9, %v458_v48, %v705_v63  ;;  %v1304_v7 = vrot.slane %v3190_v60, 5  ;;  %v480_v9 = vrot.slane %v478_v47, 7  ;;  %v275_v28 = vld [vmem:[#allocation2 + $0x80] sm:$0x1]  ;;  %v317_v33 = vld [vmem:[%s2879_s17 + $0x48] sm:$0xf] }
  0x5c   : > { %1797 = vrot.lane.b32.xlu1 %v3210_v11, %s2820_s29  ;;  %707 = vst [vmem:[#allocation2 + $0x60] sm:$0xf] %v706_v3  ;;  %708 = vst.msk [vmem:[#allocation2 + $0x64] sm:$0xf] %vm177_vm0, %v467_v2  ;;  %v273_v4 = vsel %vm2871_vm5, 0, %v272_v55  ;;  %v991_v13 = vrot.slane %v989_v46, 5  ;;  %v475_v16 = vor.u32 %v473_v53, %v472_v5  ;;  %v3271_v51 = vcombine.low %v3181_v56, %v3190_v60 }
  0x5d   : > { %1795 = vrot.lane.b32.xlu0 %v3172_v6, %s2820_s29  ;;  %v1003_v14 = vshll.u32 %v3241_v52, 16  ;;  %v476_v19 = vrot.slane %v472_v5, 4  ;;  %274 = vst [vmem:[#allocation2 + $0x74] sm:$0x1] %v273_v4  ;;  %v994_v20 = vshrl.u32 %v3243_v0, 16  ;;  %v997_v22 = vshll.u32 %v3243_v0, 16 }
  0x5e   : > { %v709_v15 = vld [vmem:[#allocation2 + $0x68] sm:$0x1]  ;;  %v1007_v23 = vshrl.u32 %v3241_v52, 16  ;;  %v977_v26 = vrot.slane %v976_v57, 4  ;;  %v987_v21 = vrot.slane %v986_v42, 4  ;;  %v483_v31 = vor.u32 %v481_v35, %v480_v9 }
  0x5f   : > { %v710_v24 = vsel %vm2854_vm3, %v468_v62, %v709_v15  ;;  %v712_v25 = vld [vmem:[#allocation2 + $0x6c] sm:$0xf]  ;;  %v2614_v30 = vrot.slane %v3181_v56, 9  ;;  %v220_v32 = vsel %vm2854_vm3, 0, %v219_v37  ;;  %v1307_v36 = vrot.slane %v3221_v27, 5 }
  0x60   : > { %1544 = vrot.lane.b32.xlu1 %v3172_v6, %s2816_s21  ;;  %v3251_v6 = vcombine.low %v1298_v44, %v1301_v45  ;;  %711 = vst [vmem:[#allocation2 + $0x68] sm:$0x1] %v710_v24  ;;  %v713_v41 = vsel %vm2901_vm9, %v475_v16, %v712_v25  ;;  %v3278_v44 = vrot.slane %v1003_v14, 5  ;;  %v484_v45 = vsel %vm2907_vm10, %v476_v19, %v483_v31  ;;  %v318_v48 = vld [vmem:[%s2879_s17 + $0x4c] sm:$0xf] }
  0x61   : > { %1830 = vrot.lane.b32.xlu0 %v3176_v17, %s2818_s25  ;;  %714 = vst [vmem:[#allocation2 + $0x6c] sm:$0xf] %v713_v41  ;;  %v485_v46 = vrot.slane %v480_v9, 4  ;;  %221 = vst [vmem:[#allocation2 + $0x78] sm:$0x1] %v220_v32  ;;  %v996_v60 = vrot.slane %v994_v20, 4  ;;  %v982_v27 = vsel %vm2978_vm14, %v977_v26, %v3227_v29  ;;  %v992_v54 = vsel %vm2978_vm14, %v987_v21, %v991_v13 }
  0x62   : > { %v999_v47 = vrot.slane %v997_v22, 5  ;;  %v1009_v56 = vrot.slane %v1007_v23, 4  ;;  %715 = vst.msk [vmem:[#allocation2 + $0x70] sm:$0xf] %vm177_vm0, %v484_v45  ;;  %v276_v38 = vsel %vm2871_vm5, 0, %v275_v28  ;;  %v1306_v53 = vrot.slane %v1304_v7, 4 }
  0x63   : > { %v3293_v55 = vld [vmem:[#allocation2 + $0x5c] sm:$0x1]  ;;  %v487_v57 = vshrl.u32 %v317_v33, 16  ;;  %277 = vst [vmem:[#allocation2 + $0x80] sm:$0x1] %v276_v38  ;;  %v495_v63 = vshrl.u32 %v318_v48, 16  ;;  %v3301_v29 = vcombine.low %v982_v27, %v992_v54  ;;  %v1305_v35 = vsel %vm2922_vm13, %v2614_v30, %v1304_v7 }
  0x64   : > { %1546 = vrot.lane.b32.xlu1 %v3210_v11, %s2816_s21  ;;  %v716_v42 = vld [vmem:[#allocation2 + $0x74] sm:$0x1]  ;;  %v1000_v2 = vor.u32 %v999_v47, %v996_v60  ;;  %v1010_v3 = vor.u32 %v1009_v56, %v3278_v44  ;;  %v1013_v5 = vshll.u32 %v3293_v55, 16  ;;  %v490_v4 = vshll.u32 %v317_v33, 16  ;;  %v3332_v28 = vld [vmem:[#allocation2 + $0x60] sm:$0xf] }
  0x65   : > { %1832 = vrot.lane.b32.xlu0 %v3251_v6, %s2818_s25  ;;  %v717_v62 = vsel %vm2854_vm3, %v485_v46, %v716_v42  ;;  %v489_v9 = vrot.slane %v487_v57, 7  ;;  %v497_v37 = vrot.slane %v495_v63, 7  ;;  %v498_v13 = vshll.u32 %v318_v48, 16  ;;  %v2796_v41 = vld [vmem:[%s4219_s1 + $0x10] ss:$0 sps:$4 sm:$0x33]  }
  0x66   : > { %718 = vst [vmem:[#allocation2 + $0x74] sm:$0x1] %v717_v62  ;;  %v1001_v15 = vrot.slane %v1000_v2, 4  ;;  %v1011_v16 = vrot.slane %v1010_v3, 4  ;;  %v1015_v19 = vrot.slane %v1013_v5, 5  ;;  %v1311_v7 = vrot.slane %v3241_v52, 5 }
  0x67   : > { %v493_v20 = vrot.slane %v489_v9, 4  ;;  %v492_v22 = vor.u32 %v490_v4, %v489_v9  ;;  %v500_v23 = vor.u32 %v498_v13, %v497_v37  ;;  %v502_v24 = vrot.slane %v497_v37, 4  ;;  %v3334_v30 = vld [vmem:[#allocation2 + $0x64] sm:$0xf]  ;;  %v319_v45 = vld [vmem:[%s2879_s17 + $0x50] sm:$0xf] }
  0x68   : > { %1626 = vrot.lane.b32.xlu1 %v3251_v6, %s2813_s18  ;;  %v719_v25 = vld [vmem:[#allocation2 + $0x78] sm:$0xf]  ;;  %v3322_v21 = vcombine.low %v3243_v0, %v3241_v52  ;;  %v1016_v31 = vsel %vm2978_vm14, %v1011_v16, %v1015_v19  ;;  %v222_v52 = vld [vmem:[#allocation2 + $0x84] sm:$0x1]  ;;  %v1313_v33 = vrot.slane %v1311_v7, 4  ;;  %v2615_v47 = vrot.slane %v3243_v0, 9 }
  0x69   : > { %1624 = vrot.lane.b32.xlu0 %v3176_v17, %s2813_s18  ;;  %v1308_v17 = vsel %vm2922_vm13, %v1306_v53, %v1307_v36  ;;  %v501_v32 = vsel %vm2907_vm10, %v493_v20, %v500_v23  ;;  %v720_v36 = vsel %vm2901_vm9, %v492_v22, %v719_v25  ;;  %v320_v46 = vld [vmem:[%s2879_s17 + $0x54] sm:$0xf]  ;;  %v1314_v56 = vrot.slane %v3293_v55, 5  ;;  %v278_v54 = vld [vmem:[#allocation2 + $0x8c] sm:$0x1] }
  0x6a   : > { %v3313_v14 = vcombine.low %v1305_v35, %v1308_v17  ;;  %v723_v26 = vld [vmem:[#allocation2 + $0x80] sm:$0x1]  ;;  %722 = vst.msk [vmem:[#allocation2 + $0x7c] sm:$0xf] %vm177_vm0, %v501_v32  ;;  %721 = vst [vmem:[#allocation2 + $0x78] sm:$0xf] %v720_v36  ;;  %v1312_v35 = vsel %vm2922_vm13, %v2615_v47, %v1311_v7 }
  0x6b   : > { %vm2191_vm15 = vcmask 1041408   ;;  %v1021_v48 = vshll.u32 %v3332_v28, 16  ;;  %v1031_v38 = vshrl.u32 %v3334_v30, 16  ;;  %v1027_v53 = vshll.u32 %v3334_v30, 16  ;;  %v225_v42 = vld [vmem:[#allocation2 + $0x90] sm:$0x1] }
  0x6c   : > { %1661 = vrot.lane.b32.xlu1 %v3271_v51, %s2814_s19  ;;  %2765 = vmatprep.subr.msk.bf16.mxu0 %vm2191_vm15, %v2796_v41  ;;  %v2193_v27 = vsel %vm2191_vm15, %v2796_v41, 0  ;;  %v223_v0 = vsel %vm2854_vm3, 0, %v222_v52  ;;  %v504_v55 = vshrl.u32 %v319_v45, 16  ;;  %v512_v57 = vshrl.u32 %v320_v46, 16  ;;  %v321_v4 = vld [vmem:[%s2879_s17 + $0x58] sm:$0xf] }
  0x6d   : > { %1659 = vrot.lane.b32.xlu0 %v3188_v58, %s2814_s19  ;;  %2726 = vmatpush3.bf16.msra.mxu0 %v2193_v27  ;;  %224 = vst [vmem:[#allocation2 + $0x84] sm:$0x1] %v223_v0  ;;  %v515_v62 = vshll.u32 %v320_v46, 16  ;;  %v507_v2 = vshll.u32 %v319_v45, 16  ;;  %v279_v5 = vsel %vm2871_vm5, 0, %v278_v54  ;;  %v1315_v17 = vsel %vm2922_vm13, %v1313_v33, %v1314_v56 }
  0x6e   : > { %2766 = vmatprep.subr.msk.bf16.mxu1 %vm2191_vm15, %v2796_v41  ;;  %v506_v63 = vrot.slane %v504_v55, 7  ;;  %v514_v3 = vrot.slane %v512_v57, 7  ;;  %280 = vst [vmem:[#allocation2 + $0x8c] sm:$0x1] %v279_v5  ;;  %v226_v9 = vsel %vm2854_vm3, 0, %v225_v42  ;;  %v1023_v16 = vrot.slane %v1021_v48, 5 }
  0x6f   : > { %2764 = vmatpush3.bf16.msra.mxu1 %v2193_v27  ;;  %v322_v37 = vld [vmem:[%s2879_s17 + $0x5c] sm:$0xf]  ;;  %v3373_v13 = vld [vmem:[#allocation2 + $0x68] sm:$0x1]  ;;  %v3375_v19 = vrot.slane %v1027_v53, 5  ;;  %v1033_v20 = vrot.slane %v1031_v38, 4  ;;  %v3390_v52 = vcombine.low %v3332_v28, %v3334_v30 }
  0x70   : > { %1696 = vrot.lane.b32.xlu1 %v3301_v29, %s2819_s28  ;;  %227 = vst [vmem:[#allocation2 + $0x90] sm:$0x1] %v226_v9  ;;  %v510_v7 = vrot.slane %v506_v63, 4  ;;  %v517_v22 = vor.u32 %v515_v62, %v514_v3  ;;  %v3379_v23 = vld [vmem:[#allocation2 + $0x6c] sm:$0xf]  ;;  %v509_v25 = vor.u32 %v507_v2, %v506_v63  ;;  %v1037_v41 = vshll.u32 %v3373_v13, 16 }
  0x71   : > { %1694 = vrot.lane.b32.xlu0 %v3210_v11, %s2819_s28  ;;  %v1006_v11 = vsel %vm2978_vm14, %v1001_v15, %v3278_v44  ;;  %v724_v44 = vsel %vm2854_vm3, %v502_v24, %v723_v26  ;;  %v3381_v24 = vld [vmem:[#allocation2 + $0x70] sm:$0xf]  ;;  %v521_v26 = vshrl.u32 %v321_v4, 16  ;;  %v519_v32 = vrot.slane %v514_v3, 4  ;;  %v281_v46 = vld [vmem:[#allocation2 + $0x98] sm:$0x1] }
  0x72   : > { %v3347_v60 = vcombine.low %v1006_v11, %v1016_v31  ;;  %725 = vst [vmem:[#allocation2 + $0x80] sm:$0x1] %v724_v44  ;;  %v529_v11 = vshrl.u32 %v322_v37, 16  ;;  %v3385_v31 = vcombine.low %v1312_v35, %v1315_v17  ;;  %v1034_v36 = vor.u32 %v1033_v20, %v3375_v19  ;;  %v228_v48 = vld [vmem:[#allocation2 + $0x9c] sm:$0x1] }
  0x73   : > { %v524_v45 = vshll.u32 %v321_v4, 16  ;;  %v1045_v47 = vshll.u32 %v3379_v23, 16  ;;  %v1055_v56 = vshrl.u32 %v3381_v24, 16  ;;  %v1051_v38 = vshll.u32 %v3381_v24, 16  ;;  %v284_v17 = vld [vmem:[#allocation2 + $0xa4] sm:$0x1] }
  0x74   : > { %1731 = vrot.lane.b32.xlu1 %v3313_v14, %s2817_s24  ;;  %v726_v44 = vld [vmem:[#allocation2 + $0x84] sm:$0xf]  ;;  %v523_v53 = vrot.slane %v521_v26, 7  ;;  %v531_v0 = vrot.slane %v529_v11, 7  ;;  %v1039_v55 = vrot.slane %v1037_v41, 5  ;;  %v1318_v57 = vrot.slane %v3334_v30, 5 }
  0x75   : > { %1729 = vrot.lane.b32.xlu0 %v3251_v6, %s2817_s24  ;;  %v1018_v6 = vshrl.u32 %v3332_v28, 16  ;;  %v727_v27 = vsel %vm2901_vm9, %v509_v25, %v726_v44  ;;  %v730_v54 = vld [vmem:[#allocation2 + $0x8c] sm:$0x1]  ;;  %v532_v62 = vshll.u32 %v322_v37, 16  ;;  %v1035_v3 = vrot.slane %v1034_v36, 4 }
  0x76   : > { %728 = vst [vmem:[#allocation2 + $0x84] sm:$0xf] %v727_v27  ;;  %v731_v42 = vsel %vm2854_vm3, %v519_v32, %v730_v54  ;;  %v526_v5 = vor.u32 %v524_v45, %v523_v53  ;;  %v527_v35 = vrot.slane %v523_v53, 4  ;;  %v1047_v4 = vrot.slane %v1045_v47, 5  ;;  %v323_v25 = vld [vmem:[%s2879_s17 + $0x60] sm:$0xf] }
  0x77   : > { %v1020_v15 = vrot.slane %v1018_v6, 4  ;;  %v518_v6 = vsel %vm2907_vm10, %v510_v7, %v517_v22  ;;  %v733_v63 = vld [vmem:[#allocation2 + $0x90] sm:$0xf]  ;;  %732 = vst [vmem:[#allocation2 + $0x8c] sm:$0x1] %v731_v42  ;;  %v282_v30 = vsel %vm2871_vm5, 0, %v281_v46  ;;  %v1040_v44 = vsel %vm2978_vm14, %v1035_v3, %v1039_v55 }
  0x78   : > { %1766 = vrot.lane.b32.xlu1 %v3322_v21, %s2815_s20  ;;  %729 = vst.msk [vmem:[#allocation2 + $0x88] sm:$0xf] %vm177_vm0, %v518_v6  ;;  %v3413_v20 = vrot.slane %v1051_v38, 5  ;;  %v1057_v37 = vrot.slane %v1055_v56, 4  ;;  %v734_v7 = vsel %vm2901_vm9, %v526_v5, %v733_v63  ;;  %283 = vst [vmem:[#allocation2 + $0x98] sm:$0x1] %v282_v30 }
  0x79   : > { %1764 = vrot.lane.b32.xlu0 %v3271_v51, %s2815_s20  ;;  %v1024_v33 = vor.u32 %v1023_v16, %v1020_v15  ;;  %v534_v15 = vor.u32 %v532_v62, %v531_v0  ;;  %v231_v16 = vld [vmem:[#allocation2 + $0xa8] sm:$0x1]  ;;  %v229_v22 = vsel %vm2854_vm3, 0, %v228_v48  ;;  %v2616_v26 = vrot.slane %v3332_v28, 9  ;;  %v3424_v32 = vld [vmem:[#allocation2 + $0x74] sm:$0x1] }
  0x7a   : > { %v1320_v11 = vrot.slane %v1318_v57, 4  ;;  %v1321_v41 = vrot.slane %v3373_v13, 5  ;;  %735 = vst [vmem:[#allocation2 + $0x90] sm:$0xf] %v734_v7  ;;  %230 = vst [vmem:[#allocation2 + $0x9c] sm:$0x1] %v229_v22 }
  0x7b   : > { %v1025_v2 = vrot.slane %v1024_v33, 4  ;;  %v535_v33 = vsel %vm2907_vm10, %v527_v35, %v534_v15  ;;  %v324_v28 = vld [vmem:[%s2879_s17 + $0x64] sm:$0xf]  ;;  %v285_v13 = vsel %vm2871_vm5, 0, %v284_v17  ;;  %v232_v45 = vsel %vm2854_vm3, 0, %v231_v16 }
  0x7c   : > { %1801 = vrot.lane.b32.xlu1 %v3347_v60, %s2820_s29  ;;  %736 = vst.msk [vmem:[#allocation2 + $0x94] sm:$0xf] %vm177_vm0, %v535_v33  ;;  %v538_v46 = vshrl.u32 %v323_v25, 16  ;;  %286 = vst [vmem:[#allocation2 + $0xa4] sm:$0x1] %v285_v13  ;;  %v1061_v47 = vshll.u32 %v3424_v32, 16  ;;  %v1319_v38 = vsel %vm2922_vm13, %v2616_v26, %v1318_v57 }
  0x7d   : > { %1799 = vrot.lane.b32.xlu0 %v3301_v29, %s2820_s29  ;;  %v1030_v36 = vsel %vm2978_vm14, %v1025_v2, %v3375_v19  ;;  %233 = vst [vmem:[#allocation2 + $0xa8] sm:$0x1] %v232_v45  ;;  %v1058_v19 = vor.u32 %v1057_v37, %v3413_v20  ;;  %v536_v56 = vrot.slane %v531_v0, 4  ;;  %v546_v48 = vshrl.u32 %v324_v28, 16  ;;  %v325_v3 = vld [vmem:[%s2879_s17 + $0x68] sm:$0xf] }
  0x7e   : > { %v3445_v6 = vcombine.low %v1030_v36, %v1040_v44  ;;  %v540_v54 = vrot.slane %v538_v46, 7  ;;  %v541_v53 = vshll.u32 %v323_v25, 16  ;;  %v1063_v42 = vrot.slane %v1061_v47, 5  ;;  %v326_v5 = vld [vmem:[%s2879_s17 + $0x6c] sm:$0xf] }
  0x7f   : > { %v737_v27 = vld [vmem:[#allocation2 + $0x98] sm:$0x1]  ;;  %v1059_v55 = vrot.slane %v1058_v19, 4  ;;  %v548_v63 = vrot.slane %v546_v48, 7  ;;  %v549_v2 = vshll.u32 %v324_v28, 16  ;;  %v555_v16 = vshrl.u32 %v325_v3, 16 }
  0x80   : > { %1548 = vrot.lane.b32.xlu1 %v3301_v29, %s2816_s21  ;;  %v1042_v29 = vshrl.u32 %v3379_v23, 16  ;;  %v738_v62 = vsel %vm2854_vm3, %v536_v56, %v737_v27  ;;  %v543_v35 = vor.u32 %v541_v53, %v540_v54  ;;  %v544_v17 = vrot.slane %v540_v54, 4  ;;  %v3476_v25 = vld [vmem:[#allocation2 + $0x78] sm:$0xf]  ;;  %v3478_v26 = vld [vmem:[#allocation2 + $0x7c] sm:$0xf] }
  0x81   : > { %1834 = vrot.lane.b32.xlu0 %v3313_v14, %s2818_s25  ;;  %739 = vst [vmem:[#allocation2 + $0x98] sm:$0x1] %v738_v62  ;;  %v1064_v15 = vsel %vm2978_vm14, %v1059_v55, %v1063_v42  ;;  %v740_v30 = vld [vmem:[#allocation2 + $0x9c] sm:$0xf]  ;;  %v563_v37 = vshrl.u32 %v326_v5, 16  ;;  %v551_v7 = vor.u32 %v549_v2, %v548_v63  ;;  %v1325_v33 = vrot.slane %v3381_v24, 5 }
  0x82   : > { %v1044_v9 = vrot.slane %v1042_v29, 4  ;;  %v741_v44 = vsel %vm2901_vm9, %v543_v35, %v740_v30  ;;  %v287_v28 = vld [vmem:[#allocation2 + $0xb0] sm:$0x1]  ;;  %v1066_v47 = vshrl.u32 %v3476_v25, 16  ;;  %v1069_v56 = vshll.u32 %v3476_v25, 16 }
  0x83   : > { %v744_v22 = vld [vmem:[#allocation2 + $0xa4] sm:$0x1]  ;;  %v552_v36 = vsel %vm2907_vm10, %v544_v17, %v551_v7  ;;  %742 = vst [vmem:[#allocation2 + $0x9c] sm:$0xf] %v741_v44  ;;  %v3494_v46 = vrot.slane %v563_v37, 7  ;;  %v1079_v48 = vshrl.u32 %v3478_v26, 16 }
  0x84   : > { %1550 = vrot.lane.b32.xlu1 %v3347_v60, %s2816_s21  ;;  %v1048_v29 = vor.u32 %v1047_v4, %v1044_v9  ;;  %743 = vst.msk [vmem:[#allocation2 + $0xa0] sm:$0xf] %vm177_vm0, %v552_v36  ;;  %v2617_v55 = vrot.slane %v3379_v23, 9  ;;  %v288_v42 = vsel %vm2871_vm5, 0, %v287_v28  ;;  %v1071_v30 = vrot.slane %v1069_v56, 5 }
  0x85   : > { %1836 = vrot.lane.b32.xlu0 %v3385_v31, %s2818_s25  ;;  %289 = vst [vmem:[#allocation2 + $0xb0] sm:$0x1] %v288_v42  ;;  %vm1858_vm1 = vcmask 31744   ;;  %vm1907_vm2 = vcmask 64512   ;;  %vm1940_vm4 = vcmask 97280   ;;  %vm1973_vm6 = vcmask 130048  }
  0x86   : > { %v1049_v0 = vrot.slane %v1048_v29, 4  ;;  %v566_v29 = vshll.u32 %v326_v5, 16  ;;  %v1328_v5 = vrot.slane %v3424_v32, 5  ;;  %v1081_v32 = vrot.slane %v1079_v48, 4 }
  0x87   : > { %vm2006_vm7 = vcmask 162816   ;;  %vm2072_vm8 = vcmask 228352  }
  0x88   : > { %1630 = vrot.lane.b32.xlu1 %v3385_v31, %s2813_s18  ;;  %v1054_v4 = vsel %vm2978_vm14, %v1049_v0, %v3413_v20  ;;  %v553_v20 = vrot.slane %v548_v63, 4  ;;  %v568_v53 = vor.u32 %v566_v29, %v3494_v46  ;;  %v290_v0 = vld [vmem:[#allocation2 + $0xbc] sm:$0x1]  ;;  %v237_v63 = vld [vmem:[#allocation2 + $0xc0] sm:$0x1] }
  0x89   : > { %1628 = vrot.lane.b32.xlu0 %v3313_v14, %s2813_s18  ;;  %v1322_v14 = vsel %vm2922_vm13, %v1320_v11, %v1321_v41  ;;  %v558_v11 = vshll.u32 %v325_v3, 16  ;;  %v3482_v41 = vcombine.low %v1054_v4, %v1064_v15  ;;  %v1327_v3 = vrot.slane %v1325_v33, 4  ;;  %v3522_v4 = vld [vmem:[#allocation2 + $0x80] sm:$0x1] }
  0x8a   : > { %v3457_v57 = vcombine.low %v1319_v38, %v1322_v14  ;;  %v745_v45 = vsel %vm2854_vm3, %v553_v20, %v744_v22  ;;  %v1075_v38 = vshll.u32 %v3478_v26, 16  ;;  %v747_v14 = vld [vmem:[#allocation2 + $0xa8] sm:$0xf]  ;;  %v1068_v15 = vrot.slane %v1066_v47, 4 }
  0x8b   : > { %746 = vst [vmem:[#allocation2 + $0xa4] sm:$0x1] %v745_v45  ;;  %v291_v7 = vsel %vm2871_vm5, 0, %v290_v0  ;;  %v238_v22 = vsel %vm2854_vm3, 0, %v237_v63  ;;  %v1326_v20 = vsel %vm2922_vm13, %v2617_v55, %v1325_v33  ;;  %v1329_v44 = vsel %vm2922_vm13, %v1327_v3, %v1328_v5  ;;  %v3549_v47 = vld [vmem:[#allocation2 + $0x88] sm:$0xf] }
  0x8c   : > { %1665 = vrot.lane.b32.xlu1 %v3390_v52, %s2814_s19  ;;  %292 = vst [vmem:[#allocation2 + $0xbc] sm:$0x1] %v291_v7  ;;  %239 = vst [vmem:[#allocation2 + $0xc0] sm:$0x1] %v238_v22  ;;  %v1085_v28 = vshll.u32 %v3522_v4, 16  ;;  %v570_v45 = vrot.slane %v3494_v46, 4  ;;  %v1072_v29 = vor.u32 %v1071_v30, %v1068_v15  ;;  %v3553_v48 = vcombine.low %v1326_v20, %v1329_v44 }
  0x8d   : > { %1663 = vrot.lane.b32.xlu0 %v3322_v21, %s2814_s19  ;;  %v1332_v46 = vrot.slane %v3478_v26, 5  ;;  %v1099_v63 = vshll.u32 %v3549_v47, 16  ;;  %v329_v3 = vld [vmem:[%s2879_s17 + $0x78] sm:$0xf]  ;;  %v1335_v20 = vrot.slane %v3522_v4, 5 }
  0x8e   : > { %v1073_v55 = vrot.slane %v1072_v29, 4 }
  0x8f   : > { %v1334_v22 = vrot.slane %v1332_v46, 4 }
  0x90   : > { %1700 = vrot.lane.b32.xlu1 %v3445_v6, %s2819_s28 }
  0x91   : > { %1698 = vrot.lane.b32.xlu0 %v3347_v60, %s2819_s28  ;;  %v3474_v60 = vcombine.low %v3379_v23, %v3381_v24  ;;  %v234_v24 = vld [vmem:[#allocation2 + $0xb4] sm:$0x1]  ;;  %v327_v23 = vld [vmem:[%s2879_s17 + $0x70] sm:$0xf] }
  0x92   : > { %v3463_v9 = vpop.permute.xlu1 %1616  ;;  %v235_v62 = vsel %vm2854_vm3, 0, %v234_v24  ;;  %v575_v0 = vshll.u32 %v327_v23, 16 }
  0x93   : > { %236 = vst [vmem:[#allocation2 + $0xb4] sm:$0x1] %v235_v62  ;;  %v1103_v62 = vshrl.u32 %v3549_v47, 16 }
  0x94   : > { %1735 = vrot.lane.b32.xlu1 %v3457_v57, %s2817_s24 }
  0x95   : > { %1733 = vrot.lane.b32.xlu0 %v3385_v31, %s2817_s24  ;;  %v557_v31 = vrot.slane %v555_v16, 7  ;;  %v3524_v16 = vrot.slane %v1075_v38, 5  ;;  %v3556_v38 = vld [vmem:[#allocation2 + $0x84] sm:$0xf] }
  0x96   : > { %v3489_v13 = vpop.permute.xlu0 %1651  ;;  %v3660_v34 = vcombine.low %v3556_v38, %v3549_v47 }
  0x97   : > { %v560_v27 = vor.u32 %v558_v11, %v557_v31  ;;  %v561_v54 = vrot.slane %v557_v31, 4  ;;  %v328_v11 = vld [vmem:[%s2879_s17 + $0x74] sm:$0xf]  ;;  %v572_v31 = vshrl.u32 %v327_v23, 16  ;;  %v1082_v24 = vor.u32 %v1081_v32, %v3524_v16 }
  0x98   : > { %1770 = vrot.lane.b32.xlu1 %v3474_v60, %s2815_s20  ;;  %v3498_v19 = vpop.permute.xlu1 %1653  ;;  %v580_v56 = vshrl.u32 %v328_v11, 16  ;;  %v583_v30 = vshll.u32 %v328_v11, 16  ;;  %v3575_v23 = vcombine.low %v3476_v25, %v3478_v26  ;;  %v2618_v32 = vrot.slane %v3476_v25, 9 }
  0x99   : > { %1768 = vrot.lane.b32.xlu0 %v3390_v52, %s2815_s20  ;;  %v569_v35 = vsel %vm2907_vm10, %v561_v54, %v568_v53  ;;  %v748_v17 = vsel %vm2901_vm9, %v560_v27, %v747_v14  ;;  %v751_v14 = vld [vmem:[#allocation2 + $0xb0] sm:$0x1]  ;;  %v1087_v27 = vrot.slane %v1085_v28, 5  ;;  %v574_v53 = vrot.slane %v572_v31, 7 }
  0x9a   : > { %v3512_v2 = vpop.permute.xlu0 %1756  ;;  %749 = vst [vmem:[#allocation2 + $0xa8] sm:$0xf] %v748_v17  ;;  %750 = vst.msk [vmem:[#allocation2 + $0xac] sm:$0xf] %vm177_vm0, %v569_v35  ;;  %v752_v54 = vsel %vm2854_vm3, %v570_v45, %v751_v14  ;;  %v1083_v42 = vrot.slane %v1082_v24, 4  ;;  %v1090_v35 = vshrl.u32 %v3556_v38, 16  ;;  %v1078_v11 = vsel %vm2978_vm14, %v1073_v55, %v3524_v16 }
  0x9b   : > { %753 = vst [vmem:[#allocation2 + $0xb0] sm:$0x1] %v752_v54  ;;  %v1093_v17 = vshll.u32 %v3556_v38, 16  ;;  %v582_v15 = vrot.slane %v580_v56, 7  ;;  %v577_v44 = vor.u32 %v575_v0, %v574_v53  ;;  %v589_v28 = vshrl.u32 %v329_v3, 16 }
  0x9c   : > { %1805 = vrot.lane.b32.xlu1 %v3482_v41, %s2820_s29  ;;  %v3527_v37 = vpop.permute.xlu1 %1758  ;;  %v1088_v26 = vsel %vm2978_vm14, %v1083_v42, %v1087_v27  ;;  %v3588_v45 = vld [vmem:[#allocation2 + $0x8c] sm:$0x1]  ;;  %v3590_v25 = vrot.slane %v1099_v63, 5  ;;  %v1105_v31 = vrot.slane %v1103_v62, 4  ;;  %v754_v29 = vld [vmem:[#allocation2 + $0xb4] sm:$0xf]  ;;  %v1333_v55 = vsel %vm2922_vm13, %v2618_v32, %v1332_v46 }
  0x9d   : > { %1803 = vrot.lane.b32.xlu0 %v3445_v6, %s2820_s29  ;;  %v1092_v24 = vrot.slane %v1090_v35, 4  ;;  %v1095_v56 = vrot.slane %v1093_v17, 5  ;;  %v578_v14 = vrot.slane %v574_v53, 4  ;;  %v585_v54 = vor.u32 %v583_v30, %v582_v15  ;;  %v758_v0 = vld [vmem:[#allocation2 + $0xbc] sm:$0x1] }
  0x9e   : > { %v3538_v36 = vpop.permute.xlu0 %1536  ;;  %v587_v16 = vrot.slane %v582_v15, 4  ;;  %v330_v27 = vld [vmem:[%s2879_s17 + $0x7c] sm:$0xf]  ;;  %v755_v62 = vsel %vm2901_vm9, %v577_v44, %v754_v29  ;;  %v591_v53 = vrot.slane %v589_v28, 7  ;;  %v293_v63 = vld [vmem:[#allocation2 + $0xc8] sm:$0x1]  ;;  %v1106_v17 = vor.u32 %v1105_v31, %v3590_v25 }
  0x9f   : > { %v586_v42 = vsel %vm2907_vm10, %v578_v14, %v585_v54  ;;  %v1109_v15 = vshll.u32 %v3588_v45, 16  ;;  %756 = vst [vmem:[#allocation2 + $0xb4] sm:$0xf] %v755_v62  ;;  %v240_v30 = vld [vmem:[#allocation2 + $0xcc] sm:$0x1]  ;;  %v1336_v32 = vsel %vm2922_vm13, %v1334_v22, %v1335_v20  ;;  %v1096_v44 = vor.u32 %v1095_v56, %v1092_v24 }
  0xa0   : > { %1552 = vrot.lane.b32.xlu1 %v3445_v6, %s2816_s21  ;;  %v3547_v33 = vpop.permute.xlu1 %1618  ;;  %757 = vst.msk [vmem:[#allocation2 + $0xb8] sm:$0xf] %vm177_vm0, %v586_v42  ;;  %v759_v46 = vsel %vm2854_vm3, %v587_v16, %v758_v0  ;;  %v592_v28 = vshll.u32 %v329_v3, 16  ;;  %v597_v29 = vshrl.u32 %v330_v27, 16  ;;  %v600_v14 = vshll.u32 %v330_v27, 16 }
  0xa1   : > { %1838 = vrot.lane.b32.xlu0 %v3457_v57, %s2818_s25  ;;  %760 = vst [vmem:[#allocation2 + $0xbc] sm:$0x1] %v759_v46  ;;  %v294_v22 = vsel %vm2871_vm5, 0, %v293_v63  ;;  %v595_v24 = vrot.slane %v591_v53, 4  ;;  %v761_v56 = vld [vmem:[#allocation2 + $0xc0] sm:$0xf] }
  0xa2   : > { %v3558_v6 = vpop.permute.xlu0 %1721  ;;  %v594_v20 = vor.u32 %v592_v28, %v591_v53  ;;  %v3625_v3 = vrot.slane %v597_v29, 7  ;;  %295 = vst [vmem:[#allocation2 + $0xc8] sm:$0x1] %v294_v22  ;;  %v241_v18 = vsel %vm2854_vm3, 0, %v240_v30  ;;  %v1111_v54 = vrot.slane %v1109_v15, 5 }
  0xa3   : > { %242 = vst [vmem:[#allocation2 + $0xcc] sm:$0x1] %v241_v18  ;;  %v1097_v42 = vrot.slane %v1096_v44, 4  ;;  %v3673_v15 = vld [vmem:[#allocation2 + $0x94] sm:$0xf] }
  0xa4   : > { %1554 = vrot.lane.b32.xlu1 %v3482_v41, %s2816_s21  ;;  %v3567_v5 = vpop.permute.xlu1 %1723  ;;  %v602_v62 = vor.u32 %v600_v14, %v3625_v3  ;;  %v762_v8 = vsel %vm2901_vm9, %v594_v20, %v761_v56  ;;  %vm2158_vm9 = vcmask 293888   ;;  %v2619_v20 = vrot.slane %v3556_v38, 9 }
  0xa5   : > { %1840 = vrot.lane.b32.xlu0 %v3553_v48, %s2818_s25  ;;  %763 = vst [vmem:[#allocation2 + $0xc0] sm:$0xf] %v762_v8  ;;  %v1342_v56 = vrot.slane %v3588_v45, 5  ;;  %v3729_v8 = vld [vmem:[#allocation2 + $0x9c] sm:$0xf] }
  0xa6   : > { %v3578_v7 = vpop.permute.xlu0 %1826 }
  0xa8   : > { %1634 = vrot.lane.b32.xlu1 %v3553_v48, %s2813_s18  ;;  %v3592_v4 = vpop.permute.xlu1 %1688 }
  0xa9   : > { %1632 = vrot.lane.b32.xlu0 %v3457_v57, %s2813_s18  ;;  %v3607_v57 = vcombine.low %v1078_v11, %v1088_v26  ;;  %v296_v11 = vld [vmem:[#allocation2 + $0xd4] sm:$0x1]  ;;  %v1861_v26 = vsel %vm1858_vm1, %v2626_v39, %v3538_v36  ;;  %v3631_v39 = vcombine.low %v1333_v55, %v1336_v32  ;;  %v1107_v36 = vrot.slane %v1106_v17, 4  ;;  %v765_v22 = vld [vmem:[#allocation2 + $0xc8] sm:$0x1] }
  0xaa   : > { %v297_v0 = vsel %vm2871_vm5, 0, %v296_v11  ;;  %v1909_v16 = vsel %vm1907_vm2, %v1861_v26, %v3463_v9  ;;  %vm2039_vm5 = vcmask 195584   ;;  %v1339_v32 = vrot.slane %v3549_v47, 5 }
  0xab   : > { %v3603_v35 = vpop.permute.xlu0 %1828  ;;  %298 = vst [vmem:[#allocation2 + $0xd4] sm:$0x1] %v297_v0  ;;  %v1112_v17 = vsel %vm2978_vm14, %v1107_v36, %v1111_v54  ;;  %v1127_v11 = vshrl.u32 %v3673_v15, 16  ;;  %v604_v47 = vrot.slane %v3625_v3, 4  ;;  %v806_v54 = vld [vmem:[#allocation2 + $0x98] sm:$0x1] }
  0xac   : > { %1669 = vrot.lane.b32.xlu1 %v3575_v23, %s2814_s19  ;;  %v1340_v45 = vsel %vm2922_vm13, %v2619_v20, %v1339_v32  ;;  %v1133_v1 = vshll.u32 %v806_v54, 16 }
  0xad   : > { %1667 = vrot.lane.b32.xlu0 %v3474_v60, %s2814_s19  ;;  %v1794_v31 = vpop.permute.xlu1 %1793  ;;  %v1129_v36 = vrot.slane %v1127_v11, 4  ;;  %v766_v0 = vsel %vm2854_vm3, %v604_v47, %v765_v22  ;;  %vm2425_vm3 = vcmask 57344  }
  0xae   : > { %767 = vst [vmem:[#allocation2 + $0xc8] sm:$0x1] %v766_v0 }
  0xaf   : > { %v1539_v59 = vpop.permute.xlu0 %1538 }
  0xb0   : > { %1704 = vrot.lane.b32.xlu1 %v3607_v57, %s2819_s28  ;;  %v1864_v27 = vsel %vm1858_vm1, %v2968_v43, %v1539_v59  ;;  %v603_v43 = vsel %vm2907_vm10, %v595_v24, %v602_v62  ;;  %v1341_v24 = vrot.slane %v1339_v32, 4 }
  0xb1   : > { %v1911_v55 = vsel %vm1907_vm2, %v1864_v27, %v3547_v33  ;;  %1702 = vrot.lane.b32.xlu0 %v3482_v41, %s2819_s28  ;;  %v3644_v53 = vpop.permute.xlu1 %1540  ;;  %v1942_v41 = vsel %vm1940_vm4, %v1909_v16, %v3489_v13  ;;  %764 = vst.msk [vmem:[#allocation2 + $0xc4] sm:$0xf] %vm177_vm0, %v603_v43  ;;  %v1102_v13 = vsel %vm2978_vm14, %v1097_v42, %v3590_v25  ;;  %vm2105_vm0 = vcmask 261120  }
  0xb2   : > { %v1944_v9 = vsel %vm1940_vm4, %v1911_v55, %v3498_v19  ;;  %v3662_v19 = vld [vmem:[#allocation2 + $0x90] sm:$0xf]  ;;  %v3691_v29 = vcombine.low %v1102_v13, %v1112_v17 }
  0xb3   : > { %v1977_v33 = vsel %vm1973_vm6, %v1944_v9, %v3592_v4  ;;  %v1687_v63 = vpop.permute.xlu0 %1686  ;;  %v1114_v44 = vshrl.u32 %v3662_v19, 16  ;;  %v1117_v28 = vshll.u32 %v3662_v19, 16  ;;  %v3731_v9 = vld [vmem:[#allocation2 + $0xa0] sm:$0xf] }
  0xb4   : > { %1739 = vrot.lane.b32.xlu1 %v3631_v39, %s2817_s24  ;;  %v1975_v40 = vsel %vm1973_vm6, %v1942_v41, %v1687_v63  ;;  %v2010_v4 = vsel %vm2006_vm7, %v1977_v33, %v3567_v5  ;;  %v1135_v41 = vrot.slane %v1133_v1, 5  ;;  %v1346_v63 = vrot.slane %v3673_v15, 5 }
  0xb5   : > { %v2008_v46 = vsel %vm2006_vm7, %v1975_v40, %v3558_v6  ;;  %1737 = vrot.lane.b32.xlu0 %v3553_v48, %s2817_s24  ;;  %v3679_v30 = vpop.permute.xlu1 %1542  ;;  %v2043_v5 = vsel %vm2039_vm5, %v2010_v4, %v3527_v37  ;;  %v1123_v37 = vshll.u32 %v3673_v15, 16  ;;  %v1116_v18 = vrot.slane %v1114_v44, 4 }
  0xb6   : > { %v2041_v25 = vsel %vm2039_vm5, %v2008_v46, %v3512_v2  ;;  %v2076_v48 = vsel %vm2072_vm8, %v2043_v5, %v1794_v31  ;;  %v1119_v59 = vrot.slane %v1117_v28, 5  ;;  %v1138_v40 = vshrl.u32 %v3729_v8, 16 }
  0xb7   : > { %v1792_v6 = vpop.permute.xlu0 %1791  ;;  %v2109_v31 = vsel %vm2105_vm0, %v2076_v48, %v3603_v35  ;;  %v1343_v35 = vsel %vm2922_vm13, %v1341_v24, %v1342_v56  ;;  %v1141_v4 = vshll.u32 %v3729_v8, 16  ;;  %v1151_v13 = vshrl.u32 %v3731_v9, 16 }
  0xb8   : > { %1774 = vrot.lane.b32.xlu1 %v3660_v34, %s2815_s20  ;;  %v2074_v2 = vsel %vm2072_vm8, %v2041_v25, %v1792_v6  ;;  %v1120_v27 = vor.u32 %v1119_v59, %v1116_v18  ;;  %v3727_v55 = vcombine.low %v1340_v45, %v1343_v35  ;;  %v1147_v17 = vshll.u32 %v3731_v9, 16 }
  0xb9   : > { %1772 = vrot.lane.b32.xlu0 %v3575_v23, %s2815_s20  ;;  %v3699_v26 = vpop.permute.xlu1 %1622  ;;  %v2107_v14 = vsel %vm2105_vm0, %v2074_v2, %v3578_v7  ;;  %v1125_v7 = vrot.slane %v1123_v37, 5  ;;  %v3744_v5 = vcombine.low %v3662_v19, %v3673_v15  ;;  %v2620_v25 = vrot.slane %v3662_v19, 9  ;;  %v3755_v15 = vld [vmem:[#allocation2 + $0xa4] sm:$0x1] }
  0xba   : > { %2727 = vmatprep.mubr.msk.bf16.mxu0 %vm2158_vm9, %v2107_v14  ;;  %v1121_v33 = vrot.slane %v1120_v27, 4  ;;  %v1348_v6 = vrot.slane %v1346_v63, 4  ;;  %v1349_v48 = vrot.slane %v806_v54, 5  ;;  %v1140_v11 = vrot.slane %v1138_v40, 4 }
  0xbb   : > { %2728 = vmatmul.mubr.msk.bf16.vlgmr.msra.gmra.mrb[0].mxu0 %vm2158_vm9, %v2109_v31  ;;  %v1621_v3 = vpop.permute.xlu0 %1620  ;;  %v1130_v42 = vor.u32 %v1129_v36, %v1125_v7  ;;  %v1143_v37 = vrot.slane %v1141_v4, 5  ;;  %v1149_v2 = vrot.slane %v1147_v17, 5  ;;  %v1153_v47 = vrot.slane %v1151_v13, 4 }
  0xbc   : > { %1809 = vrot.lane.b32.xlu1 %v3691_v29, %s2820_s29  ;;  %v1126_v44 = vsel %vm2978_vm14, %v1121_v33, %v1125_v7  ;;  %v1347_v31 = vsel %vm2922_vm13, %v2620_v25, %v1346_v63  ;;  %v1350_v20 = vsel %vm2922_vm13, %v1348_v6, %v1349_v48  ;;  %v1157_v18 = vshll.u32 %v3755_v15, 16  ;;  %v3807_v63 = vld [vmem:[#allocation2 + $0xac] sm:$0xf] }
  0xbd   : > { %1807 = vrot.lane.b32.xlu0 %v3607_v57, %s2820_s29  ;;  %v3715_v38 = vpop.permute.xlu1 %1657  ;;  %v1144_v24 = vor.u32 %v1143_v37, %v1140_v11  ;;  %v1154_v56 = vor.u32 %v1153_v47, %v1149_v2  ;;  %v1870_v36 = vsel %vm1858_vm1, %v3001_v12, %v3679_v30  ;;  %v3778_v45 = vcombine.low %v1347_v31, %v1350_v20  ;;  %v812_v20 = vld [vmem:[#allocation2 + $0xb0] sm:$0x1] }
  0xbe   : > { %v1159_v27 = vrot.slane %v1157_v18, 5  ;;  %v1915_v12 = vsel %vm1907_vm2, %v1870_v36, %v3699_v26  ;;  %v3796_v33 = vcombine.low %v3729_v8, %v3731_v9  ;;  %v1353_v13 = vrot.slane %v3731_v9, 5 }
  0xbf   : > { %v1656_v16 = vpop.permute.xlu0 %1655  ;;  %v1155_v35 = vrot.slane %v1154_v56, 4  ;;  %v2621_v48 = vrot.slane %v3729_v8, 9  ;;  %v1356_v37 = vrot.slane %v3755_v15, 5 }
  0xc0   : > { %1556 = vrot.lane.b32.xlu1 %v3607_v57, %s2816_s21  ;;  %v1131_v57 = vrot.slane %v1130_v42, 4  ;;  %v1355_v11 = vrot.slane %v1353_v13, 4 }
  0xc1   : > { %1842 = vrot.lane.b32.xlu0 %v3631_v39, %s2818_s25  ;;  %v1354_v8 = vsel %vm2922_vm13, %v2621_v48, %v1353_v13 }
  0xc2   : > { %v3725_v62 = vpop.permute.xlu1 %1692  ;;  %v1136_v28 = vsel %vm2978_vm14, %v1131_v57, %v1135_v41  ;;  %v1160_v41 = vsel %vm2978_vm14, %v1155_v35, %v1159_v27  ;;  %v1357_v15 = vsel %vm2922_vm13, %v1355_v11, %v1356_v37  ;;  %v1360_v27 = vrot.slane %v3807_v63, 5 }
  0xc3   : > { %v1691_v43 = vpop.permute.xlu0 %1690  ;;  %v3759_v22 = vcombine.low %v1126_v44, %v1136_v28  ;;  %v1171_v28 = vshll.u32 %v3807_v63, 16  ;;  %v3850_v36 = vcombine.low %v1354_v8, %v1357_v15 }
  0xc4   : > { %1558 = vrot.lane.b32.xlu1 %v3691_v29, %s2816_s21 }
  0xc5   : > { %1844 = vrot.lane.b32.xlu0 %v3727_v55, %s2818_s25 }
  0xc6   : > { %v1728_v46 = vpop.permute.xlu1 %1727 }
  0xc7   : > { %v1726_v32 = vpop.permute.xlu0 %1725 }
  0xc8   : > { %1638 = vrot.lane.b32.xlu1 %v3727_v55, %s2813_s18 }
  0xc9   : > { %1636 = vrot.lane.b32.xlu0 %v3631_v39, %s2813_s18  ;;  %v1867_v39 = vsel %vm1858_vm1, %v2974_v49, %v3644_v53  ;;  %v1145_v53 = vrot.slane %v1144_v24, 4 }
  0xca   : > { %v1763_v19 = vpop.permute.xlu1 %1762  ;;  %v1913_v7 = vsel %vm1907_vm2, %v1867_v39, %v1621_v3 }
  0xcb   : > { %v1761_v14 = vpop.permute.xlu0 %1760  ;;  %v1946_v54 = vsel %vm1940_vm4, %v1913_v7, %v1656_v16  ;;  %v1948_v16 = vsel %vm1940_vm4, %v1915_v12, %v3715_v38  ;;  %v1150_v38 = vsel %vm2978_vm14, %v1145_v53, %v1149_v2 }
  0xcc   : > { %1673 = vrot.lane.b32.xlu1 %v3744_v5, %s2814_s19  ;;  %v1979_v49 = vsel %vm1973_vm6, %v1946_v54, %v1691_v43  ;;  %v1981_v26 = vsel %vm1973_vm6, %v1948_v16, %v3725_v62  ;;  %v3852_v54 = vld [vmem:[#allocation2 + $0xb4] sm:$0xf] }
  0xcd   : > { %1671 = vrot.lane.b32.xlu0 %v3660_v34, %s2814_s19  ;;  %v2012_v42 = vsel %vm2006_vm7, %v1979_v49, %v1726_v32  ;;  %v2014_v40 = vsel %vm2006_vm7, %v1981_v26, %v1728_v46  ;;  %v3822_v46 = vcombine.low %v1150_v38, %v1160_v41  ;;  %v1189_v12 = vshll.u32 %v3852_v54, 16 }
  0xce   : > { %v1798_v59 = vpop.permute.xlu1 %1797  ;;  %v2045_v30 = vsel %vm2039_vm5, %v2012_v42, %v1761_v14  ;;  %v2047_v62 = vsel %vm2039_vm5, %v2014_v40, %v1763_v19  ;;  %v1173_v14 = vrot.slane %v1171_v28, 5  ;;  %v1186_v42 = vshrl.u32 %v3852_v54, 16 }
  0xcf   : > { %v1796_v0 = vpop.permute.xlu0 %1795  ;;  %v2080_v32 = vsel %vm2072_vm8, %v2047_v62, %v1798_v59  ;;  %v1181_v59 = vshll.u32 %v812_v20, 16  ;;  %v1362_v40 = vrot.slane %v1360_v27, 4  ;;  %v1363_v62 = vrot.slane %v812_v20, 5 }
  0xd0   : > { %1708 = vrot.lane.b32.xlu1 %v3759_v22, %s2819_s28  ;;  %v2078_v1 = vsel %vm2072_vm8, %v2045_v30, %v1796_v0  ;;  %v3854_v0 = vld [vmem:[#allocation2 + $0xb8] sm:$0xf]  ;;  %v1188_v13 = vrot.slane %v1186_v42, 4 }
  0xd1   : > { %1706 = vrot.lane.b32.xlu0 %v3691_v29, %s2819_s28  ;;  %v3798_v29 = vld [vmem:[#allocation2 + $0xa8] sm:$0xf]  ;;  %v1183_v35 = vrot.slane %v1181_v59, 5  ;;  %v1199_v30 = vshrl.u32 %v3854_v0, 16  ;;  %v1195_v16 = vshll.u32 %v3854_v0, 16 }
  0xd2   : > { %v3784_v3 = vpop.permute.xlu1 %1544  ;;  %v1162_v17 = vshrl.u32 %v3798_v29, 16  ;;  %v1165_v25 = vshll.u32 %v3798_v29, 16  ;;  %v2622_v26 = vrot.slane %v3798_v29, 9 }
  0xd3   : > { %v1831_v43 = vpop.permute.xlu0 %1830 }
  0xd4   : > { %1743 = vrot.lane.b32.xlu1 %v3778_v45, %s2817_s24  ;;  %v2111_v57 = vsel %vm2105_vm0, %v2078_v1, %v1831_v43  ;;  %v1164_v47 = vrot.slane %v1162_v17, 4  ;;  %v1167_v19 = vrot.slane %v1165_v25, 5  ;;  %v3867_v43 = vcombine.low %v3798_v29, %v3807_v63 }
  0xd5   : > { %1741 = vrot.lane.b32.xlu0 %v3727_v55, %s2817_s24  ;;  %2731 = vmatprep.mubr.msk.bf16.mxu0 %vm2158_vm9, %v2111_v57  ;;  %v1175_v55 = vshrl.u32 %v3807_v63, 16  ;;  %v1191_v17 = vrot.slane %v1189_v12, 5  ;;  %v1197_v25 = vrot.slane %v1195_v16, 5  ;;  %v3878_v63 = vld [vmem:[#allocation2 + $0xbc] sm:$0x1]  ;;  %v1361_v28 = vsel %vm2922_vm13, %v2622_v26, %v1360_v27 }
  0xd6   : > { %v3813_v4 = vpop.permute.xlu1 %1546  ;;  %v1168_v18 = vor.u32 %v1167_v19, %v1164_v47  ;;  %v1205_v37 = vshll.u32 %v3878_v63, 16 }
  0xd7   : > { %v1833_v44 = vpop.permute.xlu0 %1832  ;;  %v1177_v31 = vrot.slane %v1175_v55, 4  ;;  %v1192_v48 = vor.u32 %v1191_v17, %v1188_v13  ;;  %v1370_v17 = vrot.slane %v3878_v63, 5 }
  0xd8   : > { %1778 = vrot.lane.b32.xlu1 %v3796_v33, %s2815_s20  ;;  %v2113_v6 = vsel %vm2105_vm0, %v2080_v32, %v1833_v44  ;;  %v1169_v53 = vrot.slane %v1168_v18, 4  ;;  %v1201_v32 = vrot.slane %v1199_v30, 4  ;;  %v1207_v18 = vrot.slane %v1205_v37, 5  ;;  %v3969_v37 = vld [vmem:[#allocation2 + $0xd0] sm:$0xf] }
  0xd9   : > { %1776 = vrot.lane.b32.xlu0 %v3744_v5, %s2815_s20  ;;  %2732 = vmatmul.mubr.msk.bf16.gmra.mrb[4].mxu0 %vm2158_vm9, %v2113_v6  ;;  %v1178_v39 = vor.u32 %v1177_v31, %v1173_v14  ;;  %v1364_v6 = vsel %vm2922_vm13, %v1362_v40, %v1363_v62  ;;  %v1367_v30 = vrot.slane %v3854_v0, 5  ;;  %v2623_v62 = vrot.slane %v3852_v54, 9 }
  0xda   : > { %v3830_v9 = vpop.permute.xlu1 %1626  ;;  %v1174_v38 = vsel %vm2978_vm14, %v1169_v53, %v1173_v14  ;;  %v1202_v11 = vor.u32 %v1201_v32, %v1197_v25  ;;  %v1876_v14 = vsel %vm1858_vm1, %v3188_v58, %v3813_v4  ;;  %v3901_v8 = vcombine.low %v1361_v28, %v1364_v6 }
  0xdb   : > { %v1625_v2 = vpop.permute.xlu0 %1624  ;;  %v1919_v58 = vsel %vm1907_vm2, %v1876_v14, %v3830_v9  ;;  %v3919_v53 = vcombine.low %v3852_v54, %v3854_v0  ;;  %v1369_v13 = vrot.slane %v1367_v30, 4  ;;  %v1368_v54 = vsel %vm2922_vm13, %v2623_v62, %v1367_v30  ;;  %v3971_v14 = vld [vmem:[#allocation2 + $0xcc] sm:$0xf] }
  0xdc   : > { %1813 = vrot.lane.b32.xlu1 %v3822_v46, %s2820_s29  ;;  %v1203_v15 = vrot.slane %v1202_v11, 4 }
  0xdd   : > { %1811 = vrot.lane.b32.xlu0 %v3759_v22, %s2820_s29  ;;  %v1371_v63 = vsel %vm2922_vm13, %v1369_v13, %v1370_v17 }
  0xde   : > { %v3838_v24 = vpop.permute.xlu1 %1661 }
  0xdf   : > { %v1660_v56 = vpop.permute.xlu0 %1659 }
  0xe0   : > { %1560 = vrot.lane.b32.xlu1 %v3759_v22, %s2816_s21  ;;  %v1179_v22 = vrot.slane %v1178_v39, 4 }
  0xe1   : > { %1846 = vrot.lane.b32.xlu0 %v3778_v45, %s2818_s25 }
  0xe2   : > { %v3848_v7 = vpop.permute.xlu1 %1696  ;;  %v1184_v41 = vsel %vm2978_vm14, %v1179_v22, %v1183_v35  ;;  %v3928_v35 = vld [vmem:[#allocation2 + $0xc0] sm:$0xf] }
  0xe3   : > { %v1695_v49 = vpop.permute.xlu0 %1694  ;;  %v3882_v55 = vcombine.low %v1174_v38, %v1184_v41  ;;  %v1376_v38 = vshll.u32 %v3928_v35, 16 }
  0xe4   : > { %1562 = vrot.lane.b32.xlu1 %v3822_v46, %s2816_s21 }
  0xe5   : > { %1848 = vrot.lane.b32.xlu0 %v3850_v36, %s2818_s25 }
  0xe6   : > { %v1732_v1 = vpop.permute.xlu1 %1731 }
  0xe7   : > { %v1730_v57 = vpop.permute.xlu0 %1729 }
  0xe8   : > { %1642 = vrot.lane.b32.xlu1 %v3850_v36, %s2813_s18 }
  0xe9   : > { %1640 = vrot.lane.b32.xlu0 %v3778_v45, %s2813_s18  ;;  %v1873_v45 = vsel %vm1858_vm1, %v3139_v10, %v3784_v3  ;;  %v1193_v3 = vrot.slane %v1192_v48, 4  ;;  %v818_v48 = vld [vmem:[#allocation2 + $0xc8] sm:$0x1] }
  0xea   : > { %v1767_v29 = vpop.permute.xlu1 %1766  ;;  %v1917_v19 = vsel %vm1907_vm2, %v1873_v45, %v1625_v2 }
  0xeb   : > { %v1765_v44 = vpop.permute.xlu0 %1764  ;;  %v1950_v31 = vsel %vm1940_vm4, %v1917_v19, %v1660_v56  ;;  %v1952_v56 = vsel %vm1940_vm4, %v1919_v58, %v3838_v24  ;;  %v1198_v22 = vsel %vm2978_vm14, %v1193_v3, %v1197_v25  ;;  %v1208_v24 = vsel %vm2978_vm14, %v1203_v15, %v1207_v18 }
  0xec   : > { %1677 = vrot.lane.b32.xlu1 %v3867_v43, %s2814_s19  ;;  %v1983_v10 = vsel %vm1973_vm6, %v1950_v31, %v1695_v49  ;;  %v1392_v19 = vshll.u32 %v818_v48, 16  ;;  %v1416_v3 = vshll.u32 %v3969_v37, 16  ;;  %v1407_v18 = vshrl.u32 %v3971_v14, 16 }
  0xed   : > { %1675 = vrot.lane.b32.xlu0 %v3796_v33, %s2814_s19  ;;  %v2016_v39 = vsel %vm2006_vm7, %v1983_v10, %v1730_v57  ;;  %v1420_v10 = vshrl.u32 %v3969_v37, 16 }
  0xee   : > { %v1802_v47 = vpop.permute.xlu1 %1801  ;;  %v2049_v4 = vsel %vm2039_vm5, %v2016_v39, %v1765_v44 }
  0xef   : > { %v1800_v20 = vpop.permute.xlu0 %1799 }
  0xf0   : > { %1712 = vrot.lane.b32.xlu1 %v3882_v55, %s2819_s28  ;;  %v2082_v59 = vsel %vm2072_vm8, %v2049_v4, %v1800_v20  ;;  %v3977_v20 = vcombine.low %v1368_v54, %v1371_v63  ;;  %v1394_v4 = vrot.slane %v1392_v19, 5  ;;  %v1435_v63 = vrot.slane %v3969_v37, 5 }
  0xf1   : > { %1710 = vrot.lane.b32.xlu0 %v3822_v46, %s2819_s28  ;;  %v1985_v46 = vsel %vm1973_vm6, %v1952_v56, %v3848_v7  ;;  %v3936_v7 = vld [vmem:[#allocation2 + $0xc4] sm:$0xf]  ;;  %v1410_v56 = vshll.u32 %v3971_v14, 16 }
  0xf2   : > { %v3907_v2 = vpop.permute.xlu1 %1548  ;;  %v2018_v27 = vsel %vm2006_vm7, %v1985_v46, %v1732_v1  ;;  %v3943_v1 = vcombine.low %v1198_v22, %v1208_v24  ;;  %v1386_v41 = vshrl.u32 %v3936_v7, 16  ;;  %v1382_v40 = vshll.u32 %v3936_v7, 16 }
  0xf3   : > { %v1835_v49 = vpop.permute.xlu0 %1834  ;;  %v2051_v12 = vsel %vm2039_vm5, %v2018_v27, %v1767_v29  ;;  %v1378_v29 = vrot.slane %v1376_v38, 5  ;;  %v1422_v46 = vrot.slane %v1420_v10, 4  ;;  %v3994_v22 = vcombine.low %v3928_v35, %v3936_v7  ;;  %v821_v38 = vld [vmem:[#allocation2 + $0xd4] sm:$0x1] }
  0xf4   : > { %1747 = vrot.lane.b32.xlu1 %v3901_v8, %s2817_s24  ;;  %v2115_v9 = vsel %vm2105_vm0, %v2082_v59, %v1835_v49  ;;  %v2084_v16 = vsel %vm2072_vm8, %v2051_v12, %v1802_v47  ;;  %v1384_v44 = vrot.slane %v1382_v40, 5  ;;  %v1388_v28 = vrot.slane %v1386_v41, 4 }
  0xf5   : > { %1745 = vrot.lane.b32.xlu0 %v3850_v36, %s2817_s24  ;;  %2735 = vmatprep.mubr.msk.bf16.mxu0 %vm2158_vm9, %v2115_v9  ;;  %v1373_v36 = vshrl.u32 %v3928_v35, 16  ;;  %v3988_v49 = vrot.slane %v1416_v3, 5  ;;  %v2624_v24 = vrot.slane %v3928_v35, 9  ;;  %v1409_v12 = vrot.slane %v1407_v18, 4 }
  0xf6   : > { %v3934_v42 = vpop.permute.xlu1 %1550  ;;  %v1389_v47 = vor.u32 %v1388_v28, %v1384_v44  ;;  %v1426_v17 = vshll.u32 %v821_v38, 16  ;;  %v2625_v10 = vrot.slane %v3971_v14, 9  ;;  %v1438_v18 = vrot.slane %v821_v38, 5 }
  0xf7   : > { %v1837_v26 = vpop.permute.xlu0 %1836  ;;  %v1375_v32 = vrot.slane %v1373_v36, 4  ;;  %v1412_v36 = vrot.slane %v1410_v56, 5  ;;  %v1423_v13 = vor.u32 %v1422_v46, %v3988_v49 }
  0xf8   : > { %1782 = vrot.lane.b32.xlu1 %v3919_v53, %s2815_s20  ;;  %v2117_v57 = vsel %vm2105_vm0, %v2084_v16, %v1837_v26  ;;  %v1390_v58 = vrot.slane %v1389_v47, 4  ;;  %v1404_v26 = vrot.slane %v818_v48, 5  ;;  %v1428_v47 = vrot.slane %v1426_v17, 5 }
  0xf9   : > { %1780 = vrot.lane.b32.xlu0 %v3867_v43, %s2815_s20  ;;  %2736 = vmatmul.mubr.msk.bf16.gmra.mrb[8].mxu0 %vm2158_vm9, %v2117_v57  ;;  %v1379_v45 = vor.u32 %v1378_v29, %v1375_v32  ;;  %v1413_v62 = vor.u32 %v1412_v36, %v1409_v12  ;;  %v1436_v50 = vsel %vm2922_vm13, %v2625_v10, %v1435_v63 }
  0xfa   : > { %v3953_v0 = vpop.permute.xlu1 %1630  ;;  %v1395_v16 = vsel %vm2978_vm14, %v1390_v58, %v1394_v4 }
  0xfb   : > { %v1629_v25 = vpop.permute.xlu0 %1628  ;;  %v1380_v39 = vrot.slane %v1379_v45, 4  ;;  %v1424_v45 = vrot.slane %v1423_v13, 4 }
  0xfc   : > { %1817 = vrot.lane.b32.xlu1 %v3943_v1, %s2820_s29 }
  0xfd   : > { %1815 = vrot.lane.b32.xlu0 %v3882_v55, %s2820_s29  ;;  %v1385_v30 = vsel %vm2978_vm14, %v1380_v39, %v1384_v44  ;;  %v1882_v44 = vsel %vm1858_vm1, %v3322_v21, %v3934_v42 }
  0xfe   : > { %v3961_v6 = vpop.permute.xlu1 %1665  ;;  %v2675_v35 = vcombine.low %v1385_v30, %v1395_v16  ;;  %v1923_v21 = vsel %vm1907_vm2, %v1882_v44, %v3953_v0 }
  0xff   : > { %v1664_v11 = vpop.permute.xlu0 %1663  ;;  %v1956_v3 = vsel %vm1940_vm4, %v1923_v21, %v3961_v6 }
 0x100   : > { %1564 = vrot.lane.b32.xlu1 %v3882_v55, %s2816_s21  ;;  %v1401_v55 = vrot.slane %v3936_v7, 5 }
 0x101   : > { %1850 = vrot.lane.b32.xlu0 %v3901_v8, %s2818_s25 }
 0x102   : > { %v3975_v31 = vpop.permute.xlu1 %1700  ;;  %v1403_v27 = vrot.slane %v1401_v55, 4  ;;  %v1402_v7 = vsel %vm2922_vm13, %v2624_v24, %v1401_v55 }
 0x103   : > { %v1699_v15 = vpop.permute.xlu0 %1698  ;;  %v1989_v0 = vsel %vm1973_vm6, %v1956_v3, %v3975_v31 }
 0x104   : > { %1566 = vrot.lane.b32.xlu1 %v3943_v1, %s2816_s21  ;;  %v1405_v40 = vsel %vm2922_vm13, %v1403_v27, %v1404_v26 }
 0x105   : > { %1852 = vrot.lane.b32.xlu0 %v3977_v20, %s2818_s25  ;;  %v2676_v54 = vcombine.low %v1402_v7, %v1405_v40 }
 0x106   : > { %v1736_v59 = vpop.permute.xlu1 %1735 }
 0x107   : > { %v1734_v9 = vpop.permute.xlu0 %1733  ;;  %v2022_v6 = vsel %vm2006_vm7, %v1989_v0, %v1736_v59 }
 0x108   : > { %1646 = vrot.lane.b32.xlu1 %v3977_v20, %s2813_s18 }
 0x109   : > { %1644 = vrot.lane.b32.xlu0 %v3901_v8, %s2813_s18  ;;  %v1879_v8 = vsel %vm1858_vm1, %v3271_v51, %v3907_v2  ;;  %v1414_v2 = vrot.slane %v1413_v62, 4 }
 0x10a   : > { %v1771_v57 = vpop.permute.xlu1 %1770  ;;  %v1921_v29 = vsel %vm1907_vm2, %v1879_v8, %v1629_v25 }
 0x10b   : > { %v1769_v41 = vpop.permute.xlu0 %1768  ;;  %v1954_v28 = vsel %vm1940_vm4, %v1921_v29, %v1664_v11  ;;  %v2677_v11 = vcombine.low %v3971_v14, %v3969_v37  ;;  %v1419_v37 = vsel %vm2978_vm14, %v1414_v2, %v3988_v49  ;;  %v1429_v14 = vsel %vm2978_vm14, %v1424_v45, %v1428_v47 }
 0x10c   : > { %1681 = vrot.lane.b32.xlu1 %v3994_v22, %s2814_s19  ;;  %v1987_v51 = vsel %vm1973_vm6, %v1954_v28, %v1699_v15  ;;  %v2055_v4 = vsel %vm2039_vm5, %v2022_v6, %v1771_v57  ;;  %v2678_v46 = vcombine.low %v1419_v37, %v1429_v14 }
 0x10d   : > { %1679 = vrot.lane.b32.xlu0 %v3919_v53, %s2814_s19  ;;  %v2020_v19 = vsel %vm2006_vm7, %v1987_v51, %v1734_v9 }
 0x10e   : > { %v1806_v32 = vpop.permute.xlu1 %1805  ;;  %v2053_v42 = vsel %vm2039_vm5, %v2020_v19, %v1769_v41 }
 0x10f   : > { %v1804_v48 = vpop.permute.xlu0 %1803  ;;  %v2088_v31 = vsel %vm2072_vm8, %v2055_v4, %v1806_v32 }
 0x110   : > { %1716 = vrot.lane.b32.xlu1 %v2675_v35, %s2819_s28  ;;  %v2086_v15 = vsel %vm2072_vm8, %v2053_v42, %v1804_v48 }
 0x111   : > { %1714 = vrot.lane.b32.xlu0 %v3943_v1, %s2819_s28  ;;  %v1437_v1 = vrot.slane %v1435_v63, 4 }
 0x112   : > { %v1553_v25 = vpop.permute.xlu1 %1552 }
 0x113   : > { %v1839_v55 = vpop.permute.xlu0 %1838  ;;  %v1439_v59 = vsel %vm2922_vm13, %v1437_v1, %v1438_v18  ;;  %v1885_v57 = vsel %vm1858_vm1, %v3390_v52, %v1553_v25 }
 0x114   : > { %1751 = vrot.lane.b32.xlu1 %v2676_v54, %s2817_s24  ;;  %v2119_v39 = vsel %vm2105_vm0, %v2086_v15, %v1839_v55  ;;  %v2679_v24 = vcombine.low %v1436_v50, %v1439_v59 }
 0x115   : > { %1749 = vrot.lane.b32.xlu0 %v3977_v20, %s2817_s24  ;;  %2739 = vmatprep.mubr.msk.bf16.mxu0 %vm2158_vm9, %v2119_v39 }
 0x116   : > { %v1555_v58 = vpop.permute.xlu1 %1554 }
 0x117   : > { %v1841_v56 = vpop.permute.xlu0 %1840 }
 0x118   : > { %1786 = vrot.lane.b32.xlu1 %v2677_v11, %s2815_s20  ;;  %v2121_v49 = vsel %vm2105_vm0, %v2088_v31, %v1841_v56 }
 0x119   : > { %1784 = vrot.lane.b32.xlu0 %v3994_v22, %s2815_s20  ;;  %2740 = vmatmul.mubr.msk.bf16.gmra.mrb[12].mxu0 %vm2158_vm9, %v2121_v49 }
 0x11a   : > { %v1635_v20 = vpop.permute.xlu1 %1634 }
 0x11b   : > { %v1633_v9 = vpop.permute.xlu0 %1632 }
 0x11c   : > { %1821 = vrot.lane.b32.xlu1 %v2678_v46, %s2820_s29  ;;  %v1925_v41 = vsel %vm1907_vm2, %v1885_v57, %v1633_v9 }
 0x11d   : > { %1819 = vrot.lane.b32.xlu0 %v2675_v35, %s2820_s29  ;;  %v1888_v35 = vsel %vm1858_vm1, %v3474_v60, %v1555_v58 }
 0x11e   : > { %v1670_v27 = vpop.permute.xlu1 %1669  ;;  %v1927_v8 = vsel %vm1907_vm2, %v1888_v35, %v1635_v20 }
 0x11f   : > { %v1668_v12 = vpop.permute.xlu0 %1667  ;;  %v1960_v52 = vsel %vm1940_vm4, %v1927_v8, %v1670_v27 }
 0x120   : > { %1856 = vrot.lane.b32.xlu1 %v2679_v24, %s2818_s25  ;;  %v1958_v7 = vsel %vm1940_vm4, %v1925_v41, %v1668_v12 }
 0x121   : > { %1854 = vrot.lane.b32.xlu0 %v2676_v54, %s2818_s25 }
 0x122   : > { %v1705_v61 = vpop.permute.xlu1 %1704 }
 0x123   : > { %v1703_v30 = vpop.permute.xlu0 %1702  ;;  %v1993_v28 = vsel %vm1973_vm6, %v1960_v52, %v1705_v61 }
 0x124   : > { %v1991_v62 = vsel %vm1973_vm6, %v1958_v7, %v1703_v30 }
 0x126   : > { %v1740_v16 = vpop.permute.xlu1 %1739 }
 0x127   : > { %v1738_v26 = vpop.permute.xlu0 %1737  ;;  %v2026_v48 = vsel %vm2006_vm7, %v1993_v28, %v1740_v16 }
 0x128   : > { %v2024_v13 = vsel %vm2006_vm7, %v1991_v62, %v1738_v26 }
 0x12a   : > { %v1775_v22 = vpop.permute.xlu1 %1774 }
 0x12b   : > { %v1773_v36 = vpop.permute.xlu0 %1772  ;;  %v2059_v63 = vsel %vm2039_vm5, %v2026_v48, %v1775_v22 }
 0x12c   : > { %v2057_v32 = vsel %vm2039_vm5, %v2024_v13, %v1773_v36 }
 0x12e   : > { %v1810_v38 = vpop.permute.xlu1 %1809 }
 0x12f   : > { %v1808_v40 = vpop.permute.xlu0 %1807  ;;  %v2092_v51 = vsel %vm2072_vm8, %v2059_v63, %v1810_v38 }
 0x130   : > { %v2090_v29 = vsel %vm2072_vm8, %v2057_v32, %v1808_v40 }
 0x132   : > { %v1557_v17 = vpop.permute.xlu1 %1556 }
 0x133   : > { %v1843_v44 = vpop.permute.xlu0 %1842  ;;  %v1891_v1 = vsel %vm1858_vm1, %v3575_v23, %v1557_v17 }
 0x134   : > { %v2123_v60 = vsel %vm2105_vm0, %v2090_v29, %v1843_v44 }
 0x135   : > { %2743 = vmatprep.mubr.msk.bf16.mxu1 %vm2158_vm9, %v2123_v60 }
 0x136   : > { %v1559_v54 = vpop.permute.xlu1 %1558 }
 0x137   : > { %v1845_v2 = vpop.permute.xlu0 %1844  ;;  %v1894_v39 = vsel %vm1858_vm1, %v3660_v34, %v1559_v54 }
 0x138   : > { %v2125_v45 = vsel %vm2105_vm0, %v2092_v51, %v1845_v2 }
 0x139   : > { %2744 = vmatmul.mubr.msk.bf16.vlgmr.msra.gmra.mrb[0].mxu1 %vm2158_vm9, %v2125_v45 }
 0x13a   : > { %v1639_v47 = vpop.permute.xlu1 %1638 }
 0x13b   : > { %v1637_v19 = vpop.permute.xlu0 %1636  ;;  %v1931_v31 = vsel %vm1907_vm2, %v1894_v39, %v1639_v47 }
 0x13c   : > { %v1929_v0 = vsel %vm1907_vm2, %v1891_v1, %v1637_v19 }
 0x13e   : > { %v1674_v25 = vpop.permute.xlu1 %1673 }
 0x13f   : > { %v1672_v21 = vpop.permute.xlu0 %1671  ;;  %v1964_v23 = vsel %vm1940_vm4, %v1931_v31, %v1674_v25 }
 0x140   : > { %v1962_v37 = vsel %vm1940_vm4, %v1929_v0, %v1672_v21 }
 0x142   : > { %v1709_v42 = vpop.permute.xlu1 %1708 }
 0x143   : > { %v1707_v11 = vpop.permute.xlu0 %1706  ;;  %v1997_v50 = vsel %vm1973_vm6, %v1964_v23, %v1709_v42 }
 0x144   : > { %v1995_v6 = vsel %vm1973_vm6, %v1962_v37, %v1707_v11 }
 0x146   : > { %v1744_v10 = vpop.permute.xlu1 %1743 }
 0x147   : > { %v1742_v3 = vpop.permute.xlu0 %1741  ;;  %v2030_v59 = vsel %vm2006_vm7, %v1997_v50, %v1744_v10 }
 0x148   : > { %v2028_v58 = vsel %vm2006_vm7, %v1995_v6, %v1742_v3 }
 0x14a   : > { %v1779_v15 = vpop.permute.xlu1 %1778 }
 0x14b   : > { %v1777_v55 = vpop.permute.xlu0 %1776  ;;  %v2063_v9 = vsel %vm2039_vm5, %v2030_v59, %v1779_v15 }
 0x14c   : > { %v2061_v56 = vsel %vm2039_vm5, %v2028_v58, %v1777_v55 }
 0x14e   : > { %v1814_v18 = vpop.permute.xlu1 %1813 }
 0x14f   : > { %v1812_v14 = vpop.permute.xlu0 %1811  ;;  %v2096_v24 = vsel %vm2072_vm8, %v2063_v9, %v1814_v18 }
 0x150   : > { %v2094_v46 = vsel %vm2072_vm8, %v2061_v56, %v1812_v14 }
 0x152   : > { %v1561_v4 = vpop.permute.xlu1 %1560 }
 0x153   : > { %v1847_v49 = vpop.permute.xlu0 %1846  ;;  %v1897_v7 = vsel %vm1858_vm1, %v3744_v5, %v1561_v4 }
 0x154   : > { %v2127_v34 = vsel %vm2105_vm0, %v2094_v46, %v1847_v49 }
 0x155   : > { %2747 = vmatprep.mubr.msk.bf16.mxu1 %vm2158_vm9, %v2127_v34 }
 0x156   : > { %v1563_v20 = vpop.permute.xlu1 %1562 }
 0x157   : > { %v1849_v27 = vpop.permute.xlu0 %1848  ;;  %v1900_v13 = vsel %vm1858_vm1, %v3796_v33, %v1563_v20 }
 0x158   : > { %v2129_v12 = vsel %vm2105_vm0, %v2096_v24, %v1849_v27 }
 0x159   : > { %2748 = vmatmul.mubr.msk.bf16.gmra.mrb[4].mxu1 %vm2158_vm9, %v2129_v12 }
 0x15a   : > { %v1643_v61 = vpop.permute.xlu1 %1642 }
 0x15b   : > { %v1641_v30 = vpop.permute.xlu0 %1640  ;;  %v1935_v44 = vsel %vm1907_vm2, %v1900_v13, %v1643_v61 }
 0x15c   : > { %v1933_v62 = vsel %vm1907_vm2, %v1897_v7, %v1641_v30 }
 0x15e   : > { %v1678_v16 = vpop.permute.xlu1 %1677 }
 0x15f   : > { %v1676_v26 = vpop.permute.xlu0 %1675  ;;  %v1968_v5 = vsel %vm1940_vm4, %v1935_v44, %v1678_v16 }
 0x160   : > { %v1966_v17 = vsel %vm1940_vm4, %v1933_v62, %v1676_v26 }
 0x162   : > { %v1713_v22 = vpop.permute.xlu1 %1712 }
 0x163   : > { %v1711_v36 = vpop.permute.xlu0 %1710  ;;  %v2001_v54 = vsel %vm1973_vm6, %v1968_v5, %v1713_v22 }
 0x164   : > { %v1999_v32 = vsel %vm1973_vm6, %v1966_v17, %v1711_v36 }
 0x166   : > { %v1748_v57 = vpop.permute.xlu1 %1747 }
 0x167   : > { %v1746_v38 = vpop.permute.xlu0 %1745  ;;  %v2034_v63 = vsel %vm2006_vm7, %v2001_v54, %v1748_v57 }
 0x168   : > { %v2032_v52 = vsel %vm2006_vm7, %v1999_v32, %v1746_v38 }
 0x16a   : > { %v1783_v41 = vpop.permute.xlu1 %1782 }
 0x16b   : > { %v1781_v35 = vpop.permute.xlu0 %1780  ;;  %v2067_v2 = vsel %vm2039_vm5, %v2034_v63, %v1783_v41 }
 0x16c   : > { %v2065_v28 = vsel %vm2039_vm5, %v2032_v52, %v1781_v35 }
 0x16e   : > { %v1818_v40 = vpop.permute.xlu1 %1817 }
 0x16f   : > { %v1816_v8 = vpop.permute.xlu0 %1815  ;;  %v2100_v45 = vsel %vm2072_vm8, %v2067_v2, %v1818_v40 }
 0x170   : > { %v2098_v60 = vsel %vm2072_vm8, %v2065_v28, %v1816_v8 }
 0x172   : > { %v1565_v29 = vpop.permute.xlu1 %1564 }
 0x173   : > { %v1851_v48 = vpop.permute.xlu0 %1850  ;;  %v1903_v39 = vsel %vm1858_vm1, %v3867_v43, %v1565_v29 }
 0x174   : > { %v2131_v33 = vsel %vm2105_vm0, %v2098_v60, %v1851_v48 }
 0x175   : > { %2751 = vmatprep.mubr.msk.bf16.mxu1 %vm2158_vm9, %v2131_v33 }
 0x176   : > { %v1567_v51 = vpop.permute.xlu1 %1566 }
 0x177   : > { %v1853_v47 = vpop.permute.xlu0 %1852  ;;  %v1906_v18 = vsel %vm1858_vm1, %v3919_v53, %v1567_v51 }
 0x178   : > { %v2133_v19 = vsel %vm2105_vm0, %v2100_v45, %v1853_v47 }
 0x179   : > { %2752 = vmatmul.mubr.msk.bf16.gmra.mrb[8].mxu1 %vm2158_vm9, %v2133_v19 }
 0x17a   : > { %v1647_v25 = vpop.permute.xlu1 %1646 }
 0x17b   : > { %v1645_v21 = vpop.permute.xlu0 %1644  ;;  %v1939_v37 = vsel %vm1907_vm2, %v1906_v18, %v1647_v25 }
 0x17c   : > { %v1937_v14 = vsel %vm1907_vm2, %v1903_v39, %v1645_v21 }
 0x17e   : > { %v1682_v42 = vpop.permute.xlu1 %1681 }
 0x17f   : > { %v1680_v11 = vpop.permute.xlu0 %1679  ;;  %v1972_v58 = vsel %vm1940_vm4, %v1939_v37, %v1682_v42 }
 0x180   : > { %v1970_v4 = vsel %vm1940_vm4, %v1937_v14, %v1680_v11 }
 0x182   : > { %v1717_v10 = vpop.permute.xlu1 %1716 }
 0x183   : > { %v1715_v3 = vpop.permute.xlu0 %1714  ;;  %v2005_v56 = vsel %vm1973_vm6, %v1972_v58, %v1717_v10 }
 0x184   : > { %v2003_v23 = vsel %vm1973_vm6, %v1970_v4, %v1715_v3 }
 0x186   : > { %v1752_v15 = vpop.permute.xlu1 %1751 }
 0x187   : > { %v1750_v55 = vpop.permute.xlu0 %1749  ;;  %v2038_v49 = vsel %vm2006_vm7, %v2005_v56, %v1752_v15 }
 0x188   : > { %v2036_v43 = vsel %vm2006_vm7, %v2003_v23, %v1750_v55 }
 0x18a   : > { %v1787_v1 = vpop.permute.xlu1 %1786 }
 0x18b   : > { %v1785_v0 = vpop.permute.xlu0 %1784  ;;  %v2071_v59 = vsel %vm2039_vm5, %v2038_v49, %v1787_v1 }
 0x18c   : > { %v2069_v20 = vsel %vm2039_vm5, %v2036_v43, %v1785_v0 }
 0x18e   : > { %v1822_v6 = vpop.permute.xlu1 %1821  ;;  %v2729_v31 = vpop.f32.mrb[0].mxu0 }
 0x18f   : > { %v2229_v46 = vpop.f32.mrb[1].mxu0  ;;  %v1820_v53 = vpop.permute.xlu0 %1819  ;;  %v2429_v24 = vmul.f32 %v2729_v31, %v2729_v31  ;;  %v2104_v16 = vsel %vm2072_vm8, %v2071_v59, %v1822_v6  ;;  %v2359_v26 = vsel %vm1907_vm2, %v2729_v31, 0.0 }
 0x190   : > { %v2427_v50 = vmul.f32 %v2229_v46, %v2229_v46  ;;  %v2730_v34 = vpop.f32.mrb[2].mxu0  ;;  %v2356_v27 = vsel %vm1907_vm2, %v2229_v46, 0.0  ;;  %v2102_v22 = vsel %vm2072_vm8, %v2069_v20, %v1820_v53 }
 0x191   : > { %v2232_v9 = vpop.f32.mrb[3].mxu0  ;;  %v2430_v41 = vmul.f32 %v2730_v34, %v2730_v34  ;;  %v2462_v17 = vsel %vm1907_vm2, %v2429_v24, 0.0  ;;  %v2361_v8 = vsel %vm1907_vm2, %v2730_v34, 0.0 }
 0x192   : > { %v2357_v12 = vsel %vm1907_vm2, %v2232_v9, 0.0  ;;  %v2428_v61 = vmul.f32 %v2232_v9, %v2232_v9  ;;  %v1857_v30 = vpop.permute.xlu1 %1856  ;;  %v2459_v38 = vsel %vm1907_vm2, %v2427_v50, 0.0 }
 0x193   : > { %v2358_v36 = vadd.f32 %v2357_v12, %v2356_v27  ;;  %v1855_v57 = vpop.permute.xlu0 %1854  ;;  %v2137_v13 = vsel %vm2105_vm0, %v2104_v16, %v1857_v30  ;;  %v2464_v29 = vsel %vm1907_vm2, %v2430_v41, 0.0 }
 0x194   : > { %v2460_v35 = vsel %vm1907_vm2, %v2428_v61, 0.0  ;;  %v2135_v7 = vsel %vm2105_vm0, %v2102_v22, %v1855_v57 }
 0x195   : > { %v2360_v40 = vadd.f32 %v2359_v26, %v2358_v36  ;;  %v2461_v62 = vadd.f32 %v2460_v35, %v2459_v38  ;;  %2755 = vmatprep.mubr.msk.bf16.mxu1 %vm2158_vm9, %v2135_v7 }
 0x196   : > { %2756 = vmatmul.mubr.msk.bf16.gmra.mrb[12].mxu1 %vm2158_vm9, %v2137_v13 }
 0x197   : > { %v2463_v32 = vadd.f32 %v2462_v17, %v2461_v62  ;;  %v2362_v52 = vadd.f32 %v2361_v8, %v2360_v40 }
 0x199   : > { %v2465_v44 = vadd.f32 %v2464_v29, %v2463_v32 }
 0x1ac   : > { %v2733_v28 = vpop.f32.mrb[4].mxu0 }
 0x1ad   : > { %v2245_v5 = vpop.f32.mrb[5].mxu0  ;;  %v2433_v51 = vmul.f32 %v2733_v28, %v2733_v28  ;;  %v2367_v21 = vsel %vm1907_vm2, %v2733_v28, 0.0 }
 0x1ae   : > { %v2363_v60 = vsel %vm1907_vm2, %v2245_v5, 0.0  ;;  %v2431_v48 = vmul.f32 %v2245_v5, %v2245_v5  ;;  %v2734_v54 = vpop.f32.mrb[6].mxu0 }
 0x1af   : > { %v2364_v33 = vadd.f32 %v2363_v60, %v2362_v52  ;;  %v2248_v63 = vpop.f32.mrb[7].mxu0  ;;  %v2434_v42 = vmul.f32 %v2734_v54, %v2734_v54  ;;  %v2470_v15 = vsel %vm1907_vm2, %v2433_v51, 0.0  ;;  %v2369_v55 = vsel %vm1907_vm2, %v2734_v54, 0.0 }
 0x1b0   : > { %v2466_v2 = vsel %vm1907_vm2, %v2431_v48, 0.0  ;;  %v2365_v45 = vsel %vm1907_vm2, %v2248_v63, 0.0  ;;  %v2432_v47 = vmul.f32 %v2248_v63, %v2248_v63 }
 0x1b1   : > { %v2467_v19 = vadd.f32 %v2466_v2, %v2465_v44  ;;  %v2366_v25 = vadd.f32 %v2365_v45, %v2364_v33  ;;  %v2472_v0 = vsel %vm1907_vm2, %v2434_v42, 0.0 }
 0x1b2   : > { %v2468_v11 = vsel %vm1907_vm2, %v2432_v47, 0.0 }
 0x1b3   : > { %v2368_v10 = vadd.f32 %v2367_v21, %v2366_v25  ;;  %v2469_v3 = vadd.f32 %v2468_v11, %v2467_v19 }
 0x1b5   : > { %v2471_v1 = vadd.f32 %v2470_v15, %v2469_v3  ;;  %v2370_v18 = vadd.f32 %v2369_v55, %v2368_v10 }
 0x1b7   : > { %v2473_v39 = vadd.f32 %v2472_v0, %v2471_v1 }
 0x1cc   : > { %v2737_v37 = vpop.f32.mrb[8].mxu0 }
 0x1cd   : > { %v2261_v14 = vpop.f32.mrb[9].mxu0  ;;  %v2437_v23 = vmul.f32 %v2737_v37, %v2737_v37  ;;  %v2375_v34 = vsel %vm1907_vm2, %v2737_v37, 0.0 }
 0x1ce   : > { %v2371_v6 = vsel %vm1907_vm2, %v2261_v14, 0.0  ;;  %v2435_v58 = vmul.f32 %v2261_v14, %v2261_v14  ;;  %v2738_v4 = vpop.f32.mrb[10].mxu0 }
 0x1cf   : > { %v2372_v31 = vadd.f32 %v2371_v6, %v2370_v18  ;;  %v2264_v56 = vpop.f32.mrb[11].mxu0  ;;  %v2438_v59 = vmul.f32 %v2738_v4, %v2738_v4  ;;  %v2478_v27 = vsel %vm1907_vm2, %v2437_v23, 0.0  ;;  %v2377_v12 = vsel %vm1907_vm2, %v2738_v4, 0.0 }
 0x1d0   : > { %v2474_v46 = vsel %vm1907_vm2, %v2435_v58, 0.0  ;;  %v2373_v53 = vsel %vm1907_vm2, %v2264_v56, 0.0  ;;  %v2436_v49 = vmul.f32 %v2264_v56, %v2264_v56 }
 0x1d1   : > { %v2475_v43 = vadd.f32 %v2474_v46, %v2473_v39  ;;  %v2374_v50 = vadd.f32 %v2373_v53, %v2372_v31  ;;  %v2480_v16 = vsel %vm1907_vm2, %v2438_v59, 0.0 }
 0x1d2   : > { %v2476_v20 = vsel %vm1907_vm2, %v2436_v49, 0.0 }
 0x1d3   : > { %v2376_v9 = vadd.f32 %v2375_v34, %v2374_v50  ;;  %v2477_v24 = vadd.f32 %v2476_v20, %v2475_v43 }
 0x1d5   : > { %v2479_v61 = vadd.f32 %v2478_v27, %v2477_v24  ;;  %v2378_v30 = vadd.f32 %v2377_v12, %v2376_v9 }
 0x1d7   : > { %v2481_v26 = vadd.f32 %v2480_v16, %v2479_v61 }
 0x1ec   : > { %v2741_v22 = vpop.f32.mrb[12].mxu0 }
 0x1ed   : > { %v2277_v36 = vpop.f32.mrb[13].mxu0  ;;  %v2441_v40 = vmul.f32 %v2741_v22, %v2741_v22  ;;  %v2383_v52 = vsel %vm1907_vm2, %v2741_v22, 0.0 }
 0x1ee   : > { %v2379_v57 = vsel %vm1907_vm2, %v2277_v36, 0.0  ;;  %v2439_v38 = vmul.f32 %v2277_v36, %v2277_v36  ;;  %v2742_v41 = vpop.f32.mrb[14].mxu0 }
 0x1ef   : > { %v2380_v35 = vadd.f32 %v2379_v57, %v2378_v30  ;;  %v2280_v7 = vpop.f32.mrb[15].mxu0  ;;  %v2442_v29 = vmul.f32 %v2742_v41, %v2742_v41  ;;  %v2486_v60 = vsel %vm1907_vm2, %v2441_v40, 0.0  ;;  %v2385_v48 = vsel %vm1907_vm2, %v2742_v41, 0.0 }
 0x1f0   : > { %v2482_v62 = vsel %vm1907_vm2, %v2439_v38, 0.0  ;;  %v2381_v13 = vsel %vm1907_vm2, %v2280_v7, 0.0  ;;  %v2440_v17 = vmul.f32 %v2280_v7, %v2280_v7 }
 0x1f1   : > { %v2483_v8 = vadd.f32 %v2482_v62, %v2481_v26  ;;  %v2382_v32 = vadd.f32 %v2381_v13, %v2380_v35  ;;  %v2488_v63 = vsel %vm1907_vm2, %v2442_v29, 0.0 }
 0x1f2   : > { %v2484_v44 = vsel %vm1907_vm2, %v2440_v17, 0.0 }
 0x1f3   : > { %v2384_v28 = vadd.f32 %v2383_v52, %v2382_v32  ;;  %v2485_v5 = vadd.f32 %v2484_v44, %v2483_v8 }
 0x1f5   : > { %v2487_v54 = vadd.f32 %v2486_v60, %v2485_v5  ;;  %v2386_v33 = vadd.f32 %v2385_v48, %v2384_v28 }
 0x1f7   : > { %v2489_v51 = vadd.f32 %v2488_v63, %v2487_v54 }
 0x20c   : > { %v2745_v2 = vpop.f32.mrb[0].mxu1 }
 0x20d   : > { %v2293_v45 = vpop.f32.mrb[1].mxu1  ;;  %v2445_v11 = vmul.f32 %v2745_v2, %v2745_v2  ;;  %v2391_v18 = vsel %vm1907_vm2, %v2745_v2, 0.0 }
 0x20e   : > { %v2387_v47 = vsel %vm1907_vm2, %v2293_v45, 0.0  ;;  %v2443_v19 = vmul.f32 %v2293_v45, %v2293_v45  ;;  %v2746_v25 = vpop.f32.mrb[2].mxu1 }
 0x20f   : > { %v2388_v21 = vadd.f32 %v2387_v47, %v2386_v33  ;;  %v2296_v42 = vpop.f32.mrb[3].mxu1  ;;  %v2446_v0 = vmul.f32 %v2746_v25, %v2746_v25  ;;  %v2494_v6 = vsel %vm1907_vm2, %v2445_v11, 0.0  ;;  %v2393_v58 = vsel %vm1907_vm2, %v2746_v25, 0.0 }
 0x210   : > { %v2490_v10 = vsel %vm1907_vm2, %v2443_v19, 0.0  ;;  %v2389_v3 = vsel %vm1907_vm2, %v2296_v42, 0.0  ;;  %v2444_v15 = vmul.f32 %v2296_v42, %v2296_v42 }
 0x211   : > { %v2491_v55 = vadd.f32 %v2490_v10, %v2489_v51  ;;  %v2390_v1 = vadd.f32 %v2389_v3, %v2388_v21  ;;  %v2496_v56 = vsel %vm1907_vm2, %v2446_v0, 0.0 }
 0x212   : > { %v2492_v39 = vsel %vm1907_vm2, %v2444_v15, 0.0 }
 0x213   : > { %v2392_v37 = vadd.f32 %v2391_v18, %v2390_v1  ;;  %v2493_v14 = vadd.f32 %v2492_v39, %v2491_v55 }
 0x215   : > { %v2495_v4 = vadd.f32 %v2494_v6, %v2493_v14  ;;  %v2394_v31 = vadd.f32 %v2393_v58, %v2392_v37 }
 0x217   : > { %v2497_v23 = vadd.f32 %v2496_v56, %v2495_v4 }
 0x22c   : > { %v2749_v46 = vpop.f32.mrb[4].mxu1 }
 0x22d   : > { %v2309_v53 = vpop.f32.mrb[5].mxu1  ;;  %v2449_v20 = vmul.f32 %v2749_v46, %v2749_v46  ;;  %v2399_v30 = vsel %vm1907_vm2, %v2749_v46, 0.0 }
 0x22e   : > { %v2395_v49 = vsel %vm1907_vm2, %v2309_v53, 0.0  ;;  %v2447_v43 = vmul.f32 %v2309_v53, %v2309_v53  ;;  %v2750_v50 = vpop.f32.mrb[6].mxu1 }
 0x22f   : > { %v2396_v34 = vadd.f32 %v2395_v49, %v2394_v31  ;;  %v2312_v59 = vpop.f32.mrb[7].mxu1  ;;  %v2450_v16 = vmul.f32 %v2750_v50, %v2750_v50  ;;  %v2502_v57 = vsel %vm1907_vm2, %v2449_v20, 0.0  ;;  %v2401_v38 = vsel %vm1907_vm2, %v2750_v50, 0.0 }
 0x230   : > { %v2498_v9 = vsel %vm1907_vm2, %v2447_v43, 0.0  ;;  %v2397_v24 = vsel %vm1907_vm2, %v2312_v59, 0.0  ;;  %v2448_v27 = vmul.f32 %v2312_v59, %v2312_v59 }
 0x231   : > { %v2499_v12 = vadd.f32 %v2498_v9, %v2497_v23  ;;  %v2398_v61 = vadd.f32 %v2397_v24, %v2396_v34  ;;  %v2504_v7 = vsel %vm1907_vm2, %v2450_v16, 0.0 }
 0x232   : > { %v2500_v26 = vsel %vm1907_vm2, %v2448_v27, 0.0 }
 0x233   : > { %v2400_v22 = vadd.f32 %v2399_v30, %v2398_v61  ;;  %v2501_v36 = vadd.f32 %v2500_v26, %v2499_v12 }
 0x235   : > { %v2503_v41 = vadd.f32 %v2502_v57, %v2501_v36  ;;  %v2402_v35 = vadd.f32 %v2401_v38, %v2400_v22 }
 0x237   : > { %v2505_v40 = vadd.f32 %v2504_v7, %v2503_v41 }
 0x24c   : > { %v2753_v62 = vpop.f32.mrb[8].mxu1 }
 0x24d   : > { %v2325_v13 = vpop.f32.mrb[9].mxu1  ;;  %v2453_v44 = vmul.f32 %v2753_v62, %v2753_v62  ;;  %v2407_v33 = vsel %vm1907_vm2, %v2753_v62, 0.0 }
 0x24e   : > { %v2403_v17 = vsel %vm1907_vm2, %v2325_v13, 0.0  ;;  %v2451_v8 = vmul.f32 %v2325_v13, %v2325_v13  ;;  %v2754_v32 = vpop.f32.mrb[10].mxu1 }
 0x24f   : > { %v2404_v52 = vadd.f32 %v2403_v17, %v2402_v35  ;;  %v2328_v29 = vpop.f32.mrb[11].mxu1  ;;  %v2454_v63 = vmul.f32 %v2754_v32, %v2754_v32  ;;  %v2510_v47 = vsel %vm1907_vm2, %v2453_v44, 0.0  ;;  %v2409_v19 = vsel %vm1907_vm2, %v2754_v32, 0.0 }
 0x250   : > { %v2506_v28 = vsel %vm1907_vm2, %v2451_v8, 0.0  ;;  %v2405_v5 = vsel %vm1907_vm2, %v2328_v29, 0.0  ;;  %v2452_v60 = vmul.f32 %v2328_v29, %v2328_v29 }
 0x251   : > { %v2507_v48 = vadd.f32 %v2506_v28, %v2505_v40  ;;  %v2406_v54 = vadd.f32 %v2405_v5, %v2404_v52  ;;  %v2512_v42 = vsel %vm1907_vm2, %v2454_v63, 0.0 }
 0x252   : > { %v2508_v51 = vsel %vm1907_vm2, %v2452_v60, 0.0 }
 0x253   : > { %v2408_v2 = vadd.f32 %v2407_v33, %v2406_v54  ;;  %v2509_v45 = vadd.f32 %v2508_v51, %v2507_v48 }
 0x255   : > { %v2511_v25 = vadd.f32 %v2510_v47, %v2509_v45  ;;  %v2410_v21 = vadd.f32 %v2409_v19, %v2408_v2 }
 0x257   : > { %v2513_v11 = vadd.f32 %v2512_v42, %v2511_v25 }
 0x269   : > { %v2757_v10 = vpop.f32.mrb[12].mxu1 }
 0x26a   : > { %v2341_v3 = vpop.f32.mrb[13].mxu1  ;;  %v2457_v39 = vmul.f32 %v2757_v10, %v2757_v10  ;;  %v2415_v31 = vsel %vm1907_vm2, %v2757_v10, 0.0 }
 0x26b   : > { %v2411_v15 = vsel %vm1907_vm2, %v2341_v3, 0.0  ;;  %v2455_v55 = vmul.f32 %v2341_v3, %v2341_v3  ;;  %v2758_v1 = vpop.f32.mrb[14].mxu1 }
 0x26c   : > { %v2412_v18 = vadd.f32 %v2411_v15, %v2410_v21  ;;  %v2344_v0 = vpop.f32.mrb[15].mxu1  ;;  %v2458_v56 = vmul.f32 %v2758_v1, %v2758_v1  ;;  %v2518_v49 = vsel %vm1907_vm2, %v2457_v39, 0.0  ;;  %v2417_v43 = vsel %vm1907_vm2, %v2758_v1, 0.0 }
 0x26d   : > { %v2514_v37 = vsel %vm1907_vm2, %v2455_v55, 0.0  ;;  %v2413_v14 = vsel %vm1907_vm2, %v2344_v0, 0.0  ;;  %v2456_v6 = vmul.f32 %v2344_v0, %v2344_v0 }
 0x26e   : > { %v2515_v58 = vadd.f32 %v2514_v37, %v2513_v11  ;;  %v2414_v4 = vadd.f32 %v2413_v14, %v2412_v18  ;;  %v2520_v59 = vsel %vm1907_vm2, %v2458_v56, 0.0 }
 0x26f   : > { %v2516_v23 = vsel %vm1907_vm2, %v2456_v6, 0.0 }
 0x270   : > { %v2416_v46 = vadd.f32 %v2415_v31, %v2414_v4  ;;  %v2517_v53 = vadd.f32 %v2516_v23, %v2515_v58 }
 0x272   : > { %v2418_v50 = vadd.f32 %v2417_v43, %v2416_v46  ;;  %v2519_v34 = vadd.f32 %v2518_v49, %v2517_v53 }
 0x274   : > { %v2419_v20 = vrot.slane %v2418_v50, 4  ;;  %v2521_v9 = vadd.f32 %v2520_v59, %v2519_v34 }
 0x276   : > { %v2420_v24 = vadd.f32 %v2419_v20, %v2418_v50  ;;  %v2522_v27 = vrot.slane %v2521_v9, 4 }
 0x278   : > { %v2421_v12 = vrot.slane %v2420_v24, 2  ;;  %v2523_v61 = vadd.f32 %v2522_v27, %v2521_v9 }
 0x27a   : > { %v2422_v30 = vadd.f32 %v2421_v12, %v2420_v24  ;;  %v2524_v16 = vrot.slane %v2523_v61, 2 }
 0x27c   : > { %v2423_v26 = vrot.slane %v2422_v30, 1  ;;  %v2525_v22 = vadd.f32 %v2524_v16, %v2523_v61 }
 0x27e   : > { %v2424_v36 = vadd.f32 %v2423_v26, %v2422_v30  ;;  %v2526_v57 = vrot.slane %v2525_v22, 1 }
 0x280   : > { %2426 = vst.msk [vmem:[%s172_s7] sm:$0x1] %vm2425_vm3, %v2424_v36  ;;  %v2527_v38 = vadd.f32 %v2526_v57, %v2525_v22 }
 0x282   : > { %2528 = vst.msk [vmem:[%s175_s10] sm:$0x1] %vm2425_vm3, %v2527_v38 }
 0x283 PF: > { %s14_s12 = sadd.s32 1, %s2810_s12  }
 0x284   : > { %p11_p4 = scmp.ge.s32.totalorder %s14_s12, 4  }
 0x286   :  { %13 = sbr.rel (!%p11_p4) target bundleno = 1 (0x1), region = 72 }

// kernel: exit_module_forward.3
= control target key start
LH: loop header
LB: loop body
LE: loop exit
PB: predicated region body
PF: predicated region fallthrough
CT: control target
= control target key end

     0   :  { %s9243_s0 = inlined_call_operand.vmem [shape: bf16[2,16,16,4], index: 0, kind: input, shape index: {}]   ;;  %s9244_s1 = inlined_call_operand.vmem [shape: bf16[36,8], index: 1, kind: input, shape index: {}]   ;;  %s9245_s2 = inlined_call_operand.vmem [shape: f32[1,8], index: 2, kind: input, shape index: {}]   ;;  %s9246_s3 = inlined_call_operand.vmem [shape: f32[1,8], index: 3, kind: input, shape index: {}]   ;;  %s9247_s4 = inlined_call_operand.vmem [shape: bf16[72,8], index: 4, kind: input, shape index: {}]   ;;  %s9248_s5 = inlined_call_operand.vmem [shape: f32[1,8], index: 5, kind: input, shape index: {}]   ;;  %s9249_s6 = inlined_call_operand.vmem [shape: bf16[8,6], index: 6, kind: input, shape index: {}]   ;;  %s9250_s7 = inlined_call_operand.vmem [shape: f32[1,6], index: 7, kind: input, shape index: {}]   ;;  %s9251_s8 = inlined_call_operand.vmem [shape: f32[2,8,256], index: 8, kind: output, shape index: {0}]   ;;  %s9252_s9 = inlined_call_operand.vmem [shape: f32[2,6,256], index: 9, kind: output, shape index: {1}]   ;;  %s9253_s10 = inlined_call_operand.hbm [shape: f32[2,1,6], index: 10, kind: output, shape index: {2}]   ;;  %s9254_s11 = inlined_call_operand.vmem [shape: f32[2,1,8], index: 11, kind: output, shape index: {3}]  }
   0x1   :  { %9276 = sst [smem:[#allocation22_spill]] %s9243_s0 }
   0x2   :  { %9277 = sst [smem:[#allocation23_spill]] %s9244_s1 }
   0x3   :  { %17 = vsyncpa [#allocation5], 0 }
   0x4   :  { %19 = vsyncpa [#allocation5 + $0x1], 0  ;;  %s6364_s17 = smov 0   ;;  %s6366_s18 = smov 0  }
   0x5   :  { %s6368_s19 = smov 0   ;;  %s6370_s20 = smov 0  }
   0x6 LB: > { %s6385_s21 = sadd.s32 4294967295, %s6288_s20   ;;  %s5663_s22 = sadd.s32 4294967294, %s6288_s20   ;;  %s6288_s20 = sphi %s6370_s20, %s9356_s20   ;;  %s6284_s19 = sphi %s6368_s19, %s9355_s19   ;;  %s6280_s18 = sphi %s6366_s18, %s9354_s18   ;;  %s6276_s17 = sphi %s6364_s17, %s9353_s17  }
   0x7   : > { %s6389_s23 = sadd.s32 1, %s6288_s20   ;;  %s257_s24 = sadd.s32 1, %s6284_s19 }
   0x8   : > { %s254_s25 = ssub.s32 %s6288_s20, %s6389_s23  ;;  %p267_p0 = scmp.ne.s32.totalorder %s6284_s19, %s6280_s18 }
   0x9   : > { %p255_p1 = scmp.eq.s32.totalorder %s254_s25, 0  ;;  %p268_p2 = scmp.eq.s32.totalorder %s6385_s21, 1 }
   0xa   : > { %p273_p3 = scmp.ne.s32.totalorder %s6280_s18, %s6276_s17  ;;  %p274_p4 = scmp.eq.s32.totalorder %s5663_s22, 1 }
   0xb   : > { %s6400_s26 = scalar_select %p255_p1, %s6284_s19, %s257_s24  }
   0xc   : > { %p6402_p5 = por %p268_p2, %p267_p0  ;;  %p6406_p6 = por %p274_p4, %p273_p3 }
   0xd   : > { %p5666_p7 = scmp.ge.s32.totalorder %s6288_s20, 1  ;;  %p347_p8 = scmp.lt.s32.totalorder %s6288_s20, 3 }
   0xf   : > { %p348_p9 = pnand %p5666_p7, %p347_p8 }
  0x11   : > { %351 = sbr.rel (%p348_p9) target bundleno = 1457 (0x5b1), region = 52 }
  0x18   : > { %vm418_vm0 = vcmask 27648   ;;  %vm421_vm1 = vcmask 24576   ;;  %vm9263_vm2 = vsmask.f32 256  ;;  %v6290_v0 = vmov 0   ;;  %p399_p10 = scmp.lt.s32.totalorder %s6385_s21, 1 }
  0x19   : > { %419 = vst.msk [vmem:[#allocation2] sm:$0xf] %vm418_vm0, %v6290_v0  ;;  %420 = vst.msk [vmem:[#allocation2 + $0x4] sm:$0xf] %vm418_vm0, %v6290_v0  ;;  %vm9261_vm4 = vcmask 60416   ;;  %vm1498_vm7 = vcmask 1042432  }
  0x1a   : > { %422 = vst.msk [vmem:[#allocation2 + $0x8] sm:$0x1] %vm421_vm1, %v6290_v0  ;;  %vm6420_vm3 = vmand %vm421_vm1, %vm9263_vm2  ;;  %vm9262_vm5 = vsmask.f32 7938  ;;  %v433_v2 = vld [vmem:[#allocation2 + $0xc] sm:$0x1] }
  0x1b   : > { %424 = vst.msk [vmem:[#allocation2 + $0xcc] sm:$0xf] %vm418_vm0, %v6290_v0  ;;  %425 = vst.msk [vmem:[#allocation2 + $0xd0] sm:$0xf] %vm418_vm0, %v6290_v0  ;;  %s6440_s29 = scalar_select %p399_p10, %s6385_s21, 1  ;;  %v434_v3 = vsel %vm6420_vm3, 0, %v433_v2 }
  0x1c   : > { %426 = vst.msk [vmem:[#allocation2 + $0xd4] sm:$0x1] %vm421_vm1, %v6290_v0  ;;  %v436_v4 = vld [vmem:[#allocation2 + $0x18] sm:$0x1]  ;;  %v439_v5 = vld [vmem:[#allocation2 + $0x24] sm:$0x1]  ;;  %vm6450_vm6 = vmand %vm421_vm1, %vm9262_vm5 }
  0x1d   : > { %2724 = vst.msk [vmem:[#allocation3] sm:$0xf] %vm9261_vm4, %v6290_v0  ;;  %2725 = vst.msk [vmem:[#allocation3 + $0x4] sm:$0xf] %vm9261_vm4, %v6290_v0  ;;  %v437_v6 = vsel %vm6420_vm3, 0, %v436_v4  ;;  %v440_v7 = vsel %vm6420_vm3, 0, %v439_v5 }
  0x1e   : > { %2729 = vst.msk [vmem:[#allocation3 + $0xcc] sm:$0xf] %vm9261_vm4, %v6290_v0  ;;  %2730 = vst.msk [vmem:[#allocation3 + $0xd0] sm:$0xf] %vm9261_vm4, %v6290_v0  ;;  %s5912_s30 = sshll.u32 %s6440_s29, 7  ;;  %vm1499_vm8 = vcmask 1046532  }
  0x1f   : > { %435 = vst [vmem:[#allocation2 + $0xc] sm:$0x1] %v434_v3  ;;  %438 = vst [vmem:[#allocation2 + $0x18] sm:$0x1] %v437_v6  ;;  %v489_v9 = vld [vmem:[#allocation2 + $0x14] sm:$0x1] }
  0x20   : > { %441 = vst [vmem:[#allocation2 + $0x24] sm:$0x1] %v440_v7  ;;  %v492_v10 = vld [vmem:[#allocation2 + $0x20] sm:$0x1]  ;;  %s9284_s0 = sld [smem:[#allocation22_spill]]  ;;  %v490_v11 = vsel %vm6450_vm6, 0, %v489_v9  ;;  %vm6480_vm10 = vmand %vm418_vm0, %vm9262_vm5 }
  0x21   : > { %vm572_vm9 = vsmask.f32 4368  ;;  %v493_v12 = vsel %vm6450_vm6, 0, %v492_v10  ;;  %491 = vst [vmem:[#allocation2 + $0x14] sm:$0x1] %v490_v11  ;;  %vm6501_vm14 = vmor %vm1498_vm7, %vm1499_vm8  ;;  %s9268_s15 = smov 8  }
  0x22   : > { %494 = vst [vmem:[#allocation2 + $0x20] sm:$0x1] %v493_v12  ;;  %v430_v16 = vld [vmem:[#allocation2] sm:$0x1]  ;;  %v486_v17 = vld [vmem:[#allocation2 + $0x8] sm:$0x1]  ;;  %vm6486_vm11 = vmor %vm9263_vm2, %vm572_vm9 }
  0x23   : > { %v6467_v18 = vld [vmem:[#allocation2 + $0x4] sm:$0xf]  ;;  %v431_v19 = vsel %vm6420_vm3, 0, %v430_v16  ;;  %v487_v20 = vsel %vm6450_vm6, 0, %v486_v17  ;;  %vm1063_vm12 = vsmask.f32 3328 }
  0x24   : > { %v1503_v21 = vrot.slane %v6467_v18, 5  ;;  %432 = vst [vmem:[#allocation2] sm:$0x1] %v431_v19  ;;  %488 = vst [vmem:[#allocation2 + $0x8] sm:$0x1] %v487_v20  ;;  %v1076_v3 = vshll.u32 %v6467_v18, 16 }
  0x25   : > { %vm1064_vm13 = vsmask.f32 7440  ;;  %v495_v20 = vld [vmem:[#allocation2 + $0x2c] sm:$0x1]  ;;  %s9259_s16 = smov 12   ;;  %s9255_s22 = smov 24  }
  0x26   : > { %s6458_s14 = scalar_lea.vmem %s9284_s0, %s5912_s30  ;;  %v1505_v29 = vrot.slane %v1503_v21, 4  ;;  %v897_v31 = vld [vmem:[#allocation2 + $0xc] sm:$0xf]  ;;  %v904_v38 = vld [vmem:[#allocation2 + $0x18] sm:$0xf]  ;;  %vm6557_vm15 = vmor %vm1063_vm12, %vm1064_vm13  ;;  %s6294_s24 = smov 4  }
  0x27   : > { %v540_v13 = vld [vmem:[%s6458_s14] sm:$0xf]  ;;  %v541_v14 = vld [vmem:[%s6458_s14 + $0x4] sm:$0xf]  ;;  %v542_v15 = vld [vmem:[%s6458_s14 + $0x8] sm:$0xf] }
  0x28   : > { %v575_v22 = vshrl.u32 %v540_v13, 16  ;;  %v543_v23 = vld [vmem:[%s6458_s14 + $0xc] sm:$0xf]  ;;  %v578_v24 = vshll.u32 %v540_v13, 16  ;;  %v583_v25 = vshrl.u32 %v541_v14, 16  ;;  %v586_v26 = vshll.u32 %v541_v14, 16 }
  0x29   : > { %v592_v27 = vshrl.u32 %v542_v15, 16  ;;  %v544_v28 = vld [vmem:[%s6458_s14 + $0x10] sm:$0xf]  ;;  %v595_v32 = vshll.u32 %v542_v15, 16  ;;  %v600_v33 = vshrl.u32 %v543_v23, 16  ;;  %v603_v37 = vshll.u32 %v543_v23, 16 }
  0x2a   : > { %v577_v30 = vrot.slane %v575_v22, 7  ;;  %v585_v35 = vrot.slane %v583_v25, 7  ;;  %v609_v39 = vshrl.u32 %v544_v28, 16  ;;  %v545_v44 = vld [vmem:[%s6458_s14 + $0x14] sm:$0xf]  ;;  %v612_v45 = vshll.u32 %v544_v28, 16 }
  0x2b   : > { %v594_v36 = vrot.slane %v592_v27, 7  ;;  %v602_v43 = vrot.slane %v600_v33, 7  ;;  %v617_v56 = vshrl.u32 %v545_v44, 16  ;;  %v620_v57 = vshll.u32 %v545_v44, 16  ;;  %v911_v58 = vld [vmem:[#allocation2 + $0x24] sm:$0xf] }
  0x2c   : > { %v580_v41 = vor.u32 %v578_v24, %v577_v30  ;;  %v581_v42 = vrot.slane %v577_v30, 4  ;;  %v588_v46 = vor.u32 %v586_v26, %v585_v35  ;;  %v590_v47 = vrot.slane %v585_v35, 4  ;;  %v6497_v59 = vld [vmem:[#allocation2] sm:$0xf]  ;;  %v1011_v60 = vld [vmem:[#allocation2 + $0x8] sm:$0x1] }
  0x2d   : > { %v597_v48 = vor.u32 %v595_v32, %v594_v36  ;;  %v598_v49 = vrot.slane %v594_v36, 4  ;;  %v605_v51 = vor.u32 %v603_v37, %v602_v43  ;;  %v607_v52 = vrot.slane %v602_v43, 4  ;;  %v901_v9 = vld [vmem:[#allocation2 + $0x14] sm:$0x1]  ;;  %v908_v14 = vld [vmem:[#allocation2 + $0x20] sm:$0x1] }
  0x2e   : > { %v898_v50 = vsel %vm6480_vm10, %v580_v41, %v897_v31  ;;  %v611_v53 = vrot.slane %v609_v39, 7  ;;  %v589_v54 = vsel %vm6486_vm11, %v581_v42, %v588_v46  ;;  %v1086_v4 = vshll.u32 %v1011_v60, 16  ;;  %v442_v22 = vld [vmem:[#allocation2 + $0x30] sm:$0x1]  ;;  %s9293_s1 = sld [smem:[#allocation23_spill]]  ;;  %s6295_s12 = smov 20  }
  0x2f   : > { %899 = vst [vmem:[#allocation2 + $0xc] sm:$0xf] %v898_v50  ;;  %v905_v55 = vsel %vm6480_vm10, %v597_v48, %v904_v38  ;;  %900 = vst.msk [vmem:[#allocation2 + $0x10] sm:$0xf] %vm418_vm0, %v589_v54  ;;  %v606_v62 = vsel %vm6486_vm11, %v598_v49, %v605_v51  ;;  %v5673_v5 = vrot.slane %v6497_v59, 9  ;;  %v1506_v6 = vrot.slane %v1011_v60, 5 }
  0x30   : > { %906 = vst [vmem:[#allocation2 + $0x18] sm:$0xf] %v905_v55  ;;  %v614_v63 = vor.u32 %v612_v45, %v611_v53  ;;  %v615_v2 = vrot.slane %v611_v53, 4  ;;  %907 = vst.msk [vmem:[#allocation2 + $0x1c] sm:$0xf] %vm418_vm0, %v606_v62  ;;  %v6511_v7 = vrot.slane %v617_v56, 7  ;;  %v5691_v41 = vcombine.low %v6497_v59, %v6467_v18 }
  0x31   : > { %v1067_v11 = vshrl.u32 %v6497_v59, 16  ;;  %v1070_v12 = vshll.u32 %v6497_v59, 16  ;;  %v6517_v13 = vrot.slane %v1076_v3, 5  ;;  %v1504_v15 = vsel %vm6501_vm14, %v5673_v5, %v1503_v21  ;;  %s6296_s13 = smov 32   ;;  %s6298_s25 = smov 28  }
  0x32   : > { %v912_v10 = vsel %vm6480_vm10, %v614_v63, %v911_v58  ;;  %v1507_v16 = vsel %vm6501_vm14, %v1505_v29, %v1506_v6  ;;  %v622_v17 = vor.u32 %v620_v57, %v6511_v7  ;;  %v624_v19 = vrot.slane %v6511_v7, 4  ;;  %s9294_s30 = smov 24  }
  0x33   : > { %913 = vst [vmem:[#allocation2 + $0x24] sm:$0xf] %v912_v10  ;;  %v5723_v23 = vcombine.low %v1504_v15, %v1507_v16  ;;  %v1069_v24 = vrot.slane %v1067_v11, 4  ;;  %v1072_v25 = vrot.slane %v1070_v12, 5  ;;  %v1080_v26 = vshrl.u32 %v6467_v18, 16 }
  0x34   : > { %v623_v27 = vsel %vm6486_vm11, %v615_v2, %v622_v17  ;;  %v1088_v28 = vrot.slane %v1086_v4, 5  ;;  %v902_v21 = vsel %vm6420_vm3, %v590_v47, %v901_v9  ;;  %v909_v29 = vsel %vm6420_vm3, %v607_v52, %v908_v14 }
  0x35   : > { %1857 = vrot.lane.b32.xlu1 %v5723_v23, %s9268_s15  ;;  %914 = vst.msk [vmem:[#allocation2 + $0x28] sm:$0xf] %vm418_vm0, %v623_v27  ;;  %v1073_v31 = vor.u32 %v1072_v25, %v1069_v24  ;;  %v1082_v32 = vrot.slane %v1080_v26, 4  ;;  %903 = vst [vmem:[#allocation2 + $0x14] sm:$0x1] %v902_v21  ;;  %v496_v33 = vsel %vm6450_vm6, 0, %v495_v20 }
  0x36   : > { %v1012_v30 = vld [vmem:[#allocation2 + $0xc] sm:$0xf]  ;;  %910 = vst [vmem:[#allocation2 + $0x20] sm:$0x1] %v909_v29  ;;  %v443_v35 = vsel %vm6420_vm3, 0, %v442_v22  ;;  %vm2432_vm1 = vcmask 1041408  }
  0x37   : > { %v6540_v36 = vld [vmem:[#allocation2 + $0x10] sm:$0xf]  ;;  %v1091_v37 = vshrl.u32 %v1012_v30, 16  ;;  %v1094_v38 = vshll.u32 %v1012_v30, 16  ;;  %v1015_v39 = vld [vmem:[#allocation2 + $0x18] sm:$0xf]  ;;  %v1083_v56 = vor.u32 %v1082_v32, %v6517_v13 }
  0x38   : > { %497 = vst [vmem:[#allocation2 + $0x2c] sm:$0x1] %v496_v33  ;;  %444 = vst [vmem:[#allocation2 + $0x30] sm:$0x1] %v443_v35  ;;  %v1100_v42 = vshll.u32 %v6540_v36, 16  ;;  %v1104_v43 = vshrl.u32 %v6540_v36, 16  ;;  %v6547_v44 = vcombine.low %v1012_v30, %v6540_v36 }
  0x39   : > { %v1016_v45 = vld [vmem:[#allocation2 + $0x1c] sm:$0xf]  ;;  %v1115_v46 = vshrl.u32 %v1015_v39, 16  ;;  %v6549_v47 = vrot.slane %v1091_v37, 4  ;;  %v6551_v48 = vrot.slane %v1094_v38, 5  ;;  %v1118_v53 = vshll.u32 %v1015_v39, 16 }
  0x3a   : > { %v1128_v49 = vshrl.u32 %v1016_v45, 16  ;;  %v6553_v50 = vcombine.low %v1015_v39, %v1016_v45  ;;  %v6561_v52 = vrot.slane %v1104_v43, 4  ;;  %1892 = vrot.lane.b32.xlu0 %v6547_v44, %s9259_s16  ;;  %v1018_v54 = vld [vmem:[#allocation2 + $0x24] sm:$0xf]  ;;  %v1074_v55 = vrot.slane %v1073_v31, 4 }
  0x3b   : > { %v1139_v57 = vshrl.u32 %v1018_v54, 16  ;;  %v1142_v58 = vshll.u32 %v1018_v54, 16  ;;  %v5674_v60 = vrot.slane %v1012_v30, 9  ;;  %v1510_v62 = vrot.slane %v6540_v36, 5 }
  0x3c   : > { %1894 = vrot.lane.b32.xlu1 %v6553_v50, %s9259_s16  ;;  %v1079_v63 = vsel %vm6557_vm15, %v1074_v55, %v6517_v13  ;;  %v1084_v2 = vrot.slane %v1083_v56, 4  ;;  %v5675_v3 = vrot.slane %v1015_v39, 9  ;;  %v1517_v4 = vrot.slane %v1016_v45, 5  ;;  %v1019_v5 = vld [vmem:[#allocation2 + $0x28] sm:$0xf] }
  0x3d   : > { %v6572_v6 = vld [vmem:[#allocation2 + $0x14] sm:$0x1]  ;;  %v1511_v9 = vsel %vm6501_vm14, %v5674_v60, %v1510_v62  ;;  %v1512_v10 = vrot.slane %v1510_v62, 4  ;;  %v1117_v11 = vrot.slane %v1115_v46, 4  ;;  %v1097_v12 = vor.u32 %v6551_v48, %v6549_v47  ;;  %v1017_v17 = vld [vmem:[#allocation2 + $0x20] sm:$0x1] }
  0x3e   : > { %1997 = vrot.lane.b32.xlu0 %v6553_v50, %s9255_s22  ;;  %v1152_v14 = vshrl.u32 %v1019_v5, 16  ;;  %v6580_v13 = vcombine.low %v1018_v54, %v1019_v5  ;;  %v1089_v15 = vsel %vm6557_vm15, %v1084_v2, %v1088_v28  ;;  %v1513_v16 = vrot.slane %v6572_v6, 5 }
  0x3f   : > { %v915_v20 = vld [vmem:[#allocation2 + $0x2c] sm:$0x1]  ;;  %v5707_v22 = vcombine.low %v1079_v63, %v1089_v15  ;;  %v1518_v23 = vsel %vm6501_vm14, %v5675_v3, %v1517_v4  ;;  %v1519_v24 = vrot.slane %v1517_v4, 4  ;;  %v1520_v25 = vrot.slane %v1017_v17, 5 }
  0x40   : > { %1999 = vrot.lane.b32.xlu1 %v6580_v13, %s9255_s22  ;;  %v1514_v26 = vsel %vm6501_vm14, %v1512_v10, %v1513_v16  ;;  %v1120_v27 = vrot.slane %v1118_v53, 5  ;;  %v1124_v21 = vshll.u32 %v1016_v45, 16  ;;  %v1130_v29 = vrot.slane %v1128_v49, 4  ;;  %v546_v49 = vld [vmem:[%s6458_s14 + $0x18] sm:$0xf]  ;;  %v6190_v53 = vld [vmem:[%s9293_s1] sm:$0xff]  }
  0x41   : > { %v5724_v28 = vcombine.low %v1511_v9, %v1514_v26  ;;  %v1521_v30 = vsel %vm6501_vm14, %v1519_v24, %v1520_v25  ;;  %v1134_v31 = vshll.u32 %v1017_v17, 16  ;;  %v916_v32 = vsel %vm6420_vm3, %v624_v19, %v915_v20  ;;  %6004 = vmatprep.subr.bf16.mxu0 %v6190_v53  ;;  %6118 = vmatprep.subr.bf16.mxu1 %v6190_v53  ;;  %s9257_s22 = smov 16  }
  0x42   : > { %1777 = vrot.lane.b32.xlu0 %v5707_v22, %s6294_s24  ;;  %v6598_v33 = vcombine.low %v1518_v23, %v1521_v30  ;;  %v1121_v35 = vor.u32 %v1120_v27, %v1117_v11  ;;  %v1126_v37 = vrot.slane %v1124_v21, 5  ;;  %917 = vst [vmem:[#allocation2 + $0x2c] sm:$0x1] %v916_v32  ;;  %v5676_v38 = vrot.slane %v1018_v54, 9  ;;  %6005 = vmatpush3.bf16.msra.mxu0 %v6190_v53  ;;  %v547_v11 = vld [vmem:[%s6458_s14 + $0x1c] sm:$0xf] }
  0x43   : > { %v1136_v39 = vrot.slane %v1134_v31, 5  ;;  %v1524_v43 = vrot.slane %v1019_v5, 5  ;;  %v1141_v45 = vrot.slane %v1139_v57, 4  ;;  %v1144_v46 = vrot.slane %v1142_v58, 5  ;;  %v445_v22 = vld [vmem:[#allocation2 + $0x3c] sm:$0x1]  ;;  %6121 = vmatpush3.bf16.msra.mxu1 %v6190_v53 }
  0x44   : > { %1859 = vrot.lane.b32.xlu1 %v5724_v28, %s9268_s15  ;;  %v1122_v7 = vrot.slane %v1121_v35, 4  ;;  %v1131_v47 = vor.u32 %v1130_v29, %v1126_v37  ;;  %v1148_v48 = vshll.u32 %v1019_v5, 16  ;;  %v1154_v19 = vrot.slane %v1152_v14, 4  ;;  %v6626_v23 = vld [vmem:[%s6458_s14 + $0x20] sm:$0xf]  ;;  %v6191_v32 = vld [vmem:[%s9293_s1 + $0x8] sm:$0xff]  }
  0x45   : > { %v1525_v55 = vsel %vm6501_vm14, %v5676_v38, %v1524_v43  ;;  %v1526_v56 = vrot.slane %v1524_v43, 4  ;;  %v1145_v54 = vor.u32 %v1144_v46, %v1141_v45  ;;  %v1098_v60 = vrot.slane %v1097_v12, 4  ;;  %v918_v12 = vld [vmem:[#allocation2 + $0x30] sm:$0xf]  ;;  %v549_v27 = vld [vmem:[%s6458_s14 + $0x24] sm:$0xf]  ;;  %6006 = vmatprep.subr.bf16.mxu0 %v6191_v32  ;;  %6119 = vmatprep.subr.bf16.mxu1 %v6191_v32 }
  0x46   : > { %1962 = vrot.lane.b32.xlu0 %v5724_v28, %s6295_s12  ;;  %v1127_v57 = vsel %vm6557_vm15, %v1122_v7, %v1126_v37  ;;  %v1132_v58 = vrot.slane %v1131_v47, 4  ;;  %v1150_v62 = vrot.slane %v1148_v48, 5  ;;  %v1102_v63 = vrot.slane %v1100_v42, 5  ;;  %v501_v31 = vld [vmem:[#allocation2 + $0x44] sm:$0x1]  ;;  %6007 = vmatpush3.bf16.msra.mxu0 %v6191_v32 }
  0x47   : > { %v1146_v2 = vrot.slane %v1145_v54, 4  ;;  %v1110_v3 = vshll.u32 %v6572_v6, 16  ;;  %v626_v4 = vshrl.u32 %v546_v49, 16  ;;  %v629_v5 = vshll.u32 %v546_v49, 16  ;;  %v498_v6 = vld [vmem:[#allocation2 + $0x38] sm:$0x1]  ;;  %6122 = vmatpush3.bf16.msra.mxu1 %v6191_v32 }
  0x48   : > { %1964 = vrot.lane.b32.xlu1 %v6598_v33, %s6295_s12  ;;  %v1137_v9 = vsel %vm6557_vm15, %v1132_v58, %v1136_v39  ;;  %v1155_v10 = vor.u32 %v1154_v19, %v1150_v62  ;;  %v1103_v36 = vsel %vm6557_vm15, %v1098_v60, %v1102_v63  ;;  %v1107_v42 = vor.u32 %v6561_v52, %v1102_v63  ;;  %v448_v47 = vld [vmem:[#allocation2 + $0x48] sm:$0x1]  ;;  %v551_v58 = vld [vmem:[%s6458_s14 + $0x2c] sm:$0xf] }
  0x49   : > { %v6621_v14 = vcombine.low %v1127_v57, %v1137_v9  ;;  %v1020_v15 = vld [vmem:[#allocation2 + $0x2c] sm:$0x1]  ;;  %v1151_v16 = vsel %vm6557_vm15, %v1146_v2, %v1150_v62  ;;  %v1112_v17 = vrot.slane %v1110_v3, 5  ;;  %v628_v20 = vrot.slane %v626_v4, 7  ;;  %v504_v62 = vld [vmem:[#allocation2 + $0x50] sm:$0x1] }
  0x4a   : > { %2067 = vrot.lane.b32.xlu0 %v6598_v33, %s6296_s13  ;;  %v1527_v52 = vrot.slane %v1020_v15, 5  ;;  %v1156_v24 = vrot.slane %v1155_v10, 4  ;;  %v1158_v25 = vshll.u32 %v1020_v15, 16  ;;  %v1108_v26 = vrot.slane %v1107_v42, 4 }
  0x4b   : > { %v631_v21 = vor.u32 %v629_v5, %v628_v20  ;;  %v632_v29 = vrot.slane %v628_v20, 4  ;;  %v634_v28 = vshrl.u32 %v547_v11, 16  ;;  %v637_v30 = vshll.u32 %v547_v11, 16  ;;  %v451_v5 = vld [vmem:[#allocation2 + $0x54] sm:$0x1] }
  0x4c   : > { %1929 = vrot.lane.b32.xlu1 %v6621_v14, %s9257_s22  ;;  %v1528_v35 = vsel %vm6501_vm14, %v1526_v56, %v1527_v52  ;;  %v1160_v37 = vrot.slane %v1158_v25, 5  ;;  %v1113_v38 = vsel %vm6557_vm15, %v1108_v26, %v1112_v17  ;;  %v499_v39 = vsel %vm6450_vm6, 0, %v498_v6  ;;  %v6669_v11 = vld [vmem:[%s6458_s14 + $0x30] sm:$0xf] }
  0x4d   : > { %v6642_v43 = vcombine.low %v1525_v55, %v1528_v35  ;;  %v6644_v45 = vcombine.low %v1103_v36, %v1113_v38  ;;  %v636_v46 = vrot.slane %v634_v28, 7  ;;  %v919_v7 = vsel %vm6480_vm10, %v631_v21, %v918_v12  ;;  %500 = vst [vmem:[#allocation2 + $0x38] sm:$0x1] %v499_v39  ;;  %v550_v55 = vld [vmem:[%s6458_s14 + $0x28] sm:$0xf] }
  0x4e   : > { %v1161_v48 = vsel %vm6557_vm15, %v1156_v24, %v1160_v37  ;;  %920 = vst [vmem:[#allocation2 + $0x30] sm:$0xf] %v919_v7  ;;  %v446_v19 = vsel %vm6420_vm3, 0, %v445_v22  ;;  %v643_v49 = vshrl.u32 %v6626_v23, 16  ;;  %v646_v53 = vshll.u32 %v6626_v23, 16 }
  0x4f   : > { %2069 = vrot.lane.b32.xlu0 %v6642_v43, %s6296_s13  ;;  %v6657_v56 = vcombine.low %v1151_v16, %v1161_v48  ;;  %v639_v54 = vor.u32 %v637_v30, %v636_v46  ;;  %v641_v60 = vrot.slane %v636_v46, 4  ;;  %447 = vst [vmem:[#allocation2 + $0x3c] sm:$0x1] %v446_v19  ;;  %v651_v57 = vshrl.u32 %v549_v27, 16  ;;  %v553_v23 = vld [vmem:[%s6458_s14 + $0x34] sm:$0xf] }
  0x50   : > { %v645_v63 = vrot.slane %v643_v49, 7  ;;  %v654_v2 = vshll.u32 %v549_v27, 16  ;;  %v502_v3 = vsel %vm6450_vm6, 0, %v501_v31  ;;  %v449_v4 = vsel %vm6420_vm3, 0, %v448_v47  ;;  %v507_v48 = vld [vmem:[#allocation2 + $0x5c] sm:$0x1] }
  0x51   : > { %2034 = vrot.lane.b32.xlu1 %v6657_v56, %s6298_s25  ;;  %v640_v9 = vsel %vm6486_vm11, %v632_v29, %v639_v54  ;;  %v653_v10 = vrot.slane %v651_v57, 7  ;;  %503 = vst [vmem:[#allocation2 + $0x44] sm:$0x1] %v502_v3  ;;  %450 = vst [vmem:[#allocation2 + $0x48] sm:$0x1] %v449_v4  ;;  %v660_v36 = vshrl.u32 %v550_v55, 16 }
  0x52   : > { %v663_v42 = vshll.u32 %v550_v55, 16  ;;  %921 = vst.msk [vmem:[#allocation2 + $0x34] sm:$0xf] %vm418_vm0, %v640_v9  ;;  %v649_v12 = vrot.slane %v645_v63, 4  ;;  %v668_v6 = vshrl.u32 %v551_v58, 16  ;;  %v671_v15 = vshll.u32 %v551_v58, 16 }
  0x53   : > { %1779 = vrot.lane.b32.xlu0 %v6644_v45, %s6294_s24  ;;  %v648_v16 = vor.u32 %v646_v53, %v645_v63  ;;  %v656_v17 = vor.u32 %v654_v2, %v653_v10  ;;  %v662_v20 = vrot.slane %v660_v36, 7  ;;  %v505_v22 = vsel %vm6450_vm6, 0, %v504_v62 }
  0x54   : > { %v922_v52 = vld [vmem:[#allocation2 + $0x38] sm:$0x1]  ;;  %v658_v24 = vrot.slane %v653_v10, 4  ;;  %v670_v25 = vrot.slane %v668_v6, 7  ;;  %506 = vst [vmem:[#allocation2 + $0x50] sm:$0x1] %v505_v22 }
  0x55   : > { %v452_v26 = vsel %vm6420_vm3, 0, %v451_v5  ;;  %v677_v27 = vshrl.u32 %v6669_v11, 16  ;;  %1781 = vrot.lane.b32.xlu1 %v6621_v14, %s6294_s24  ;;  %v6682_v21 = vld [vmem:[#allocation2 + $0x30] sm:$0xf]  ;;  %v923_v29 = vsel %vm6420_vm3, %v641_v60, %v922_v52  ;;  %v657_v28 = vsel %vm6486_vm11, %v649_v12, %v656_v17 }
  0x56   : > { %v665_v30 = vor.u32 %v663_v42, %v662_v20  ;;  %v666_v31 = vrot.slane %v662_v20, 4  ;;  %453 = vst [vmem:[#allocation2 + $0x54] sm:$0x1] %v452_v26  ;;  %v1163_v32 = vshrl.u32 %v6682_v21, 16  ;;  %v1166_v35 = vshll.u32 %v6682_v21, 16 }
  0x57   : > { %924 = vst [vmem:[#allocation2 + $0x38] sm:$0x1] %v923_v29  ;;  %v925_v37 = vld [vmem:[#allocation2 + $0x3c] sm:$0xf]  ;;  %928 = vst.msk [vmem:[#allocation2 + $0x40] sm:$0xf] %vm418_vm0, %v657_v28  ;;  %v673_v38 = vor.u32 %v671_v15, %v670_v25  ;;  %1927 = vrot.lane.b32.xlu0 %v6644_v45, %s9257_s22 }
  0x58   : > { %v926_v39 = vsel %vm6480_vm10, %v648_v16, %v925_v37  ;;  %v675_v46 = vrot.slane %v670_v25, 4  ;;  %v6695_v7 = vrot.slane %v677_v27, 7  ;;  %v685_v47 = vshrl.u32 %v553_v23, 16  ;;  %v929_v53 = vld [vmem:[#allocation2 + $0x44] sm:$0x1] }
  0x59   : > { %v1165_v19 = vrot.slane %v1163_v32, 4  ;;  %v1168_v49 = vrot.slane %v1166_v35, 5  ;;  %927 = vst [vmem:[#allocation2 + $0x3c] sm:$0xf] %v926_v39  ;;  %v674_v55 = vsel %vm6486_vm11, %v666_v31, %v673_v38  ;;  %v932_v54 = vld [vmem:[#allocation2 + $0x48] sm:$0xf]  ;;  %1783 = vrot.lane.b32.xlu1 %v6657_v56, %s6294_s24  ;;  %v930_v60 = vsel %vm6420_vm3, %v658_v24, %v929_v53 }
  0x5a   : > { %v1022_v45 = vld [vmem:[#allocation2 + $0x34] sm:$0xf]  ;;  %v933_v57 = vsel %vm6480_vm10, %v665_v30, %v932_v54  ;;  %935 = vst.msk [vmem:[#allocation2 + $0x4c] sm:$0xf] %vm418_vm0, %v674_v55  ;;  %931 = vst [vmem:[#allocation2 + $0x44] sm:$0x1] %v930_v60 }
  0x5b   : > { %v1176_v58 = vshrl.u32 %v1022_v45, 16  ;;  %v1169_v62 = vor.u32 %v1168_v49, %v1165_v19  ;;  %v1172_v63 = vshll.u32 %v1022_v45, 16  ;;  %934 = vst [vmem:[#allocation2 + $0x48] sm:$0xf] %v933_v57  ;;  %v683_v2 = vrot.slane %v6695_v7, 4  ;;  %2032 = vrot.lane.b32.xlu0 %v6621_v14, %s6298_s25 }
  0x5c   : > { %v1531_v3 = vrot.slane %v1022_v45, 5  ;;  %v936_v4 = vld [vmem:[#allocation2 + $0x50] sm:$0x1]  ;;  %v6709_v5 = vrot.slane %v685_v47, 7  ;;  %v688_v9 = vshll.u32 %v553_v23, 16  ;;  %v508_v10 = vsel %vm6450_vm6, 0, %v507_v48 }
  0x5d   : > { %v1170_v36 = vrot.slane %v1169_v62, 4  ;;  %v1174_v42 = vrot.slane %v1172_v63, 5  ;;  %v1178_v12 = vrot.slane %v1176_v58, 4  ;;  %v937_v6 = vsel %vm6420_vm3, %v675_v46, %v936_v4  ;;  %509 = vst [vmem:[#allocation2 + $0x5c] sm:$0x1] %v508_v10  ;;  %1863 = vrot.lane.b32.xlu1 %v6642_v43, %s9268_s15 }
  0x5e   : > { %v6718_v14 = vcombine.low %v6682_v21, %v1022_v45  ;;  %v1023_v15 = vld [vmem:[#allocation2 + $0x38] sm:$0x1]  ;;  %v5677_v16 = vrot.slane %v6682_v21, 9  ;;  %v1533_v17 = vrot.slane %v1531_v3, 4  ;;  %v6721_v20 = vld [vmem:[#allocation2 + $0x40] sm:$0xf]  ;;  %v690_v22 = vor.u32 %v688_v9, %v6709_v5 }
  0x5f   : > { %938 = vst [vmem:[#allocation2 + $0x50] sm:$0x1] %v937_v6  ;;  %v1179_v23 = vor.u32 %v1178_v12, %v1174_v42  ;;  %v1182_v52 = vshll.u32 %v1023_v15, 16  ;;  %v1534_v24 = vrot.slane %v1023_v15, 5  ;;  %1861 = vrot.lane.b32.xlu0 %v6598_v33, %s9268_s15  ;;  %v1200_v26 = vshrl.u32 %v6721_v20, 16 }
  0x60   : > { %v6726_v25 = vld [vmem:[#allocation2 + $0x3c] sm:$0xf]  ;;  %v1196_v27 = vshll.u32 %v6721_v20, 16  ;;  %v680_v21 = vshll.u32 %v6669_v11, 16  ;;  %v691_v29 = vsel %vm6486_vm11, %v683_v2, %v690_v22  ;;  %v1175_v28 = vsel %vm6557_vm15, %v1170_v36, %v1174_v42  ;;  %v939_v62 = vld [vmem:[#allocation2 + $0x54] sm:$0xf] }
  0x61   : > { %v1180_v30 = vrot.slane %v1179_v23, 4  ;;  %v1184_v31 = vrot.slane %v1182_v52, 5  ;;  %v1187_v32 = vshrl.u32 %v6726_v25, 16  ;;  %942 = vst.msk [vmem:[#allocation2 + $0x58] sm:$0xf] %vm418_vm0, %v691_v29  ;;  %1898 = vrot.lane.b32.xlu1 %v6718_v14, %s9259_s16  ;;  %v1532_v33 = vsel %vm6501_vm14, %v5677_v16, %v1531_v3 }
  0x62   : > { %v1535_v11 = vsel %vm6501_vm14, %v1533_v17, %v1534_v24  ;;  %v1190_v35 = vshll.u32 %v6726_v25, 16  ;;  %v6744_v37 = vld [vmem:[#allocation2 + $0x44] sm:$0x1]  ;;  %v1198_v38 = vrot.slane %v1196_v27, 5  ;;  %v1202_v47 = vrot.slane %v1200_v26, 4 }
  0x63   : > { %v1185_v39 = vsel %vm6557_vm15, %v1180_v30, %v1184_v31  ;;  %v1189_v46 = vrot.slane %v1187_v32, 4  ;;  %v1206_v48 = vshll.u32 %v6744_v37, 16  ;;  %1896 = vrot.lane.b32.xlu0 %v6580_v13, %s9259_s16  ;;  %v6755_v55 = vcombine.low %v1532_v33, %v1535_v11  ;;  %v6760_v63 = vld [vmem:[#allocation2 + $0x48] sm:$0xf]  ;;  %v6769_v4 = vld [vmem:[#allocation2 + $0x4c] sm:$0xf] }
  0x64   : > { %v6751_v19 = vcombine.low %v1175_v28, %v1185_v39  ;;  %v1192_v49 = vrot.slane %v1190_v35, 5  ;;  %v1203_v53 = vor.u32 %v1202_v47, %v1198_v38  ;;  %v682_v57 = vor.u32 %v680_v21, %v6695_v7  ;;  %v943_v7 = vld [vmem:[#allocation2 + $0x5c] sm:$0x1]  ;;  %v454_v36 = vld [vmem:[#allocation2 + $0x60] sm:$0x1] }
  0x65   : > { %v1208_v60 = vrot.slane %v1206_v48, 5  ;;  %v692_v2 = vrot.slane %v6709_v5, 4  ;;  %v6767_v3 = vcombine.low %v6726_v25, %v6721_v20  ;;  %v1538_v5 = vrot.slane %v6721_v20, 5  ;;  %v554_v16 = vld [vmem:[%s6458_s14 + $0x38] sm:$0xf] }
  0x66   : > { %1933 = vrot.lane.b32.xlu1 %v6751_v19, %s9257_s22  ;;  %v1193_v54 = vor.u32 %v1192_v49, %v1189_v46  ;;  %v1204_v45 = vrot.slane %v1203_v53, 4  ;;  %v940_v10 = vsel %vm6480_vm10, %v682_v57, %v939_v62  ;;  %v1211_v42 = vshrl.u32 %v6760_v63, 16  ;;  %v555_v17 = vld [vmem:[%s6458_s14 + $0x3c] sm:$0xf]  ;;  %v510_v23 = vld [vmem:[#allocation2 + $0x68] sm:$0x1] }
  0x67   : > { %1931 = vrot.lane.b32.xlu0 %v6657_v56, %s9257_s22  ;;  %v1214_v12 = vshll.u32 %v6760_v63, 16  ;;  %941 = vst [vmem:[#allocation2 + $0x54] sm:$0xf] %v940_v10  ;;  %v1224_v6 = vshrl.u32 %v6769_v4, 16  ;;  %v944_v15 = vsel %vm6420_vm3, %v692_v2, %v943_v7  ;;  %v455_v22 = vsel %vm6420_vm3, 0, %v454_v36 }
  0x68   : > { %v1194_v58 = vrot.slane %v1193_v54, 4  ;;  %v1209_v9 = vsel %vm6557_vm15, %v1204_v45, %v1208_v60  ;;  %945 = vst [vmem:[#allocation2 + $0x5c] sm:$0x1] %v944_v15  ;;  %v457_v52 = vld [vmem:[#allocation2 + $0x6c] sm:$0x1]  ;;  %v5678_v24 = vrot.slane %v6726_v25, 9 }
  0x69   : > { %v1540_v26 = vrot.slane %v1538_v5, 4  ;;  %v1541_v27 = vrot.slane %v6744_v37, 5  ;;  %456 = vst [vmem:[#allocation2 + $0x60] sm:$0x1] %v455_v22  ;;  %v556_v21 = vld [vmem:[%s6458_s14 + $0x40] sm:$0xf] }
  0x6a   : > { %1968 = vrot.lane.b32.xlu1 %v6755_v55, %s6295_s12  ;;  %v1199_v56 = vsel %vm6557_vm15, %v1194_v58, %v1198_v38  ;;  %v1213_v29 = vrot.slane %v1211_v42, 4  ;;  %v1216_v28 = vrot.slane %v1214_v12, 5  ;;  %v694_v30 = vshrl.u32 %v554_v16, 16  ;;  %v557_v32 = vld [vmem:[%s6458_s14 + $0x44] sm:$0xf] }
  0x6b   : > { %1966 = vrot.lane.b32.xlu0 %v6642_v43, %s6295_s12  ;;  %v6789_v20 = vcombine.low %v1199_v56, %v1209_v9  ;;  %v1220_v43 = vshll.u32 %v6769_v4, 16  ;;  %v702_v31 = vshrl.u32 %v555_v17, 16  ;;  %v6800_v33 = vld [vmem:[#allocation2 + $0x50] sm:$0x1]  ;;  %v1226_v11 = vrot.slane %v1224_v6, 4 }
  0x6c   : > { %v697_v35 = vshll.u32 %v554_v16, 16  ;;  %v705_v38 = vshll.u32 %v555_v17, 16  ;;  %v511_v25 = vsel %vm6450_vm6, 0, %v510_v23  ;;  %v696_v39 = vrot.slane %v694_v30, 7  ;;  %v513_v2 = vld [vmem:[#allocation2 + $0x74] sm:$0x1] }
  0x6d   : > { %v6806_v37 = vrot.slane %v1220_v43, 5  ;;  %v704_v46 = vrot.slane %v702_v31, 7  ;;  %512 = vst [vmem:[#allocation2 + $0x68] sm:$0x1] %v511_v25  ;;  %v458_v47 = vsel %vm6420_vm3, 0, %v457_v52  ;;  %v711_v48 = vshrl.u32 %v556_v21, 16 }
  0x6e   : > { %2003 = vrot.lane.b32.xlu1 %v6767_v3, %s9294_s30  ;;  %459 = vst [vmem:[#allocation2 + $0x6c] sm:$0x1] %v458_v47  ;;  %v1539_v49 = vsel %vm6501_vm14, %v5678_v24, %v1538_v5  ;;  %v1542_v53 = vsel %vm6501_vm14, %v1540_v26, %v1541_v27  ;;  %v1230_v54 = vshll.u32 %v6800_v33, 16  ;;  %v719_v45 = vshrl.u32 %v557_v32, 16  ;;  %v6820_v9 = vld [vmem:[#allocation2 + $0x58] sm:$0xf] }
  0x6f   : > { %2001 = vrot.lane.b32.xlu0 %v6718_v14, %s9294_s30  ;;  %v699_v60 = vor.u32 %v697_v35, %v696_v39  ;;  %v700_v57 = vrot.slane %v696_v39, 4  ;;  %v707_v58 = vor.u32 %v705_v38, %v704_v46  ;;  %v714_v62 = vshll.u32 %v556_v21, 16  ;;  %v6822_v36 = vld [vmem:[#allocation2 + $0x54] sm:$0xf]  ;;  %v460_v22 = vld [vmem:[#allocation2 + $0x78] sm:$0x1] }
  0x70   : > { %v1217_v7 = vor.u32 %v1216_v28, %v1213_v29  ;;  %v1227_v56 = vor.u32 %v1226_v11, %v6806_v37  ;;  %v709_v5 = vrot.slane %v704_v46, 4  ;;  %v946_v10 = vld [vmem:[#allocation2 + $0x60] sm:$0xf]  ;;  %v713_v6 = vrot.slane %v711_v48, 7  ;;  %v558_v48 = vld [vmem:[%s6458_s14 + $0x48] sm:$0xf] }
  0x71   : > { %v708_v42 = vsel %vm6486_vm11, %v700_v57, %v707_v58  ;;  %v947_v12 = vsel %vm6480_vm10, %v699_v60, %v946_v10  ;;  %v722_v15 = vshll.u32 %v557_v32, 16  ;;  %v1545_v16 = vrot.slane %v6769_v4, 5  ;;  %v516_v25 = vld [vmem:[#allocation2 + $0x80] sm:$0x1]  ;;  %v559_v57 = vld [vmem:[%s6458_s14 + $0x4c] sm:$0xf] }
  0x72   : > { %2038 = vrot.lane.b32.xlu1 %v6789_v20, %s6298_s25  ;;  %948 = vst [vmem:[#allocation2 + $0x60] sm:$0xf] %v947_v12  ;;  %949 = vst.msk [vmem:[#allocation2 + $0x64] sm:$0xf] %vm418_vm0, %v708_v42  ;;  %v721_v17 = vrot.slane %v719_v45, 7  ;;  %v514_v43 = vsel %vm6450_vm6, 0, %v513_v2  ;;  %v716_v26 = vor.u32 %v714_v62, %v713_v6  ;;  %v6850_v39 = vcombine.low %v6760_v63, %v6769_v4 }
  0x73   : > { %2036 = vrot.lane.b32.xlu0 %v6751_v19, %s6298_s25  ;;  %v1232_v23 = vrot.slane %v1230_v54, 5  ;;  %v1244_v52 = vshll.u32 %v6820_v9, 16  ;;  %v717_v27 = vrot.slane %v713_v6, 4  ;;  %515 = vst [vmem:[#allocation2 + $0x74] sm:$0x1] %v514_v43  ;;  %v1235_v21 = vshrl.u32 %v6822_v36, 16 }
  0x74   : > { %v950_v24 = vld [vmem:[#allocation2 + $0x68] sm:$0x1]  ;;  %v1238_v29 = vshll.u32 %v6822_v36, 16  ;;  %v1248_v28 = vshrl.u32 %v6820_v9, 16  ;;  %v1218_v32 = vrot.slane %v1217_v7, 4  ;;  %v1228_v11 = vrot.slane %v1227_v56, 4 }
  0x75   : > { %v951_v30 = vsel %vm6420_vm3, %v709_v5, %v950_v24  ;;  %v953_v31 = vld [vmem:[#allocation2 + $0x6c] sm:$0xf]  ;;  %v724_v35 = vor.u32 %v722_v15, %v721_v17  ;;  %v5679_v46 = vrot.slane %v6760_v63, 9  ;;  %v461_v47 = vsel %vm6420_vm3, 0, %v460_v22  ;;  %v6872_v7 = vld [vmem:[#allocation2 + $0x5c] sm:$0x1] }
  0x76   : > { %1785 = vrot.lane.b32.xlu1 %v6751_v19, %s6294_s24  ;;  %v6830_v19 = vcombine.low %v1539_v49, %v1542_v53  ;;  %952 = vst [vmem:[#allocation2 + $0x68] sm:$0x1] %v951_v30  ;;  %v954_v38 = vsel %vm6480_vm10, %v716_v26, %v953_v31  ;;  %v1548_v49 = vrot.slane %v6800_v33, 5  ;;  %v6857_v53 = vrot.slane %v1244_v52, 5  ;;  %462 = vst [vmem:[#allocation2 + $0x78] sm:$0x1] %v461_v47 }
  0x77   : > { %2071 = vrot.lane.b32.xlu0 %v6755_v55, %s6296_s13  ;;  %955 = vst [vmem:[#allocation2 + $0x6c] sm:$0xf] %v954_v38  ;;  %v725_v54 = vsel %vm6486_vm11, %v717_v27, %v724_v35  ;;  %v726_v45 = vrot.slane %v721_v17, 4  ;;  %v1237_v4 = vrot.slane %v1235_v21, 4  ;;  %v1240_v60 = vrot.slane %v1238_v29, 5 }
  0x78   : > { %v1250_v63 = vrot.slane %v1248_v28, 4  ;;  %956 = vst.msk [vmem:[#allocation2 + $0x70] sm:$0xf] %vm418_vm0, %v725_v54  ;;  %v517_v58 = vsel %vm6450_vm6, 0, %v516_v25  ;;  %v1223_v33 = vsel %vm6557_vm15, %v1218_v32, %v6806_v37  ;;  %v1233_v62 = vsel %vm6557_vm15, %v1228_v11, %v1232_v23 }
  0x79   : > { %v1547_v2 = vrot.slane %v1545_v16, 4  ;;  %v728_v56 = vshrl.u32 %v558_v48, 16  ;;  %518 = vst [vmem:[#allocation2 + $0x80] sm:$0x1] %v517_v58  ;;  %v736_v42 = vshrl.u32 %v559_v57, 16  ;;  %v6880_v37 = vcombine.low %v1223_v33, %v1233_v62 }
  0x7a   : > { %1787 = vrot.lane.b32.xlu1 %v6789_v20, %s6294_s24  ;;  %v957_v5 = vld [vmem:[#allocation2 + $0x74] sm:$0x1]  ;;  %v1241_v12 = vor.u32 %v1240_v60, %v1237_v4  ;;  %v1251_v6 = vor.u32 %v1250_v63, %v6857_v53  ;;  %v1254_v15 = vshll.u32 %v6872_v7, 16  ;;  %v1546_v17 = vsel %vm6501_vm14, %v5679_v46, %v1545_v16  ;;  %v6192_v38 = vld [vmem:[%s9293_s1 + $0x10] ss:$0 sps:$4 sm:$0x33]  }
  0x7b   : > { %2073 = vrot.lane.b32.xlu0 %v6830_v19, %s6296_s13  ;;  %v958_v10 = vsel %vm6420_vm3, %v726_v45, %v957_v5  ;;  %v730_v43 = vrot.slane %v728_v56, 7  ;;  %v731_v22 = vshll.u32 %v558_v48, 16  ;;  %v738_v23 = vrot.slane %v736_v42, 7  ;;  %v6910_v25 = vld [vmem:[#allocation2 + $0x60] sm:$0xf]  ;;  %6124 = vmatprep.subr.msk.bf16.mxu0 %vm2432_vm1, %v6192_v38 }
  0x7c   : > { %959 = vst [vmem:[#allocation2 + $0x74] sm:$0x1] %v958_v10  ;;  %v739_v52 = vshll.u32 %v559_v57, 16  ;;  %v1242_v26 = vrot.slane %v1241_v12, 4  ;;  %v1252_v27 = vrot.slane %v1251_v6, 4  ;;  %v1256_v21 = vrot.slane %v1254_v15, 5  ;;  %6125 = vmatprep.subr.msk.bf16.mxu1 %vm2432_vm1, %v6192_v38 }
  0x7d   : > { %v734_v29 = vrot.slane %v730_v43, 4  ;;  %v733_v16 = vor.u32 %v731_v22, %v730_v43  ;;  %v743_v30 = vrot.slane %v738_v23, 4  ;;  %v960_v31 = vld [vmem:[#allocation2 + $0x78] sm:$0xf]  ;;  %v6900_v11 = vcombine.low %v6822_v36, %v6820_v9  ;;  %v6912_v46 = vld [vmem:[#allocation2 + $0x64] sm:$0xf] }
  0x7e   : > { %1867 = vrot.lane.b32.xlu1 %v6830_v19, %s9268_s15  ;;  %v741_v28 = vor.u32 %v739_v52, %v738_v23  ;;  %v1247_v35 = vsel %vm6557_vm15, %v1242_v26, %v6857_v53  ;;  %v463_v48 = vld [vmem:[#allocation2 + $0x84] sm:$0x1]  ;;  %v560_v45 = vld [vmem:[%s6458_s14 + $0x50] sm:$0xf]  ;;  %v561_v4 = vld [vmem:[%s6458_s14 + $0x54] sm:$0xf] }
  0x7f   : > { %1865 = vrot.lane.b32.xlu0 %v6755_v55, %s9268_s15  ;;  %v1549_v55 = vsel %vm6501_vm14, %v1547_v2, %v1548_v49  ;;  %v1552_v49 = vrot.slane %v6820_v9, 5  ;;  %v961_v53 = vsel %vm6480_vm10, %v733_v16, %v960_v31  ;;  %v1259_v9 = vshrl.u32 %v6910_v25, 16  ;;  %v519_v58 = vld [vmem:[#allocation2 + $0x8c] sm:$0x1]  ;;  %v466_v5 = vld [vmem:[#allocation2 + $0x90] sm:$0x1] }
  0x80   : > { %v6892_v24 = vcombine.low %v1546_v17, %v1549_v55  ;;  %v964_v32 = vld [vmem:[#allocation2 + $0x80] sm:$0x1]  ;;  %v742_v47 = vsel %vm6486_vm11, %v734_v29, %v741_v28  ;;  %962 = vst [vmem:[#allocation2 + $0x78] sm:$0xf] %v961_v53  ;;  %v1272_v63 = vshrl.u32 %v6912_v46, 16  ;;  %v2434_v57 = vsel %vm2432_vm1, %v6192_v38, 0 }
  0x81   : > { %963 = vst.msk [vmem:[#allocation2 + $0x7c] sm:$0xf] %vm418_vm0, %v742_v47  ;;  %v965_v54 = vsel %vm6420_vm3, %v743_v30, %v964_v32  ;;  %v1268_v33 = vshll.u32 %v6912_v46, 16  ;;  %6009 = vmatpush3.bf16.msra.mxu0 %v2434_v57  ;;  %v464_v62 = vsel %vm6420_vm3, 0, %v463_v48  ;;  %v745_v2 = vshrl.u32 %v560_v45, 16  ;;  %6123 = vmatpush3.bf16.msra.mxu1 %v2434_v57 }
  0x82   : > { %1902 = vrot.lane.b32.xlu1 %v6850_v39, %s9259_s16  ;;  %966 = vst [vmem:[#allocation2 + $0x80] sm:$0x1] %v965_v54  ;;  %v753_v56 = vshrl.u32 %v561_v4, 16  ;;  %v5680_v10 = vrot.slane %v6822_v36, 9  ;;  %v1554_v42 = vrot.slane %v1552_v49, 4  ;;  %v1555_v12 = vrot.slane %v6872_v7, 5 }
  0x83   : > { %1900 = vrot.lane.b32.xlu0 %v6767_v3, %s9259_s16  ;;  %465 = vst [vmem:[#allocation2 + $0x84] sm:$0x1] %v464_v62  ;;  %v756_v6 = vshll.u32 %v561_v4, 16  ;;  %v562_v15 = vld [vmem:[%s6458_s14 + $0x58] sm:$0xf]  ;;  %v747_v17 = vrot.slane %v745_v2, 7 }
  0x84   : > { %v748_v55 = vshll.u32 %v560_v45, 16  ;;  %v755_v43 = vrot.slane %v753_v56, 7  ;;  %v520_v22 = vsel %vm6450_vm6, 0, %v519_v58  ;;  %v563_v23 = vld [vmem:[%s6458_s14 + $0x5c] sm:$0xf]  ;;  %v1261_v36 = vrot.slane %v1259_v9, 4 }
  0x85   : > { %v6946_v52 = vld [vmem:[#allocation2 + $0x68] sm:$0x1]  ;;  %521 = vst [vmem:[#allocation2 + $0x8c] sm:$0x1] %v520_v22  ;;  %v467_v7 = vsel %vm6420_vm3, 0, %v466_v5  ;;  %v1553_v29 = vsel %vm6501_vm14, %v5680_v10, %v1552_v49  ;;  %v1556_v16 = vsel %vm6501_vm14, %v1554_v42, %v1555_v12  ;;  %v751_v28 = vrot.slane %v747_v17, 4 }
  0x86   : > { %1937 = vrot.lane.b32.xlu1 %v6880_v37, %s9257_s22  ;;  %468 = vst [vmem:[#allocation2 + $0x90] sm:$0x1] %v467_v7  ;;  %v758_v30 = vor.u32 %v756_v6, %v755_v43  ;;  %v1278_v31 = vshll.u32 %v6946_v52, 16  ;;  %v6959_v32 = vld [vmem:[#allocation2 + $0x6c] sm:$0xf]  ;;  %v770_v38 = vshrl.u32 %v563_v23, 16  ;;  %v6963_v53 = vcombine.low %v1553_v29, %v1556_v16 }
  0x87   : > { %1935 = vrot.lane.b32.xlu0 %v6789_v20, %s9257_s22  ;;  %v1257_v20 = vsel %vm6557_vm15, %v1252_v27, %v1256_v21  ;;  %v6950_v27 = vrot.slane %v1268_v33, 5  ;;  %v1274_v21 = vrot.slane %v1272_v63, 4  ;;  %v760_v48 = vrot.slane %v755_v43, 4  ;;  %v6966_v54 = vld [vmem:[#allocation2 + $0x70] sm:$0xf]  ;;  %s9295_s16 = smov 12  }
  0x88   : > { %v6926_v60 = vcombine.low %v1247_v35, %v1257_v20  ;;  %v750_v35 = vor.u32 %v748_v55, %v747_v17  ;;  %v762_v20 = vshrl.u32 %v562_v15, 16  ;;  %v765_v4 = vshll.u32 %v562_v15, 16  ;;  %v522_v9 = vld [vmem:[#allocation2 + $0x98] sm:$0x1]  ;;  %v469_v58 = vld [vmem:[#allocation2 + $0x9c] sm:$0x1] }
  0x89   : > { %v1275_v49 = vor.u32 %v1274_v21, %v6950_v27  ;;  %v1283_v63 = vshrl.u32 %v6959_v32, 16  ;;  %v759_v57 = vsel %vm6486_vm11, %v751_v28, %v758_v30  ;;  %v1280_v33 = vrot.slane %v1278_v31, 5  ;;  %v525_v21 = vld [vmem:[#allocation2 + $0xa4] sm:$0x1]  ;;  %s9296_s22 = smov 16  }
  0x8a   : > { %1972 = vrot.lane.b32.xlu1 %v6892_v24, %s6295_s12  ;;  %v967_v45 = vld [vmem:[#allocation2 + $0x84] sm:$0xf]  ;;  %970 = vst.msk [vmem:[#allocation2 + $0x88] sm:$0xf] %vm418_vm0, %v759_v57  ;;  %v764_v56 = vrot.slane %v762_v20, 7  ;;  %v772_v5 = vrot.slane %v770_v38, 7 }
  0x8b   : > { %1970 = vrot.lane.b32.xlu0 %v6830_v19, %s6295_s12  ;;  %v1262_v19 = vshll.u32 %v6910_v25, 16  ;;  %v968_v62 = vsel %vm6480_vm10, %v750_v35, %v967_v45  ;;  %v1296_v42 = vshrl.u32 %v6966_v54, 16  ;;  %v773_v6 = vshll.u32 %v563_v23, 16 }
  0x8c   : > { %v971_v2 = vld [vmem:[#allocation2 + $0x8c] sm:$0x1]  ;;  %969 = vst [vmem:[#allocation2 + $0x84] sm:$0xf] %v968_v62  ;;  %v1276_v17 = vrot.slane %v1275_v49, 4  ;;  %v1292_v55 = vshll.u32 %v6966_v54, 16  ;;  %v767_v43 = vor.u32 %v765_v4, %v764_v56 }
  0x8d   : > { %v1264_v26 = vrot.slane %v1262_v19, 5  ;;  %v1559_v19 = vrot.slane %v6912_v46, 5  ;;  %v972_v12 = vsel %vm6420_vm3, %v760_v48, %v971_v2  ;;  %v974_v15 = vld [vmem:[#allocation2 + $0x90] sm:$0xf]  ;;  %v768_v22 = vrot.slane %v764_v56, 4 }
  0x8e   : > { %2007 = vrot.lane.b32.xlu1 %v6900_v11, %s9294_s30  ;;  %973 = vst [vmem:[#allocation2 + $0x8c] sm:$0x1] %v972_v12  ;;  %v775_v7 = vor.u32 %v773_v6, %v772_v5  ;;  %v523_v23 = vsel %vm6450_vm6, 0, %v522_v9  ;;  %v1562_v16 = vrot.slane %v6946_v52, 5  ;;  %v975_v28 = vsel %vm6480_vm10, %v767_v43, %v974_v15  ;;  %v565_v48 = vld [vmem:[%s6458_s14 + $0x64] sm:$0xf] }
  0x8f   : > { %2005 = vrot.lane.b32.xlu0 %v6850_v39, %s9294_s30  ;;  %v1265_v47 = vor.u32 %v1264_v26, %v1261_v36  ;;  %v6988_v36 = vcombine.low %v6910_v25, %v6912_v46  ;;  %v5681_v26 = vrot.slane %v6910_v25, 9  ;;  %v1561_v29 = vrot.slane %v1559_v19, 4  ;;  %524 = vst [vmem:[#allocation2 + $0x98] sm:$0x1] %v523_v23  ;;  %v564_v46 = vld [vmem:[%s6458_s14 + $0x60] sm:$0xf] }
  0x90   : > { %v470_v30 = vsel %vm6420_vm3, 0, %v469_v58  ;;  %v1285_v31 = vrot.slane %v1283_v63, 4  ;;  %v776_v52 = vsel %vm6486_vm11, %v768_v22, %v775_v7  ;;  %976 = vst [vmem:[#allocation2 + $0x90] sm:$0xf] %v975_v28  ;;  %v1281_v20 = vsel %vm6557_vm15, %v1276_v17, %v1280_v33  ;;  %v7037_v22 = vld [vmem:[#allocation2 + $0x7c] sm:$0xf] }
  0x91   : > { %v1266_v10 = vrot.slane %v1265_v47, 4  ;;  %471 = vst [vmem:[#allocation2 + $0x9c] sm:$0x1] %v470_v30  ;;  %v1294_v38 = vrot.slane %v1292_v55, 5  ;;  %v1298_v47 = vrot.slane %v1296_v42, 4  ;;  %v526_v49 = vsel %vm6450_vm6, 0, %v525_v21 }
  0x92   : > { %2042 = vrot.lane.b32.xlu1 %v6926_v60, %s6298_s25  ;;  %977 = vst.msk [vmem:[#allocation2 + $0x94] sm:$0xf] %vm418_vm0, %v776_v52  ;;  %v779_v45 = vshrl.u32 %v564_v46, 16  ;;  %527 = vst [vmem:[#allocation2 + $0xa4] sm:$0x1] %v526_v49  ;;  %v777_v4 = vrot.slane %v772_v5, 4  ;;  %v1560_v63 = vsel %vm6501_vm14, %v5681_v26, %v1559_v19  ;;  %v1563_v57 = vsel %vm6501_vm14, %v1561_v29, %v1562_v16 }
  0x93   : > { %2040 = vrot.lane.b32.xlu0 %v6880_v37, %s6298_s25  ;;  %v1271_v25 = vsel %vm6557_vm15, %v1266_v10, %v6950_v27  ;;  %v7014_v27 = vld [vmem:[#allocation2 + $0x74] sm:$0x1]  ;;  %v1299_v33 = vor.u32 %v1298_v47, %v1294_v38  ;;  %v782_v56 = vshll.u32 %v564_v46, 16  ;;  %v7031_v19 = vcombine.low %v1560_v63, %v1563_v57  ;;  %v7045_v23 = vld [vmem:[#allocation2 + $0x78] sm:$0xf] }
  0x94   : > { %v7018_v9 = vcombine.low %v1271_v25, %v1281_v20  ;;  %v781_v2 = vrot.slane %v779_v45, 7  ;;  %v790_v42 = vshll.u32 %v565_v48, 16  ;;  %v7043_v7 = vcombine.low %v6959_v32, %v6966_v54 }
  0x95   : > { %v1300_v6 = vrot.slane %v1299_v33, 4  ;;  %v1566_v30 = vrot.slane %v6966_v54, 5  ;;  %v1320_v46 = vshrl.u32 %v7037_v22, 16  ;;  %v1307_v52 = vshrl.u32 %v7045_v23, 16  ;;  %v7081_v33 = vld [vmem:[#allocation2 + $0x80] sm:$0x1] }
  0x96   : > { %1789 = vrot.lane.b32.xlu1 %v6880_v37, %s6294_s24  ;;  %v1286_v37 = vshll.u32 %v6959_v32, 16  ;;  %v978_v62 = vld [vmem:[#allocation2 + $0x98] sm:$0x1]  ;;  %v784_v17 = vor.u32 %v782_v56, %v781_v2  ;;  %v785_v55 = vrot.slane %v781_v2, 4  ;;  %v1310_v20 = vshll.u32 %v7045_v23, 16 }
  0x97   : > { %2075 = vrot.lane.b32.xlu0 %v6892_v24, %s6296_s13  ;;  %v979_v5 = vsel %vm6420_vm3, %v777_v4, %v978_v62  ;;  %v1568_v49 = vrot.slane %v1566_v30, 4  ;;  %v1569_v45 = vrot.slane %v7014_v27, 5  ;;  %v1309_v63 = vrot.slane %v1307_v52, 4 }
  0x98   : > { %v1288_v35 = vrot.slane %v1286_v37, 5  ;;  %v787_v37 = vshrl.u32 %v565_v48, 16  ;;  %980 = vst [vmem:[#allocation2 + $0x98] sm:$0x1] %v979_v5  ;;  %v981_v26 = vld [vmem:[#allocation2 + $0x9c] sm:$0xf] }
  0x99   : > { %v985_v29 = vld [vmem:[#allocation2 + $0xa4] sm:$0x1]  ;;  %v5682_v48 = vrot.slane %v6959_v32, 9  ;;  %v1570_v62 = vsel %vm6501_vm14, %v1568_v49, %v1569_v45  ;;  %v1326_v5 = vshll.u32 %v7081_v33, 16  ;;  %v566_v49 = vld [vmem:[%s6458_s14 + $0x68] sm:$0xf] }
  0x9a   : > { %1791 = vrot.lane.b32.xlu1 %v6926_v60, %s6294_s24  ;;  %v1289_v58 = vor.u32 %v1288_v35, %v1285_v31  ;;  %v789_v10 = vrot.slane %v787_v37, 7  ;;  %v982_v31 = vsel %vm6480_vm10, %v784_v17, %v981_v26  ;;  %v1312_v37 = vrot.slane %v1310_v20, 5  ;;  %v567_v45 = vld [vmem:[%s6458_s14 + $0x6c] sm:$0xf] }
  0x9b   : > { %2077 = vrot.lane.b32.xlu0 %v6963_v53, %s6296_s13  ;;  %983 = vst [vmem:[#allocation2 + $0x9c] sm:$0xf] %v982_v31  ;;  %v1567_v32 = vsel %vm6501_vm14, %v5682_v48, %v1566_v30  ;;  %v1328_v26 = vrot.slane %v1326_v5, 5  ;;  %v1576_v31 = vrot.slane %v7081_v33, 5  ;;  %v7127_v20 = vcombine.low %v7045_v23, %v7037_v22  ;;  %v7133_v48 = vld [vmem:[#allocation2 + $0x8c] sm:$0x1] }
  0x9c   : > { %v1290_v12 = vrot.slane %v1289_v58, 4  ;;  %v792_v21 = vor.u32 %v790_v42, %v789_v10  ;;  %v794_v28 = vrot.slane %v789_v10, 4  ;;  %v1322_v58 = vrot.slane %v1320_v46, 4  ;;  %v7098_v42 = vld [vmem:[#allocation2 + $0x88] sm:$0xf] }
  0x9d   : > { %v1313_v2 = vor.u32 %v1312_v37, %v1309_v63  ;;  %v804_v33 = vshrl.u32 %v567_v45, 16  ;;  %v799_v5 = vshll.u32 %v566_v49, 16  ;;  %vm2099_vm7 = vcmask 31744  }
  0x9e   : > { %1871 = vrot.lane.b32.xlu1 %v6963_v53, %s9268_s15  ;;  %v793_v25 = vsel %vm6486_vm11, %v785_v55, %v792_v21  ;;  %v1340_v21 = vshll.u32 %v7098_v42, 16  ;;  %vm2148_vm8 = vcmask 64512   ;;  %vm2181_vm9 = vcmask 97280  }
  0x9f   : > { %1869 = vrot.lane.b32.xlu0 %v6892_v24, %s9268_s15  ;;  %v1302_v24 = vshll.u32 %v7014_v27, 16  ;;  %984 = vst.msk [vmem:[#allocation2 + $0xa0] sm:$0xf] %vm418_vm0, %v793_v25  ;;  %v1314_v17 = vrot.slane %v1313_v2, 4  ;;  %v5683_v25 = vrot.slane %v7045_v23, 9  ;;  %vm2214_vm12 = vcmask 130048  }
  0xa0   : > { %v7139_v63 = vrot.slane %v1340_v21, 5  ;;  %vm2247_vm13 = vcmask 162816   ;;  %vm2280_vm1 = vcmask 195584   ;;  %vm2313_vm4 = vcmask 228352  }
  0xa1   : > { %v1304_v15 = vrot.slane %v1302_v24, 5  ;;  %vm2346_vm5 = vcmask 261120   ;;  %vm2399_vm2 = vcmask 293888  }
  0xa2   : > { %1906 = vrot.lane.b32.xlu1 %v6988_v36, %s9295_s16 }
  0xa3   : > { %1904 = vrot.lane.b32.xlu0 %v6900_v11, %s9295_s16  ;;  %v1305_v16 = vsel %vm6557_vm15, %v1300_v6, %v1304_v15  ;;  %v7104_v6 = vld [vmem:[#allocation2 + $0x84] sm:$0xf] }
  0xa4   : > { %v1334_v30 = vshll.u32 %v7104_v6, 16 }
  0xa6   : > { %1941 = vrot.lane.b32.xlu1 %v7018_v9, %s9296_s22 }
  0xa7   : > { %1939 = vrot.lane.b32.xlu0 %v6926_v60, %s9296_s22  ;;  %v7035_v43 = vpop.permute.xlu1 %1857  ;;  %v1295_v60 = vsel %vm6557_vm15, %v1290_v12, %v1294_v38  ;;  %v1316_v38 = vshll.u32 %v7037_v22, 16  ;;  %v7102_v12 = vcombine.low %v1567_v32, %v1570_v62  ;;  %v1336_v62 = vrot.slane %v1334_v30, 5 }
  0xa8   : > { %v7071_v47 = vcombine.low %v1295_v60, %v1305_v16  ;;  %v1573_v16 = vrot.slane %v7037_v22, 5  ;;  %v528_v22 = vld [vmem:[#allocation2 + $0xb0] sm:$0x1] }
  0xa9   : > { %v1318_v57 = vrot.slane %v1316_v38, 5  ;;  %v529_v2 = vsel %vm6450_vm6, 0, %v528_v22 }
  0xaa   : > { %1976 = vrot.lane.b32.xlu1 %v7031_v19, %s6295_s12  ;;  %v1575_v32 = vrot.slane %v1573_v16, 4  ;;  %530 = vst [vmem:[#allocation2 + $0xb0] sm:$0x1] %v529_v2 }
  0xab   : > { %1974 = vrot.lane.b32.xlu0 %v6963_v53, %s6295_s12  ;;  %v986_v53 = vsel %vm6420_vm3, %v794_v28, %v985_v29  ;;  %v1323_v56 = vor.u32 %v1322_v58, %v1318_v57  ;;  %v472_v29 = vld [vmem:[#allocation2 + $0xa8] sm:$0x1]  ;;  %v1331_v28 = vshrl.u32 %v7104_v6, 16  ;;  %v1319_v38 = vsel %vm6557_vm15, %v1314_v17, %v1318_v57 }
  0xac   : > { %v7059_v35 = vpop.permute.xlu0 %1892  ;;  %987 = vst [vmem:[#allocation2 + $0xa4] sm:$0x1] %v986_v53  ;;  %v473_v46 = vsel %vm6420_vm3, 0, %v472_v29  ;;  %v796_v58 = vshrl.u32 %v566_v49, 16  ;;  %v806_v17 = vrot.slane %v804_v33, 7  ;;  %v1577_v49 = vsel %vm6501_vm14, %v1575_v32, %v1576_v31 }
  0xad   : > { %v1324_v55 = vrot.slane %v1323_v56, 4  ;;  %474 = vst [vmem:[#allocation2 + $0xa8] sm:$0x1] %v473_v46  ;;  %v1333_v57 = vrot.slane %v1331_v28, 4  ;;  %v1574_v46 = vsel %vm6501_vm14, %v5683_v25, %v1573_v16  ;;  %v475_v31 = vld [vmem:[#allocation2 + $0xb4] sm:$0x1] }
  0xae   : > { %2011 = vrot.lane.b32.xlu1 %v7043_v7, %s9294_s30  ;;  %v7069_v54 = vpop.permute.xlu1 %1894  ;;  %v798_v56 = vrot.slane %v796_v58, 7  ;;  %v7173_v59 = vcombine.low %v1574_v46, %v1577_v49  ;;  %v811_v25 = vrot.slane %v806_v17, 4 }
  0xaf   : > { %2009 = vrot.lane.b32.xlu0 %v6988_v36, %s9294_s30  ;;  %v1329_v53 = vsel %vm6557_vm15, %v1324_v55, %v1328_v26  ;;  %v807_v55 = vshll.u32 %v567_v45, 16 }
  0xb0   : > { %v7077_v4 = vpop.permute.xlu0 %1997  ;;  %v7147_v26 = vcombine.low %v1319_v38, %v1329_v53  ;;  %v801_v28 = vor.u32 %v799_v5, %v798_v56  ;;  %v802_v30 = vrot.slane %v798_v56, 4  ;;  %v1337_v38 = vor.u32 %v1336_v62, %v1333_v57 }
  0xb1   : > { %v992_v57 = vld [vmem:[#allocation2 + $0xb0] sm:$0x1]  ;;  %v476_v62 = vsel %vm6420_vm3, 0, %v475_v31  ;;  %v7193_v5 = vcombine.low %v7104_v6, %v7098_v42 }
  0xb2   : > { %2046 = vrot.lane.b32.xlu1 %v7071_v47, %s6298_s25  ;;  %v7083_v24 = vpop.permute.xlu1 %1999  ;;  %v1338_v32 = vrot.slane %v1337_v38, 4  ;;  %477 = vst [vmem:[#allocation2 + $0xb4] sm:$0x1] %v476_v62 }
  0xb3   : > { %2044 = vrot.lane.b32.xlu0 %v7018_v9, %s6298_s25 }
  0xb4   : > { %v7089_v27 = vpop.permute.xlu0 %1777  ;;  %v988_v53 = vld [vmem:[#allocation2 + $0xa8] sm:$0xf] }
  0xb5   : > { %v2102_v45 = vsel %vm2099_vm7, %v5691_v41, %v7089_v27  ;;  %v989_v16 = vsel %vm6480_vm10, %v801_v28, %v988_v53  ;;  %v569_v28 = vld [vmem:[%s6458_s14 + $0x74] sm:$0xf] }
  0xb6   : > { %1793 = vrot.lane.b32.xlu1 %v7018_v9, %s6294_s24  ;;  %v7096_v10 = vpop.permute.xlu1 %1859  ;;  %v1344_v9 = vshrl.u32 %v7098_v42, 16  ;;  %990 = vst [vmem:[#allocation2 + $0xa8] sm:$0xf] %v989_v16  ;;  %v2150_v33 = vsel %vm2148_vm8, %v2102_v45, %v7035_v43 }
  0xb7   : > { %2079 = vrot.lane.b32.xlu0 %v7031_v19, %s6296_s13 }
  0xb8   : > { %v7106_v15 = vpop.permute.xlu0 %1962  ;;  %v1346_v37 = vrot.slane %v1344_v9, 4  ;;  %v1350_v9 = vshll.u32 %v7133_v48, 16 }
  0xba   : > { %1795 = vrot.lane.b32.xlu1 %v7071_v47, %s6294_s24  ;;  %v7112_v60 = vpop.permute.xlu1 %1964  ;;  %v1347_v29 = vor.u32 %v1346_v37, %v7139_v63  ;;  %v1352_v27 = vrot.slane %v1350_v9, 5  ;;  %v2183_v9 = vsel %vm2181_vm9, %v2150_v33, %v7059_v35  ;;  %v7214_v35 = vld [vmem:[#allocation2 + $0x94] sm:$0xf] }
  0xbb   : > { %2081 = vrot.lane.b32.xlu0 %v7102_v12, %s6296_s13  ;;  %v1364_v31 = vshll.u32 %v7214_v35, 16 }
  0xbc   : > { %v7123_v52 = vpop.permute.xlu0 %2067  ;;  %v1348_v41 = vrot.slane %v1347_v29, 4 }
  0xbe   : > { %1875 = vrot.lane.b32.xlu1 %v7102_v12, %s9268_s15  ;;  %v7141_v23 = vpop.permute.xlu1 %1929 }
  0xbf   : > { %1873 = vrot.lane.b32.xlu0 %v7031_v19, %s9268_s15  ;;  %v809_v19 = vor.u32 %v807_v55, %v806_v17  ;;  %v568_v17 = vld [vmem:[%s6458_s14 + $0x70] sm:$0xf] }
  0xc0   : > { %v816_v16 = vshll.u32 %v568_v17, 16 }
  0xc1   : > { %v7150_v21 = vpop.permute.xlu0 %2069  ;;  %v810_v58 = vsel %vm6486_vm11, %v802_v30, %v809_v19  ;;  %v813_v30 = vshrl.u32 %v568_v17, 16  ;;  %v531_v19 = vld [vmem:[#allocation2 + $0xbc] sm:$0x1]  ;;  %v995_v17 = vld [vmem:[#allocation2 + $0xb4] sm:$0xf] }
  0xc2   : > { %1910 = vrot.lane.b32.xlu1 %v7127_v20, %s9295_s16  ;;  %991 = vst.msk [vmem:[#allocation2 + $0xac] sm:$0xf] %vm418_vm0, %v810_v58  ;;  %v532_v38 = vsel %vm6450_vm6, 0, %v531_v19 }
  0xc3   : > { %1908 = vrot.lane.b32.xlu0 %v7043_v7, %s9295_s16  ;;  %v2035_v37 = vpop.permute.xlu1 %2034  ;;  %v815_v58 = vrot.slane %v813_v30, 7  ;;  %533 = vst [vmem:[#allocation2 + $0xbc] sm:$0x1] %v532_v38 }
  0xc5   : > { %v1780_v18 = vpop.permute.xlu0 %1779  ;;  %v818_v62 = vor.u32 %v816_v16, %v815_v58 }
  0xc6   : > { %1945 = vrot.lane.b32.xlu1 %v7147_v26, %s9296_s22  ;;  %v2105_v22 = vsel %vm2099_vm7, %v6547_v44, %v1780_v18  ;;  %v993_v44 = vsel %vm6420_vm3, %v811_v25, %v992_v57  ;;  %v1583_v57 = vrot.slane %v7133_v48, 5  ;;  %v1366_v48 = vrot.slane %v1364_v31, 5 }
  0xc7   : > { %v2152_v2 = vsel %vm2148_vm8, %v2105_v22, %v7096_v10  ;;  %1943 = vrot.lane.b32.xlu0 %v7071_v47, %s9296_s22  ;;  %v7185_v56 = vpop.permute.xlu1 %1781  ;;  %v1580_v10 = vrot.slane %v7098_v42, 5  ;;  %v7196_v47 = vld [vmem:[#allocation2 + $0x90] sm:$0xf]  ;;  %994 = vst [vmem:[#allocation2 + $0xb0] sm:$0x1] %v993_v44 }
  0xc8   : > { %v2185_v43 = vsel %vm2181_vm9, %v2152_v2, %v7069_v54  ;;  %v1353_v54 = vsel %vm6557_vm15, %v1348_v41, %v1352_v27  ;;  %v1355_v18 = vshrl.u32 %v7196_v47, 16  ;;  %v1358_v41 = vshll.u32 %v7196_v47, 16 }
  0xc9   : > { %v2218_v55 = vsel %vm2214_vm12, %v2185_v43, %v7141_v23  ;;  %v1928_v29 = vpop.permute.xlu0 %1927  ;;  %v1343_v23 = vsel %vm6557_vm15, %v1338_v32, %v7139_v63  ;;  %v821_v27 = vshrl.u32 %v569_v28, 16  ;;  %v824_v43 = vshll.u32 %v569_v28, 16 }
  0xca   : > { %1980 = vrot.lane.b32.xlu1 %v7173_v59, %s6295_s12  ;;  %v2216_v46 = vsel %vm2214_vm12, %v2183_v9, %v1928_v29  ;;  %v2251_v49 = vsel %vm2247_vm13, %v2218_v55, %v7112_v60  ;;  %v7233_v25 = vcombine.low %v1343_v23, %v1353_v54  ;;  %v1360_v9 = vrot.slane %v1358_v41, 5  ;;  %v7256_v54 = vld [vmem:[#allocation2 + $0x98] sm:$0x1]  ;;  %v7288_v41 = vld [vmem:[#allocation2 + $0xa0] sm:$0xf] }
  0xcb   : > { %v2249_v53 = vsel %vm2247_vm13, %v2216_v46, %v7106_v15  ;;  %1978 = vrot.lane.b32.xlu0 %v7102_v12, %s6295_s12  ;;  %v7222_v45 = vpop.permute.xlu1 %1783  ;;  %v2284_v60 = vsel %vm2280_vm1, %v2251_v49, %v7083_v24  ;;  %v1368_v24 = vshrl.u32 %v7214_v35, 16  ;;  %v823_v44 = vrot.slane %v821_v27, 7 }
  0xcc   : > { %v2282_v63 = vsel %vm2280_vm1, %v2249_v53, %v7077_v4  ;;  %v2317_v12 = vsel %vm2313_vm4, %v2284_v60, %v2035_v37  ;;  %v5684_v4 = vrot.slane %v7104_v6, 9  ;;  %v1582_v37 = vrot.slane %v1580_v10, 4 }
  0xcd   : > { %v2033_v15 = vpop.permute.xlu0 %2032  ;;  %v2350_v2 = vsel %vm2346_vm5, %v2317_v12, %v7150_v21  ;;  %v819_v6 = vrot.slane %v815_v58, 4  ;;  %v1370_v29 = vrot.slane %v1368_v24, 4  ;;  %v826_v30 = vor.u32 %v824_v43, %v823_v44  ;;  %v999_v21 = vld [vmem:[#allocation2 + $0xbc] sm:$0x1] }
  0xce   : > { %2015 = vrot.lane.b32.xlu1 %v7193_v5, %s9294_s30  ;;  %v2315_v33 = vsel %vm2313_vm4, %v2282_v63, %v2033_v15  ;;  %v828_v19 = vrot.slane %v823_v44, 4  ;;  %v996_v46 = vsel %vm6480_vm10, %v818_v62, %v995_v17  ;;  %v1581_v49 = vsel %vm6501_vm14, %v5684_v4, %v1580_v10  ;;  %v7279_v10 = vld [vmem:[#allocation2 + $0x9c] sm:$0xf]  ;;  %v478_v4 = vld [vmem:[#allocation2 + $0xc0] sm:$0x1] }
  0xcf   : > { %2013 = vrot.lane.b32.xlu0 %v7127_v20, %s9294_s30  ;;  %v7241_v22 = vpop.permute.xlu1 %1863  ;;  %v2348_v32 = vsel %vm2346_vm5, %v2315_v33, %v7123_v52  ;;  %v1357_v52 = vrot.slane %v1355_v18, 4  ;;  %v1584_v23 = vsel %vm6501_vm14, %v1582_v37, %v1583_v57  ;;  %v827_v38 = vsel %vm6486_vm11, %v819_v6, %v826_v30  ;;  %997 = vst [vmem:[#allocation2 + $0xb4] sm:$0xf] %v996_v46  ;;  %v570_v30 = vld [vmem:[%s6458_s14 + $0x78] sm:$0xf] }
  0xd0   : > { %6010 = vmatprep.mubr.msk.bf16.mxu0 %vm2399_vm2, %v2348_v32  ;;  %v1000_v53 = vsel %vm6420_vm3, %v828_v19, %v999_v21  ;;  %v1371_v42 = vor.u32 %v1370_v29, %v1366_v48  ;;  %v1374_v16 = vshll.u32 %v7256_v54, 16  ;;  %998 = vst.msk [vmem:[#allocation2 + $0xb8] sm:$0xf] %vm418_vm0, %v827_v38  ;;  %v7286_v18 = vcombine.low %v1581_v49, %v1584_v23  ;;  %v571_v49 = vld [vmem:[%s6458_s14 + $0x7c] sm:$0xf]  ;;  %s9266_s14 = smov 64  }
  0xd1   : > { %6011 = vmatmul.mubr.msk.bf16.vlgmr.msra.gmra.mrb[0].mxu0 %vm2399_vm2, %v2350_v2  ;;  %v7252_v55 = vpop.permute.xlu0 %1861  ;;  %v1361_v58 = vor.u32 %v1360_v9, %v1357_v52  ;;  %1001 = vst [vmem:[#allocation2 + $0xbc] sm:$0x1] %v1000_v53  ;;  %v1382_v27 = vshll.u32 %v7279_v10, 16  ;;  %v1587_v33 = vrot.slane %v7214_v35, 5  ;;  %v1392_v32 = vshrl.u32 %v7288_v41, 16 }
  0xd2   : > { %2050 = vrot.lane.b32.xlu1 %v7233_v25, %s6298_s25  ;;  %v1372_v24 = vrot.slane %v1371_v42, 4  ;;  %v1376_v31 = vrot.slane %v1374_v16, 5  ;;  %v1388_v37 = vshll.u32 %v7288_v41, 16  ;;  %v479_v57 = vsel %vm6420_vm3, 0, %v478_v4  ;;  %v534_v38 = vld [vmem:[#allocation2 + $0xc8] sm:$0x1] }
  0xd3   : > { %2048 = vrot.lane.b32.xlu0 %v7147_v26, %s6298_s25  ;;  %v7260_v28 = vpop.permute.xlu1 %1898  ;;  %v1362_v12 = vrot.slane %v1361_v58, 4  ;;  %480 = vst [vmem:[#allocation2 + $0xc0] sm:$0x1] %v479_v57  ;;  %v5685_v2 = vrot.slane %v7196_v47, 9  ;;  %v1384_v44 = vrot.slane %v1382_v27, 5  ;;  %v7310_v17 = vcombine.low %v7196_v47, %v7214_v35 }
  0xd4   : > { %v1377_v9 = vsel %vm6557_vm15, %v1372_v24, %v1376_v31  ;;  %v1589_v29 = vrot.slane %v1587_v33, 4  ;;  %v1590_v19 = vrot.slane %v7256_v54, 5  ;;  %v7318_v21 = vrot.slane %v1388_v37, 5  ;;  %v7325_v35 = vld [vmem:[#allocation2 + $0xa4] sm:$0x1] }
  0xd5   : > { %v7274_v60 = vpop.permute.xlu0 %1896  ;;  %v1367_v52 = vsel %vm6557_vm15, %v1362_v12, %v1366_v48  ;;  %v1394_v46 = vrot.slane %v1392_v32, 4  ;;  %v830_v23 = vshrl.u32 %v570_v30, 16  ;;  %v833_v48 = vshll.u32 %v570_v30, 16 }
  0xd6   : > { %1797 = vrot.lane.b32.xlu1 %v7147_v26, %s6294_s24  ;;  %v1379_v26 = vshrl.u32 %v7279_v10, 16  ;;  %v7327_v53 = vcombine.low %v1367_v52, %v1377_v9  ;;  %v1588_v58 = vsel %vm6501_vm14, %v5685_v2, %v1587_v33  ;;  %v2108_v16 = vsel %vm2099_vm7, %v6553_v50, %v7185_v56 }
  0xd7   : > { %2083 = vrot.lane.b32.xlu0 %v7173_v59, %s6296_s13  ;;  %v832_v42 = vrot.slane %v830_v23, 7  ;;  %v838_v27 = vshrl.u32 %v571_v49, 16  ;;  %v535_v12 = vsel %vm6450_vm6, 0, %v534_v38  ;;  %v1591_v24 = vsel %vm6501_vm14, %v1589_v29, %v1590_v19 }
  0xd8   : > { %v7284_v63 = vpop.permute.xlu1 %1933  ;;  %v1381_v6 = vrot.slane %v1379_v26, 4  ;;  %v1395_v31 = vor.u32 %v1394_v46, %v7318_v21  ;;  %v1398_v33 = vshll.u32 %v7325_v35, 16  ;;  %v841_v50 = vshll.u32 %v571_v49, 16  ;;  %536 = vst [vmem:[#allocation2 + $0xc8] sm:$0x1] %v535_v12 }
  0xd9   : > { %v7292_v15 = vpop.permute.xlu0 %1931  ;;  %v2154_v32 = vsel %vm2148_vm8, %v2108_v16, %v7252_v55  ;;  %v836_v37 = vrot.slane %v832_v42, 4  ;;  %v840_v57 = vrot.slane %v838_v27, 7  ;;  %v7389_v16 = vld [vmem:[#allocation2 + $0xac] sm:$0xf]  ;;  %v1594_v27 = vrot.slane %v7288_v41, 5 }
  0xda   : > { %1799 = vrot.lane.b32.xlu1 %v7233_v25, %s6294_s24  ;;  %v1385_v54 = vor.u32 %v1384_v44, %v1381_v6  ;;  %v1002_v56 = vld [vmem:[#allocation2 + $0xc0] sm:$0xf]  ;;  %v2187_v2 = vsel %vm2181_vm9, %v2154_v32, %v7274_v60  ;;  %v7355_v44 = vcombine.low %v1588_v58, %v1591_v24  ;;  %v1396_v29 = vrot.slane %v1395_v31, 4 }
  0xdb   : > { %2085 = vrot.lane.b32.xlu0 %v7286_v18, %s6296_s13  ;;  %v1400_v55 = vrot.slane %v1398_v33, 5  ;;  %v843_v30 = vor.u32 %v841_v50, %v840_v57  ;;  %v845_v49 = vrot.slane %v840_v57, 4  ;;  %v1416_v33 = vshrl.u32 %v7389_v16, 16 }
  0xdc   : > { %v7303_v62 = vpop.permute.xlu1 %1968  ;;  %v1386_v52 = vrot.slane %v1385_v54, 4  ;;  %v1412_v50 = vshll.u32 %v7389_v16, 16  ;;  %v1596_v32 = vrot.slane %v1594_v27, 4 }
  0xdd   : > { %v1967_v43 = vpop.permute.xlu0 %1966 }
  0xde   : > { %1879 = vrot.lane.b32.xlu1 %v7286_v18, %s9268_s15 }
  0xdf   : > { %1877 = vrot.lane.b32.xlu0 %v7173_v59, %s9268_s15  ;;  %v2111_v59 = vsel %vm2099_vm7, %v6580_v13, %v7222_v45  ;;  %v835_v45 = vor.u32 %v833_v48, %v832_v42  ;;  %v1006_v38 = vld [vmem:[#allocation2 + $0xc8] sm:$0x1]  ;;  %v1401_v42 = vsel %vm6557_vm15, %v1396_v29, %v1400_v55 }
  0xe0   : > { %v7323_v47 = vpop.permute.xlu1 %2003  ;;  %v2156_v4 = vsel %vm2148_vm8, %v2111_v59, %v7241_v22  ;;  %v2220_v22 = vsel %vm2214_vm12, %v2187_v2, %v7292_v15  ;;  %v844_v15 = vsel %vm6486_vm11, %v836_v37, %v843_v30  ;;  %v1007_v59 = vsel %vm6420_vm3, %v845_v49, %v1006_v38 }
  0xe1   : > { %v2002_v26 = vpop.permute.xlu0 %2001  ;;  %v1003_v9 = vsel %vm6480_vm10, %v835_v45, %v1002_v56  ;;  %v2189_v60 = vsel %vm2181_vm9, %v2156_v4, %v7260_v28  ;;  %v2253_v19 = vsel %vm2247_vm13, %v2220_v22, %v1967_v43  ;;  %v7376_v28 = vcombine.low %v7279_v10, %v7288_v41  ;;  %v7381_v43 = vld [vmem:[#allocation2 + $0xa8] sm:$0xf]  ;;  %1005 = vst.msk [vmem:[#allocation2 + $0xc4] sm:$0xf] %vm418_vm0, %v844_v15  ;;  %v481_v56 = vld [vmem:[#allocation2 + $0xcc] sm:$0x1] }
  0xe2   : > { %1914 = vrot.lane.b32.xlu1 %v7310_v17, %s9295_s16  ;;  %1004 = vst [vmem:[#allocation2 + $0xc0] sm:$0xf] %v1003_v9  ;;  %v2286_v34 = vsel %vm2280_vm1, %v2253_v19, %v2002_v26  ;;  %v2222_v58 = vsel %vm2214_vm12, %v2189_v60, %v7284_v63  ;;  %1008 = vst [vmem:[#allocation2 + $0xc8] sm:$0x1] %v1007_v59  ;;  %v1403_v12 = vshrl.u32 %v7381_v43, 16  ;;  %v1406_v24 = vshll.u32 %v7381_v43, 16 }
  0xe3   : > { %1912 = vrot.lane.b32.xlu0 %v7193_v5, %s9295_s16  ;;  %v482_v45 = vsel %vm6420_vm3, 0, %v481_v56  ;;  %v537_v4 = vld [vmem:[#allocation2 + $0xd4] sm:$0x1]  ;;  %v1597_v37 = vrot.slane %v7325_v35, 5  ;;  %v1418_v9 = vrot.slane %v1416_v33, 4  ;;  %v1601_v38 = vrot.slane %v7389_v16, 5 }
  0xe4   : > { %v2039_v13 = vpop.permute.xlu1 %2038  ;;  %v1405_v57 = vrot.slane %v1403_v12, 4  ;;  %v1408_v2 = vrot.slane %v1406_v24, 5  ;;  %483 = vst [vmem:[#allocation2 + $0xcc] sm:$0x1] %v482_v45  ;;  %v1053_v22 = vld [vmem:[#allocation2 + $0xb0] sm:$0x1] }
  0xe5   : > { %v2037_v6 = vpop.permute.xlu0 %2036  ;;  %v1598_v29 = vsel %vm6501_vm14, %v1596_v32, %v1597_v37  ;;  %v1422_v8 = vshll.u32 %v1053_v22, 16  ;;  %v7444_v15 = vld [vmem:[#allocation2 + $0xb8] sm:$0xf]  ;;  %v1604_v33 = vrot.slane %v1053_v22, 5  ;;  %v7468_v45 = vld [vmem:[#allocation2 + $0xbc] sm:$0x1] }
  0xe6   : > { %1949 = vrot.lane.b32.xlu1 %v7327_v53, %s9296_s22  ;;  %v2319_v23 = vsel %vm2313_vm4, %v2286_v34, %v2037_v6  ;;  %v1409_v55 = vor.u32 %v1408_v2, %v1405_v57  ;;  %v7442_v34 = vld [vmem:[#allocation2 + $0xb4] sm:$0xf]  ;;  %v1436_v59 = vshll.u32 %v7444_v15, 16  ;;  %vm2726_vm0 = vcmask 57344  }
  0xe7   : > { %1947 = vrot.lane.b32.xlu0 %v7233_v25, %s9296_s22  ;;  %v1391_v25 = vsel %vm6557_vm15, %v1386_v52, %v7318_v21  ;;  %v2255_v21 = vsel %vm2247_vm13, %v2222_v58, %v7303_v62  ;;  %v1414_v52 = vrot.slane %v1412_v50, 5  ;;  %v1427_v58 = vshrl.u32 %v7442_v34, 16  ;;  %2727 = vst.msk [vmem:[#allocation3 + $0x8] sm:$0x1] %vm2726_vm0, %v6290_v0  ;;  %2731 = vst.msk [vmem:[#allocation3 + $0xd4] sm:$0x1] %vm2726_vm0, %v6290_v0 }
  0xe8   : > { %v7366_v46 = vpop.permute.xlu1 %1785  ;;  %v2288_v63 = vsel %vm2280_vm1, %v2255_v21, %v7323_v47  ;;  %v1438_v56 = vrot.slane %v1436_v59, 5  ;;  %vm9297_vm3 = vsmask.f32 256  ;;  %vm9300_vm10 = vsmask.f32 7938 }
  0xe9   : > { %v2072_v48 = vpop.permute.xlu0 %2071  ;;  %v2321_v31 = vsel %vm2313_vm4, %v2288_v63, %v2039_v13  ;;  %v5686_v13 = vrot.slane %v7279_v10, 9  ;;  %v538_v10 = vsel %vm6450_vm6, 0, %v537_v4  ;;  %v1419_v60 = vor.u32 %v1418_v9, %v1414_v52  ;;  %vm7626_vm6 = vmand %vm2726_vm0, %vm9297_vm3 }
  0xea   : > { %1984 = vrot.lane.b32.xlu1 %v7355_v44, %s6295_s12  ;;  %v2352_v54 = vsel %vm2346_vm5, %v2319_v23, %v2072_v48  ;;  %539 = vst [vmem:[#allocation2 + $0xd4] sm:$0x1] %v538_v10  ;;  %v1410_v23 = vrot.slane %v1409_v55, 4  ;;  %v7457_v63 = vcombine.low %v7381_v43, %v7389_v16  ;;  %v1429_v50 = vrot.slane %v1427_v58, 4  ;;  %vm7651_vm3 = vmand %vm2726_vm0, %vm9300_vm10 }
  0xeb   : > { %1982 = vrot.lane.b32.xlu0 %v7286_v18, %s6295_s12  ;;  %6014 = vmatprep.mubr.msk.bf16.mxu0 %vm2399_vm2, %v2352_v54  ;;  %v7408_v18 = vcombine.low %v1391_v25, %v1401_v42  ;;  %v1595_v35 = vsel %vm6501_vm14, %v5686_v13, %v1594_v27  ;;  %v1420_v25 = vrot.slane %v1419_v60, 4  ;;  %v1430_v54 = vshll.u32 %v7442_v34, 16 }
  0xec   : > { %v7398_v26 = vpop.permute.xlu1 %1787  ;;  %v7440_v49 = vcombine.low %v1595_v35, %v1598_v29  ;;  %v1440_v42 = vshrl.u32 %v7444_v15, 16  ;;  %v1415_v27 = vsel %vm6557_vm15, %v1410_v23, %v1414_v52  ;;  %v2114_v4 = vsel %vm2099_vm7, %v6718_v14, %v7366_v46 }
  0xed   : > { %v2074_v62 = vpop.permute.xlu0 %2073  ;;  %v1446_v14 = vshll.u32 %v7468_v45, 16 }
  0xee   : > { %2019 = vrot.lane.b32.xlu1 %v7376_v28, %s9294_s30  ;;  %v2354_v47 = vsel %vm2346_vm5, %v2321_v31, %v2074_v62  ;;  %v5687_v31 = vrot.slane %v7381_v43, 9  ;;  %v1603_v62 = vrot.slane %v1601_v38, 4  ;;  %v1442_v13 = vrot.slane %v1440_v42, 4 }
  0xef   : > { %2017 = vrot.lane.b32.xlu0 %v7310_v17, %s9294_s30  ;;  %6015 = vmatmul.mubr.msk.bf16.gmra.mrb[4].mxu0 %vm2399_vm2, %v2354_v47  ;;  %v1432_v47 = vrot.slane %v1430_v54, 5  ;;  %v2117_v43 = vsel %vm2099_vm7, %v6767_v3, %v7398_v26  ;;  %v1448_v60 = vrot.slane %v1446_v14, 5  ;;  %v7520_v54 = vld [vmem:[#allocation2 + $0xc4] sm:$0xf] }
  0xf0   : > { %v7416_v41 = vpop.permute.xlu1 %1867  ;;  %v1602_v57 = vsel %vm6501_vm14, %v5687_v31, %v1601_v38  ;;  %v1443_v52 = vor.u32 %v1442_v13, %v1438_v56  ;;  %v1611_v13 = vrot.slane %v7468_v45, 5 }
  0xf1   : > { %v1866_v6 = vpop.permute.xlu0 %1865  ;;  %v1433_v2 = vor.u32 %v1432_v47, %v1429_v50  ;;  %v2160_v3 = vsel %vm2148_vm8, %v2117_v43, %v7416_v41  ;;  %v5688_v47 = vrot.slane %v7442_v34, 9 }
  0xf2   : > { %2054 = vrot.lane.b32.xlu1 %v7408_v18, %s6298_s25  ;;  %v2158_v26 = vsel %vm2148_vm8, %v2114_v4, %v1866_v6  ;;  %v1444_v55 = vrot.slane %v1443_v52, 4 }
  0xf3   : > { %2052 = vrot.lane.b32.xlu0 %v7327_v53, %s6298_s25  ;;  %v1434_v29 = vrot.slane %v1433_v2, 4 }
  0xf4   : > { %v7428_v1 = vpop.permute.xlu1 %1902  ;;  %v1449_v58 = vsel %vm6557_vm15, %v1444_v55, %v1448_v60  ;;  %v1642_v55 = vrot.slane %v7520_v54, 5 }
  0xf5   : > { %v1901_v30 = vpop.permute.xlu0 %1900 }
  0xf6   : > { %1801 = vrot.lane.b32.xlu1 %v7327_v53, %s6294_s24  ;;  %v1424_v53 = vrot.slane %v1422_v8, 5  ;;  %v2191_v9 = vsel %vm2181_vm9, %v2158_v26, %v1901_v30  ;;  %v2193_v8 = vsel %vm2181_vm9, %v2160_v3, %v7428_v1  ;;  %v7511_v1 = vld [vmem:[#allocation2 + $0xc0] sm:$0xf]  ;;  %v7561_v26 = vld [vmem:[#allocation2 + $0xd0] sm:$0xf] }
  0xf7   : > { %2087 = vrot.lane.b32.xlu0 %v7355_v44, %s6296_s13  ;;  %v1661_v60 = vshrl.u32 %v7561_v26, 16  ;;  %v1676_v0 = vrot.slane %v7561_v26, 5 }
  0xf8   : > { %v7438_v19 = vpop.permute.xlu1 %1937  ;;  %v1425_v24 = vsel %vm6557_vm15, %v1420_v25, %v1424_v53 }
  0xf9   : > { %v1936_v48 = vpop.permute.xlu0 %1935  ;;  %v7478_v37 = vcombine.low %v1415_v27, %v1425_v24  ;;  %v2226_v53 = vsel %vm2214_vm12, %v2193_v8, %v7438_v19  ;;  %v1608_v27 = vrot.slane %v7444_v15, 5  ;;  %v1617_v24 = vshll.u32 %v7511_v1, 16 }
  0xfa   : > { %1803 = vrot.lane.b32.xlu1 %v7408_v18, %s6294_s24  ;;  %v2224_v35 = vsel %vm2214_vm12, %v2191_v9, %v1936_v48  ;;  %v7509_v48 = vcombine.low %v7442_v34, %v7444_v15  ;;  %v7563_v9 = vld [vmem:[#allocation2 + $0xcc] sm:$0xf] }
  0xfb   : > { %2089 = vrot.lane.b32.xlu0 %v7440_v49, %s6296_s13  ;;  %v1619_v4 = vrot.slane %v1617_v24, 5  ;;  %v1609_v34 = vsel %vm6501_vm14, %v5688_v47, %v1608_v27 }
  0xfc   : > { %v1973_v21 = vpop.permute.xlu1 %1972 }
  0xfd   : > { %v1971_v12 = vpop.permute.xlu0 %1970  ;;  %v2259_v42 = vsel %vm2247_vm13, %v2226_v53, %v1973_v21 }
  0xfe   : > { %1883 = vrot.lane.b32.xlu1 %v7440_v49, %s9268_s15  ;;  %v2257_v41 = vsel %vm2247_vm13, %v2224_v35, %v1971_v12  ;;  %v1614_v12 = vshrl.u32 %v7511_v1, 16 }
  0xff   : > { %1881 = vrot.lane.b32.xlu0 %v7355_v44, %s9268_s15  ;;  %v1605_v44 = vsel %vm6501_vm14, %v1603_v62, %v1604_v33  ;;  %v1627_v33 = vshrl.u32 %v7520_v54, 16 }
 0x100   : > { %v2008_v16 = vpop.permute.xlu1 %2007  ;;  %v7493_v10 = vcombine.low %v1602_v57, %v1605_v44  ;;  %v1059_v44 = vld [vmem:[#allocation2 + $0xc8] sm:$0x1] }
 0x101   : > { %v2006_v32 = vpop.permute.xlu0 %2005  ;;  %v2292_v19 = vsel %vm2280_vm1, %v2259_v42, %v2008_v16  ;;  %v1616_v16 = vrot.slane %v1614_v12, 4  ;;  %v1629_v57 = vrot.slane %v1627_v33, 4  ;;  %v1633_v3 = vshll.u32 %v1059_v44, 16  ;;  %v7595_v33 = vld [vmem:[#allocation2 + $0xd4] sm:$0x1] }
 0x102   : > { %1918 = vrot.lane.b32.xlu1 %v7457_v63, %s9295_s16  ;;  %v2290_v6 = vsel %vm2280_vm1, %v2257_v41, %v2006_v32  ;;  %v1645_v42 = vrot.slane %v1059_v44, 5 }
 0x103   : > { %1916 = vrot.lane.b32.xlu0 %v7376_v28, %s9295_s16  ;;  %v1620_v52 = vor.u32 %v1619_v4, %v1616_v16 }
 0x104   : > { %v2043_v46 = vpop.permute.xlu1 %2042 }
 0x105   : > { %v2041_v22 = vpop.permute.xlu0 %2040  ;;  %v2325_v31 = vsel %vm2313_vm4, %v2292_v19, %v2043_v46 }
 0x106   : > { %1953 = vrot.lane.b32.xlu1 %v7478_v37, %s9296_s22  ;;  %v2323_v30 = vsel %vm2313_vm4, %v2290_v6, %v2041_v22  ;;  %v1635_v6 = vrot.slane %v1633_v3, 5 }
 0x107   : > { %1951 = vrot.lane.b32.xlu0 %v7408_v18, %s9296_s22  ;;  %v1439_v18 = vsel %vm6557_vm15, %v1434_v29, %v1438_v56  ;;  %v1610_v56 = vrot.slane %v1608_v27, 4  ;;  %v1621_v29 = vrot.slane %v1620_v52, 4  ;;  %v1663_v27 = vrot.slane %v1661_v60, 4 }
 0x108   : > { %v7499_v23 = vpop.permute.xlu1 %1789  ;;  %v7535_v21 = vcombine.low %v1439_v18, %v1449_v58  ;;  %v5689_v18 = vrot.slane %v7511_v1, 9  ;;  %v1644_v58 = vrot.slane %v1642_v55, 4 }
 0x109   : > { %v2076_v25 = vpop.permute.xlu0 %2075  ;;  %v1612_v45 = vsel %vm6501_vm14, %v1610_v56, %v1611_v13 }
 0x10a   : > { %1988 = vrot.lane.b32.xlu1 %v7493_v10, %s6295_s12  ;;  %v2356_v38 = vsel %vm2346_vm5, %v2323_v30, %v2076_v25  ;;  %v7569_v35 = vcombine.low %v1609_v34, %v1612_v45  ;;  %v1648_v30 = vshrl.u32 %v7563_v9, 16  ;;  %v1651_v25 = vshll.u32 %v7563_v9, 16 }
 0x10b   : > { %6018 = vmatprep.mubr.msk.bf16.mxu0 %vm2399_vm2, %v2356_v38  ;;  %1986 = vrot.lane.b32.xlu0 %v7440_v49, %s6295_s12  ;;  %v1623_v49 = vshll.u32 %v7520_v54, 16  ;;  %v7584_v38 = vcombine.low %v7511_v1, %v7520_v54  ;;  %v1646_v47 = vsel %vm6501_vm14, %v1644_v58, %v1645_v42  ;;  %v1678_v58 = vrot.slane %v1676_v0, 4 }
 0x10c   : > { %v7524_v59 = vpop.permute.xlu1 %1791  ;;  %v1653_v54 = vrot.slane %v1651_v25, 5 }
 0x10d   : > { %v2078_v62 = vpop.permute.xlu0 %2077  ;;  %v1625_v32 = vrot.slane %v1623_v49, 5  ;;  %v2123_v13 = vsel %vm2099_vm7, %v6900_v11, %v7524_v59  ;;  %v2734_v11 = vld [vmem:[#allocation3] sm:$0x1] }
 0x10e   : > { %2023 = vrot.lane.b32.xlu1 %v7509_v48, %s9294_s30  ;;  %v2358_v50 = vsel %vm2346_vm5, %v2325_v31, %v2078_v62  ;;  %v1650_v62 = vrot.slane %v1648_v30, 4  ;;  %v2735_v34 = vsel %vm7626_vm6, 0, %v2734_v11 }
 0x10f   : > { %6019 = vmatmul.mubr.msk.bf16.gmra.mrb[8].mxu0 %vm2399_vm2, %v2358_v50  ;;  %2021 = vrot.lane.b32.xlu0 %v7457_v63, %s9294_s30  ;;  %v1630_v46 = vor.u32 %v1629_v57, %v1625_v32  ;;  %v1626_v24 = vsel %vm6557_vm15, %v1621_v29, %v1625_v32  ;;  %v1643_v50 = vsel %vm6501_vm14, %v5689_v18, %v1642_v55  ;;  %v1667_v32 = vshll.u32 %v7595_v33, 16 }
 0x110   : > { %v7541_v15 = vpop.permute.xlu1 %1871  ;;  %v1654_v4 = vor.u32 %v1653_v54, %v1650_v62  ;;  %v7634_v44 = vcombine.low %v1643_v50, %v1646_v47  ;;  %2736 = vst [vmem:[#allocation3] sm:$0x1] %v2735_v34  ;;  %v2795_v62 = vld [vmem:[#allocation3 + $0x20] sm:$0x1]  ;;  %v2792_v47 = vld [vmem:[#allocation3 + $0x14] sm:$0x1] }
 0x111   : > { %v7547_v43 = vpop.permute.xlu0 %1869  ;;  %v1631_v41 = vrot.slane %v1630_v46, 4  ;;  %v1669_v29 = vrot.slane %v1667_v32, 5 }
 0x112   : > { %2058 = vrot.lane.b32.xlu1 %v7535_v21, %s6298_s25  ;;  %v1655_v46 = vrot.slane %v1654_v4, 4 }
 0x113   : > { %2056 = vrot.lane.b32.xlu0 %v7478_v37, %s6298_s25  ;;  %v1636_v31 = vsel %vm6557_vm15, %v1631_v41, %v1635_v6 }
 0x114   : > { %v7551_v2 = vpop.permute.xlu1 %1906  ;;  %v7601_v49 = vcombine.low %v1626_v24, %v1636_v31  ;;  %v2737_v24 = vld [vmem:[#allocation3 + $0xc] sm:$0x1] }
 0x115   : > { %v1905_v14 = vpop.permute.xlu0 %1904 }
 0x116   : > { %1805 = vrot.lane.b32.xlu1 %v7478_v37, %s6294_s24  ;;  %v1657_v37 = vshll.u32 %v7561_v26, 16 }
 0x117   : > { %2091 = vrot.lane.b32.xlu0 %v7493_v10, %s6296_s13 }
 0x118   : > { %v7565_v22 = vpop.permute.xlu1 %1941  ;;  %v7587_v19 = vrot.slane %v1657_v37, 5  ;;  %v2789_v37 = vld [vmem:[#allocation3 + $0x8] sm:$0x1] }
 0x119   : > { %v1940_v8 = vpop.permute.xlu0 %1939  ;;  %v2790_v6 = vsel %vm7651_vm3, 0, %v2789_v37 }
 0x11a   : > { %1807 = vrot.lane.b32.xlu1 %v7535_v21, %s6294_s24  ;;  %v1664_v56 = vor.u32 %v1663_v27, %v7587_v19  ;;  %v1660_v25 = vsel %vm6557_vm15, %v1655_v46, %v7587_v19  ;;  %2791 = vst [vmem:[#allocation3 + $0x8] sm:$0x1] %v2790_v6  ;;  %v1679_v27 = vrot.slane %v7595_v33, 5  ;;  %s9264_s24 = smov 40  }
 0x11b   : > { %2093 = vrot.lane.b32.xlu0 %v7569_v35, %s6296_s13 }
 0x11c   : > { %v7578_v53 = vpop.permute.xlu1 %1976  ;;  %v1665_v3 = vrot.slane %v1664_v56, 4  ;;  %v3358_v56 = vld [vmem:[#allocation3] sm:$0xf] }
 0x11d   : > { %v1975_v12 = vpop.permute.xlu0 %1974  ;;  %v3416_v4 = vshll.u32 %v3358_v56, 16 }
 0x11e   : > { %1887 = vrot.lane.b32.xlu1 %v7569_v35, %s9268_s15  ;;  %v1670_v18 = vsel %vm6557_vm15, %v1665_v3, %v1669_v29 }
 0x11f   : > { %1885 = vrot.lane.b32.xlu0 %v7493_v10, %s9268_s15  ;;  %v2120_v10 = vsel %vm2099_vm7, %v6850_v39, %v7499_v23  ;;  %v2164_v23 = vsel %vm2148_vm8, %v2123_v13, %v7541_v15  ;;  %v5743_v33 = vcombine.low %v1660_v25, %v1670_v18  ;;  %v2793_v13 = vsel %vm7651_vm3, 0, %v2792_v47 }
 0x120   : > { %v7597_v1 = vpop.permute.xlu1 %2011  ;;  %v2162_v59 = vsel %vm2148_vm8, %v2120_v10, %v7547_v43  ;;  %v2197_v43 = vsel %vm2181_vm9, %v2164_v23, %v7551_v2  ;;  %v5690_v2 = vrot.slane %v7563_v9, 9  ;;  %2794 = vst [vmem:[#allocation3 + $0x14] sm:$0x1] %v2793_v13  ;;  %v3418_v34 = vrot.slane %v3416_v4, 5 }
 0x121   : > { %v2010_v16 = vpop.permute.xlu0 %2009  ;;  %v2195_v45 = vsel %vm2181_vm9, %v2162_v59, %v1905_v14 }
 0x122   : > { %1922 = vrot.lane.b32.xlu1 %v7584_v38, %s9295_s16  ;;  %v2228_v15 = vsel %vm2214_vm12, %v2195_v45, %v1940_v8  ;;  %v5742_v8 = vcombine.low %v7563_v9, %v7561_v26  ;;  %v2740_v26 = vld [vmem:[#allocation3 + $0x18] sm:$0x1]  ;;  %v2230_v9 = vsel %vm2214_vm12, %v2197_v43, %v7565_v22  ;;  %v2738_v22 = vsel %vm7626_vm6, 0, %v2737_v24  ;;  %v3360_v45 = vld [vmem:[#allocation3 + $0x8] sm:$0x1] }
 0x123   : > { %1920 = vrot.lane.b32.xlu0 %v7509_v48, %s9295_s16  ;;  %v2261_v55 = vsel %vm2247_vm13, %v2228_v15, %v1975_v12  ;;  %v2741_v12 = vsel %vm7626_vm6, 0, %v2740_v26  ;;  %v2263_v19 = vsel %vm2247_vm13, %v2230_v9, %v7578_v53  ;;  %v1677_v50 = vsel %vm6501_vm14, %v5690_v2, %v1676_v0  ;;  %2739 = vst [vmem:[#allocation3 + $0xc] sm:$0x1] %v2738_v22  ;;  %s6299_s16 = smov 48  }
 0x124   : > { %v2047_v57 = vpop.permute.xlu1 %2046  ;;  %v2294_v41 = vsel %vm2280_vm1, %v2261_v55, %v2010_v16  ;;  %2742 = vst [vmem:[#allocation3 + $0x18] sm:$0x1] %v2741_v12  ;;  %v2296_v54 = vsel %vm2280_vm1, %v2263_v19, %v7597_v1  ;;  %v2796_v53 = vsel %vm7651_vm3, 0, %v2795_v62  ;;  %v3359_v1 = vld [vmem:[#allocation3 + $0x4] sm:$0xf]  ;;  %v3413_v16 = vshrl.u32 %v3358_v56, 16 }
 0x125   : > { %v2045_v52 = vpop.permute.xlu0 %2044  ;;  %2797 = vst [vmem:[#allocation3 + $0x20] sm:$0x1] %v2796_v53  ;;  %v1680_v0 = vsel %vm6501_vm14, %v1678_v58, %v1679_v27  ;;  %v3422_v11 = vshll.u32 %v3359_v1, 16  ;;  %v3426_v23 = vshrl.u32 %v3359_v1, 16  ;;  %v3432_v43 = vshll.u32 %v3360_v45, 16 }
 0x126   : > { %1957 = vrot.lane.b32.xlu1 %v7601_v49, %s9296_s22  ;;  %v2327_v30 = vsel %vm2313_vm4, %v2294_v41, %v2045_v52  ;;  %v3415_v59 = vrot.slane %v3413_v16, 4  ;;  %v5744_v29 = vcombine.low %v1677_v50, %v1680_v0  ;;  %v5798_v58 = vrot.slane %v3358_v56, 9  ;;  %v2801_v0 = vld [vmem:[#allocation3 + $0x38] sm:$0x1] }
 0x127   : > { %1955 = vrot.lane.b32.xlu0 %v7535_v21, %s9296_s22  ;;  %v3424_v52 = vrot.slane %v3422_v11, 5  ;;  %v3428_v46 = vrot.slane %v3426_v23, 4  ;;  %v3849_v26 = vrot.slane %v3360_v45, 5 }
 0x128   : > { %v7645_v60 = vpop.permute.xlu1 %1793  ;;  %v3419_v15 = vor.u32 %v3418_v34, %v3415_v59  ;;  %v2798_v59 = vld [vmem:[#allocation3 + $0x2c] sm:$0x1] }
 0x129   : > { %v2080_v21 = vpop.permute.xlu0 %2079  ;;  %v3429_v55 = vor.u32 %v3428_v46, %v3424_v52 }
 0x12a   : > { %1992 = vrot.lane.b32.xlu1 %v7634_v44, %s6295_s12  ;;  %v2360_v42 = vsel %vm2346_vm5, %v2327_v30, %v2080_v21  ;;  %v3420_v41 = vrot.slane %v3419_v15, 4  ;;  %v3846_v30 = vrot.slane %v3359_v1, 5 }
 0x12b   : > { %6022 = vmatprep.mubr.msk.bf16.mxu0 %vm2399_vm2, %v2360_v42  ;;  %1990 = vrot.lane.b32.xlu0 %v7569_v35, %s6295_s12  ;;  %v2329_v35 = vsel %vm2313_vm4, %v2296_v54, %v2047_v57  ;;  %v3430_v2 = vrot.slane %v3429_v55, 4  ;;  %s6302_s12 = smov 56  }
 0x12c   : > { %v7678_v31 = vpop.permute.xlu1 %1795  ;;  %v3425_v6 = vsel %vm6557_vm15, %v3420_v41, %v3424_v52  ;;  %v3847_v42 = vsel %vm6501_vm14, %v5798_v58, %v3846_v30  ;;  %v2799_v52 = vsel %vm7651_vm3, 0, %v2798_v59 }
 0x12d   : > { %v2082_v10 = vpop.permute.xlu0 %2081  ;;  %v2129_v62 = vsel %vm2099_vm7, %v7043_v7, %v7678_v31  ;;  %v2743_v31 = vld [vmem:[#allocation3 + $0x24] sm:$0x1]  ;;  %2800 = vst [vmem:[#allocation3 + $0x2c] sm:$0x1] %v2799_v52 }
 0x12e   : > { %2027 = vrot.lane.b32.xlu1 %v5742_v8, %s9294_s30  ;;  %v2362_v32 = vsel %vm2346_vm5, %v2329_v35, %v2082_v10  ;;  %v3434_v8 = vrot.slane %v3432_v43, 5 }
 0x12f   : > { %6023 = vmatmul.mubr.msk.bf16.gmra.mrb[12].mxu0 %vm2399_vm2, %v2362_v32  ;;  %2025 = vrot.lane.b32.xlu0 %v7584_v38, %s9294_s30  ;;  %v2744_v32 = vsel %vm7626_vm6, 0, %v2743_v31 }
 0x130   : > { %v1876_v57 = vpop.permute.xlu1 %1875  ;;  %v3435_v21 = vsel %vm6557_vm15, %v3430_v2, %v3434_v8  ;;  %2745 = vst [vmem:[#allocation3 + $0x24] sm:$0x1] %v2744_v32 }
 0x131   : > { %v1874_v3 = vpop.permute.xlu0 %1873  ;;  %v5832_v18 = vcombine.low %v3425_v6, %v3435_v21  ;;  %v2168_v50 = vsel %vm2148_vm8, %v2129_v62, %v1876_v57  ;;  %v2802_v57 = vsel %vm7651_vm3, 0, %v2801_v0  ;;  %v2749_v62 = vld [vmem:[#allocation3 + $0x3c] sm:$0x1] }
 0x132   : > { %2062 = vrot.lane.b32.xlu1 %v5743_v33, %s6298_s25  ;;  %2803 = vst [vmem:[#allocation3 + $0x38] sm:$0x1] %v2802_v57 }
 0x133   : > { %2060 = vrot.lane.b32.xlu0 %v7601_v49, %s6298_s25  ;;  %v3848_v49 = vrot.slane %v3846_v30, 4  ;;  %s392_s25 = sand.u32 1, %s6280_s18  }
 0x134   : > { %v1911_v37 = vpop.permute.xlu1 %1910 }
 0x135   : > { %v1909_v38 = vpop.permute.xlu0 %1908  ;;  %v3850_v27 = vsel %vm6501_vm14, %v3848_v49, %v3849_v26  ;;  %v2201_v10 = vsel %vm2181_vm9, %v2168_v50, %v1911_v37 }
 0x136   : > { %2097 = vrot.lane.b32.xlu1 %v5744_v29, %s6296_s13  ;;  %v5848_v24 = vcombine.low %v3847_v42, %v3850_v27 }
 0x137   : > { %2095 = vrot.lane.b32.xlu0 %v7634_v44, %s6296_s13  ;;  %v2126_v44 = vsel %vm2099_vm7, %v6988_v36, %v7645_v60  ;;  %v2746_v60 = vld [vmem:[#allocation3 + $0x30] sm:$0x1] }
 0x138   : > { %v1946_v25 = vpop.permute.xlu1 %1945  ;;  %v2166_v53 = vsel %vm2148_vm8, %v2126_v44, %v1874_v3  ;;  %v2747_v7 = vsel %vm7626_vm6, 0, %v2746_v60 }
 0x139   : > { %v1944_v9 = vpop.permute.xlu0 %1943  ;;  %v2199_v47 = vsel %vm2181_vm9, %v2166_v53, %v1909_v38  ;;  %2748 = vst [vmem:[#allocation3 + $0x30] sm:$0x1] %v2747_v7  ;;  %v2234_v11 = vsel %vm2214_vm12, %v2201_v10, %v1946_v25  ;;  %v2750_v53 = vsel %vm7626_vm6, 0, %v2749_v62  ;;  %v2804_v10 = vld [vmem:[#allocation3 + $0x44] sm:$0x1] }
 0x13a   : > { %v2232_v35 = vsel %vm2214_vm12, %v2199_v47, %v1944_v9  ;;  %v2807_v47 = vld [vmem:[#allocation3 + $0x50] sm:$0x1]  ;;  %2751 = vst [vmem:[#allocation3 + $0x3c] sm:$0x1] %v2750_v53 }
 0x13b   : > { %4120 = vrot.lane.b32.xlu0 %v5832_v18, %s9268_s15 }
 0x13c   : > { %v1981_v12 = vpop.permute.xlu1 %1980 }
 0x13d   : > { %v1979_v19 = vpop.permute.xlu0 %1978  ;;  %v2267_v34 = vsel %vm2247_vm13, %v2234_v11, %v1981_v12 }
 0x13e   : > { %v2265_v13 = vsel %vm2247_vm13, %v2232_v35, %v1979_v19  ;;  %v2752_v19 = vld [vmem:[#allocation3 + $0x48] sm:$0x1]  ;;  %v2808_v35 = vsel %vm7651_vm3, 0, %v2807_v47 }
 0x13f   : > { %4200 = vrot.lane.b32.xlu0 %v5848_v24, %s9296_s22  ;;  %v2753_v44 = vsel %vm7626_vm6, 0, %v2752_v19  ;;  %2809 = vst [vmem:[#allocation3 + $0x50] sm:$0x1] %v2808_v35 }
 0x140   : > { %v2016_v22 = vpop.permute.xlu1 %2015  ;;  %2754 = vst [vmem:[#allocation3 + $0x48] sm:$0x1] %v2753_v44 }
 0x141   : > { %v2014_v54 = vpop.permute.xlu0 %2013  ;;  %v2300_v46 = vsel %vm2280_vm1, %v2267_v34, %v2016_v22 }
 0x142   : > { %v2298_v1 = vsel %vm2280_vm1, %v2265_v13, %v2014_v54 }
 0x144   : > { %v2051_v33 = vpop.permute.xlu1 %2050 }
 0x145   : > { %v2049_v56 = vpop.permute.xlu0 %2048  ;;  %v2333_v3 = vsel %vm2313_vm4, %v2300_v46, %v2051_v33 }
 0x146   : > { %v2331_v16 = vsel %vm2313_vm4, %v2298_v1, %v2049_v56 }
 0x148   : > { %v1798_v36 = vpop.permute.xlu1 %1797 }
 0x149   : > { %v2084_v4 = vpop.permute.xlu0 %2083  ;;  %v2132_v38 = vsel %vm2099_vm7, %v7127_v20, %v1798_v36  ;;  %v2805_v36 = vsel %vm7651_vm3, 0, %v2804_v10 }
 0x14a   : > { %v2364_v23 = vsel %vm2346_vm5, %v2331_v16, %v2084_v4  ;;  %2806 = vst [vmem:[#allocation3 + $0x44] sm:$0x1] %v2805_v36 }
 0x14b   : > { %6026 = vmatprep.mubr.msk.bf16.mxu1 %vm2399_vm2, %v2364_v23 }
 0x14c   : > { %v1800_v45 = vpop.permute.xlu1 %1799 }
 0x14d   : > { %v2086_v29 = vpop.permute.xlu0 %2085  ;;  %v2135_v30 = vsel %vm2099_vm7, %v7193_v5, %v1800_v45 }
 0x14e   : > { %v2366_v15 = vsel %vm2346_vm5, %v2333_v3, %v2086_v29 }
 0x14f   : > { %6027 = vmatmul.mubr.msk.bf16.vlgmr.msra.gmra.mrb[0].mxu1 %vm2399_vm2, %v2366_v15 }
 0x150   : > { %v1880_v43 = vpop.permute.xlu1 %1879 }
 0x151   : > { %v1878_v55 = vpop.permute.xlu0 %1877  ;;  %v2172_v58 = vsel %vm2148_vm8, %v2135_v30, %v1880_v43  ;;  %v2758_v30 = vld [vmem:[#allocation3 + $0x60] sm:$0x1] }
 0x152   : > { %v2170_v25 = vsel %vm2148_vm8, %v2132_v38, %v1878_v55 }
 0x154   : > { %v1915_v37 = vpop.permute.xlu1 %1914 }
 0x155   : > { %v1913_v41 = vpop.permute.xlu0 %1912  ;;  %v2205_v9 = vsel %vm2181_vm9, %v2172_v58, %v1915_v37 }
 0x156   : > { %v2203_v49 = vsel %vm2181_vm9, %v2170_v25, %v1913_v41  ;;  %v2759_v25 = vsel %vm7626_vm6, 0, %v2758_v30 }
 0x157   : > { %2760 = vst [vmem:[#allocation3 + $0x60] sm:$0x1] %v2759_v25 }
 0x158   : > { %v1950_v8 = vpop.permute.xlu1 %1949 }
 0x159   : > { %v1948_v2 = vpop.permute.xlu0 %1947  ;;  %v2238_v20 = vsel %vm2214_vm12, %v2205_v9, %v1950_v8 }
 0x15a   : > { %v2236_v27 = vsel %vm2214_vm12, %v2203_v49, %v1948_v2 }
 0x15c   : > { %v1985_v6 = vpop.permute.xlu1 %1984 }
 0x15d   : > { %v1983_v21 = vpop.permute.xlu0 %1982  ;;  %v2271_v54 = vsel %vm2247_vm13, %v2238_v20, %v1985_v6 }
 0x15e   : > { %v2269_v24 = vsel %vm2247_vm13, %v2236_v27, %v1983_v21  ;;  %v2810_v27 = vld [vmem:[#allocation3 + $0x5c] sm:$0x1] }
 0x160   : > { %v2020_v18 = vpop.permute.xlu1 %2019 }
 0x161   : > { %v2018_v26 = vpop.permute.xlu0 %2017  ;;  %v2304_v60 = vsel %vm2280_vm1, %v2271_v54, %v2020_v18  ;;  %v2755_v18 = vld [vmem:[#allocation3 + $0x54] sm:$0x1] }
 0x162   : > { %v2302_v22 = vsel %vm2280_vm1, %v2269_v24, %v2018_v26  ;;  %v2756_v49 = vsel %vm7626_vm6, 0, %v2755_v18  ;;  %v2813_v26 = vld [vmem:[#allocation3 + $0x68] sm:$0x1]  ;;  %v2811_v24 = vsel %vm7651_vm3, 0, %v2810_v27  ;;  %v2819_v18 = vld [vmem:[#allocation3 + $0x80] sm:$0x1] }
 0x163   : > { %2757 = vst [vmem:[#allocation3 + $0x54] sm:$0x1] %v2756_v49  ;;  %2812 = vst [vmem:[#allocation3 + $0x5c] sm:$0x1] %v2811_v24 }
 0x164   : > { %v2055_v42 = vpop.permute.xlu1 %2054 }
 0x165   : > { %v2053_v12 = vpop.permute.xlu0 %2052  ;;  %v2337_v1 = vsel %vm2313_vm4, %v2304_v60, %v2055_v42  ;;  %v2814_v42 = vsel %vm7651_vm3, 0, %v2813_v26 }
 0x166   : > { %v2335_v33 = vsel %vm2313_vm4, %v2302_v22, %v2053_v12  ;;  %2815 = vst [vmem:[#allocation3 + $0x68] sm:$0x1] %v2814_v42  ;;  %v2816_v42 = vld [vmem:[#allocation3 + $0x74] sm:$0x1] }
 0x168   : > { %v1802_v5 = vpop.permute.xlu1 %1801 }
 0x169   : > { %v2088_v50 = vpop.permute.xlu0 %2087  ;;  %v2138_v0 = vsel %vm2099_vm7, %v7310_v17, %v1802_v5 }
 0x16a   : > { %v2368_v56 = vsel %vm2346_vm5, %v2335_v33, %v2088_v50 }
 0x16b   : > { %6030 = vmatprep.mubr.msk.bf16.mxu1 %vm2399_vm2, %v2368_v56 }
 0x16c   : > { %v1804_v13 = vpop.permute.xlu1 %1803 }
 0x16d   : > { %v2090_v7 = vpop.permute.xlu0 %2089  ;;  %v2141_v59 = vsel %vm2099_vm7, %v7376_v28, %v1804_v13 }
 0x16e   : > { %v2370_v31 = vsel %vm2346_vm5, %v2337_v1, %v2090_v7 }
 0x16f   : > { %6031 = vmatmul.mubr.msk.bf16.gmra.mrb[4].mxu1 %vm2399_vm2, %v2370_v31 }
 0x170   : > { %v1884_v16 = vpop.permute.xlu1 %1883 }
 0x171   : > { %v1882_v4 = vpop.permute.xlu0 %1881  ;;  %v2176_v46 = vsel %vm2148_vm8, %v2141_v59, %v1884_v16 }
 0x172   : > { %v2174_v57 = vsel %vm2148_vm8, %v2138_v0, %v1882_v4  ;;  %v7817_v4 = vld [vmem:[%s9245_s2] ss:$0 sm:$0xff] }
 0x174   : > { %v1919_v32 = vpop.permute.xlu1 %1918 }
 0x175   : > { %v1917_v11 = vpop.permute.xlu0 %1916  ;;  %v2209_v15 = vsel %vm2181_vm9, %v2176_v46, %v1919_v32 }
 0x176   : > { %v2207_v45 = vsel %vm2181_vm9, %v2174_v57, %v1917_v11 }
 0x178   : > { %v1954_v23 = vpop.permute.xlu1 %1953 }
 0x179   : > { %v1952_v34 = vpop.permute.xlu0 %1951  ;;  %v2242_v37 = vsel %vm2214_vm12, %v2209_v15, %v1954_v23  ;;  %v7823_v23 = vld [vmem:[%s9246_s3] ss:$0 sm:$0xff] }
 0x17a   : > { %v2240_v29 = vsel %vm2214_vm12, %v2207_v45, %v1952_v34 }
 0x17c   : > { %v1989_v52 = vpop.permute.xlu1 %1988 }
 0x17d   : > { %v1987_v3 = vpop.permute.xlu0 %1986  ;;  %v2275_v8 = vsel %vm2247_vm13, %v2242_v37, %v1989_v52  ;;  %v2764_v37 = vld [vmem:[#allocation3 + $0x78] sm:$0x1] }
 0x17e   : > { %v2273_v17 = vsel %vm2247_vm13, %v2240_v29, %v1987_v3 }
 0x180   : > { %v2024_v43 = vpop.permute.xlu1 %2023 }
 0x181   : > { %v2022_v55 = vpop.permute.xlu0 %2021  ;;  %v2308_v21 = vsel %vm2280_vm1, %v2275_v8, %v2024_v43  ;;  %v2765_v8 = vsel %vm7626_vm6, 0, %v2764_v37 }
 0x182   : > { %v2306_v28 = vsel %vm2280_vm1, %v2273_v17, %v2022_v55  ;;  %2766 = vst [vmem:[#allocation3 + $0x78] sm:$0x1] %v2765_v8 }
 0x184   : > { %v2059_v41 = vpop.permute.xlu1 %2058 }
 0x185   : > { %v2057_v2 = vpop.permute.xlu0 %2056  ;;  %v2341_v12 = vsel %vm2313_vm4, %v2308_v21, %v2059_v41 }
 0x186   : > { %v2339_v38 = vsel %vm2313_vm4, %v2306_v28, %v2057_v2  ;;  %v2761_v2 = vld [vmem:[#allocation3 + $0x6c] sm:$0x1] }
 0x187   : > { %v2762_v25 = vsel %vm7626_vm6, 0, %v2761_v2 }
 0x188   : > { %v1806_v6 = vpop.permute.xlu1 %1805  ;;  %2763 = vst [vmem:[#allocation3 + $0x6c] sm:$0x1] %v2762_v25 }
 0x189   : > { %v2092_v58 = vpop.permute.xlu0 %2091  ;;  %v2144_v33 = vsel %vm2099_vm7, %v7457_v63, %v1806_v6 }
 0x18a   : > { %v2372_v9 = vsel %vm2346_vm5, %v2339_v38, %v2092_v58 }
 0x18b   : > { %6034 = vmatprep.mubr.msk.bf16.mxu1 %vm2399_vm2, %v2372_v9  ;;  %v2820_v9 = vsel %vm7651_vm3, 0, %v2819_v18 }
 0x18c   : > { %v1808_v20 = vpop.permute.xlu1 %1807  ;;  %2821 = vst [vmem:[#allocation3 + $0x80] sm:$0x1] %v2820_v9 }
 0x18d   : > { %v2094_v5 = vpop.permute.xlu0 %2093  ;;  %v2147_v54 = vsel %vm2099_vm7, %v7509_v48, %v1808_v20  ;;  %v2817_v20 = vsel %vm7651_vm3, 0, %v2816_v42  ;;  %vm9304_vm7 = vcmask 60416  }
 0x18e   : > { %v2374_v19 = vsel %vm2346_vm5, %v2341_v12, %v2094_v5  ;;  %2818 = vst [vmem:[#allocation3 + $0x74] sm:$0x1] %v2817_v20 }
 0x18f   : > { %6035 = vmatmul.mubr.msk.bf16.gmra.mrb[8].mxu1 %vm2399_vm2, %v2374_v19 }
 0x190   : > { %v1888_v22 = vpop.permute.xlu1 %1887 }
 0x191   : > { %v1886_v44 = vpop.permute.xlu0 %1885  ;;  %v2180_v53 = vsel %vm2148_vm8, %v2147_v54, %v1888_v22 }
 0x192   : > { %v2178_v56 = vsel %vm2148_vm8, %v2144_v33, %v1886_v44 }
 0x194   : > { %v1923_v62 = vpop.permute.xlu1 %1922 }
 0x195   : > { %v1921_v50 = vpop.permute.xlu0 %1920  ;;  %v2213_v10 = vsel %vm2181_vm9, %v2180_v53, %v1923_v62 }
 0x196   : > { %v2211_v13 = vsel %vm2181_vm9, %v2178_v56, %v1921_v50 }
 0x198   : > { %v1958_v47 = vpop.permute.xlu1 %1957 }
 0x199   : > { %v1956_v35 = vpop.permute.xlu0 %1955  ;;  %v2246_v60 = vsel %vm2214_vm12, %v2213_v10, %v1958_v47  ;;  %v3253_v47 = vld [vmem:[#allocation3 + $0x18] sm:$0xf] }
 0x19a   : > { %v2244_v48 = vsel %vm2214_vm12, %v2211_v13, %v1956_v35 }
 0x19c   : > { %v1993_v36 = vpop.permute.xlu1 %1992 }
 0x19d   : > { %v1991_v1 = vpop.permute.xlu0 %1990  ;;  %v2279_v63 = vsel %vm2247_vm13, %v2246_v60, %v1993_v36  ;;  %v3246_v36 = vld [vmem:[#allocation3 + $0xc] sm:$0xf] }
 0x19e   : > { %v2277_v31 = vsel %vm2247_vm13, %v2244_v48, %v1991_v1 }
 0x1a0   : > { %v2028_v7 = vpop.permute.xlu1 %2027 }
 0x1a1   : > { %v2026_v16 = vpop.permute.xlu0 %2025  ;;  %v2312_v32 = vsel %vm2280_vm1, %v2279_v63, %v2028_v7  ;;  %v3257_v7 = vld [vmem:[#allocation3 + $0x20] sm:$0x1] }
 0x1a2   : > { %v2310_v57 = vsel %vm2280_vm1, %v2277_v31, %v2026_v16 }
 0x1a4   : > { %v2063_v0 = vpop.permute.xlu1 %2062  ;;  %v6012_v11 = vpop.f32.mrb[0].mxu0 }
 0x1a5   : > { %v2606_v59 = vmul.f32 %v6012_v11, %v7817_v4  ;;  %v2470_v34 = vpop.f32.mrb[1].mxu0  ;;  %v2061_v45 = vpop.permute.xlu0 %2060  ;;  %v2345_v3 = vsel %vm2313_vm4, %v2312_v32, %v2063_v0 }
 0x1a6   : > { %v2604_v52 = vmul.f32 %v7817_v4, %v2470_v34  ;;  %v6013_v46 = vpop.f32.mrb[2].mxu0  ;;  %v2343_v17 = vsel %vm2313_vm4, %v2310_v57, %v2061_v45  ;;  %vm9303_vm4 = vmmov %vm9300_vm10  ;;  %v3250_v57 = vld [vmem:[#allocation3 + $0x14] sm:$0x1] }
 0x1a7   : > { %v2645_v29 = vadd.f32 %v7823_v23, %v2606_v59  ;;  %v2607_v15 = vmul.f32 %v6013_v46, %v7817_v4  ;;  %v2473_v43 = vpop.f32.mrb[3].mxu0  ;;  %vm7850_vm9 = vmand %vm9304_vm7, %vm9303_vm4 }
 0x1a8   : > { %v2098_v55 = vpop.permute.xlu1 %2097  ;;  %v2643_v41 = vadd.f32 %v7823_v23, %v2604_v52  ;;  %v2605_v28 = vmul.f32 %v7817_v4, %v2473_v43 }
 0x1a9   : > { %v2677_v38 = vmax.f32 %v2645_v29, 0.0  ;;  %v2646_v6 = vadd.f32 %v7823_v23, %v2607_v15  ;;  %v2096_v30 = vpop.permute.xlu0 %2095  ;;  %v2378_v21 = vsel %vm2346_vm5, %v2345_v3, %v2098_v55 }
 0x1aa   : > { %v2675_v58 = vmax.f32 %v2643_v41, 0.0  ;;  %v2644_v49 = vadd.f32 %v7823_v23, %v2605_v28  ;;  %v2376_v26 = vsel %vm2346_vm5, %v2343_v17, %v2096_v30 }
 0x1ab   : > { %v5917_v27 = vpack.c.bf16 %v2677_v38, %v2677_v38  ;;  %v2678_v12 = vmax.f32 %v2646_v6, 0.0  ;;  %6038 = vmatprep.mubr.msk.bf16.mxu1 %vm2399_vm2, %v2376_v26 }
 0x1ac   : > { %v5915_v24 = vpack.c.bf16 %v2675_v58, %v2675_v58  ;;  %v2676_v5 = vmax.f32 %v2644_v49, 0.0  ;;  %6039 = vmatmul.mubr.msk.bf16.gmra.mrb[12].mxu1 %vm2399_vm2, %v2378_v21  ;;  %vm9307_vm2 = vmmov %vm9304_vm7 }
 0x1ad   : > { %v2941_v19 = vshrl.u32 %v5917_v27, 16  ;;  %v5918_v22 = vpack.c.bf16 %v2678_v12, %v2678_v12  ;;  %v2944_v33 = vshll.u32 %v5917_v27, 16  ;;  %vm9308_vm13 = vmmov %vm9307_vm2 }
 0x1ae   : > { %v2924_v44 = vshrl.u32 %v5915_v24, 16  ;;  %v5916_v62 = vpack.c.bf16 %v2676_v5, %v2676_v5  ;;  %v2927_v35 = vshll.u32 %v5915_v24, 16  ;;  %vm9309_vm10 = vmmov %vm9307_vm2 }
 0x1af   : > { %v2943_v54 = vrot.slane %v2941_v19, 7  ;;  %v2949_v50 = vshrl.u32 %v5918_v22, 16  ;;  %v2952_v1 = vshll.u32 %v5918_v22, 16  ;;  %vm9310_vm4 = vmmov %vm9307_vm2 }
 0x1b0   : > { %v2926_v56 = vrot.slane %v2924_v44, 7  ;;  %v2932_v10 = vshrl.u32 %v5916_v62, 16  ;;  %v2935_v31 = vshll.u32 %v5916_v62, 16  ;;  %vm9311_vm7 = vmmov %vm9307_vm2 }
 0x1b1   : > { %v2946_v13 = vor.u32 %v2944_v33, %v2943_v54  ;;  %v2951_v60 = vrot.slane %v2949_v50, 7  ;;  %v2947_v16 = vrot.slane %v2943_v54, 4 }
 0x1b2   : > { %v2929_v48 = vor.u32 %v2927_v35, %v2926_v56  ;;  %v2934_v63 = vrot.slane %v2932_v10, 7  ;;  %v2930_v59 = vrot.slane %v2926_v56, 4 }
 0x1b3   : > { %v3254_v32 = vsel %vm7850_vm9, %v2946_v13, %v3253_v47  ;;  %v2954_v0 = vor.u32 %v2952_v1, %v2951_v60  ;;  %v2956_v11 = vrot.slane %v2951_v60, 4 }
 0x1b4   : > { %3255 = vst [vmem:[#allocation3 + $0x18] sm:$0xf] %v3254_v32  ;;  %v3247_v34 = vsel %vm7850_vm9, %v2929_v48, %v3246_v36  ;;  %v2937_v45 = vor.u32 %v2935_v31, %v2934_v63  ;;  %v2939_v52 = vrot.slane %v2934_v63, 4 }
 0x1b5   : > { %3248 = vst [vmem:[#allocation3 + $0xc] sm:$0xf] %v3247_v34  ;;  %v2955_v46 = vsel %vm6486_vm11, %v2947_v16, %v2954_v0  ;;  %v3258_v3 = vsel %vm7626_vm6, %v2956_v11, %v3257_v7 }
 0x1b6   : > { %3256 = vst.msk [vmem:[#allocation3 + $0x1c] sm:$0xf] %vm9307_vm2, %v2955_v46  ;;  %3259 = vst [vmem:[#allocation3 + $0x20] sm:$0x1] %v3258_v3  ;;  %v2938_v29 = vsel %vm6486_vm11, %v2930_v59, %v2937_v45  ;;  %v3251_v15 = vsel %vm7626_vm6, %v2939_v52, %v3250_v57  ;;  %v2770_v3 = vld [vmem:[#allocation3 + $0x90] sm:$0x1] }
 0x1b7   : > { %3249 = vst.msk [vmem:[#allocation3 + $0x10] sm:$0xf] %vm9308_vm13, %v2938_v29  ;;  %3252 = vst [vmem:[#allocation3 + $0x14] sm:$0x1] %v3251_v15 }
 0x1b8   : > { %vm9312_vm13 = vmmov %vm9307_vm2 }
 0x1bb   : > { %v3364_v43 = vld [vmem:[#allocation3 + $0x18] sm:$0xf] }
 0x1bc   : > { %v3461_v17 = vshrl.u32 %v3364_v43, 16  ;;  %v3464_v55 = vshll.u32 %v3364_v43, 16  ;;  %v3361_v37 = vld [vmem:[#allocation3 + $0xc] sm:$0xf]  ;;  %v5800_v41 = vrot.slane %v3364_v43, 9 }
 0x1bd   : > { %v3365_v28 = vld [vmem:[#allocation3 + $0x1c] sm:$0xf]  ;;  %v3437_v8 = vshrl.u32 %v3361_v37, 16  ;;  %v3440_v2 = vshll.u32 %v3361_v37, 16  ;;  %v3366_v38 = vld [vmem:[#allocation3 + $0x20] sm:$0x1] }
 0x1be   : > { %v7868_v6 = vcombine.low %v3364_v43, %v3365_v28  ;;  %v3474_v30 = vshrl.u32 %v3365_v28, 16  ;;  %v7870_v21 = vld [vmem:[#allocation3 + $0x10] sm:$0xf]  ;;  %v3860_v25 = vrot.slane %v3365_v28, 5  ;;  %v3863_v18 = vrot.slane %v3366_v38, 5 }
 0x1bf   : > { %v3450_v58 = vshrl.u32 %v7870_v21, 16  ;;  %v7874_v49 = vcombine.low %v3361_v37, %v7870_v21  ;;  %v7876_v26 = vld [vmem:[#allocation3 + $0x14] sm:$0x1]  ;;  %v5799_v9 = vrot.slane %v3361_v37, 9  ;;  %v3853_v42 = vrot.slane %v7870_v21, 5 }
 0x1c0   : > { %4237 = vrot.lane.b32.xlu1 %v7868_v6, %s9294_s30  ;;  %4340 = vrot.lane.b32.xlu0 %v7868_v6, %s6299_s16  ;;  %v3861_v27 = vsel %vm6501_vm14, %v5800_v41, %v3860_v25  ;;  %v3862_v12 = vrot.slane %v3860_v25, 4  ;;  %v3856_v20 = vrot.slane %v7876_v26, 5  ;;  %v3463_v24 = vrot.slane %v3461_v17, 4  ;;  %v2767_v37 = vld [vmem:[#allocation3 + $0x84] sm:$0x1] }
 0x1c1   : > { %v3854_v5 = vsel %vm6501_vm14, %v5799_v9, %v3853_v42  ;;  %v3855_v19 = vrot.slane %v3853_v42, 4  ;;  %v3466_v22 = vrot.slane %v3464_v55, 5  ;;  %v3470_v44 = vshll.u32 %v3365_v28, 16  ;;  %v2822_v42 = vld [vmem:[#allocation3 + $0x8c] sm:$0x1] }
 0x1c2   : > { %v6016_v62 = vpop.f32.mrb[4].mxu0  ;;  %v3864_v54 = vsel %vm6501_vm14, %v3862_v12, %v3863_v18  ;;  %v3476_v33 = vrot.slane %v3474_v30, 4  ;;  %v3480_v50 = vshll.u32 %v3366_v38, 16  ;;  %v3439_v47 = vrot.slane %v3437_v8, 4  ;;  %v2825_v38 = vld [vmem:[#allocation3 + $0x98] sm:$0x1] }
 0x1c3   : > { %v2610_v56 = vmul.f32 %v6016_v62, %v7817_v4  ;;  %v2486_v35 = vpop.f32.mrb[5].mxu0  ;;  %v7891_v10 = vcombine.low %v3861_v27, %v3864_v54  ;;  %v3857_v13 = vsel %vm6501_vm14, %v3855_v19, %v3856_v20  ;;  %v3467_v36 = vor.u32 %v3466_v22, %v3463_v24 }
 0x1c4   : > { %v2608_v60 = vmul.f32 %v7817_v4, %v2486_v35  ;;  %v6017_v1 = vpop.f32.mrb[6].mxu0  ;;  %4235 = vrot.lane.b32.xlu0 %v7874_v49, %s9294_s30  ;;  %v7898_v48 = vcombine.low %v3854_v5, %v3857_v13  ;;  %v3472_v7 = vrot.slane %v3470_v44, 5  ;;  %v3482_v63 = vrot.slane %v3480_v50, 5 }
 0x1c5   : > { %v2649_v31 = vadd.f32 %v7823_v23, %v2610_v56  ;;  %v2611_v16 = vmul.f32 %v6017_v1, %v7817_v4  ;;  %v2489_v32 = vpop.f32.mrb[7].mxu0  ;;  %v3468_v0 = vrot.slane %v3467_v36, 4  ;;  %v3442_v11 = vrot.slane %v3440_v2, 5  ;;  %v3267_v56 = vld [vmem:[#allocation3 + $0x30] sm:$0xf] }
 0x1c6   : > { %v2647_v57 = vadd.f32 %v7823_v23, %v2608_v60  ;;  %v2609_v59 = vmul.f32 %v7817_v4, %v2489_v32  ;;  %v3477_v34 = vor.u32 %v3476_v33, %v3472_v7  ;;  %v3446_v45 = vshll.u32 %v7870_v21, 16 }
 0x1c7   : > { %v2681_v52 = vmax.f32 %v2649_v31, 0.0  ;;  %v2650_v46 = vadd.f32 %v7823_v23, %v2611_v16  ;;  %v3473_v29 = vsel %vm6557_vm15, %v3468_v0, %v3472_v7  ;;  %v3443_v15 = vor.u32 %v3442_v11, %v3439_v47  ;;  %v3271_v11 = vld [vmem:[#allocation3 + $0x38] sm:$0x1] }
 0x1c8   : > { %v2679_v43 = vmax.f32 %v2647_v57, 0.0  ;;  %v2648_v17 = vadd.f32 %v7823_v23, %v2609_v59  ;;  %v2771_v55 = vsel %vm7626_vm6, 0, %v2770_v3  ;;  %v3478_v41 = vrot.slane %v3477_v34, 4 }
 0x1c9   : > { %v5921_v28 = vpack.c.bf16 %v2681_v52, %v2681_v52  ;;  %v2682_v8 = vmax.f32 %v2650_v46, 0.0  ;;  %2772 = vst [vmem:[#allocation3 + $0x90] sm:$0x1] %v2771_v55  ;;  %v2768_v2 = vsel %vm7626_vm6, 0, %v2767_v37  ;;  %v3444_v30 = vrot.slane %v3443_v15, 4 }
 0x1ca   : > { %v5919_v25 = vpack.c.bf16 %v2679_v43, %v2679_v43  ;;  %v2680_v18 = vmax.f32 %v2648_v17, 0.0  ;;  %2769 = vst [vmem:[#allocation3 + $0x84] sm:$0x1] %v2768_v2  ;;  %v2826_v9 = vsel %vm7651_vm3, 0, %v2825_v38  ;;  %v3483_v27 = vsel %vm6557_vm15, %v3478_v41, %v3482_v63  ;;  %v3260_v63 = vld [vmem:[#allocation3 + $0x24] sm:$0xf] }
 0x1cb   : > { %v2975_v12 = vshrl.u32 %v5921_v28, 16  ;;  %v2978_v20 = vshll.u32 %v5921_v28, 16  ;;  %v5922_v24 = vpack.c.bf16 %v2682_v8, %v2682_v8  ;;  %2827 = vst [vmem:[#allocation3 + $0x98] sm:$0x1] %v2826_v9  ;;  %v2823_v5 = vsel %vm7651_vm3, 0, %v2822_v42 }
 0x1cc   : > { %v2958_v19 = vshrl.u32 %v5919_v25, 16  ;;  %v2961_v22 = vshll.u32 %v5919_v25, 16  ;;  %v5920_v44 = vpack.c.bf16 %v2680_v18, %v2680_v18  ;;  %2824 = vst [vmem:[#allocation3 + $0x8c] sm:$0x1] %v2823_v5  ;;  %v7919_v62 = vcombine.low %v3473_v29, %v3483_v27  ;;  %v3264_v46 = vld [vmem:[#allocation3 + $0x2c] sm:$0x1] }
 0x1cd   : > { %v2977_v54 = vrot.slane %v2975_v12, 7  ;;  %v2983_v33 = vshrl.u32 %v5922_v24, 16  ;;  %v2986_v50 = vshll.u32 %v5922_v24, 16  ;;  %v3448_v47 = vrot.slane %v3446_v45, 5 }
 0x1ce   : > { %v2960_v35 = vrot.slane %v2958_v19, 7  ;;  %v2966_v13 = vshrl.u32 %v5920_v44, 16  ;;  %v2969_v36 = vshll.u32 %v5920_v44, 16  ;;  %v3452_v60 = vrot.slane %v3450_v58, 4 }
 0x1cf   : > { %v2980_v1 = vor.u32 %v2978_v20, %v2977_v54  ;;  %v2981_v7 = vrot.slane %v2977_v54, 4  ;;  %v2985_v31 = vrot.slane %v2983_v33, 7  ;;  %v3449_v16 = vsel %vm6557_vm15, %v3444_v30, %v3448_v47 }
 0x1d0   : > { %v2963_v32 = vor.u32 %v2961_v22, %v2960_v35  ;;  %v2964_v0 = vrot.slane %v2960_v35, 4  ;;  %v2968_v57 = vrot.slane %v2966_v13, 7  ;;  %v3453_v59 = vor.u32 %v3452_v60, %v3448_v47 }
 0x1d1   : > { %v3268_v34 = vsel %vm7850_vm9, %v2980_v1, %v3267_v56  ;;  %v2988_v45 = vor.u32 %v2986_v50, %v2985_v31  ;;  %v2990_v52 = vrot.slane %v2985_v31, 4  ;;  %v3456_v21 = vshll.u32 %v7876_v26, 16  ;;  %v3281_v1 = vld [vmem:[#allocation3 + $0x48] sm:$0xf] }
 0x1d2   : > { %3269 = vst [vmem:[#allocation3 + $0x30] sm:$0xf] %v3268_v34  ;;  %v3261_v58 = vsel %vm7850_vm9, %v2963_v32, %v3260_v63  ;;  %v2971_v3 = vor.u32 %v2969_v36, %v2968_v57  ;;  %v2973_v29 = vrot.slane %v2968_v57, 4  ;;  %v3454_v15 = vrot.slane %v3453_v59, 4  ;;  %v3274_v32 = vld [vmem:[#allocation3 + $0x3c] sm:$0xf] }
 0x1d3   : > { %3262 = vst [vmem:[#allocation3 + $0x24] sm:$0xf] %v3261_v58  ;;  %v2989_v43 = vsel %vm6486_vm11, %v2981_v7, %v2988_v45  ;;  %v3272_v17 = vsel %vm7626_vm6, %v2990_v52, %v3271_v11  ;;  %v3458_v55 = vrot.slane %v3456_v21, 5  ;;  %v3285_v59 = vld [vmem:[#allocation3 + $0x50] sm:$0x1] }
 0x1d4   : > { %3270 = vst.msk [vmem:[#allocation3 + $0x34] sm:$0xf] %vm9309_vm10, %v2989_v43  ;;  %3273 = vst [vmem:[#allocation3 + $0x38] sm:$0x1] %v3272_v17  ;;  %v2972_v26 = vsel %vm6486_vm11, %v2964_v0, %v2971_v3  ;;  %v3265_v37 = vsel %vm7626_vm6, %v2973_v29, %v3264_v46  ;;  %v3278_v3 = vld [vmem:[#allocation3 + $0x44] sm:$0x1] }
 0x1d5   : > { %3263 = vst.msk [vmem:[#allocation3 + $0x28] sm:$0xf] %vm9310_vm4, %v2972_v26  ;;  %3266 = vst [vmem:[#allocation3 + $0x2c] sm:$0x1] %v3265_v37  ;;  %v3459_v41 = vsel %vm6557_vm15, %v3454_v15, %v3458_v55 }
 0x1d6   : > { %v7942_v28 = vcombine.low %v3449_v16, %v3459_v41  ;;  %vm9313_vm10 = vmmov %vm9307_vm2 }
 0x1d7   : > { %vm9314_vm4 = vmmov %vm9307_vm2 }
 0x1e2   : > { %v6020_v8 = vpop.f32.mrb[8].mxu0 }
 0x1e3   : > { %v2614_v2 = vmul.f32 %v6020_v8, %v7817_v4  ;;  %v2502_v38 = vpop.f32.mrb[9].mxu0 }
 0x1e4   : > { %v2612_v30 = vmul.f32 %v7817_v4, %v2502_v38  ;;  %v6021_v25 = vpop.f32.mrb[10].mxu0 }
 0x1e5   : > { %v2653_v18 = vadd.f32 %v7823_v23, %v2614_v2  ;;  %v2615_v9 = vmul.f32 %v6021_v25, %v7817_v4  ;;  %v2505_v42 = vpop.f32.mrb[11].mxu0 }
 0x1e6   : > { %v2651_v27 = vadd.f32 %v7823_v23, %v2612_v30  ;;  %v2613_v12 = vmul.f32 %v7817_v4, %v2505_v42 }
 0x1e7   : > { %v2685_v20 = vmax.f32 %v2653_v18, 0.0  ;;  %v2654_v24 = vadd.f32 %v7823_v23, %v2615_v9 }
 0x1e8   : > { %v2683_v5 = vmax.f32 %v2651_v27, 0.0  ;;  %v2652_v19 = vadd.f32 %v7823_v23, %v2613_v12 }
 0x1e9   : > { %v5925_v22 = vpack.c.bf16 %v2685_v20, %v2685_v20  ;;  %v2686_v44 = vmax.f32 %v2654_v24, 0.0 }
 0x1ea   : > { %v5923_v54 = vpack.c.bf16 %v2683_v5, %v2683_v5  ;;  %v2684_v33 = vmax.f32 %v2652_v19, 0.0 }
 0x1eb   : > { %v3009_v50 = vshrl.u32 %v5925_v22, 16  ;;  %v5926_v47 = vpack.c.bf16 %v2686_v44, %v2686_v44  ;;  %v3012_v36 = vshll.u32 %v5925_v22, 16 }
 0x1ec   : > { %v2992_v56 = vshrl.u32 %v5923_v54, 16  ;;  %v5924_v35 = vpack.c.bf16 %v2684_v33, %v2684_v33  ;;  %v2995_v63 = vshll.u32 %v5923_v54, 16 }
 0x1ed   : > { %v3011_v13 = vrot.slane %v3009_v50, 7  ;;  %v3017_v60 = vshrl.u32 %v5926_v47, 16  ;;  %v3020_v11 = vshll.u32 %v5926_v47, 16 }
 0x1ee   : > { %v2994_v7 = vrot.slane %v2992_v56, 7  ;;  %v3000_v31 = vshrl.u32 %v5924_v35, 16  ;;  %v3003_v45 = vshll.u32 %v5924_v35, 16 }
 0x1ef   : > { %v3014_v16 = vor.u32 %v3012_v36, %v3011_v13  ;;  %v3019_v0 = vrot.slane %v3017_v60, 7  ;;  %v3015_v52 = vrot.slane %v3011_v13, 4 }
 0x1f0   : > { %v2997_v57 = vor.u32 %v2995_v63, %v2994_v7  ;;  %v3002_v34 = vrot.slane %v3000_v31, 7  ;;  %v2998_v29 = vrot.slane %v2994_v7, 4 }
 0x1f1   : > { %v3282_v46 = vsel %vm7850_vm9, %v3014_v16, %v3281_v1  ;;  %v3022_v21 = vor.u32 %v3020_v11, %v3019_v0  ;;  %v3024_v58 = vrot.slane %v3019_v0, 4  ;;  %v3295_v1 = vld [vmem:[#allocation3 + $0x60] sm:$0xf] }
 0x1f2   : > { %3283 = vst [vmem:[#allocation3 + $0x48] sm:$0xf] %v3282_v46  ;;  %v3275_v15 = vsel %vm7850_vm9, %v2997_v57, %v3274_v32  ;;  %v3005_v43 = vor.u32 %v3003_v45, %v3002_v34  ;;  %v3007_v17 = vrot.slane %v3002_v34, 4  ;;  %v3288_v32 = vld [vmem:[#allocation3 + $0x54] sm:$0xf] }
 0x1f3   : > { %3276 = vst [vmem:[#allocation3 + $0x3c] sm:$0xf] %v3275_v15  ;;  %v3023_v55 = vsel %vm6486_vm11, %v3015_v52, %v3022_v21  ;;  %v3286_v26 = vsel %vm7626_vm6, %v3024_v58, %v3285_v59  ;;  %v3299_v59 = vld [vmem:[#allocation3 + $0x68] sm:$0x1] }
 0x1f4   : > { %3284 = vst.msk [vmem:[#allocation3 + $0x4c] sm:$0xf] %vm9311_vm7, %v3023_v55  ;;  %3287 = vst [vmem:[#allocation3 + $0x50] sm:$0x1] %v3286_v26  ;;  %v3006_v37 = vsel %vm6486_vm11, %v2998_v29, %v3005_v43  ;;  %v3279_v41 = vsel %vm7626_vm6, %v3007_v17, %v3278_v3  ;;  %v3292_v3 = vld [vmem:[#allocation3 + $0x5c] sm:$0x1] }
 0x1f5   : > { %3277 = vst.msk [vmem:[#allocation3 + $0x40] sm:$0xf] %vm9307_vm2, %v3006_v37  ;;  %3280 = vst [vmem:[#allocation3 + $0x44] sm:$0x1] %v3279_v41 }
 0x1f6   : > { %vm9315_vm7 = vmmov %vm9307_vm2 }
 0x202   : > { %v6024_v8 = vpop.f32.mrb[12].mxu0 }
 0x203   : > { %v2618_v2 = vmul.f32 %v6024_v8, %v7817_v4  ;;  %v2518_v38 = vpop.f32.mrb[13].mxu0 }
 0x204   : > { %v2616_v30 = vmul.f32 %v7817_v4, %v2518_v38  ;;  %v6025_v25 = vpop.f32.mrb[14].mxu0 }
 0x205   : > { %v2657_v18 = vadd.f32 %v7823_v23, %v2618_v2  ;;  %v2619_v9 = vmul.f32 %v6025_v25, %v7817_v4  ;;  %v2521_v42 = vpop.f32.mrb[15].mxu0 }
 0x206   : > { %v2655_v27 = vadd.f32 %v7823_v23, %v2616_v30  ;;  %v2617_v12 = vmul.f32 %v7817_v4, %v2521_v42 }
 0x207   : > { %v2689_v20 = vmax.f32 %v2657_v18, 0.0  ;;  %v2658_v24 = vadd.f32 %v7823_v23, %v2619_v9 }
 0x208   : > { %v2687_v5 = vmax.f32 %v2655_v27, 0.0  ;;  %v2656_v19 = vadd.f32 %v7823_v23, %v2617_v12 }
 0x209   : > { %v5929_v22 = vpack.c.bf16 %v2689_v20, %v2689_v20  ;;  %v2690_v44 = vmax.f32 %v2658_v24, 0.0 }
 0x20a   : > { %v5927_v54 = vpack.c.bf16 %v2687_v5, %v2687_v5  ;;  %v2688_v33 = vmax.f32 %v2656_v19, 0.0 }
 0x20b   : > { %v3043_v50 = vshrl.u32 %v5929_v22, 16  ;;  %v5930_v47 = vpack.c.bf16 %v2690_v44, %v2690_v44  ;;  %v3046_v36 = vshll.u32 %v5929_v22, 16 }
 0x20c   : > { %v3026_v56 = vshrl.u32 %v5927_v54, 16  ;;  %v5928_v35 = vpack.c.bf16 %v2688_v33, %v2688_v33  ;;  %v3029_v63 = vshll.u32 %v5927_v54, 16 }
 0x20d   : > { %v3045_v13 = vrot.slane %v3043_v50, 7  ;;  %v3051_v60 = vshrl.u32 %v5930_v47, 16  ;;  %v3054_v11 = vshll.u32 %v5930_v47, 16 }
 0x20e   : > { %v3028_v7 = vrot.slane %v3026_v56, 7  ;;  %v3034_v31 = vshrl.u32 %v5928_v35, 16  ;;  %v3037_v45 = vshll.u32 %v5928_v35, 16  ;;  %v3309_v56 = vld [vmem:[#allocation3 + $0x78] sm:$0xf] }
 0x20f   : > { %v3048_v16 = vor.u32 %v3046_v36, %v3045_v13  ;;  %v3053_v0 = vrot.slane %v3051_v60, 7  ;;  %v3049_v52 = vrot.slane %v3045_v13, 4 }
 0x210   : > { %v3031_v57 = vor.u32 %v3029_v63, %v3028_v7  ;;  %v3036_v34 = vrot.slane %v3034_v31, 7  ;;  %v3032_v29 = vrot.slane %v3028_v7, 4  ;;  %v3302_v7 = vld [vmem:[#allocation3 + $0x6c] sm:$0xf] }
 0x211   : > { %v3296_v46 = vsel %vm7850_vm9, %v3048_v16, %v3295_v1  ;;  %v3056_v21 = vor.u32 %v3054_v11, %v3053_v0  ;;  %v3058_v58 = vrot.slane %v3053_v0, 4 }
 0x212   : > { %3297 = vst [vmem:[#allocation3 + $0x60] sm:$0xf] %v3296_v46  ;;  %v3289_v15 = vsel %vm7850_vm9, %v3031_v57, %v3288_v32  ;;  %v3039_v43 = vor.u32 %v3037_v45, %v3036_v34  ;;  %v3041_v17 = vrot.slane %v3036_v34, 4  ;;  %v3313_v32 = vld [vmem:[#allocation3 + $0x80] sm:$0x1] }
 0x213   : > { %3290 = vst [vmem:[#allocation3 + $0x54] sm:$0xf] %v3289_v15  ;;  %v3057_v55 = vsel %vm6486_vm11, %v3049_v52, %v3056_v21  ;;  %v3300_v26 = vsel %vm7626_vm6, %v3058_v58, %v3299_v59  ;;  %v2776_v57 = vld [vmem:[#allocation3 + $0xa8] sm:$0x1]  ;;  %v2773_v46 = vld [vmem:[#allocation3 + $0x9c] sm:$0x1] }
 0x214   : > { %3298 = vst.msk [vmem:[#allocation3 + $0x64] sm:$0xf] %vm9312_vm13, %v3057_v55  ;;  %3301 = vst [vmem:[#allocation3 + $0x68] sm:$0x1] %v3300_v26  ;;  %v3040_v37 = vsel %vm6486_vm11, %v3032_v29, %v3039_v43  ;;  %v3293_v41 = vsel %vm7626_vm6, %v3041_v17, %v3292_v3  ;;  %v2777_v52 = vsel %vm7626_vm6, 0, %v2776_v57  ;;  %v2774_v29 = vsel %vm7626_vm6, 0, %v2773_v46 }
 0x215   : > { %3291 = vst.msk [vmem:[#allocation3 + $0x58] sm:$0xf] %vm9313_vm10, %v3040_v37  ;;  %3294 = vst [vmem:[#allocation3 + $0x5c] sm:$0x1] %v3293_v41  ;;  %v2831_v15 = vld [vmem:[#allocation3 + $0xb0] sm:$0x1] }
 0x216   : > { %2778 = vst [vmem:[#allocation3 + $0xa8] sm:$0x1] %v2777_v52  ;;  %v3306_v26 = vld [vmem:[#allocation3 + $0x74] sm:$0x1]  ;;  %2775 = vst [vmem:[#allocation3 + $0x9c] sm:$0x1] %v2774_v29 }
 0x217   : > { %v2832_v37 = vsel %vm7651_vm3, 0, %v2831_v15  ;;  %v2828_v41 = vld [vmem:[#allocation3 + $0xa4] sm:$0x1]  ;;  %vm9316_vm13 = vmmov %vm9307_vm2 }
 0x218   : > { %2833 = vst [vmem:[#allocation3 + $0xb0] sm:$0x1] %v2832_v37  ;;  %vm9318_vm10 = vmmov %vm9307_vm2 }
 0x222   : > { %v6028_v8 = vpop.f32.mrb[0].mxu1 }
 0x223   : > { %v2622_v2 = vmul.f32 %v6028_v8, %v7817_v4  ;;  %v2534_v38 = vpop.f32.mrb[1].mxu1 }
 0x224   : > { %v2620_v30 = vmul.f32 %v7817_v4, %v2534_v38  ;;  %v6029_v25 = vpop.f32.mrb[2].mxu1 }
 0x225   : > { %v2661_v18 = vadd.f32 %v7823_v23, %v2622_v2  ;;  %v2623_v9 = vmul.f32 %v6029_v25, %v7817_v4  ;;  %v2537_v42 = vpop.f32.mrb[3].mxu1 }
 0x226   : > { %v2659_v27 = vadd.f32 %v7823_v23, %v2620_v30  ;;  %v2621_v12 = vmul.f32 %v7817_v4, %v2537_v42  ;;  %v2829_v30 = vsel %vm7651_vm3, 0, %v2828_v41 }
 0x227   : > { %v2693_v20 = vmax.f32 %v2661_v18, 0.0  ;;  %v2662_v24 = vadd.f32 %v7823_v23, %v2623_v9  ;;  %2830 = vst [vmem:[#allocation3 + $0xa4] sm:$0x1] %v2829_v30  ;;  %v3316_v30 = vld [vmem:[#allocation3 + $0x84] sm:$0xf] }
 0x228   : > { %v2691_v5 = vmax.f32 %v2659_v27, 0.0  ;;  %v2660_v19 = vadd.f32 %v7823_v23, %v2621_v12 }
 0x229   : > { %v5933_v22 = vpack.c.bf16 %v2693_v20, %v2693_v20  ;;  %v2694_v44 = vmax.f32 %v2662_v24, 0.0 }
 0x22a   : > { %v5931_v54 = vpack.c.bf16 %v2691_v5, %v2691_v5  ;;  %v2692_v33 = vmax.f32 %v2660_v19, 0.0 }
 0x22b   : > { %v3077_v50 = vshrl.u32 %v5933_v22, 16  ;;  %v5934_v47 = vpack.c.bf16 %v2694_v44, %v2694_v44  ;;  %v3080_v60 = vshll.u32 %v5933_v22, 16 }
 0x22c   : > { %v3060_v35 = vshrl.u32 %v5931_v54, 16  ;;  %v5932_v13 = vpack.c.bf16 %v2692_v33, %v2692_v33  ;;  %v3063_v1 = vshll.u32 %v5931_v54, 16 }
 0x22d   : > { %v3079_v36 = vrot.slane %v3077_v50, 7  ;;  %v3085_v63 = vshrl.u32 %v5934_v47, 16  ;;  %v3088_v16 = vshll.u32 %v5934_v47, 16 }
 0x22e   : > { %v3062_v31 = vrot.slane %v3060_v35, 7  ;;  %v3068_v0 = vshrl.u32 %v5932_v13, 16  ;;  %v3071_v11 = vshll.u32 %v5932_v13, 16 }
 0x22f   : > { %v3082_v59 = vor.u32 %v3080_v60, %v3079_v36  ;;  %v3083_v34 = vrot.slane %v3079_v36, 4  ;;  %v3087_v45 = vrot.slane %v3085_v63, 7 }
 0x230   : > { %v3065_v21 = vor.u32 %v3063_v1, %v3062_v31  ;;  %v3066_v58 = vrot.slane %v3062_v31, 4  ;;  %v3070_v3 = vrot.slane %v3068_v0, 7 }
 0x231   : > { %v3310_v43 = vsel %vm7850_vm9, %v3082_v59, %v3309_v56  ;;  %v3090_v17 = vor.u32 %v3088_v16, %v3087_v45  ;;  %v3092_v55 = vrot.slane %v3087_v45, 4 }
 0x232   : > { %3311 = vst [vmem:[#allocation3 + $0x78] sm:$0xf] %v3310_v43  ;;  %v3303_v8 = vsel %vm7850_vm9, %v3065_v21, %v3302_v7  ;;  %v3073_v2 = vor.u32 %v3071_v11, %v3070_v3  ;;  %v3075_v38 = vrot.slane %v3070_v3, 4 }
 0x233   : > { %3304 = vst [vmem:[#allocation3 + $0x6c] sm:$0xf] %v3303_v8  ;;  %v3091_v25 = vsel %vm6486_vm11, %v3083_v34, %v3090_v17  ;;  %v3314_v18 = vsel %vm7626_vm6, %v3092_v55, %v3313_v32  ;;  %v3323_v55 = vld [vmem:[#allocation3 + $0x90] sm:$0xf] }
 0x234   : > { %3312 = vst.msk [vmem:[#allocation3 + $0x7c] sm:$0xf] %vm9314_vm4, %v3091_v25  ;;  %3315 = vst [vmem:[#allocation3 + $0x80] sm:$0x1] %v3314_v18  ;;  %v3074_v9 = vsel %vm6486_vm11, %v3066_v58, %v3073_v2  ;;  %v3307_v42 = vsel %vm7626_vm6, %v3075_v38, %v3306_v26 }
 0x235   : > { %3305 = vst.msk [vmem:[#allocation3 + $0x70] sm:$0xf] %vm9315_vm7, %v3074_v9  ;;  %3308 = vst [vmem:[#allocation3 + $0x74] sm:$0x1] %v3307_v42  ;;  %v3327_v42 = vld [vmem:[#allocation3 + $0x98] sm:$0x1] }
 0x236   : > { %vm9319_vm4 = vmmov %vm9307_vm2  ;;  %vm4794_vm7 = vcmask 1043456  }
 0x239   : > { %v8018_v27 = vld [vmem:[#allocation3 + $0x78] sm:$0xf] }
 0x23a   : > { %v8032_v5 = vld [vmem:[#allocation3 + $0x6c] sm:$0xf] }
 0x23b   : > { %v8020_v12 = vld [vmem:[#allocation3 + $0x7c] sm:$0xf]  ;;  %v8046_v35 = vld [vmem:[#allocation3 + $0x80] sm:$0x1]  ;;  %v5807_v45 = vrot.slane %v8032_v5, 9 }
 0x23c   : > { %v8024_v20 = vcombine.low %v8018_v27, %v8020_v12  ;;  %v8026_v24 = vld [vmem:[#allocation3 + $0x70] sm:$0xf]  ;;  %v3916_v22 = vrot.slane %v8020_v12, 5  ;;  %v8048_v13 = vld [vmem:[#allocation3 + $0x74] sm:$0x1]  ;;  %v3919_v11 = vrot.slane %v8046_v35, 5 }
 0x23d   : > { %v8036_v19 = vcombine.low %v8032_v5, %v8026_v24  ;;  %v3909_v44 = vrot.slane %v8026_v24, 5  ;;  %v3912_v57 = vrot.slane %v8048_v13, 5 }
 0x23e   : > { %4356 = vrot.lane.b32.xlu0 %v8024_v20, %s6299_s16  ;;  %4253 = vrot.lane.b32.xlu1 %v8024_v20, %s9294_s30  ;;  %v3918_v7 = vrot.slane %v3916_v22, 4 }
 0x23f   : > { %v3911_v63 = vrot.slane %v3909_v44, 4  ;;  %v3910_v17 = vsel %vm6501_vm14, %v5807_v45, %v3909_v44 }
 0x240   : > { %v3920_v21 = vsel %vm6501_vm14, %v3918_v7, %v3919_v11  ;;  %v8087_v11 = vld [vmem:[#allocation3 + $0x34] sm:$0xf] }
 0x241   : > { %v3913_v58 = vsel %vm6501_vm14, %v3911_v63, %v3912_v57 }
 0x242   : > { %4251 = vrot.lane.b32.xlu0 %v8036_v19, %s9294_s30  ;;  %4354 = vrot.lane.b32.xlu1 %v8036_v19, %s6299_s16  ;;  %v6032_v54 = vpop.f32.mrb[4].mxu1  ;;  %v8076_v8 = vcombine.low %v3910_v17, %v3913_v58  ;;  %v8102_v58 = vld [vmem:[#allocation3 + $0x30] sm:$0xf]  ;;  %v3653_v17 = vshrl.u32 %v8018_v27, 16 }
 0x243   : > { %v2626_v33 = vmul.f32 %v6032_v54, %v7817_v4  ;;  %v2550_v50 = vpop.f32.mrb[5].mxu1 }
 0x244   : > { %v2624_v47 = vmul.f32 %v7817_v4, %v2550_v50  ;;  %v6033_v56 = vpop.f32.mrb[6].mxu1 }
 0x245   : > { %v2665_v36 = vadd.f32 %v7823_v23, %v2626_v33  ;;  %v2627_v60 = vmul.f32 %v6033_v56, %v7817_v4  ;;  %v2553_v1 = vpop.f32.mrb[7].mxu1  ;;  %v3320_v56 = vld [vmem:[#allocation3 + $0x8c] sm:$0x1] }
 0x246   : > { %v2663_v31 = vadd.f32 %v7823_v23, %v2624_v47  ;;  %v2625_v16 = vmul.f32 %v7817_v4, %v2553_v1  ;;  %4410 = vrot.lane.b32.xlu0 %v7891_v10, %s9266_s14  ;;  %4307 = vrot.lane.b32.xlu1 %v7891_v10, %s9264_s24  ;;  %v5808_v4 = vrot.slane %v8018_v27, 9 }
 0x247   : > { %v2697_v32 = vmax.f32 %v2665_v36, 0.0  ;;  %v2666_v0 = vadd.f32 %v7823_v23, %v2627_v60  ;;  %v2779_v60 = vld [vmem:[#allocation3 + $0xb4] sm:$0x1] }
 0x248   : > { %v2695_v59 = vmax.f32 %v2663_v31, 0.0  ;;  %v2664_v34 = vadd.f32 %v7823_v23, %v2625_v16  ;;  %v3917_v43 = vsel %vm6501_vm14, %v5808_v4, %v3916_v22  ;;  %v2782_v22 = vld [vmem:[#allocation3 + $0xc0] sm:$0x1]  ;;  %v2780_v31 = vsel %vm7626_vm6, 0, %v2779_v60  ;;  %v2837_v16 = vld [vmem:[#allocation3 + $0xc8] sm:$0x1] }
 0x249   : > { %v5937_v52 = vpack.c.bf16 %v2697_v32, %v2697_v32  ;;  %v2698_v46 = vmax.f32 %v2666_v0, 0.0  ;;  %v5858_v41 = vcombine.low %v3917_v43, %v3920_v21  ;;  %v2783_v36 = vsel %vm7626_vm6, 0, %v2782_v22  ;;  %2781 = vst [vmem:[#allocation3 + $0xb4] sm:$0x1] %v2780_v31 }
 0x24a   : > { %v5935_v3 = vpack.c.bf16 %v2695_v59, %v2695_v59  ;;  %v2696_v29 = vmax.f32 %v2664_v34, 0.0  ;;  %4204 = vrot.lane.b32.xlu0 %v7891_v10, %s9296_s22  ;;  %4202 = vrot.lane.b32.xlu1 %v7898_v48, %s9296_s22  ;;  %2784 = vst [vmem:[#allocation3 + $0xc0] sm:$0x1] %v2783_v36  ;;  %v2838_v57 = vsel %vm7651_vm3, 0, %v2837_v16  ;;  %v2834_v59 = vld [vmem:[#allocation3 + $0xbc] sm:$0x1] }
 0x24b   : > { %v3111_v23 = vshrl.u32 %v5937_v52, 16  ;;  %v5938_v15 = vpack.c.bf16 %v2698_v46, %v2698_v46  ;;  %v3114_v38 = vshll.u32 %v5937_v52, 16  ;;  %2839 = vst [vmem:[#allocation3 + $0xc8] sm:$0x1] %v2838_v57  ;;  %v2835_v52 = vsel %vm7651_vm3, 0, %v2834_v59 }
 0x24c   : > { %v3094_v26 = vshrl.u32 %v5935_v3, 16  ;;  %v5936_v37 = vpack.c.bf16 %v2696_v29, %v2696_v29  ;;  %v3097_v10 = vshll.u32 %v5935_v3, 16  ;;  %2836 = vst [vmem:[#allocation3 + $0xbc] sm:$0x1] %v2835_v52  ;;  %v3662_v43 = vshll.u32 %v8020_v12, 16 }
 0x24d   : > { %v3113_v2 = vrot.slane %v3111_v23, 7  ;;  %v3119_v25 = vshrl.u32 %v5938_v15, 16  ;;  %v3122_v9 = vshll.u32 %v5938_v15, 16  ;;  %v8111_v23 = vcombine.low %v8102_v58, %v8087_v11  ;;  %v8170_v16 = vld [vmem:[%s9246_s3] ss:$0 sm:$0xff] }
 0x24e   : > { %v3096_v18 = vrot.slane %v3094_v26, 7  ;;  %v3102_v54 = vshrl.u32 %v5936_v37, 16  ;;  %v3105_v33 = vshll.u32 %v5936_v37, 16  ;;  %4305 = vrot.lane.b32.xlu0 %v7898_v48, %s9264_s24  ;;  %4323 = vrot.lane.b32.xlu1 %v5858_v41, %s9264_s24  ;;  %v3666_v15 = vshrl.u32 %v8020_v12, 16  ;;  %v8121_v26 = vld [vmem:[#allocation3 + $0x28] sm:$0xf] }
 0x24f   : > { %v3116_v44 = vor.u32 %v3114_v38, %v3113_v2  ;;  %v3117_v50 = vrot.slane %v3113_v2, 4  ;;  %v3121_v47 = vrot.slane %v3119_v25, 7  ;;  %v3664_v37 = vrot.slane %v3662_v43, 5 }
 0x250   : > { %v3099_v1 = vor.u32 %v3097_v10, %v3096_v18  ;;  %v3100_v7 = vrot.slane %v3096_v18, 4  ;;  %v3104_v63 = vrot.slane %v3102_v54, 7  ;;  %v3668_v2 = vrot.slane %v3666_v15, 4 }
 0x251   : > { %v3324_v48 = vsel %vm7850_vm9, %v3116_v44, %v3323_v55  ;;  %v3124_v32 = vor.u32 %v3122_v9, %v3121_v47  ;;  %v3126_v0 = vrot.slane %v3121_v47, 4  ;;  %v3656_v55 = vshll.u32 %v8018_v27, 16 }
 0x252   : > { %3325 = vst [vmem:[#allocation3 + $0x90] sm:$0xf] %v3324_v48  ;;  %v3317_v34 = vsel %vm7850_vm9, %v3099_v1, %v3316_v30  ;;  %v3107_v4 = vor.u32 %v3105_v33, %v3104_v63  ;;  %v3109_v45 = vrot.slane %v3104_v63, 4  ;;  %4426 = vrot.lane.b32.xlu0 %v5858_v41, %s9266_s14  ;;  %4218 = vrot.lane.b32.xlu1 %v8076_v8, %s9296_s22  ;;  %v3655_v12 = vrot.slane %v3653_v17, 4 }
 0x253   : > { %3318 = vst [vmem:[#allocation3 + $0x84] sm:$0xf] %v3317_v34  ;;  %v3125_v46 = vsel %vm6486_vm11, %v3117_v50, %v3124_v32  ;;  %v3328_v21 = vsel %vm7626_vm6, %v3126_v0, %v3327_v42  ;;  %v3658_v10 = vrot.slane %v3656_v55, 5  ;;  %v3669_v27 = vor.u32 %v3668_v2, %v3664_v37 }
 0x254   : > { %3326 = vst.msk [vmem:[#allocation3 + $0x94] sm:$0xf] %vm9307_vm2, %v3125_v46  ;;  %3329 = vst [vmem:[#allocation3 + $0x98] sm:$0x1] %v3328_v21  ;;  %v3108_v3 = vsel %vm6486_vm11, %v3100_v7, %v3107_v4  ;;  %v3321_v29 = vsel %vm7626_vm6, %v3109_v45, %v3320_v56  ;;  %v3629_v30 = vshrl.u32 %v8032_v5, 16  ;;  %v3632_v25 = vshll.u32 %v8032_v5, 16 }
 0x255   : > { %3319 = vst.msk [vmem:[#allocation3 + $0x88] sm:$0xf] %vm9316_vm13, %v3108_v3  ;;  %3322 = vst [vmem:[#allocation3 + $0x8c] sm:$0x1] %v3321_v29  ;;  %v3659_v18 = vor.u32 %v3658_v10, %v3655_v12  ;;  %v3672_v9 = vshll.u32 %v8046_v35, 16  ;;  %v3642_v42 = vshrl.u32 %v8026_v24, 16 }
 0x256   : > { %4220 = vrot.lane.b32.xlu0 %v5858_v41, %s9296_s22  ;;  %4241 = vrot.lane.b32.xlu1 %v8111_v23, %s9294_s30  ;;  %v8127_v41 = vld [vmem:[#allocation3 + $0x24] sm:$0xf]  ;;  %v3638_v33 = vshll.u32 %v8026_v24, 16  ;;  %v8150_v5 = vrot.slane %v3629_v30, 4  ;;  %v8152_v50 = vrot.slane %v3632_v25, 5  ;;  %v3874_v45 = vrot.slane %v8087_v11, 5 }
 0x257   : > { %v8131_v38 = vcombine.low %v8127_v41, %v8121_v26  ;;  %v8157_v35 = vld [vmem:[%s9245_s2] ss:$0 sm:$0xff]  ;;  %v3660_v36 = vrot.slane %v3659_v18, 4  ;;  %v3674_v60 = vrot.slane %v3672_v9, 5  ;;  %v3644_v31 = vrot.slane %v3642_v42, 4 }
 0x258   : > { %v8165_v63 = vrot.slane %v3638_v33, 5  ;;  %v3635_v4 = vor.u32 %v8152_v50, %v8150_v5  ;;  %v3648_v21 = vshll.u32 %v8048_v13, 16  ;;  %vm4685_vm13 = vcmask 523264  }
 0x259   : > { %v8148_v44 = vld [vmem:[#allocation3 + $0x90] sm:$0xf] }
 0x25a   : > { %4272 = vrot.lane.b32.xlu1 %v7919_v62, %s6296_s13  ;;  %4424 = vrot.lane.b32.xlu0 %v8076_v8, %s9266_s14  ;;  %v3645_v17 = vor.u32 %v3644_v31, %v8165_v63  ;;  %v5810_v13 = vrot.slane %v8148_v44, 9  ;;  %v8206_v5 = vld [vmem:[#allocation3 + $0x84] sm:$0xf]  ;;  %s9320_s14 = smov 64   ;;  %v3701_v40 = vshrl.u32 %v8148_v44, 16 }
 0x25b   : > { %v8141_v54 = vld [vmem:[#allocation3 + $0x94] sm:$0xf]  ;;  %v8189_v3 = vld [vmem:[#allocation3 + $0x98] sm:$0x1] }
 0x25c   : > { %v8162_v56 = vcombine.low %v8148_v44, %v8141_v54  ;;  %v3930_v10 = vrot.slane %v8141_v54, 5  ;;  %v3933_v9 = vrot.slane %v8189_v3, 5  ;;  %v3710_v53 = vshll.u32 %v8141_v54, 16 }
 0x25e   : > { %4342 = vrot.lane.b32.xlu1 %v8131_v38, %s6299_s16  ;;  %4321 = vrot.lane.b32.xlu0 %v8076_v8, %s9264_s24  ;;  %v3670_v8 = vrot.slane %v3669_v27, 4  ;;  %9317 = vst [vmem:[#allocation7_spill] sm:$0xff] %v8162_v56  ;;  %v8201_v27 = vld [vmem:[#allocation3 + $0x88] sm:$0xf]  ;;  %s9321_s24 = smov 40  }
 0x260   : > { %v3675_v57 = vsel %vm6557_vm15, %v3670_v8, %v3674_v60  ;;  %v8214_v60 = vcombine.low %v8206_v5, %v8201_v27 }
 0x262   : > { %4124 = vrot.lane.b32.xlu1 %v7919_v62, %s9268_s15  ;;  %4344 = vrot.lane.b32.xlu0 %v8111_v23, %s6299_s16  ;;  %v6036_v22 = vpop.f32.mrb[8].mxu1 }
 0x263   : > { %v2630_v24 = vmul.f32 %v8157_v35, %v6036_v22  ;;  %v2566_v47 = vpop.f32.mrb[9].mxu1  ;;  %v3931_v22 = vsel %vm6501_vm14, %v5810_v13, %v3930_v10 }
 0x264   : > { %v2628_v1 = vmul.f32 %v8157_v35, %v2566_v47  ;;  %v6037_v7 = vpop.f32.mrb[10].mxu1 }
 0x265   : > { %v2669_v48 = vadd.f32 %v8170_v16, %v2630_v24  ;;  %v2631_v32 = vmul.f32 %v8157_v35, %v6037_v7  ;;  %v2569_v0 = vpop.f32.mrb[11].mxu1 }
 0x266   : > { %4375 = vrot.lane.b32.xlu0 %v7919_v62, %s6302_s12  ;;  %4257 = vrot.lane.b32.xlu1 %v8162_v56, %s9294_s30  ;;  %v2667_v59 = vadd.f32 %v8170_v16, %v2628_v1  ;;  %v2629_v34 = vmul.f32 %v8157_v35, %v2569_v0  ;;  %v3665_v62 = vsel %vm6557_vm15, %v3660_v36, %v3664_v37  ;;  %v3932_v36 = vrot.slane %v3930_v10, 4  ;;  %v3337_v1 = vld [vmem:[#allocation3 + $0xa8] sm:$0xf] }
 0x267   : > { %v2701_v52 = vmax.f32 %v2669_v48, 0.0  ;;  %v2670_v46 = vadd.f32 %v8170_v16, %v2631_v32  ;;  %v8192_v43 = vcombine.low %v3665_v62, %v3675_v57  ;;  %v3330_v57 = vld [vmem:[#allocation3 + $0x9c] sm:$0xf] }
 0x268   : > { %v2699_v29 = vmax.f32 %v2667_v59, 0.0  ;;  %v2668_v15 = vadd.f32 %v8170_v16, %v2629_v34  ;;  %v3934_v34 = vsel %vm6501_vm14, %v3932_v36, %v3933_v9 }
 0x269   : > { %v5941_v55 = vpack.c.bf16 %v2701_v52, %v2701_v52  ;;  %v2702_v2 = vmax.f32 %v2670_v46, 0.0  ;;  %v3341_v46 = vld [vmem:[#allocation3 + $0xb0] sm:$0x1] }
 0x26a   : > { %4239 = vrot.lane.b32.xlu0 %v8131_v38, %s9294_s30  ;;  %4122 = vrot.lane.b32.xlu1 %v7942_v28, %s9268_s15  ;;  %v5939_v37 = vpack.c.bf16 %v2699_v29, %v2699_v29  ;;  %v2700_v12 = vmax.f32 %v2668_v15, 0.0  ;;  %v8218_v29 = vcombine.low %v3931_v22, %v3934_v34  ;;  %v3646_v15 = vrot.slane %v3645_v17, 4 }
 0x26b   : > { %v3145_v30 = vshrl.u32 %v5941_v55, 16  ;;  %v3148_v25 = vshll.u32 %v5941_v55, 16  ;;  %v5942_v18 = vpack.c.bf16 %v2702_v2, %v2702_v2  ;;  %v3650_v17 = vrot.slane %v3648_v21, 5 }
 0x26c   : > { %v3128_v42 = vshrl.u32 %v5939_v37, 16  ;;  %v3131_v33 = vshll.u32 %v5939_v37, 16  ;;  %v5940_v8 = vpack.c.bf16 %v2700_v12, %v2700_v12  ;;  %v3334_v12 = vld [vmem:[#allocation3 + $0xa4] sm:$0x1]  ;;  %v3509_v21 = vshrl.u32 %v8102_v58, 16 }
 0x26d   : > { %v3147_v50 = vrot.slane %v3145_v30, 7  ;;  %v3153_v24 = vshrl.u32 %v5942_v18, 16  ;;  %v3156_v47 = vshll.u32 %v5942_v18, 16 }
 0x26e   : > { %4270 = vrot.lane.b32.xlu0 %v7942_v28, %s6296_s13  ;;  %4288 = vrot.lane.b32.xlu1 %v8192_v43, %s6296_s13  ;;  %v3130_v7 = vrot.slane %v3128_v42, 7  ;;  %v3136_v31 = vshrl.u32 %v5940_v8, 16  ;;  %v3139_v48 = vshll.u32 %v5940_v8, 16  ;;  %v3522_v42 = vshrl.u32 %v8087_v11, 16 }
 0x26f   : > { %v3150_v32 = vor.u32 %v3148_v25, %v3147_v50  ;;  %v3151_v0 = vrot.slane %v3147_v50, 4  ;;  %v3155_v59 = vrot.slane %v3153_v24, 7  ;;  %v3636_v25 = vrot.slane %v3635_v4, 4 }
 0x270   : > { %v3133_v52 = vor.u32 %v3131_v33, %v3130_v7  ;;  %v3134_v28 = vrot.slane %v3130_v7, 4  ;;  %v3138_v62 = vrot.slane %v3136_v31, 7  ;;  %v3372_v33 = vld [vmem:[#allocation3 + $0x38] sm:$0x1]  ;;  %v3518_v8 = vshll.u32 %v8087_v11, 16 }
 0x271   : > { %v3338_v55 = vsel %vm7850_vm9, %v3150_v32, %v3337_v1  ;;  %v3158_v2 = vor.u32 %v3156_v47, %v3155_v59  ;;  %v3160_v37 = vrot.slane %v3155_v59, 4  ;;  %v3512_v50 = vshll.u32 %v8102_v58, 16 }
 0x272   : > { %4391 = vrot.lane.b32.xlu0 %v8192_v43, %s6302_s12  ;;  %4358 = vrot.lane.b32.xlu1 %v8214_v60, %s6299_s16  ;;  %3339 = vst [vmem:[#allocation3 + $0xa8] sm:$0xf] %v3338_v55  ;;  %v3331_v13 = vsel %vm7850_vm9, %v3133_v52, %v3330_v57  ;;  %v3141_v10 = vor.u32 %v3139_v48, %v3138_v62  ;;  %v3143_v30 = vrot.slane %v3138_v62, 4  ;;  %v3876_v47 = vrot.slane %v3874_v45, 4 }
 0x273   : > { %3332 = vst [vmem:[#allocation3 + $0x9c] sm:$0xf] %v3331_v13  ;;  %v3159_v18 = vsel %vm6486_vm11, %v3151_v0, %v3158_v2  ;;  %v3342_v9 = vsel %vm7626_vm6, %v3160_v37, %v3341_v46  ;;  %v3651_v24 = vsel %vm6557_vm15, %v3646_v15, %v3650_v17  ;;  %v3641_v36 = vsel %vm6557_vm15, %v3636_v25, %v8165_v63  ;;  %v8284_v17 = vld [vmem:[#allocation3 + $0x8c] sm:$0x1] }
 0x274   : > { %3340 = vst.msk [vmem:[#allocation3 + $0xac] sm:$0xf] %vm9318_vm10, %v3159_v18  ;;  %3343 = vst [vmem:[#allocation3 + $0xb0] sm:$0x1] %v3342_v9  ;;  %v3142_v22 = vsel %vm6486_vm11, %v3134_v28, %v3141_v10  ;;  %v3335_v4 = vsel %vm7626_vm6, %v3143_v30, %v3334_v12  ;;  %v3877_v1 = vrot.slane %v3372_v33, 5  ;;  %v5841_v7 = vcombine.low %v3641_v36, %v3651_v24  ;;  %v6213_v12 = vld [vmem:[%s9247_s4] sm:$0xff]  }
 0x275   : > { %3333 = vst.msk [vmem:[#allocation3 + $0xa0] sm:$0xf] %vm9319_vm4, %v3142_v22  ;;  %3336 = vst [vmem:[#allocation3 + $0xa4] sm:$0x1] %v3335_v4  ;;  %v3867_v31 = vrot.slane %v8121_v26, 5  ;;  %v8254_v48 = vrot.slane %v3518_v8, 5  ;;  %6042 = vmatprep.subr.bf16.mxu1 %v6213_v12 }
 0x276   : > { %4255 = vrot.lane.b32.xlu0 %v8214_v60, %s9294_s30  ;;  %4140 = vrot.lane.b32.xlu1 %v8192_v43, %s9268_s15  ;;  %v3524_v32 = vrot.slane %v3522_v42, 4  ;;  %v5802_v0 = vrot.slane %v8102_v58, 9  ;;  %v3878_v57 = vsel %vm6501_vm14, %v3876_v47, %v3877_v1  ;;  %v3511_v59 = vrot.slane %v3509_v21, 4  ;;  %v8265_v43 = vld [vmem:[#allocation3 + $0x2c] sm:$0x1]  ;;  %v6215_v1 = vld [vmem:[%s9247_s4 + $0x8] sm:$0xff]  }
 0x277   : > { %v3514_v34 = vrot.slane %v3512_v50, 5  ;;  %v3485_v52 = vshrl.u32 %v8127_v41, 16  ;;  %v3869_v58 = vrot.slane %v3867_v31, 4  ;;  %v5801_v62 = vrot.slane %v8127_v41, 9  ;;  %6043 = vmatpush3.bf16.msra.mxu1 %v6213_v12 }
 0x278   : > { %v3875_v63 = vsel %vm6501_vm14, %v5802_v0, %v3874_v45  ;;  %v3525_v46 = vor.u32 %v3524_v32, %v8254_v48  ;;  %v3923_v15 = vrot.slane %v8201_v27, 5  ;;  %v3528_v2 = vshll.u32 %v3372_v33, 16  ;;  %6044 = vmatprep.subr.bf16.mxu1 %v6215_v1 }
 0x279   : > { %v5852_v28 = vcombine.low %v3875_v63, %v3878_v57  ;;  %v3515_v55 = vor.u32 %v3514_v34, %v3511_v59  ;;  %v3498_v37 = vshrl.u32 %v8121_v26, 16  ;;  %v3870_v11 = vrot.slane %v8265_v43, 5 }
 0x27a   : > { %4286 = vrot.lane.b32.xlu0 %v5841_v7, %s6296_s13  ;;  %4389 = vrot.lane.b32.xlu1 %v5841_v7, %s6302_s12  ;;  %v3494_v45 = vshll.u32 %v8121_v26, 16  ;;  %v3488_v13 = vshll.u32 %v8127_v41, 16  ;;  %v3868_v10 = vsel %vm6501_vm14, %v5801_v62, %v3867_v31  ;;  %v3526_v18 = vrot.slane %v3525_v46, 4 }
 0x27b   : > { %v3871_v25 = vsel %vm6501_vm14, %v3869_v58, %v3870_v11  ;;  %v8286_v9 = vrot.slane %v3485_v52, 4  ;;  %v3925_v33 = vrot.slane %v3923_v15, 4  ;;  %v3516_v8 = vrot.slane %v3515_v55, 4  ;;  %6045 = vmatpush3.bf16.msra.mxu1 %v6215_v1 }
 0x27c   : > { %v3530_v22 = vrot.slane %v3528_v2, 5  ;;  %v8292_v21 = vrot.slane %v3494_v45, 5  ;;  %v8294_v50 = vrot.slane %v3498_v37, 4  ;;  %v3926_v31 = vrot.slane %v8284_v17, 5 }
 0x27d   : > { %v8306_v59 = vrot.slane %v3488_v13, 5  ;;  %v5809_v52 = vrot.slane %v8206_v5, 9  ;;  %v3521_v62 = vsel %vm6557_vm15, %v3516_v8, %v8254_v48  ;;  %vm4761_vm10 = vcmask 588800  }
 0x27e   : > { %4414 = vrot.lane.b32.xlu0 %v5852_v28, %s9320_s14  ;;  %4138 = vrot.lane.b32.xlu1 %v5841_v7, %s9268_s15  ;;  %v5851_v7 = vcombine.low %v3868_v10, %v3871_v25  ;;  %v3531_v57 = vsel %vm6557_vm15, %v3526_v18, %v3530_v22  ;;  %v3501_v55 = vor.u32 %v8294_v50, %v8292_v21  ;;  %s9324_s15 = smov 8  }
 0x27f   : > { %v6040_v30 = vpop.f32.mrb[12].mxu1  ;;  %v3924_v11 = vsel %vm6501_vm14, %v5809_v52, %v3923_v15  ;;  %v8327_v45 = vcombine.low %v3521_v62, %v3531_v57  ;;  %v3677_v15 = vshrl.u32 %v8206_v5, 16  ;;  %v3680_v52 = vshll.u32 %v8206_v5, 16 }
 0x280   : > { %v2634_v26 = vmul.f32 %v8157_v35, %v6040_v30  ;;  %v2582_v42 = vpop.f32.mrb[13].mxu1  ;;  %v8331_v30 = vld [vmem:[#allocation3 + $0x48] sm:$0xf] }
 0x281   : > { %v2632_v41 = vmul.f32 %v8157_v35, %v2582_v42  ;;  %v6041_v4 = vpop.f32.mrb[14].mxu1 }
 0x282   : > { %4208 = vrot.lane.b32.xlu0 %v5852_v28, %s9296_s22  ;;  %4311 = vrot.lane.b32.xlu1 %v5852_v28, %s9321_s24  ;;  %v2673_v24 = vadd.f32 %v8170_v16, %v2634_v26  ;;  %v2635_v47 = vmul.f32 %v8157_v35, %v6041_v4  ;;  %v2585_v36 = vpop.f32.mrb[15].mxu1  ;;  %v3927_v28 = vsel %vm6501_vm14, %v3925_v33, %v3926_v31 }
 0x283   : > { %v2671_v32 = vadd.f32 %v8170_v16, %v2632_v41  ;;  %v2633_v0 = vmul.f32 %v8157_v35, %v2585_v36  ;;  %v8315_v35 = vld [vmem:[#allocation3 + $0x4c] sm:$0xf]  ;;  %v8329_v10 = vcombine.low %v3924_v11, %v3927_v28  ;;  %v3351_v36 = vld [vmem:[#allocation3 + $0xc0] sm:$0xf]  ;;  %v3348_v11 = vld [vmem:[#allocation3 + $0xbc] sm:$0x1] }
 0x284   : > { %v2705_v34 = vmax.f32 %v2673_v24, 0.0  ;;  %v2674_v63 = vadd.f32 %v8170_v16, %v2635_v47  ;;  %v8335_v26 = vcombine.low %v8331_v30, %v8315_v35  ;;  %v6217_v24 = vld [vmem:[%s9247_s4 + $0x18] sm:$0xff]   ;;  %v3690_v47 = vshrl.u32 %v8201_v27, 16 }
 0x285   : > { %v2703_v58 = vmax.f32 %v2671_v32, 0.0  ;;  %v2672_v46 = vadd.f32 %v8170_v16, %v2633_v0  ;;  %v6216_v16 = vld [vmem:[%s9247_s4 + $0x10] sm:$0xff]   ;;  %v3686_v0 = vshll.u32 %v8201_v27, 16 }
 0x286   : > { %4412 = vrot.lane.b32.xlu0 %v5851_v7, %s9320_s14  ;;  %4206 = vrot.lane.b32.xlu1 %v5851_v7, %s9296_s22  ;;  %v5945_v2 = vpack.c.bf16 %v2705_v34, %v2705_v34  ;;  %v2706_v37 = vmax.f32 %v2674_v63, 0.0  ;;  %9322 = vst [vmem:[#allocation8_spill] sm:$0xff] %v8335_v26  ;;  %v3344_v34 = vld [vmem:[#allocation3 + $0xb4] sm:$0xf]  ;;  %v3692_v5 = vrot.slane %v3690_v47, 4  ;;  %v3704_v47 = vshll.u32 %v8148_v44, 16 }
 0x287   : > { %v5943_v12 = vpack.c.bf16 %v2703_v58, %v2703_v58  ;;  %v2704_v13 = vmax.f32 %v2672_v46, 0.0  ;;  %6046 = vmatprep.subr.bf16.mxu1 %v6216_v16  ;;  %v3355_v46 = vld [vmem:[#allocation3 + $0xc8] sm:$0x1] }
 0x288   : > { %v3179_v48 = vshrl.u32 %v5945_v2, 16  ;;  %v3182_v25 = vshll.u32 %v5945_v2, 16  ;;  %v5946_v18 = vpack.c.bf16 %v2706_v37, %v2706_v37  ;;  %6047 = vmatpush3.bf16.msra.mxu1 %v6216_v16  ;;  %v3714_v2 = vshrl.u32 %v8141_v54, 16 }
 0x289   : > { %v3162_v42 = vshrl.u32 %v5943_v12, 16  ;;  %v3165_v33 = vshll.u32 %v5943_v12, 16  ;;  %v5944_v8 = vpack.c.bf16 %v2704_v13, %v2704_v13  ;;  %6048 = vmatprep.subr.bf16.mxu1 %v6217_v24  ;;  %v3491_v54 = vor.u32 %v8306_v59, %v8286_v9 }
 0x28a   : > { %4309 = vrot.lane.b32.xlu0 %v5851_v7, %s9321_s24  ;;  %4222 = vrot.lane.b32.xlu1 %v8329_v10, %s9296_s22  ;;  %v3181_v22 = vrot.slane %v3179_v48, 7  ;;  %v3187_v41 = vshrl.u32 %v5946_v18, 16  ;;  %v3190_v4 = vshll.u32 %v5946_v18, 16  ;;  %v8359_v18 = vrot.slane %v3686_v0, 5 }
 0x28b   : > { %v3164_v1 = vrot.slane %v3162_v42, 7  ;;  %v3170_v31 = vshrl.u32 %v5944_v8, 16  ;;  %v3173_v32 = vshll.u32 %v5944_v8, 16  ;;  %v8365_v8 = vld [vmem:[#allocation3 + $0x40] sm:$0xf]  ;;  %v3712_v59 = vrot.slane %v3710_v53, 5 }
 0x28c   : > { %v3184_v57 = vor.u32 %v3182_v25, %v3181_v22  ;;  %v3185_v7 = vrot.slane %v3181_v22, 4  ;;  %v3189_v63 = vrot.slane %v3187_v41, 7  ;;  %6049 = vmatpush3.bf16.msra.mxu1 %v6217_v24  ;;  %v6219_v25 = vld [vmem:[%s9247_s4 + $0x20] ss:$0 sps:$4 sm:$0xff]   ;;  %v3504_v24 = vshll.u32 %v8265_v43, 16 }
 0x28d   : > { %v3167_v28 = vor.u32 %v3165_v33, %v3164_v1  ;;  %v3168_v58 = vrot.slane %v3164_v1, 4  ;;  %v3172_v62 = vrot.slane %v3170_v31, 7  ;;  %6126 = vmatprep.subr.msk.bf16.mxu1 %vm4794_vm7, %v6219_v25  ;;  %v3679_v1 = vrot.slane %v3677_v15, 4 }
 0x28e   : > { %4245 = vrot.lane.b32.xlu1 %v8335_v26, %s9294_s30  ;;  %4428 = vrot.lane.b32.xlu0 %v8329_v10, %s9320_s14  ;;  %v3352_v27 = vsel %vm7850_vm9, %v3184_v57, %v3351_v36  ;;  %v3192_v37 = vor.u32 %v3190_v4, %v3189_v63  ;;  %v3194_v16 = vrot.slane %v3189_v63, 4  ;;  %v4796_v4 = vsel %vm4794_vm7, %v6219_v25, 0  ;;  %v8385_v36 = vld [vmem:[#allocation3 + $0x3c] sm:$0xf] }
 0x28f   : > { %3353 = vst [vmem:[#allocation3 + $0xc0] sm:$0xf] %v3352_v27  ;;  %v3345_v12 = vsel %vm7850_vm9, %v3167_v28, %v3344_v34  ;;  %v3175_v13 = vor.u32 %v3173_v32, %v3172_v62  ;;  %v3177_v48 = vrot.slane %v3172_v62, 4  ;;  %vm9323_vm9 = vmmov %vm9307_vm2  ;;  %v3682_v31 = vrot.slane %v3680_v52, 5 }
 0x290   : > { %3346 = vst [vmem:[#allocation3 + $0xb4] sm:$0xf] %v3345_v12  ;;  %v3193_v42 = vsel %vm6486_vm11, %v3185_v7, %v3192_v37  ;;  %v3356_v33 = vsel %vm7626_vm6, %v3194_v16, %v3355_v46  ;;  %6051 = vmatpush3.bf16.msra.mxu1 %v4796_v4  ;;  %v8389_v32 = vcombine.low %v8385_v36, %v8365_v8  ;;  %v3502_v43 = vrot.slane %v3501_v55, 4  ;;  %v8413_v16 = vld [vmem:[#allocation3 + $0x50] sm:$0x1] }
 0x291   : > { %3354 = vst.msk [vmem:[#allocation3 + $0xc4] sm:$0xf] %vm9323_vm9, %v3193_v42  ;;  %3357 = vst [vmem:[#allocation3 + $0xc8] sm:$0x1] %v3356_v33  ;;  %v3176_v22 = vsel %vm6486_vm11, %v3168_v58, %v3175_v13  ;;  %v3349_v41 = vsel %vm7626_vm6, %v3177_v48, %v3348_v11  ;;  %v3693_v9 = vor.u32 %v3692_v5, %v8359_v18  ;;  %v3716_v0 = vrot.slane %v3714_v2, 4  ;;  %v8403_v58 = vpop.permute.xlu0 %4120 }
 0x292   : > { %4276 = vrot.lane.b32.xlu1 %v8327_v45, %s6296_s13  ;;  %4348 = vrot.lane.b32.xlu0 %v8335_v26, %s6299_s16  ;;  %3347 = vst.msk [vmem:[#allocation3 + $0xb8] sm:$0xf] %vm9307_vm2, %v3176_v22  ;;  %3350 = vst [vmem:[#allocation3 + $0xbc] sm:$0x1] %v3349_v41  ;;  %v3492_v44 = vrot.slane %v3491_v54, 4  ;;  %v3506_v15 = vrot.slane %v3504_v24, 5  ;;  %v3683_v57 = vor.u32 %v3682_v31, %v3679_v1 }
 0x293   : > { %v3696_v7 = vshll.u32 %v8284_v17, 16  ;;  %v3703_v34 = vrot.slane %v3701_v40, 4  ;;  %v3706_v63 = vrot.slane %v3704_v47, 5  ;;  %v3694_v55 = vrot.slane %v3693_v9, 4  ;;  %v8439_v24 = vld [vmem:[#allocation3 + $0x44] sm:$0x1] }
 0x294   : > { %v3507_v50 = vsel %vm6557_vm15, %v3502_v43, %v3506_v15  ;;  %v3717_v52 = vor.u32 %v3716_v0, %v3712_v59  ;;  %v3888_v28 = vrot.slane %v8315_v35, 5  ;;  %v3497_v17 = vsel %vm6557_vm15, %v3492_v44, %v8292_v21 }
 0x295   : > { %v3684_v46 = vrot.slane %v3683_v57, 4  ;;  %v3698_v62 = vrot.slane %v3696_v7, 5  ;;  %v3707_v2 = vor.u32 %v3706_v63, %v3703_v34  ;;  %v3720_v27 = vshll.u32 %v8189_v3, 16  ;;  %v8423_v48 = vpop.permute.xlu0 %4200  ;;  %v8458_v63 = vpop.permute.xlu1 %4237 }
 0x296   : > { %4346 = vrot.lane.b32.xlu1 %v8389_v32, %s6299_s16  ;;  %4379 = vrot.lane.b32.xlu0 %v8327_v45, %s6302_s12  ;;  %v5835_v37 = vcombine.low %v3497_v17, %v3507_v50  ;;  %v3718_v5 = vrot.slane %v3717_v52, 4  ;;  %v3891_v3 = vrot.slane %v8413_v16, 5  ;;  %v5804_v33 = vrot.slane %v8331_v30, 9 }
 0x297   : > { %v3699_v11 = vsel %vm6557_vm15, %v3694_v55, %v3698_v62  ;;  %v3689_v21 = vsel %vm6557_vm15, %v3684_v46, %v8359_v18  ;;  %v3708_v12 = vrot.slane %v3707_v2, 4  ;;  %v3722_v13 = vrot.slane %v3720_v27, 5  ;;  %v2785_v55 = vld [vmem:[#allocation3 + $0xcc] sm:$0x1] }
 0x298   : > { %v5843_v25 = vcombine.low %v3689_v21, %v3699_v11  ;;  %v3881_v22 = vrot.slane %v8365_v8, 5  ;;  %v3889_v41 = vsel %vm6501_vm14, %v5804_v33, %v3888_v28  ;;  %v3570_v40 = vshrl.u32 %v8315_v35, 16 }
 0x299   : > { %v3723_v42 = vsel %vm6557_vm15, %v3718_v5, %v3722_v13  ;;  %v3713_v18 = vsel %vm6557_vm15, %v3708_v12, %v3712_v59  ;;  %v3566_v1 = vshll.u32 %v8315_v35, 16  ;;  %v8443_v31 = vpop.permute.xlu0 %4340  ;;  %v3557_v43 = vshrl.u32 %v8331_v30, 16 }
 0x29a   : > { %4128 = vrot.lane.b32.xlu1 %v8327_v45, %s9324_s15  ;;  %4243 = vrot.lane.b32.xlu0 %v8389_v32, %s9294_s30  ;;  %v3890_v45 = vrot.slane %v3888_v28, 4  ;;  %v8437_v4 = vcombine.low %v3713_v18, %v3723_v42  ;;  %v3883_v47 = vrot.slane %v3881_v22, 4  ;;  %v3560_v9 = vshll.u32 %v8331_v30, 16 }
 0x29b   : > { %v3884_v59 = vrot.slane %v8439_v24, 5  ;;  %v5803_v0 = vrot.slane %v8385_v36, 9  ;;  %v3568_v15 = vrot.slane %v3566_v1, 5  ;;  %v3572_v35 = vrot.slane %v3570_v40, 4 }
 0x29c   : > { %v3892_v53 = vsel %vm6501_vm14, %v3890_v45, %v3891_v3  ;;  %v3559_v7 = vrot.slane %v3557_v43, 4  ;;  %v3562_v34 = vrot.slane %v3560_v9, 5  ;;  %v3546_v52 = vshrl.u32 %v8365_v8, 16  ;;  %v8475_v45 = vld [vmem:[#allocation3 + $0x64] sm:$0xf] }
 0x29d   : > { %v5854_v54 = vcombine.low %v3889_v41, %v3892_v53  ;;  %v3885_v44 = vsel %vm6501_vm14, %v3883_v47, %v3884_v59  ;;  %v3882_v57 = vsel %vm6501_vm14, %v5803_v0, %v3881_v22  ;;  %v8460_v30 = vpop.permute.xlu0 %4235  ;;  %v3573_v28 = vor.u32 %v3572_v35, %v3568_v15  ;;  %v3380_v9 = vld [vmem:[#allocation3 + $0x58] sm:$0xf] }
 0x29e   : > { %4377 = vrot.lane.b32.xlu1 %v5835_v37, %s6302_s12  ;;  %4274 = vrot.lane.b32.xlu0 %v5835_v37, %s6296_s13  ;;  %v5853_v50 = vcombine.low %v3882_v57, %v3885_v44  ;;  %v3542_v17 = vshll.u32 %v8365_v8, 16  ;;  %v2786_v46 = vsel %vm7626_vm6, 0, %v2785_v55  ;;  %v3533_v62 = vshrl.u32 %v8385_v36, 16  ;;  %v2840_v8 = vld [vmem:[#allocation3 + $0xd4] sm:$0x1] }
 0x29f   : > { %2787 = vst [vmem:[#allocation3 + $0xcc] sm:$0x1] %v2786_v46  ;;  %v3536_v2 = vshll.u32 %v8385_v36, 16  ;;  %v3563_v27 = vor.u32 %v3562_v34, %v3559_v7  ;;  %v3574_v39 = vrot.slane %v3573_v28, 4  ;;  %v3548_v12 = vrot.slane %v3546_v52, 4 }
 0x2a0   : > { %v3544_v21 = vrot.slane %v3542_v17, 5  ;;  %v2841_v13 = vsel %vm7651_vm3, 0, %v2840_v8  ;;  %v8481_v36 = vld [vmem:[#allocation3 + $0x60] sm:$0xf]  ;;  %v3552_v40 = vshll.u32 %v8439_v24, 16  ;;  %v3902_v0 = vrot.slane %v8475_v45, 5 }
 0x2a1   : > { %2842 = vst [vmem:[#allocation3 + $0xd4] sm:$0x1] %v2841_v13  ;;  %v3538_v42 = vrot.slane %v3536_v2, 5  ;;  %v8489_v22 = vcombine.low %v8481_v36, %v8475_v45  ;;  %v3379_v44 = vld [vmem:[#allocation3 + $0x54] sm:$0xf]  ;;  %v5806_v2 = vrot.slane %v8481_v36, 9 }
 0x2a2   : > { %4126 = vrot.lane.b32.xlu1 %v5835_v37, %s9324_s15  ;;  %4290 = vrot.lane.b32.xlu0 %v5843_v25, %s6296_s13  ;;  %v3576_v37 = vshll.u32 %v8413_v16, 16  ;;  %v3564_v16 = vrot.slane %v3563_v27, 4  ;;  %v3549_v18 = vor.u32 %v3548_v12, %v3544_v21  ;;  %v8511_v7 = vcombine.low %v3379_v44, %v3380_v9  ;;  %v3384_v34 = vld [vmem:[#allocation3 + $0x68] sm:$0x1] }
 0x2a3   : > { %9328 = vst [vmem:[#allocation12_spill] sm:$0xff] %v8489_v22  ;;  %v3904_v55 = vrot.slane %v3902_v0, 4  ;;  %v3905_v28 = vrot.slane %v3384_v34, 5  ;;  %v3618_v27 = vshrl.u32 %v8475_v45, 16  ;;  %v3895_v8 = vrot.slane %v3380_v9, 5 }
 0x2a4   : > { %v3578_v3 = vrot.slane %v3576_v37, 5  ;;  %v3569_v41 = vsel %vm6557_vm15, %v3564_v16, %v3568_v15  ;;  %v3550_v59 = vrot.slane %v3549_v18, 4  ;;  %v3554_v15 = vrot.slane %v3552_v40, 5  ;;  %9329 = vst [vmem:[#allocation13_spill] sm:$0xff] %v8511_v7 }
 0x2a5   : > { %v3906_v37 = vsel %vm6501_vm14, %v3904_v55, %v3905_v28  ;;  %v3608_v12 = vshll.u32 %v8481_v36, 16  ;;  %v3903_v13 = vsel %vm6501_vm14, %v5806_v2, %v3902_v0  ;;  %v3594_v16 = vshrl.u32 %v3380_v9, 16 }
 0x2a6   : > { %4292 = vrot.lane.b32.xlu1 %v8437_v4, %s6296_s13  ;;  %4418 = vrot.lane.b32.xlu0 %v5854_v54, %s9320_s14  ;;  %v3579_v14 = vsel %vm6557_vm15, %v3574_v39, %v3578_v3  ;;  %v3614_v39 = vshll.u32 %v8475_v45, 16  ;;  %v3897_v45 = vrot.slane %v3895_v8, 4  ;;  %v3581_v40 = vshrl.u32 %v3379_v44, 16 }
 0x2a7   : > { %v5838_v43 = vcombine.low %v3569_v41, %v3579_v14  ;;  %v3381_v14 = vld [vmem:[#allocation3 + $0x5c] sm:$0x1]  ;;  %v3620_v41 = vrot.slane %v3618_v27, 4  ;;  %v3610_v0 = vrot.slane %v3608_v12, 5  ;;  %v5805_v55 = vrot.slane %v3379_v44, 9 }
 0x2a8   : > { %v3616_v18 = vrot.slane %v3614_v39, 5  ;;  %v3583_v39 = vrot.slane %v3581_v40, 4  ;;  %vm4586_vm11 = vcmask 326656   ;;  %vm4619_vm6 = vcmask 392192  }
 0x2a9   : > { %vm4652_vm3 = vcmask 457728  }
 0x2aa   : > { %4212 = vrot.lane.b32.xlu0 %v5854_v54, %s9296_s22  ;;  %4393 = vrot.lane.b32.xlu1 %v5843_v25, %s6302_s12  ;;  %v3621_v28 = vor.u32 %v3620_v41, %v3616_v18 }
 0x2ae   : > { %4416 = vrot.lane.b32.xlu0 %v5853_v50, %s9320_s14  ;;  %4142 = vrot.lane.b32.xlu1 %v5843_v25, %s9324_s15  ;;  %v3535_v25 = vrot.slane %v3533_v62, 4 }
 0x2b0   : > { %v8471_v11 = vpop.permute.xlu1 %4253  ;;  %v8473_v5 = vpop.permute.xlu0 %4356 }
 0x2b1   : > { %9325 = vst [vmem:[#allocation9_spill] sm:$0xff] %v8473_v5 }
 0x2b2   : > { %4313 = vrot.lane.b32.xlu0 %v5853_v50, %s9321_s24  ;;  %4315 = vrot.lane.b32.xlu1 %v5854_v54, %s9321_s24  ;;  %v3539_v54 = vor.u32 %v3538_v42, %v3535_v25  ;;  %v5856_v42 = vcombine.low %v3903_v13, %v3906_v37  ;;  %v3624_v37 = vshll.u32 %v3384_v34, 16 }
 0x2b4   : > { %v8483_v33 = vpop.permute.xlu1 %4354  ;;  %v8485_v53 = vpop.permute.xlu0 %4251  ;;  %v3540_v35 = vrot.slane %v3539_v54, 4  ;;  %v3590_v54 = vshll.u32 %v3380_v9, 16  ;;  %v3596_v9 = vrot.slane %v3594_v16, 4 }
 0x2b5   : > { %9326 = vst [vmem:[#allocation10_spill] sm:$0xff] %v8483_v33  ;;  %9327 = vst [vmem:[#allocation11_spill] sm:$0xff] %v8485_v53 }
 0x2b6   : > { %4210 = vrot.lane.b32.xlu1 %v5853_v50, %s9296_s22  ;;  %4352 = vrot.lane.b32.xlu0 %v8489_v22, %s6299_s16  ;;  %v3555_v50 = vsel %vm6557_vm15, %v3550_v59, %v3554_v15  ;;  %v3545_v52 = vsel %vm6557_vm15, %v3540_v35, %v3544_v21  ;;  %v3605_v21 = vshrl.u32 %v8481_v36, 16  ;;  %v3584_v36 = vshll.u32 %v3379_v44, 16 }
 0x2b7   : > { %v5837_v62 = vcombine.low %v3545_v52, %v3555_v50  ;;  %v3898_v59 = vrot.slane %v3381_v14, 5  ;;  %v3592_v2 = vrot.slane %v3590_v54, 5  ;;  %v3626_v54 = vrot.slane %v3624_v37, 5 }
 0x2b8   : > { %v8499_v47 = vpop.permute.xlu1 %4307  ;;  %v8501_v1 = vpop.permute.xlu0 %4410  ;;  %v3607_v35 = vrot.slane %v3605_v21, 4  ;;  %v3586_v21 = vrot.slane %v3584_v36, 5 }
 0x2b9   : > { %v3899_v52 = vsel %vm6501_vm14, %v3897_v45, %v3898_v59  ;;  %v3622_v45 = vrot.slane %v3621_v28, 4  ;;  %v3597_v41 = vor.u32 %v3596_v9, %v3592_v2  ;;  %v6224_v28 = vld [vmem:[#allocation3] sm:$0xf]  ;;  %v6225_v9 = vld [vmem:[#allocation3 + $0x4] sm:$0xf] }
 0x2ba   : > { %4249 = vrot.lane.b32.xlu1 %v8489_v22, %s9294_s30  ;;  %4383 = vrot.lane.b32.xlu0 %v5838_v43, %s6302_s12  ;;  %v3611_v27 = vor.u32 %v3610_v0, %v3607_v35  ;;  %v3587_v59 = vor.u32 %v3586_v21, %v3583_v39  ;;  %v3397_v21 = vld [vmem:[#allocation3 + $0x9c] sm:$0xf] }
 0x2bb   : > { %v3627_v40 = vsel %vm6557_vm15, %v3622_v45, %v3626_v54  ;;  %v3598_v36 = vrot.slane %v3597_v41, 4  ;;  %v3398_v45 = vld [vmem:[#allocation3 + $0xa0] sm:$0xf]  ;;  %v3728_v54 = vshll.u32 %v3397_v21, 16  ;;  %v3405_v22 = vld [vmem:[#allocation3 + $0xbc] sm:$0x1] }
 0x2bc   : > { %v8507_v57 = vpop.permute.xlu1 %4202  ;;  %v8509_v24 = vpop.permute.xlu0 %4204  ;;  %v3612_v16 = vrot.slane %v3611_v27, 4  ;;  %v3588_v35 = vrot.slane %v3587_v59, 4  ;;  %v3738_v59 = vshrl.u32 %v3398_v45, 16 }
 0x2be   : > { %4280 = vrot.lane.b32.xlu1 %v5838_v43, %s6296_s13  ;;  %4247 = vrot.lane.b32.xlu0 %v8511_v7, %s9294_s30 }
 0x2c0   : > { %v8520_v17 = vpop.permute.xlu1 %4323  ;;  %v8522_v46 = vpop.permute.xlu0 %4305 }
 0x2c2   : > { %4350 = vrot.lane.b32.xlu1 %v8511_v7, %s6299_s16  ;;  %4278 = vrot.lane.b32.xlu0 %v5837_v62, %s6296_s13 }
 0x2c4   : > { %v8536_v3 = vpop.permute.xlu1 %4218  ;;  %v8538_v25 = vpop.permute.xlu0 %4426 }
 0x2c5   : > { %9330 = vst [vmem:[#allocation14_spill] sm:$0xff] %v8538_v25  ;;  %v3600_v25 = vshll.u32 %v3381_v14, 16 }
 0x2c6   : > { %4132 = vrot.lane.b32.xlu1 %v5838_v43, %s9324_s15  ;;  %4422 = vrot.lane.b32.xlu0 %v5856_v42, %s9320_s14  ;;  %v3896_v43 = vsel %vm6501_vm14, %v5805_v55, %v3895_v8 }
 0x2c7   : > { %v5855_v13 = vcombine.low %v3896_v43, %v3899_v52  ;;  %v3602_v0 = vrot.slane %v3600_v25, 5  ;;  %v5816_v43 = vcombine.low %v6224_v28, %v6225_v9  ;;  %v3399_v28 = vld [vmem:[#allocation3 + $0xa4] sm:$0x1]  ;;  %v3730_v9 = vrot.slane %v3728_v54, 5 }
 0x2c8   : > { %v8542_v15 = vpop.permute.xlu1 %4241  ;;  %v8544_v50 = vpop.permute.xlu0 %4220  ;;  %v3744_v54 = vshll.u32 %v3399_v28, 16 }
 0x2c9   : > { %v3603_v27 = vsel %vm6557_vm15, %v3598_v36, %v3602_v0  ;;  %v4444_v39 = vsel %vm2148_vm8, %v5816_v43, %v8403_v58 }
 0x2ca   : > { %4381 = vrot.lane.b32.xlu1 %v5837_v62, %s6302_s12  ;;  %4216 = vrot.lane.b32.xlu0 %v5856_v42, %s9296_s22 }
 0x2cc   : > { %v8552_v12 = vpop.permute.xlu1 %4272  ;;  %v8554_v44 = vpop.permute.xlu0 %4424 }
 0x2cd   : > { %9331 = vst [vmem:[#allocation15_spill] sm:$0xff] %v8554_v44 }
 0x2ce   : > { %4130 = vrot.lane.b32.xlu1 %v5837_v62, %s9324_s15  ;;  %4420 = vrot.lane.b32.xlu0 %v5855_v13, %s9320_s14  ;;  %v3617_v62 = vsel %vm6557_vm15, %v3612_v16, %v3616_v18 }
 0x2cf   : > { %v5840_v52 = vcombine.low %v3617_v62, %v3627_v40  ;;  %v3734_v40 = vshll.u32 %v3398_v45, 16  ;;  %v3937_v62 = vrot.slane %v3398_v45, 5 }
 0x2d0   : > { %v8558_v8 = vpop.permute.xlu1 %4342  ;;  %v8560_v34 = vpop.permute.xlu0 %4321 }
 0x2d1   : > { %9332 = vst [vmem:[#allocation16_spill] sm:$0xff] %v8560_v34  ;;  %v3736_v43 = vrot.slane %v3734_v40, 5 }
 0x2d2   : > { %4319 = vrot.lane.b32.xlu1 %v5856_v42, %s9321_s24  ;;  %4317 = vrot.lane.b32.xlu0 %v5855_v13, %s9321_s24  ;;  %v3593_v42 = vsel %vm6557_vm15, %v3588_v35, %v3592_v2  ;;  %v3725_v2 = vshrl.u32 %v3397_v21, 16 }
 0x2d3   : > { %v5839_v37 = vcombine.low %v3593_v42, %v3603_v27 }
 0x2d4   : > { %v8568_v55 = vpop.permute.xlu1 %4124  ;;  %v8570_v14 = vpop.permute.xlu0 %4344  ;;  %v3727_v35 = vrot.slane %v3725_v2, 4  ;;  %v3940_v2 = vrot.slane %v3399_v28, 5  ;;  %v3746_v28 = vrot.slane %v3744_v54, 5 }
 0x2d6   : > { %4214 = vrot.lane.b32.xlu1 %v5855_v13, %s9296_s22  ;;  %4387 = vrot.lane.b32.xlu0 %v5840_v52, %s6302_s12  ;;  %v4491_v13 = vsel %vm2214_vm12, %v4444_v39, %v8423_v48  ;;  %v3731_v40 = vor.u32 %v3730_v9, %v3727_v35 }
 0x2d7   : > { %v4523_v58 = vsel %vm2280_vm1, %v4491_v13, %v8460_v30  ;;  %v5811_v13 = vrot.slane %v3397_v21, 9 }
 0x2d8   : > { %v8578_v18 = vpop.permute.xlu1 %4257  ;;  %v4376_v25 = vpop.permute.xlu0 %4375 }
 0x2da   : > { %4284 = vrot.lane.b32.xlu1 %v5840_v52, %s6296_s13  ;;  %4282 = vrot.lane.b32.xlu0 %v5839_v37, %s6296_s13 }
 0x2dc   : > { %v8586_v41 = vpop.permute.xlu1 %4122  ;;  %v8588_v16 = vpop.permute.xlu0 %4239 }
 0x2de   : > { %4136 = vrot.lane.b32.xlu1 %v5840_v52, %s9324_s15  ;;  %4325 = vrot.lane.b32.xlu0 %v8329_v10, %s9321_s24  ;;  %v3740_v52 = vrot.slane %v3738_v59, 4  ;;  %v3939_v59 = vrot.slane %v3937_v62, 4 }
 0x2e0   : > { %v8595_v36 = vpop.permute.xlu1 %4288  ;;  %v4271_v48 = vpop.permute.xlu0 %4270 }
 0x2e1   : > { %v4555_v0 = vsel %vm2346_vm5, %v4523_v58, %v4271_v48  ;;  %v3741_v58 = vor.u32 %v3740_v52, %v3736_v43  ;;  %v8632_v52 = vcombine.low %v3397_v21, %v3398_v45 }
 0x2e2   : > { %v4588_v10 = vsel %vm4586_vm11, %v4555_v0, %v8522_v46  ;;  %4385 = vrot.lane.b32.xlu1 %v5839_v37, %s6302_s12  ;;  %4360 = vrot.lane.b32.xlu0 %v8162_v56, %s6299_s16  ;;  %v3732_v0 = vrot.slane %v3731_v40, 4 }
 0x2e3   : > { %v4621_v30 = vsel %vm4619_vm6, %v4588_v10, %v8443_v31  ;;  %v3742_v35 = vrot.slane %v3741_v58, 4  ;;  %9336 = vst [vmem:[#allocation20_spill] sm:$0xff] %v8632_v52 }
 0x2e4   : > { %v8605_v27 = vpop.permute.xlu1 %4358  ;;  %v8607_v42 = vpop.permute.xlu0 %4391  ;;  %v4654_v39 = vsel %vm4652_vm3, %v4621_v30, %v4376_v25  ;;  %v3938_v25 = vsel %vm6501_vm14, %v5811_v13, %v3937_v62  ;;  %v8634_v62 = vld [vmem:[#allocation3 + $0xa8] sm:$0xf]  ;;  %v8636_v30 = vld [vmem:[#allocation3 + $0xac] sm:$0xf] }
 0x2e5   : > { %9333 = vst [vmem:[#allocation17_spill] sm:$0xff] %v8607_v42  ;;  %v4687_v46 = vsel %vm4685_vm13, %v4654_v39, %v8501_v1  ;;  %v3941_v1 = vsel %vm6501_vm14, %v3939_v59, %v3940_v2  ;;  %v3737_v39 = vsel %vm6557_vm15, %v3732_v0, %v3736_v43  ;;  %v3747_v13 = vsel %vm6557_vm15, %v3742_v35, %v3746_v28  ;;  %v3402_v28 = vld [vmem:[#allocation3 + $0xb0] sm:$0x1] }
 0x2e6   : > { %4134 = vrot.lane.b32.xlu1 %v5839_v37, %s9324_s15  ;;  %4395 = vrot.lane.b32.xlu0 %v8437_v4, %s6302_s12  ;;  %v5861_v10 = vcombine.low %v3938_v25, %v3941_v1  ;;  %v3749_v2 = vshrl.u32 %v8634_v62, 16  ;;  %v3752_v21 = vshll.u32 %v8634_v62, 16  ;;  %v3762_v45 = vshrl.u32 %v8636_v30, 16 }
 0x2e7   : > { %6052 = vmatprep.mubr.msk.bf16.mxu1 %vm4761_vm10, %v4687_v46  ;;  %v3758_v54 = vshll.u32 %v8636_v30, 16  ;;  %v5845_v43 = vcombine.low %v3737_v39, %v3747_v13  ;;  %v3768_v56 = vshll.u32 %v3402_v28, 16 }
 0x2e8   : > { %v8616_v31 = vpop.permute.xlu1 %4140  ;;  %v8618_v48 = vpop.permute.xlu0 %4255  ;;  %v3751_v40 = vrot.slane %v3749_v2, 4  ;;  %v3754_v58 = vrot.slane %v3752_v21, 5  ;;  %v3764_v1 = vrot.slane %v3762_v45, 4  ;;  %v3403_v2 = vld [vmem:[#allocation3 + $0xb4] sm:$0xf] }
 0x2e9   : > { %v3760_v25 = vrot.slane %v3758_v54, 5  ;;  %v3404_v21 = vld [vmem:[#allocation3 + $0xb8] sm:$0xf] }
 0x2ea   : > { %4327 = vrot.lane.b32.xlu1 %v8218_v29, %s9321_s24  ;;  %4430 = vrot.lane.b32.xlu0 %v8218_v29, %s9320_s14  ;;  %v3755_v39 = vor.u32 %v3754_v58, %v3751_v40  ;;  %v3944_v40 = vrot.slane %v8636_v30, 5  ;;  %v3773_v58 = vshrl.u32 %v3403_v2, 16  ;;  %v3782_v33 = vshll.u32 %v3404_v21, 16 }
 0x2eb   : > { %v3765_v13 = vor.u32 %v3764_v1, %v3760_v25  ;;  %v3776_v1 = vshll.u32 %v3403_v2, 16  ;;  %v3951_v53 = vrot.slane %v3404_v21, 5 }
 0x2ec   : > { %v8628_v37 = vpop.permute.xlu1 %4389  ;;  %v8630_v9 = vpop.permute.xlu0 %4286  ;;  %v3756_v45 = vrot.slane %v3755_v39, 4  ;;  %v3946_v34 = vrot.slane %v3944_v40, 4 }
 0x2ed   : > { %9334 = vst [vmem:[#allocation18_spill] sm:$0xff] %v8628_v37  ;;  %9335 = vst [vmem:[#allocation19_spill] sm:$0xff] %v8630_v9  ;;  %v3766_v54 = vrot.slane %v3765_v13, 4  ;;  %v3770_v37 = vrot.slane %v3768_v56, 5  ;;  %v5812_v13 = vrot.slane %v8634_v62, 9  ;;  %v3947_v9 = vrot.slane %v3402_v28, 5 }
 0x2ee   : > { %4362 = vrot.lane.b32.xlu1 %v8632_v52, %s6299_s16  ;;  %4432 = vrot.lane.b32.xlu0 %v5861_v10, %s9320_s14  ;;  %v3761_v56 = vsel %vm6557_vm15, %v3756_v45, %v3760_v25  ;;  %v3778_v26 = vrot.slane %v3776_v1, 5  ;;  %v3784_v25 = vrot.slane %v3782_v33, 5 }
 0x2ef   : > { %v3771_v39 = vsel %vm6557_vm15, %v3766_v54, %v3770_v37  ;;  %v3948_v33 = vsel %vm6501_vm14, %v3946_v34, %v3947_v9 }
 0x2f0   : > { %v8649_v46 = vpop.permute.xlu1 %4138  ;;  %v8651_v59 = vpop.permute.xlu0 %4414  ;;  %v8697_v37 = vcombine.low %v3761_v56, %v3771_v39  ;;  %v3792_v56 = vshll.u32 %v3405_v22, 16 }
 0x2f2   : > { %4397 = vrot.lane.b32.xlu1 %v5845_v43, %s6302_s12  ;;  %4224 = vrot.lane.b32.xlu0 %v8218_v29, %s9296_s22 }
 0x2f4   : > { %v8656_v0 = vpop.permute.xlu1 %4311  ;;  %v8658_v35 = vpop.permute.xlu0 %4208 }
 0x2f6   : > { %4144 = vrot.lane.b32.xlu1 %v8437_v4, %s9324_s15  ;;  %4259 = vrot.lane.b32.xlu0 %v8632_v52, %s9294_s30  ;;  %v3786_v52 = vshrl.u32 %v3404_v21, 16 }
 0x2f8   : > { %v8664_v44 = vpop.permute.xlu1 %4206  ;;  %v8666_v29 = vpop.permute.xlu0 %4412  ;;  %v3788_v45 = vrot.slane %v3786_v52, 4  ;;  %v3954_v52 = vrot.slane %v3405_v22, 5 }
 0x2fa   : > { %4146 = vrot.lane.b32.xlu1 %v5845_v43, %s9324_s15  ;;  %4294 = vrot.lane.b32.xlu0 %v5845_v43, %s6296_s13  ;;  %v8679_v43 = vcombine.low %v8634_v62, %v8636_v30  ;;  %v4447_v30 = vsel %vm2148_vm8, %v7874_v49, %v8586_v41  ;;  %v3945_v62 = vsel %vm6501_vm14, %v5812_v13, %v3944_v40  ;;  %v5813_v41 = vrot.slane %v3403_v2, 9 }
 0x2fb   : > { %v4493_v28 = vsel %vm2214_vm12, %v4447_v30, %v8507_v57  ;;  %v5862_v13 = vcombine.low %v3945_v62, %v3948_v33  ;;  %v4450_v30 = vsel %vm2148_vm8, %v7868_v6, %v8568_v55  ;;  %v8732_v62 = vcombine.low %v3403_v2, %v3404_v21  ;;  %v8738_v33 = vld [vmem:[#allocation3 + $0xc4] sm:$0xf] }
 0x2fc   : > { %v8670_v4 = vpop.permute.xlu1 %4222  ;;  %v8672_v42 = vpop.permute.xlu0 %4309  ;;  %9337 = vst [vmem:[#allocation21_spill] sm:$0xff] %v8679_v43  ;;  %v4525_v57 = vsel %vm2280_vm1, %v4493_v28, %v8458_v63  ;;  %v3952_v34 = vsel %vm6501_vm14, %v5813_v41, %v3951_v53  ;;  %v4474_v2 = vsel %vm2148_vm8, %v8024_v20, %v8616_v31  ;;  %v3970_v21 = vshrl.u32 %v8738_v33, 16 }
 0x2fd   : > { %v4557_v63 = vsel %vm2346_vm5, %v4525_v57, %v8552_v12  ;;  %v4471_v12 = vsel %vm2148_vm8, %v8036_v19, %v8649_v46  ;;  %v4495_v19 = vsel %vm2214_vm12, %v4450_v30, %v8509_v24  ;;  %v4511_v24 = vsel %vm2214_vm12, %v4474_v2, %v8544_v50 }
 0x2fe   : > { %4226 = vrot.lane.b32.xlu1 %v5861_v10, %s9296_s22  ;;  %4329 = vrot.lane.b32.xlu0 %v5861_v10, %s9321_s24  ;;  %v3775_v10 = vrot.slane %v3773_v58, 4  ;;  %v3953_v58 = vrot.slane %v3951_v53, 4  ;;  %v4590_v41 = vsel %vm4586_vm11, %v4557_v63, %v8499_v47  ;;  %v4509_v20 = vsel %vm2214_vm12, %v4471_v12, %v8536_v3 }
 0x2ff   : > { %v4623_v31 = vsel %vm4619_vm6, %v4590_v41, %v8558_v8  ;;  %v4541_v8 = vsel %vm2280_vm1, %v4509_v20, %v8471_v11 }
 0x300   : > { %v8686_v5 = vpop.permute.xlu1 %4245  ;;  %v8688_v7 = vpop.permute.xlu0 %4428  ;;  %v3779_v1 = vor.u32 %v3778_v26, %v3775_v10  ;;  %v3955_v26 = vsel %vm6501_vm14, %v3953_v58, %v3954_v52  ;;  %v3794_v10 = vrot.slane %v3792_v56, 5 }
 0x301   : > { %v8734_v28 = vcombine.low %v3952_v34, %v3955_v26  ;;  %v3966_v34 = vshll.u32 %v8738_v33, 16  ;;  %v4543_v26 = vsel %vm2280_vm1, %v4511_v24, %v8618_v48  ;;  %v4573_v48 = vsel %vm2346_vm5, %v4541_v8, %v8595_v36 }
 0x302   : > { %4261 = vrot.lane.b32.xlu1 %v8679_v43, %s9294_s30  ;;  %4364 = vrot.lane.b32.xlu0 %v8679_v43, %s6299_s16  ;;  %v3789_v43 = vor.u32 %v3788_v45, %v3784_v25  ;;  %v3780_v22 = vrot.slane %v3779_v1, 4 }
 0x303   : > { %v3968_v63 = vrot.slane %v3966_v34, 5 }
 0x304   : > { %v8703_v54 = vpop.permute.xlu1 %4276  ;;  %v8705_v49 = vpop.permute.xlu0 %4348  ;;  %v3790_v9 = vrot.slane %v3789_v43, 4  ;;  %v8736_v43 = vld [vmem:[#allocation3 + $0xc0] sm:$0xf]  ;;  %v3785_v6 = vsel %vm6557_vm15, %v3780_v22, %v3784_v25  ;;  %v4527_v25 = vsel %vm2280_vm1, %v4495_v19, %v8588_v16 }
 0x305   : > { %v3957_v47 = vshrl.u32 %v8736_v43, 16  ;;  %v3960_v46 = vshll.u32 %v8736_v43, 16  ;;  %v5864_v8 = vcombine.low %v8736_v43, %v8738_v33 }
 0x306   : > { %4296 = vrot.lane.b32.xlu1 %v8697_v37, %s6296_s13  ;;  %4399 = vrot.lane.b32.xlu0 %v8697_v37, %s6302_s12  ;;  %v3795_v55 = vsel %vm6557_vm15, %v3790_v9, %v3794_v10 }
 0x307   : > { %v5847_v1 = vcombine.low %v3785_v6, %v3795_v55  ;;  %v3959_v9 = vrot.slane %v3957_v47, 4  ;;  %v3962_v10 = vrot.slane %v3960_v46, 5  ;;  %v8802_v6 = vld [vmem:[#allocation3 + $0xcc] sm:$0xf] }
 0x308   : > { %v8715_v40 = vpop.permute.xlu1 %4346  ;;  %v4380_v39 = vpop.permute.xlu0 %4379  ;;  %v3991_v36 = vshrl.u32 %v8802_v6, 16  ;;  %v3994_v19 = vshll.u32 %v8802_v6, 16 }
 0x309   : > { %v3963_v41 = vor.u32 %v3962_v10, %v3959_v9 }
 0x30a   : > { %4331 = vrot.lane.b32.xlu1 %v5862_v13, %s9321_s24  ;;  %4434 = vrot.lane.b32.xlu0 %v5862_v13, %s9320_s14 }
 0x30c   : > { %v8728_v45 = vpop.permute.xlu1 %4128  ;;  %v8730_v53 = vpop.permute.xlu0 %4243 }
 0x30e   : > { %4366 = vrot.lane.b32.xlu1 %v8732_v62, %s6299_s16  ;;  %4436 = vrot.lane.b32.xlu0 %v8734_v28, %s9320_s14 }
 0x310   : > { %v4378_v52 = vpop.permute.xlu1 %4377  ;;  %v4275_v58 = vpop.permute.xlu0 %4274 }
 0x311   : > { %v4656_v56 = vsel %vm4652_vm3, %v4623_v31, %v4378_v52  ;;  %v4559_v57 = vsel %vm2346_vm5, %v4527_v25, %v4275_v58 }
 0x312   : > { %v4689_v16 = vsel %vm4685_vm13, %v4656_v56, %v8666_v29  ;;  %v4592_v3 = vsel %vm4586_vm11, %v4559_v57, %v8672_v42  ;;  %4401 = vrot.lane.b32.xlu1 %v5847_v1, %s6302_s12  ;;  %4228 = vrot.lane.b32.xlu0 %v5862_v13, %s9296_s22  ;;  %v3996_v56 = vrot.slane %v3994_v19, 5 }
 0x313   : > { %v4625_v50 = vsel %vm4619_vm6, %v4592_v3, %v8570_v14  ;;  %6053 = vmatmul.mubr.msk.bf16.vlgmr.msra.gmra.mrb[16].mxu1 %vm4761_vm10, %v4689_v16  ;;  %v3972_v14 = vrot.slane %v3970_v21, 4 }
 0x314   : > { %v8785_v22 = vpop.permute.xlu1 %4126  ;;  %v4291_v29 = vpop.permute.xlu0 %4290  ;;  %v4658_v42 = vsel %vm4652_vm3, %v4625_v50, %v4380_v39  ;;  %v3408_v39 = vld [vmem:[#allocation3 + $0xc8] sm:$0x1]  ;;  %v5814_v50 = vrot.slane %v8736_v43, 9 }
 0x315   : > { %v8789_v13 = vsel %vm2346_vm5, %v4543_v26, %v4291_v29  ;;  %v4691_v11 = vsel %vm4685_vm13, %v4658_v42, %v8651_v59  ;;  %v8804_v59 = vld [vmem:[#allocation3 + $0xd0] sm:$0xf]  ;;  %v3973_v55 = vor.u32 %v3972_v14, %v3968_v63  ;;  %v3976_v2 = vshll.u32 %v3408_v39, 16  ;;  %v3411_v29 = vld [vmem:[#allocation3 + $0xd4] sm:$0x1] }
 0x316   : > { %4148 = vrot.lane.b32.xlu1 %v8697_v37, %s9324_s15  ;;  %4263 = vrot.lane.b32.xlu0 %v8732_v62, %s9294_s30  ;;  %v4606_v37 = vsel %vm4586_vm11, %v4573_v48, %v8520_v17  ;;  %v4004_v47 = vshrl.u32 %v8804_v59, 16  ;;  %v4000_v46 = vshll.u32 %v8804_v59, 16  ;;  %v3964_v17 = vrot.slane %v3963_v41, 4 }
 0x317   : > { %6056 = vmatprep.mubr.msk.bf16.mxu1 %vm4761_vm10, %v4691_v11  ;;  %v4639_v21 = vsel %vm4619_vm6, %v4606_v37, %v8605_v27  ;;  %v3974_v52 = vrot.slane %v3973_v55, 4  ;;  %v3978_v58 = vrot.slane %v3976_v2, 5  ;;  %v3993_v27 = vrot.slane %v3991_v36, 4 }
 0x318   : > { %v4293_v30 = vpop.permute.xlu1 %4292  ;;  %v8800_v12 = vpop.permute.xlu0 %4418  ;;  %v4002_v57 = vrot.slane %v4000_v46, 5  ;;  %v4006_v34 = vrot.slane %v4004_v47, 4  ;;  %v3988_v26 = vrot.slane %v3408_v39, 5  ;;  %v4010_v11 = vshll.u32 %v3411_v29, 16 }
 0x319   : > { %v3979_v42 = vsel %vm6557_vm15, %v3974_v52, %v3978_v58  ;;  %v3997_v43 = vor.u32 %v3996_v56, %v3993_v27  ;;  %v4019_v2 = vrot.slane %v8804_v59, 5  ;;  %v5867_v47 = vcombine.low %v8802_v6, %v8804_v59 }
 0x31a   : > { %4150 = vrot.lane.b32.xlu1 %v5847_v1, %s9324_s15  ;;  %4298 = vrot.lane.b32.xlu0 %v5847_v1, %s6296_s13  ;;  %v3985_v1 = vrot.slane %v8738_v33, 5  ;;  %v4007_v33 = vor.u32 %v4006_v34, %v4002_v57  ;;  %v5815_v46 = vrot.slane %v8802_v6, 9  ;;  %v4456_v59 = vsel %vm2148_vm8, %v8111_v23, %v8728_v45  ;;  %s5909_s15 = sshll.u32 %s6385_s21, 4  ;;  %s6303_s21 = smov [#allocation4]  }
 0x31b   : > { %v3998_v37 = vrot.slane %v3997_v43, 4  ;;  %s6230_s0 = sshll.u32 %s6303_s21, 4  ;;  %s6231_s0 = int_to_ptr.vmem [resolvable:$false] %s6230_s0 }
 0x31c   : > { %v4394_v25 = vpop.permute.xlu1 %4393  ;;  %v8816_v20 = vpop.permute.xlu0 %4212  ;;  %v3987_v9 = vrot.slane %v3985_v1, 4  ;;  %v4008_v55 = vrot.slane %v4007_v33, 4  ;;  %v4020_v51 = vsel %vm6501_vm14, %v5815_v46, %v4019_v2  ;;  %v9339_v46 = vld [vmem:[#allocation12_spill] sm:$0xff]  ;;  %s6232_s1 = scalar_lea.vmem %s6231_s0, 32 }
 0x31d   : > { %v4672_v31 = vsel %vm4652_vm3, %v4639_v21, %v4394_v25  ;;  %v4003_v21 = vsel %vm6557_vm15, %v3998_v37, %v4002_v57 }
 0x31e   : > { %4230 = vrot.lane.b32.xlu1 %v8734_v28, %s9296_s22  ;;  %4333 = vrot.lane.b32.xlu0 %v8734_v28, %s9321_s24  ;;  %v8826_v24 = vsel %vm4685_vm13, %v4672_v31, %v8688_v7  ;;  %v3969_v7 = vsel %vm6557_vm15, %v3964_v17, %v3968_v63  ;;  %v3989_v41 = vsel %vm6501_vm14, %v3987_v9, %v3988_v26  ;;  %v4021_v17 = vrot.slane %v4019_v2, 4 }
 0x31f   : > { %v5865_v48 = vcombine.low %v3969_v7, %v3979_v42  ;;  %v4022_v31 = vrot.slane %v3411_v29, 5 }
 0x320   : > { %v4143_v16 = vpop.permute.xlu1 %4142  ;;  %v8828_v3 = vpop.permute.xlu0 %4416 }
 0x321   : > { %v4477_v28 = vsel %vm2148_vm8, %v8214_v60, %v4143_v16  ;;  %v4023_v27 = vsel %vm6501_vm14, %v4021_v17, %v4022_v31 }
 0x322   : > { %v4513_v10 = vsel %vm2214_vm12, %v4477_v28, %v8670_v4  ;;  %4265 = vrot.lane.b32.xlu1 %v5864_v8, %s9294_s30  ;;  %4368 = vrot.lane.b32.xlu0 %v5864_v8, %s6299_s16  ;;  %v3986_v4 = vsel %vm6501_vm14, %v5814_v50, %v3985_v1  ;;  %v4453_v1 = vsel %vm2148_vm8, %v8131_v38, %v8785_v22  ;;  %s393_s30 = scalar_lea.vmem [#allocation4], %s392_s25  ;;  %vm5431_vm14 = vcmask 40960  }
 0x323   : > { %v4545_v60 = vsel %vm2280_vm1, %v4513_v10, %v8578_v18  ;;  %v4012_v18 = vrot.slane %v4010_v11, 5  ;;  %v4497_v56 = vsel %vm2214_vm12, %v4453_v1, %v8664_v44  ;;  %v4499_v38 = vsel %vm2214_vm12, %v4456_v59, %v8658_v35  ;;  %v9338_v11 = vld [vmem:[#allocation8_spill] sm:$0xff]  ;;  %s5536_s22 = sshll.u32 %s393_s30, 4  ;;  %s9202_s22 = int_to_ptr.vmem [resolvable:$true] %s5536_s22 }
 0x324   : > { %v8845_v14 = vpop.permute.xlu1 %4315  ;;  %v4314_v63 = vpop.permute.xlu0 %4313  ;;  %v8848_v39 = vsel %vm2346_vm5, %v4545_v60, %v4293_v30  ;;  %v5866_v30 = vcombine.low %v3986_v4, %v3989_v41  ;;  %v5869_v23 = vcombine.low %v4020_v51, %v4023_v27  ;;  %v4529_v45 = vsel %vm2280_vm1, %v4497_v56, %v8542_v15  ;;  %p6233_p0 = scmp.lt.s32.totalorder %s9202_s22, %s6231_s0 }
 0x325   : > { %v4013_v25 = vsel %vm6557_vm15, %v4008_v55, %v4012_v18  ;;  %v4531_v22 = vsel %vm2280_vm1, %v4499_v38, %v8730_v53  ;;  %v4561_v35 = vsel %vm2346_vm5, %v4529_v45, %v8703_v54 }
 0x326   : > { %4300 = vrot.lane.b32.xlu1 %v5865_v48, %s6296_s13  ;;  %4403 = vrot.lane.b32.xlu0 %v5865_v48, %s6302_s12  ;;  %v5868_v6 = vcombine.low %v4003_v21, %v4013_v25  ;;  %v4594_v15 = vsel %vm4586_vm11, %v4561_v35, %v8656_v0  ;;  %v9340_v25 = vld [vmem:[#allocation11_spill] sm:$0xff]  ;;  %s5913_s13 = sshll.u32 %s6440_s29, 4 }
 0x327   : > { %v4627_v53 = vsel %vm4619_vm6, %v4594_v15, %v8715_v40 }
 0x328   : > { %v4211_v36 = vpop.permute.xlu1 %4210  ;;  %v8857_v19 = vpop.permute.xlu0 %4352 }
 0x32a   : > { %4335 = vrot.lane.b32.xlu1 %v5866_v30, %s9321_s24  ;;  %4438 = vrot.lane.b32.xlu0 %v5866_v30, %s9320_s14  ;;  %s416_s24 = scalar_lea.vmem %s9254_s11, %s6440_s29 }
 0x32c   : > { %v8868_v52 = vpop.permute.xlu1 %4249  ;;  %v4384_v58 = vpop.permute.xlu0 %4383 }
 0x32e   : > { %4370 = vrot.lane.b32.xlu1 %v5867_v47, %s6299_s16  ;;  %s408_s16 = scalar_lea.vmem %s9251_s8, %s5913_s13 }
 0x330   : > { %v4281_v57 = vpop.permute.xlu1 %4280  ;;  %v4248_v34 = vpop.permute.xlu0 %4247 }
 0x332   : > { %4405 = vrot.lane.b32.xlu1 %v5868_v6, %s6302_s12  ;;  %v9341_v6 = vld [vmem:[#allocation19_spill] sm:$0xff]  ;;  %s5515_s12 = scalar_lea.sflag [#allocation5], %s392_s25 }
 0x334   : > { %v4351_v16 = vpop.permute.xlu1 %4350  ;;  %v4279_v61 = vpop.permute.xlu0 %4278 }
 0x335   : > { %v4563_v8 = vsel %vm2346_vm5, %v4531_v22, %v4279_v61  ;;  %v9344_v61 = vld [vmem:[#allocation9_spill] sm:$0xff] }
 0x336   : > { %v4596_v44 = vsel %vm4586_vm11, %v4563_v8, %v4314_v63  ;;  %4440 = vrot.lane.b32.xlu1 %v5869_v23, %s9320_s14  ;;  %v9343_v23 = vld [vmem:[#allocation13_spill] sm:$0xff]  ;;  %s6226_s14 = scalar_lea.vmem %s9202_s22, 16 }
 0x337   : > { %v4629_v29 = vsel %vm4619_vm6, %v4596_v44, %v8705_v49  ;;  %p6227_p11 = scmp.ne.s32.totalorder %s9202_s22, %s6226_s14  ;;  %p6234_p1 = scmp.lt.s32.totalorder %s6232_s1, %s6226_s14 }
 0x338   : > { %v4133_v50 = vpop.permute.xlu1 %4132  ;;  %v4423_v26 = vpop.permute.xlu0 %4422  ;;  %v4662_v42 = vsel %vm4652_vm3, %v4629_v29, %v4384_v58  ;;  %v9345_v29 = vld [vmem:[#allocation10_spill] sm:$0xff] }
 0x339   : > { %v4695_v49 = vsel %vm4685_vm13, %v4662_v42, %v8800_v12  ;;  %v4462_v60 = vsel %vm2148_vm8, %v9338_v11, %v4133_v50  ;;  %p6228_p12 = pnand %p6227_p11, %p6402_p5  ;;  %p6235_p2 = por %p6234_p1, %p6233_p0 }
 0x33a   : > { %v4503_v4 = vsel %vm2214_vm12, %v4462_v60, %v8816_v20 }
 0x33b   : > { %v4535_v37 = vsel %vm2280_vm1, %v4503_v4, %v4248_v34  ;;  %v9342_v34 = vld [vmem:[#allocation16_spill] sm:$0xff]  ;;  %p6229_p13 = pneg %p6228_p12 }
 0x33c   : > { %v4382_v28 = vpop.permute.xlu1 %4381  ;;  %v4217_v7 = vpop.permute.xlu0 %4216 }
 0x33d   : > { %v4660_v9 = vsel %vm4652_vm3, %v4627_v53, %v4382_v28  ;;  %v9346_v53 = vld [vmem:[#allocation17_spill] sm:$0xff]  ;;  %p6236_p3 = pnand %p6235_p2, %p6229_p13 }
 0x33e   : > { %v4693_v54 = vsel %vm4685_vm13, %v4660_v9, %v8828_v3 }
 0x33f   : > { %6057 = vmatmul.mubr.msk.bf16.gmra.mrb[20].mxu1 %vm4761_vm10, %v4693_v54  ;;  %v9348_v54 = vld [vmem:[#allocation15_spill] sm:$0xff] }
 0x340   : > { %v4131_v10 = vpop.permute.xlu1 %4130  ;;  %6060 = vmatprep.mubr.msk.bf16.mxu1 %vm4761_vm10, %v4695_v49  ;;  %v4421_v0 = vpop.permute.xlu0 %4420 }
 0x341   : > { %v4459_v33 = vsel %vm2148_vm8, %v8389_v32, %v4131_v10  ;;  %v9349_v10 = vld [vmem:[#allocation14_spill] sm:$0xff] }
 0x342   : > { %v4501_v63 = vsel %vm2214_vm12, %v4459_v33, %v4211_v36 }
 0x343   : > { %v4533_v12 = vsel %vm2280_vm1, %v4501_v63, %v8686_v5 }
 0x344   : > { %v4320_v43 = vpop.permute.xlu1 %4319  ;;  %v4318_v40 = vpop.permute.xlu0 %4317  ;;  %v4565_v2 = vsel %vm2346_vm5, %v4533_v12, %v4281_v57 }
 0x345   : > { %v4598_v5 = vsel %vm4586_vm11, %v4565_v2, %v8845_v14 }
 0x346   : > { %v4631_v31 = vsel %vm4619_vm6, %v4598_v5, %v4351_v16 }
 0x348   : > { %v4215_v3 = vpop.permute.xlu1 %4214  ;;  %v4388_v48 = vpop.permute.xlu0 %4387 }
 0x34c   : > { %v4285_v41 = vpop.permute.xlu1 %4284  ;;  %v4283_v55 = vpop.permute.xlu0 %4282 }
 0x34d   : > { %v4567_v18 = vsel %vm2346_vm5, %v4535_v37, %v4283_v55  ;;  %v9350_v55 = vld [vmem:[#allocation7_spill] sm:$0xff] }
 0x34e   : > { %v4600_v32 = vsel %vm4586_vm11, %v4567_v18, %v4318_v40 }
 0x34f   : > { %v4633_v47 = vsel %vm4619_vm6, %v4600_v32, %v8857_v19 }
 0x350   : > { %v4137_v30 = vpop.permute.xlu1 %4136  ;;  %v4326_v36 = vpop.permute.xlu0 %4325  ;;  %v4666_v59 = vsel %vm4652_vm3, %v4633_v47, %v4388_v48 }
 0x351   : > { %v4468_v20 = vsel %vm2148_vm8, %v9339_v46, %v4137_v30  ;;  %v4699_v14 = vsel %vm4685_vm13, %v4666_v59, %v4423_v26  ;;  %v4608_v33 = vsel %vm4586_vm11, %v8789_v13, %v4326_v36 }
 0x352   : > { %v4507_v21 = vsel %vm2214_vm12, %v4468_v20, %v4217_v7  ;;  %v9347_v7 = vld [vmem:[#allocation18_spill] sm:$0xff] }
 0x353   : > { %v4539_v17 = vsel %vm2280_vm1, %v4507_v21, %v9340_v25 }
 0x354   : > { %v4386_v58 = vpop.permute.xlu1 %4385  ;;  %v4361_v1 = vpop.permute.xlu0 %4360  ;;  %v4571_v19 = vsel %vm2346_vm5, %v4539_v17, %v9341_v6 }
 0x355   : > { %v4664_v51 = vsel %vm4652_vm3, %v4631_v31, %v4386_v58  ;;  %v4604_v38 = vsel %vm4586_vm11, %v4571_v19, %v9342_v34  ;;  %v4641_v11 = vsel %vm4619_vm6, %v4608_v33, %v4361_v1  ;;  %v9351_v19 = vld [vmem:[#allocation20_spill] sm:$0xff] }
 0x356   : > { %v4697_v27 = vsel %vm4685_vm13, %v4664_v51, %v4421_v0  ;;  %v4637_v8 = vsel %vm4619_vm6, %v4604_v38, %v9344_v61 }
 0x357   : > { %6061 = vmatmul.mubr.msk.bf16.gmra.mrb[24].mxu1 %vm4761_vm10, %v4697_v27  ;;  %v4670_v28 = vsel %vm4652_vm3, %v4637_v8, %v9346_v53 }
 0x358   : > { %v4135_v56 = vpop.permute.xlu1 %4134  ;;  %6064 = vmatprep.mubr.msk.bf16.mxu1 %vm4761_vm10, %v4699_v14  ;;  %v4396_v57 = vpop.permute.xlu0 %4395  ;;  %v4703_v0 = vsel %vm4685_vm13, %v4670_v28, %v9349_v10 }
 0x359   : > { %v4465_v45 = vsel %vm2148_vm8, %v9343_v23, %v4135_v56  ;;  %v4674_v60 = vsel %vm4652_vm3, %v4641_v11, %v4396_v57 }
 0x35a   : > { %v4505_v22 = vsel %vm2214_vm12, %v4465_v45, %v4215_v3 }
 0x35b   : > { %v4537_v16 = vsel %vm2280_vm1, %v4505_v22, %v8868_v52 }
 0x35c   : > { %v4569_v44 = vsel %vm2346_vm5, %v4537_v16, %v4285_v41  ;;  %v4328_v35 = vpop.permute.xlu1 %4327  ;;  %v4431_v50 = vpop.permute.xlu0 %4430 }
 0x35d   : > { %v4602_v26 = vsel %vm4586_vm11, %v4569_v44, %v4320_v43  ;;  %v4707_v48 = vsel %vm4685_vm13, %v4674_v60, %v4431_v50  ;;  %v4610_v4 = vsel %vm4586_vm11, %v8848_v39, %v4328_v35 }
 0x35e   : > { %v4635_v15 = vsel %vm4619_vm6, %v4602_v26, %v9345_v29  ;;  %v9352_v26 = vld [vmem:[#allocation21_spill] sm:$0xff] }
 0x35f   : > { %v4668_v42 = vsel %vm4652_vm3, %v4635_v15, %v9347_v7 }
 0x360   : > { %v4363_v9 = vpop.permute.xlu1 %4362  ;;  %v4433_v52 = vpop.permute.xlu0 %4432  ;;  %v4701_v49 = vsel %vm4685_vm13, %v4668_v42, %v9348_v54 }
 0x361   : > { %6065 = vmatmul.mubr.msk.bf16.gmra.mrb[28].mxu1 %vm4761_vm10, %v4701_v49  ;;  %v4643_v12 = vsel %vm4619_vm6, %v4610_v4, %v4363_v9 }
 0x362   : > { %6068 = vmatprep.mubr.msk.bf16.mxu1 %vm4761_vm10, %v4703_v0 }
 0x364   : > { %v4398_v43 = vpop.permute.xlu1 %4397  ;;  %v4225_v40 = vpop.permute.xlu0 %4224 }
 0x365   : > { %v4676_v37 = vsel %vm4652_vm3, %v4643_v12, %v4398_v43 }
 0x366   : > { %v4709_v30 = vsel %vm4685_vm13, %v4676_v37, %v4433_v52 }
 0x368   : > { %v4145_v63 = vpop.permute.xlu1 %4144  ;;  %v4260_v3 = vpop.permute.xlu0 %4259 }
 0x369   : > { %6069 = vmatmul.mubr.msk.bf16.gmra.mrb[32].mxu1 %vm4761_vm10, %v8826_v24  ;;  %v4480_v18 = vsel %vm2148_vm8, %v9350_v55, %v4145_v63  ;;  %v5007_v24 = vld [vmem:[%s9249_s6] sm:$0xf] }
 0x36a   : > { %6072 = vmatprep.mubr.msk.bf16.mxu1 %vm4761_vm10, %v4707_v48  ;;  %6127 = vmatprep.subr.msk.bf16.mxu0 %vm4794_vm7, %v5007_v24  ;;  %v5064_v39 = vsel %vm4794_vm7, %v5007_v24, 0  ;;  %v4515_v36 = vsel %vm2214_vm12, %v4480_v18, %v4225_v40 }
 0x36b   : > { %6085 = vmatpush3.bf16.msra.mxu0 %v5064_v39  ;;  %v4547_v20 = vsel %vm2280_vm1, %v4515_v36, %v4260_v3 }
 0x36c   : > { %v4147_v41 = vpop.permute.xlu1 %4146  ;;  %v4295_v13 = vpop.permute.xlu0 %4294 }
 0x36d   : > { %v4579_v25 = vsel %vm2346_vm5, %v4547_v20, %v4295_v13  ;;  %v4483_v51 = vsel %vm2148_vm8, %v9351_v19, %v4147_v41 }
 0x370   : > { %v4227_v32 = vpop.permute.xlu1 %4226  ;;  %v4330_v2 = vpop.permute.xlu0 %4329 }
 0x371   : > { %6073 = vmatmul.mubr.msk.bf16.gmra.mrb[36].mxu1 %vm4761_vm10, %v4709_v30  ;;  %v4612_v17 = vsel %vm4586_vm11, %v4579_v25, %v4330_v2  ;;  %v4517_v27 = vsel %vm2214_vm12, %v4483_v51, %v4227_v32 }
 0x374   : > { %v4262_v47 = vpop.permute.xlu1 %4261  ;;  %v4365_v46 = vpop.permute.xlu0 %4364 }
 0x375   : > { %v4645_v31 = vsel %vm4619_vm6, %v4612_v17, %v4365_v46  ;;  %v4549_v57 = vsel %vm2280_vm1, %v4517_v27, %v4262_v47 }
 0x378   : > { %v4297_v5 = vpop.permute.xlu1 %4296  ;;  %v4400_v21 = vpop.permute.xlu0 %4399 }
 0x379   : > { %v4678_v58 = vsel %vm4652_vm3, %v4645_v31, %v4400_v21  ;;  %v4581_v34 = vsel %vm2346_vm5, %v4549_v57, %v4297_v5 }
 0x37c   : > { %v4332_v1 = vpop.permute.xlu1 %4331  ;;  %v4435_v59 = vpop.permute.xlu0 %4434 }
 0x37d   : > { %v4711_v6 = vsel %vm4685_vm13, %v4678_v58, %v4435_v59  ;;  %v4614_v38 = vsel %vm4586_vm11, %v4581_v34, %v4332_v1 }
 0x37e   : > { %6076 = vmatprep.mubr.msk.bf16.mxu1 %vm4761_vm10, %v4711_v6 }
 0x380   : > { %v4367_v14 = vpop.permute.xlu1 %4366  ;;  %v4437_v56 = vpop.permute.xlu0 %4436 }
 0x381   : > { %v4647_v23 = vsel %vm4619_vm6, %v4614_v38, %v4367_v14 }
 0x384   : > { %v4402_v45 = vpop.permute.xlu1 %4401  ;;  %v4229_v22 = vpop.permute.xlu0 %4228 }
 0x385   : > { %v4680_v16 = vsel %vm4652_vm3, %v4647_v23, %v4402_v45 }
 0x386   : > { %v4713_v61 = vsel %vm4685_vm13, %v4680_v16, %v4437_v56 }
 0x387   : > { %6077 = vmatmul.mubr.msk.bf16.gmra.mrb[40].mxu1 %vm4761_vm10, %v4713_v61 }
 0x388   : > { %v4149_v8 = vpop.permute.xlu1 %4148  ;;  %v4264_v44 = vpop.permute.xlu0 %4263 }
 0x389   : > { %v4486_v29 = vsel %vm2148_vm8, %v9352_v26, %v4149_v8 }
 0x38a   : > { %v4519_v28 = vsel %vm2214_vm12, %v4486_v29, %v4229_v22 }
 0x38b   : > { %v4551_v9 = vsel %vm2280_vm1, %v4519_v28, %v4264_v44 }
 0x38c   : > { %v4151_v35 = vpop.permute.xlu1 %4150  ;;  %v4299_v50 = vpop.permute.xlu0 %4298 }
 0x38d   : > { %v4583_v49 = vsel %vm2346_vm5, %v4551_v9, %v4299_v50  ;;  %v4489_v63 = vsel %vm2148_vm8, %v8732_v62, %v4151_v35  ;;  %v9025_v62 = vld [vmem:[%s9248_s5] ss:$0 sm:$0xff] }
 0x390   : > { %v4231_v15 = vpop.permute.xlu1 %4230  ;;  %v4334_v53 = vpop.permute.xlu0 %4333 }
 0x391   : > { %v4616_v10 = vsel %vm4586_vm11, %v4583_v49, %v4334_v53  ;;  %v4521_v3 = vsel %vm2214_vm12, %v4489_v63, %v4231_v15 }
 0x394   : > { %v4266_v7 = vpop.permute.xlu1 %4265  ;;  %v4369_v42 = vpop.permute.xlu0 %4368 }
 0x395   : > { %v4649_v0 = vsel %vm4619_vm6, %v4616_v10, %v4369_v42  ;;  %v4553_v48 = vsel %vm2280_vm1, %v4521_v3, %v4266_v7 }
 0x398   : > { %v4301_v52 = vpop.permute.xlu1 %4300  ;;  %v4404_v54 = vpop.permute.xlu0 %4403 }
 0x399   : > { %v4682_v43 = vsel %vm4652_vm3, %v4649_v0, %v4404_v54  ;;  %v4585_v12 = vsel %vm2346_vm5, %v4553_v48, %v4301_v52  ;;  %vm5359_vm5 = vcmask 48128  }
 0x39c   : > { %v4336_v40 = vpop.permute.xlu1 %4335  ;;  %v4439_v33 = vpop.permute.xlu0 %4438 }
 0x39d   : > { %v4715_v11 = vsel %vm4685_vm13, %v4682_v43, %v4439_v33  ;;  %v4618_v41 = vsel %vm4586_vm11, %v4585_v12, %v4336_v40 }
 0x39e   : > { %6080 = vmatprep.mubr.msk.bf16.mxu1 %vm4761_vm10, %v4715_v11 }
 0x3a0   : > { %v4371_v60 = vpop.permute.xlu1 %4370 }
 0x3a1   : > { %v4651_v13 = vsel %vm4619_vm6, %v4618_v41, %v4371_v60 }
 0x3a4   : > { %v4406_v4 = vpop.permute.xlu1 %4405 }
 0x3a5   : > { %v4684_v37 = vsel %vm4652_vm3, %v4651_v13, %v4406_v4 }
 0x3a8   : > { %v4441_v55 = vpop.permute.xlu1 %4440 }
 0x3a9   : > { %v4717_v18 = vsel %vm4685_vm13, %v4684_v37, %v4441_v55 }
 0x3aa   : > { %6081 = vmatmul.mubr.msk.bf16.gmra.mrb[44].mxu1 %vm4761_vm10, %v4717_v18 }
 0x3e6   : > { %v6054_v32 = vpop.f32.mrb[16].mxu1 }
 0x3e7   : > { %v4841_v2 = vadd.f32 %v6054_v32, %v9025_v62  ;;  %v4832_v30 = vpop.f32.mrb[17].mxu1 }
 0x3e8   : > { %v4833_v24 = vadd.f32 %v9025_v62, %v4832_v30  ;;  %v6055_v39 = vpop.f32.mrb[18].mxu1 }
 0x3e9   : > { %v4844_v36 = vadd.f32 %v6055_v39, %v9025_v62  ;;  %v4835_v47 = vpop.f32.mrb[19].mxu1  ;;  %v4961_v5 = vmax.f32 %v4841_v2, 0.0 }
 0x3ea   : > { %v4959_v46 = vmax.f32 %v4833_v24, 0.0  ;;  %v4836_v20 = vadd.f32 %v9025_v62, %v4835_v47 }
 0x3eb   : > { %v4962_v21 = vmax.f32 %v4844_v36, 0.0  ;;  %v5436_v6 = vsel %vm2148_vm8, %v4961_v5, 0.0 }
 0x3ec   : > { %v4960_v25 = vmax.f32 %v4836_v20, 0.0  ;;  %5227 = vxpose.xlu0.b32.start [1/16] (narrow) %v4959_v46, 8  ;;  %v5433_v31 = vsel %vm2148_vm8, %v4959_v46, 0.0 }
 0x3ed   : > { %v4992_v17 = vpack.c.bf16 %v4962_v21, %v4961_v5  ;;  %v5438_v51 = vsel %vm2148_vm8, %v4962_v21, 0.0 }
 0x3ee   : > { %v4991_v58 = vpack.c.bf16 %v4960_v25, %v4959_v46  ;;  %v5434_v1 = vsel %vm2148_vm8, %v4960_v25, 0.0 }
 0x3ef   : > { %v5435_v59 = vadd.f32 %v5434_v1, %v5433_v31 }
 0x3f0   : > { %5228 = vxpose.xlu0.b32.cont [2/16] (narrow) %v4960_v25, 8  ;;  %6086 = vmatprep.mubr.msk.bf16.mxu0 %vm2148_vm8, %v4991_v58 }
 0x3f1   : > { %v5437_v19 = vadd.f32 %v5436_v6, %v5435_v59  ;;  %6087 = vmatmul.mubr.msk.bf16.vlgmr.msra.gmra.mrb[16].mxu0 %vm2148_vm8, %v4992_v17 }
 0x3f3   : > { %v5439_v27 = vadd.f32 %v5438_v51, %v5437_v19 }
 0x3f4   : > { %5229 = vxpose.xlu0.b32.cont [3/16] (narrow) %v4961_v5, 8 }
 0x3f8   : > { %5230 = vxpose.xlu0.b32.cont [4/16] (narrow) %v4962_v21, 8 }
 0x412   : > { %v6058_v14 = vpop.f32.mrb[20].mxu1 }
 0x413   : > { %v4857_v56 = vadd.f32 %v6058_v14, %v9025_v62  ;;  %v4848_v57 = vpop.f32.mrb[21].mxu1 }
 0x414   : > { %v4849_v34 = vadd.f32 %v9025_v62, %v4848_v57  ;;  %v6059_v38 = vpop.f32.mrb[22].mxu1 }
 0x415   : > { %v4860_v23 = vadd.f32 %v6059_v38, %v9025_v62  ;;  %v4851_v45 = vpop.f32.mrb[23].mxu1  ;;  %v4965_v61 = vmax.f32 %v4857_v56, 0.0 }
 0x416   : > { %v4963_v22 = vmax.f32 %v4849_v34, 0.0  ;;  %v4852_v16 = vadd.f32 %v9025_v62, %v4851_v45 }
 0x417   : > { %v4966_v8 = vmax.f32 %v4860_v23, 0.0  ;;  %v5444_v28 = vsel %vm2148_vm8, %v4965_v61, 0.0 }
 0x418   : > { %v5440_v44 = vsel %vm2148_vm8, %v4963_v22, 0.0  ;;  %v4964_v35 = vmax.f32 %v4852_v16, 0.0  ;;  %5231 = vxpose.xlu0.b32.cont [5/16] (narrow) %v4963_v22, 8 }
 0x419   : > { %v5441_v50 = vadd.f32 %v5440_v44, %v5439_v27  ;;  %v4994_v26 = vpack.c.bf16 %v4966_v8, %v4965_v61  ;;  %v5446_v42 = vsel %vm2148_vm8, %v4966_v8, 0.0 }
 0x41a   : > { %v4993_v29 = vpack.c.bf16 %v4964_v35, %v4963_v22  ;;  %v5442_v15 = vsel %vm2148_vm8, %v4964_v35, 0.0 }
 0x41b   : > { %v5443_v53 = vadd.f32 %v5442_v15, %v5441_v50 }
 0x41c   : > { %5232 = vxpose.xlu0.b32.cont [6/16] (narrow) %v4964_v35, 8  ;;  %6090 = vmatprep.mubr.msk.bf16.mxu0 %vm2148_vm8, %v4993_v29 }
 0x41d   : > { %v5445_v7 = vadd.f32 %v5444_v28, %v5443_v53  ;;  %6091 = vmatmul.mubr.msk.bf16.gmra.mrb[20].mxu0 %vm2148_vm8, %v4994_v26 }
 0x41f   : > { %v5447_v9 = vadd.f32 %v5446_v42, %v5445_v7 }
 0x420   : > { %5233 = vxpose.xlu0.b32.cont [7/16] (narrow) %v4965_v61, 8 }
 0x424   : > { %5234 = vxpose.xlu0.b32.cont [8/16] (narrow) %v4966_v8, 8 }
 0x42a   : > { %v6062_v52 = vpop.f32.mrb[24].mxu1 }
 0x42b   : > { %v4873_v54 = vadd.f32 %v6062_v52, %v9025_v62  ;;  %v4864_v49 = vpop.f32.mrb[25].mxu1 }
 0x42c   : > { %v4865_v10 = vadd.f32 %v9025_v62, %v4864_v49  ;;  %v6063_v0 = vpop.f32.mrb[26].mxu1 }
 0x42d   : > { %v4876_v43 = vadd.f32 %v6063_v0, %v9025_v62  ;;  %v4867_v40 = vpop.f32.mrb[27].mxu1  ;;  %v4969_v60 = vmax.f32 %v4873_v54, 0.0 }
 0x42e   : > { %v4967_v33 = vmax.f32 %v4865_v10, 0.0  ;;  %v4868_v11 = vadd.f32 %v9025_v62, %v4867_v40 }
 0x42f   : > { %v4970_v63 = vmax.f32 %v4876_v43, 0.0  ;;  %v5452_v55 = vsel %vm2148_vm8, %v4969_v60, 0.0 }
 0x430   : > { %v5448_v3 = vsel %vm2148_vm8, %v4967_v33, 0.0  ;;  %v4968_v48 = vmax.f32 %v4868_v11, 0.0  ;;  %5235 = vxpose.xlu0.b32.cont [9/16] (narrow) %v4967_v33, 8 }
 0x431   : > { %v5449_v4 = vadd.f32 %v5448_v3, %v5447_v9  ;;  %v4996_v12 = vpack.c.bf16 %v4970_v63, %v4969_v60  ;;  %v5454_v24 = vsel %vm2148_vm8, %v4970_v63, 0.0 }
 0x432   : > { %v4995_v41 = vpack.c.bf16 %v4968_v48, %v4967_v33  ;;  %v5450_v13 = vsel %vm2148_vm8, %v4968_v48, 0.0 }
 0x433   : > { %v5451_v37 = vadd.f32 %v5450_v13, %v5449_v4 }
 0x434   : > { %5236 = vxpose.xlu0.b32.cont [10/16] (narrow) %v4968_v48, 8  ;;  %v6066_v18 = vpop.f32.mrb[28].mxu1  ;;  %6094 = vmatprep.mubr.msk.bf16.mxu0 %vm2148_vm8, %v4995_v41 }
 0x435   : > { %v5453_v32 = vadd.f32 %v5452_v55, %v5451_v37  ;;  %v4889_v2 = vadd.f32 %v6066_v18, %v9025_v62  ;;  %v4880_v30 = vpop.f32.mrb[29].mxu1  ;;  %6095 = vmatmul.mubr.msk.bf16.gmra.mrb[24].mxu0 %vm2148_vm8, %v4996_v12 }
 0x436   : > { %v4881_v39 = vadd.f32 %v9025_v62, %v4880_v30  ;;  %v6067_v36 = vpop.f32.mrb[30].mxu1 }
 0x437   : > { %v5455_v47 = vadd.f32 %v5454_v24, %v5453_v32  ;;  %v4892_v46 = vadd.f32 %v6067_v36, %v9025_v62  ;;  %v4883_v20 = vpop.f32.mrb[31].mxu1  ;;  %v4973_v25 = vmax.f32 %v4889_v2, 0.0 }
 0x438   : > { %v4971_v5 = vmax.f32 %v4881_v39, 0.0  ;;  %v4884_v21 = vadd.f32 %v9025_v62, %v4883_v20  ;;  %5237 = vxpose.xlu0.b32.cont [11/16] (narrow) %v4969_v60, 8 }
 0x439   : > { %v4974_v17 = vmax.f32 %v4892_v46, 0.0  ;;  %v5460_v57 = vsel %vm2148_vm8, %v4973_v25, 0.0 }
 0x43a   : > { %v5456_v31 = vsel %vm2148_vm8, %v4971_v5, 0.0  ;;  %v4972_v58 = vmax.f32 %v4884_v21, 0.0 }
 0x43b   : > { %v5457_v1 = vadd.f32 %v5456_v31, %v5455_v47  ;;  %v4998_v59 = vpack.c.bf16 %v4974_v17, %v4973_v25  ;;  %v5462_v16 = vsel %vm2148_vm8, %v4974_v17, 0.0 }
 0x43c   : > { %v4997_v6 = vpack.c.bf16 %v4972_v58, %v4971_v5  ;;  %v5458_v19 = vsel %vm2148_vm8, %v4972_v58, 0.0  ;;  %5238 = vxpose.xlu0.b32.cont [12/16] (narrow) %v4970_v63, 8  ;;  %v6070_v51 = vpop.f32.mrb[32].mxu1 }
 0x43d   : > { %v5459_v27 = vadd.f32 %v5458_v19, %v5457_v1  ;;  %v4905_v14 = vadd.f32 %v6070_v51, %v9025_v62  ;;  %v4896_v56 = vpop.f32.mrb[33].mxu1 }
 0x43e   : > { %v4897_v34 = vadd.f32 %v9025_v62, %v4896_v56  ;;  %v6071_v38 = vpop.f32.mrb[34].mxu1  ;;  %6098 = vmatprep.mubr.msk.bf16.mxu0 %vm2148_vm8, %v4997_v6 }
 0x43f   : > { %v5461_v23 = vadd.f32 %v5460_v57, %v5459_v27  ;;  %v4908_v45 = vadd.f32 %v6071_v38, %v9025_v62  ;;  %v4899_v22 = vpop.f32.mrb[35].mxu1  ;;  %6099 = vmatmul.mubr.msk.bf16.gmra.mrb[28].mxu0 %vm2148_vm8, %v4998_v59  ;;  %v4977_v44 = vmax.f32 %v4905_v14, 0.0 }
 0x440   : > { %v4975_v61 = vmax.f32 %v4897_v34, 0.0  ;;  %v4900_v8 = vadd.f32 %v9025_v62, %v4899_v22  ;;  %5239 = vxpose.xlu0.b32.cont [13/16] (narrow) %v4971_v5, 8 }
 0x441   : > { %v5463_v35 = vadd.f32 %v5462_v16, %v5461_v23  ;;  %v4978_v50 = vmax.f32 %v4908_v45, 0.0  ;;  %v5468_v49 = vsel %vm2148_vm8, %v4977_v44, 0.0 }
 0x442   : > { %v5464_v26 = vsel %vm2148_vm8, %v4975_v61, 0.0  ;;  %v4976_v29 = vmax.f32 %v4900_v8, 0.0  ;;  %5259 = vxpose.xlu1.b32.start [1/16] (narrow) %v4975_v61, 8 }
 0x443   : > { %v5465_v15 = vadd.f32 %v5464_v26, %v5463_v35  ;;  %v5000_v53 = vpack.c.bf16 %v4978_v50, %v4977_v44  ;;  %v5470_v11 = vsel %vm2148_vm8, %v4978_v50, 0.0 }
 0x444   : > { %v4999_v28 = vpack.c.bf16 %v4976_v29, %v4975_v61  ;;  %v5466_v7 = vsel %vm2148_vm8, %v4976_v29, 0.0  ;;  %5240 = vxpose.xlu0.b32.cont [14/16] (narrow) %v4972_v58, 8  ;;  %v6074_v42 = vpop.f32.mrb[36].mxu1 }
 0x445   : > { %v5467_v9 = vadd.f32 %v5466_v7, %v5465_v15  ;;  %v4921_v52 = vadd.f32 %v6074_v42, %v9025_v62  ;;  %v4912_v54 = vpop.f32.mrb[37].mxu1 }
 0x446   : > { %v4913_v10 = vadd.f32 %v9025_v62, %v4912_v54  ;;  %5260 = vxpose.xlu1.b32.cont [2/16] (narrow) %v4976_v29, 8  ;;  %v6075_v0 = vpop.f32.mrb[38].mxu1  ;;  %6102 = vmatprep.mubr.msk.bf16.mxu0 %vm2148_vm8, %v4999_v28 }
 0x447   : > { %v5469_v43 = vadd.f32 %v5468_v49, %v5467_v9  ;;  %v4924_v40 = vadd.f32 %v6075_v0, %v9025_v62  ;;  %v4915_v33 = vpop.f32.mrb[39].mxu1  ;;  %6103 = vmatmul.mubr.msk.bf16.gmra.mrb[32].mxu0 %vm2148_vm8, %v5000_v53  ;;  %v4981_v3 = vmax.f32 %v4921_v52, 0.0 }
 0x448   : > { %v4979_v60 = vmax.f32 %v4913_v10, 0.0  ;;  %v4916_v63 = vadd.f32 %v9025_v62, %v4915_v33  ;;  %5241 = vxpose.xlu0.b32.cont [15/16] (narrow) %v4973_v25, 8 }
 0x449   : > { %v5471_v48 = vadd.f32 %v5470_v11, %v5469_v43  ;;  %v4982_v4 = vmax.f32 %v4924_v40, 0.0  ;;  %v5476_v2 = vsel %vm2148_vm8, %v4981_v3, 0.0 }
 0x44a   : > { %v5472_v12 = vsel %vm2148_vm8, %v4979_v60, 0.0  ;;  %v4980_v41 = vmax.f32 %v4916_v63, 0.0  ;;  %5261 = vxpose.xlu1.b32.cont [3/16] (narrow) %v4977_v44, 8 }
 0x44b   : > { %v5473_v13 = vadd.f32 %v5472_v12, %v5471_v48  ;;  %v5002_v37 = vpack.c.bf16 %v4982_v4, %v4981_v3  ;;  %v5478_v24 = vsel %vm2148_vm8, %v4982_v4, 0.0  ;;  %v9115_v48 = vld [vmem:[%s9250_s7] ss:$0 sm:$0xff] }
 0x44c   : > { %v5001_v55 = vpack.c.bf16 %v4980_v41, %v4979_v60  ;;  %v5474_v18 = vsel %vm2148_vm8, %v4980_v41, 0.0  ;;  %5242 = vxpose.xlu0.b32.end [16/16] (narrow) %v4974_v17, 8 }
 0x44d   : > { %v5475_v32 = vadd.f32 %v5474_v18, %v5473_v13 }
 0x44e   : > { %5262 = vxpose.xlu1.b32.cont [4/16] (narrow) %v4978_v50, 8  ;;  %6106 = vmatprep.mubr.msk.bf16.mxu0 %vm2148_vm8, %v5001_v55 }
 0x44f   : > { %v5477_v30 = vadd.f32 %v5476_v2, %v5475_v32  ;;  %6107 = vmatmul.mubr.msk.bf16.gmra.mrb[36].mxu0 %vm2148_vm8, %v5002_v37 }
 0x451   : > { %v5479_v39 = vadd.f32 %v5478_v24, %v5477_v30 }
 0x452   : > { %5263 = vxpose.xlu1.b32.cont [5/16] (narrow) %v4979_v60, 8 }
 0x456   : > { %5264 = vxpose.xlu1.b32.cont [6/16] (narrow) %v4980_v41, 8 }
 0x45a   : > { %5265 = vxpose.xlu1.b32.cont [7/16] (narrow) %v4981_v3, 8  ;;  %v6078_v36 = vpop.f32.mrb[40].mxu1 }
 0x45b   : > { %v4937_v47 = vadd.f32 %v6078_v36, %v9025_v62  ;;  %v4928_v46 = vpop.f32.mrb[41].mxu1 }
 0x45c   : > { %v4929_v20 = vadd.f32 %v9025_v62, %v4928_v46  ;;  %v6079_v5 = vpop.f32.mrb[42].mxu1 }
 0x45d   : > { %v4940_v21 = vadd.f32 %v6079_v5, %v9025_v62  ;;  %v4931_v25 = vpop.f32.mrb[43].mxu1  ;;  %v4985_v58 = vmax.f32 %v4937_v47, 0.0 }
 0x45e   : > { %v4983_v17 = vmax.f32 %v4929_v20, 0.0  ;;  %v4932_v31 = vadd.f32 %v9025_v62, %v4931_v25  ;;  %5266 = vxpose.xlu1.b32.cont [8/16] (narrow) %v4982_v4, 8 }
 0x45f   : > { %v4986_v1 = vmax.f32 %v4940_v21, 0.0  ;;  %v5484_v57 = vsel %vm2148_vm8, %v4985_v58, 0.0 }
 0x460   : > { %v5480_v59 = vsel %vm2148_vm8, %v4983_v17, 0.0  ;;  %v4984_v6 = vmax.f32 %v4932_v31, 0.0 }
 0x461   : > { %v5481_v19 = vadd.f32 %v5480_v59, %v5479_v39  ;;  %v5004_v51 = vpack.c.bf16 %v4986_v1, %v4985_v58  ;;  %v5486_v38 = vsel %vm2148_vm8, %v4986_v1, 0.0 }
 0x462   : > { %v5003_v27 = vpack.c.bf16 %v4984_v6, %v4983_v17  ;;  %v5482_v14 = vsel %vm2148_vm8, %v4984_v6, 0.0  ;;  %5267 = vxpose.xlu1.b32.cont [9/16] (narrow) %v4983_v17, 8 }
 0x463   : > { %v5483_v56 = vadd.f32 %v5482_v14, %v5481_v19 }
 0x464   : > { %6110 = vmatprep.mubr.msk.bf16.mxu0 %vm2148_vm8, %v5003_v27 }
 0x465   : > { %v5485_v34 = vadd.f32 %v5484_v57, %v5483_v56  ;;  %6111 = vmatmul.mubr.msk.bf16.gmra.mrb[40].mxu0 %vm2148_vm8, %v5004_v51 }
 0x466   : > { %5268 = vxpose.xlu1.b32.cont [10/16] (narrow) %v4984_v6, 8 }
 0x467   : > { %v5487_v23 = vadd.f32 %v5486_v38, %v5485_v34 }
 0x46a   : > { %5269 = vxpose.xlu1.b32.cont [11/16] (narrow) %v4985_v58, 8 }
 0x46e   : > { %5270 = vxpose.xlu1.b32.cont [12/16] (narrow) %v4986_v1, 8 }
 0x47d   : > { %v6082_v45 = vpop.f32.mrb[44].mxu1 }
 0x47e   : > { %v4953_v22 = vadd.f32 %v6082_v45, %v9025_v62  ;;  %v4944_v16 = vpop.f32.mrb[45].mxu1 }
 0x47f   : > { %v4945_v61 = vadd.f32 %v9025_v62, %v4944_v16  ;;  %v6083_v8 = vpop.f32.mrb[46].mxu1 }
 0x480   : > { %v4956_v44 = vadd.f32 %v6083_v8, %v9025_v62  ;;  %v4947_v35 = vpop.f32.mrb[47].mxu1  ;;  %v4989_v29 = vmax.f32 %v4953_v22, 0.0 }
 0x481   : > { %v4987_v50 = vmax.f32 %v4945_v61, 0.0  ;;  %v4948_v26 = vadd.f32 %v9025_v62, %v4947_v35 }
 0x482   : > { %v4990_v15 = vmax.f32 %v4956_v44, 0.0  ;;  %v5492_v49 = vsel %vm2148_vm8, %v4989_v29, 0.0 }
 0x483   : > { %v5488_v53 = vsel %vm2148_vm8, %v4987_v50, 0.0  ;;  %v4988_v28 = vmax.f32 %v4948_v26, 0.0  ;;  %5271 = vxpose.xlu1.b32.cont [13/16] (narrow) %v4987_v50, 8 }
 0x484   : > { %v5489_v7 = vadd.f32 %v5488_v53, %v5487_v23  ;;  %v5006_v42 = vpack.c.bf16 %v4990_v15, %v4989_v29  ;;  %v5494_v62 = vsel %vm2148_vm8, %v4990_v15, 0.0 }
 0x485   : > { %v5005_v9 = vpack.c.bf16 %v4988_v28, %v4987_v50  ;;  %v5490_v52 = vsel %vm2148_vm8, %v4988_v28, 0.0 }
 0x486   : > { %v5491_v54 = vadd.f32 %v5490_v52, %v5489_v7 }
 0x487   : > { %5272 = vxpose.xlu1.b32.cont [14/16] (narrow) %v4988_v28, 8  ;;  %6114 = vmatprep.mubr.msk.bf16.mxu0 %vm2148_vm8, %v5005_v9 }
 0x488   : > { %v5493_v10 = vadd.f32 %v5492_v49, %v5491_v54  ;;  %6115 = vmatmul.mubr.msk.bf16.gmra.mrb[44].mxu0 %vm2148_vm8, %v5006_v42 }
 0x48a   : > { %v5495_v0 = vadd.f32 %v5494_v62, %v5493_v10 }
 0x48b   : > { %5273 = vxpose.xlu1.b32.cont [15/16] (narrow) %v4989_v29, 8 }
 0x48c   : > { %v5496_v43 = vrot.slane %v5495_v0, 4 }
 0x48e   : > { %v5497_v40 = vadd.f32 %v5496_v43, %v5495_v0 }
 0x48f   : > { %5274 = vxpose.xlu1.b32.end [16/16] (narrow) %v4990_v15, 8 }
 0x490   : > { %v5498_v33 = vrot.slane %v5497_v40, 2  ;;  %v5243_v5 = vpop.trf.xlu0 }
 0x491   : > { %5291 = vst [vmem:[%s408_s16] sm:$0xff] %v5243_v5 }
 0x492   : > { %v5499_v11 = vadd.f32 %v5498_v33, %v5497_v40 }
 0x494   : > { %v5500_v60 = vrot.slane %v5499_v11, 1 }
 0x496   : > { %v5501_v63 = vadd.f32 %v5500_v60, %v5499_v11 }
 0x498   : > { %v5502_v3 = vmul.f32 0.00390625, %v5501_v63 }
 0x49a   : > { %5503 = vst.msk [vmem:[%s416_s24] sm:$0x1] %vm2726_vm0, %v5502_v3  ;;  %s9192_s24 = scalar_lea.vmem %s9252_s9, %s5913_s13  ;;  %s9200_s13 = scalar_lea.hbm %s9253_s10, %s5909_s15 }
 0x4c4   : > { %v6088_v4 = vpop.f32.mrb[16].mxu0 }
 0x4c5   : > { %v5100_v12 = vpop.f32.mrb[17].mxu0  ;;  %v5109_v55 = vadd.f32 %v6088_v4, %v9115_v48 }
 0x4c6   : > { %v5101_v41 = vadd.f32 %v9115_v48, %v5100_v12  ;;  %v6089_v13 = vpop.f32.mrb[18].mxu0 }
 0x4c7   : > { %v5103_v37 = vpop.f32.mrb[19].mxu0  ;;  %v5112_v2 = vadd.f32 %v6089_v13, %v9115_v48  ;;  %v5363_v39 = vsel %vm5359_vm5, %v5109_v55, 0.0 }
 0x4c8   : > { %v5104_v18 = vadd.f32 %v9115_v48, %v5103_v37  ;;  %5293 = vxpose.xlu0.b32.start [1/16] (narrow) %v5101_v41, 8  ;;  %v5360_v32 = vsel %vm5359_vm5, %v5101_v41, 0.0 }
 0x4c9   : > { %v5365_v47 = vsel %vm5359_vm5, %v5112_v2, 0.0 }
 0x4ca   : > { %v5361_v30 = vsel %vm5359_vm5, %v5104_v18, 0.0 }
 0x4cb   : > { %v5362_v24 = vadd.f32 %v5361_v30, %v5360_v32 }
 0x4cc   : > { %5294 = vxpose.xlu0.b32.cont [2/16] (narrow) %v5104_v18, 8 }
 0x4cd   : > { %v5364_v36 = vadd.f32 %v5363_v39, %v5362_v24 }
 0x4cf   : > { %v5366_v46 = vadd.f32 %v5365_v47, %v5364_v36 }
 0x4d0   : > { %5295 = vxpose.xlu0.b32.cont [3/16] (narrow) %v5109_v55, 8 }
 0x4d3   : > { %v5275_v20 = vpop.trf.xlu1 }
 0x4d4   : > { %5296 = vxpose.xlu0.b32.cont [4/16] (narrow) %v5112_v2, 8  ;;  %5292 = vst [vmem:[%s408_s16 + $0x8] sm:$0xff] %v5275_v20 }
 0x4f0   : > { %v6092_v21 = vpop.f32.mrb[20].mxu0 }
 0x4f1   : > { %v5116_v25 = vpop.f32.mrb[21].mxu0  ;;  %v5125_v1 = vadd.f32 %v6092_v21, %v9115_v48 }
 0x4f2   : > { %v5117_v17 = vadd.f32 %v9115_v48, %v5116_v25  ;;  %v6093_v31 = vpop.f32.mrb[22].mxu0 }
 0x4f3   : > { %v5119_v58 = vpop.f32.mrb[23].mxu0  ;;  %v5128_v51 = vadd.f32 %v6093_v31, %v9115_v48  ;;  %v5371_v56 = vsel %vm5359_vm5, %v5125_v1, 0.0 }
 0x4f4   : > { %v5367_v59 = vsel %vm5359_vm5, %v5117_v17, 0.0  ;;  %v5120_v6 = vadd.f32 %v9115_v48, %v5119_v58  ;;  %5297 = vxpose.xlu0.b32.cont [5/16] (narrow) %v5117_v17, 8 }
 0x4f5   : > { %v5368_v19 = vadd.f32 %v5367_v59, %v5366_v46  ;;  %v5373_v34 = vsel %vm5359_vm5, %v5128_v51, 0.0 }
 0x4f6   : > { %v5369_v27 = vsel %vm5359_vm5, %v5120_v6, 0.0 }
 0x4f7   : > { %v5370_v14 = vadd.f32 %v5369_v27, %v5368_v19 }
 0x4f8   : > { %5298 = vxpose.xlu0.b32.cont [6/16] (narrow) %v5120_v6, 8 }
 0x4f9   : > { %v5372_v57 = vadd.f32 %v5371_v56, %v5370_v14 }
 0x4fb   : > { %v5374_v38 = vadd.f32 %v5373_v34, %v5372_v57 }
 0x4fc   : > { %5299 = vxpose.xlu0.b32.cont [7/16] (narrow) %v5125_v1, 8 }
 0x500   : > { %5300 = vxpose.xlu0.b32.cont [8/16] (narrow) %v5128_v51, 8 }
 0x508   : > { %v6096_v23 = vpop.f32.mrb[24].mxu0 }
 0x509   : > { %v5132_v45 = vpop.f32.mrb[25].mxu0  ;;  %v5141_v8 = vadd.f32 %v6096_v23, %v9115_v48 }
 0x50a   : > { %v5133_v22 = vadd.f32 %v9115_v48, %v5132_v45  ;;  %v6097_v16 = vpop.f32.mrb[26].mxu0 }
 0x50b   : > { %v5135_v61 = vpop.f32.mrb[27].mxu0  ;;  %v5144_v26 = vadd.f32 %v6097_v16, %v9115_v48  ;;  %v5379_v53 = vsel %vm5359_vm5, %v5141_v8, 0.0 }
 0x50c   : > { %v5375_v44 = vsel %vm5359_vm5, %v5133_v22, 0.0  ;;  %v5136_v35 = vadd.f32 %v9115_v48, %v5135_v61  ;;  %5301 = vxpose.xlu0.b32.cont [9/16] (narrow) %v5133_v22, 8 }
 0x50d   : > { %v5376_v50 = vadd.f32 %v5375_v44, %v5374_v38  ;;  %v5381_v7 = vsel %vm5359_vm5, %v5144_v26, 0.0 }
 0x50e   : > { %v5377_v29 = vsel %vm5359_vm5, %v5136_v35, 0.0 }
 0x50f   : > { %v5378_v15 = vadd.f32 %v5377_v29, %v5376_v50 }
 0x510   : > { %5302 = vxpose.xlu0.b32.cont [10/16] (narrow) %v5136_v35, 8 }
 0x511   : > { %v5380_v28 = vadd.f32 %v5379_v53, %v5378_v15 }
 0x512   : > { %v6100_v42 = vpop.f32.mrb[28].mxu0 }
 0x513   : > { %v5148_v9 = vpop.f32.mrb[29].mxu0  ;;  %v5382_v52 = vadd.f32 %v5381_v7, %v5380_v28  ;;  %v5157_v62 = vadd.f32 %v6100_v42, %v9115_v48 }
 0x514   : > { %v5149_v54 = vadd.f32 %v9115_v48, %v5148_v9  ;;  %5303 = vxpose.xlu0.b32.cont [11/16] (narrow) %v5141_v8, 8  ;;  %v6101_v49 = vpop.f32.mrb[30].mxu0 }
 0x515   : > { %v5151_v10 = vpop.f32.mrb[31].mxu0  ;;  %v5160_v33 = vadd.f32 %v6101_v49, %v9115_v48  ;;  %v5387_v63 = vsel %vm5359_vm5, %v5157_v62, 0.0 }
 0x516   : > { %v5383_v0 = vsel %vm5359_vm5, %v5149_v54, 0.0  ;;  %v5152_v43 = vadd.f32 %v9115_v48, %v5151_v10 }
 0x517   : > { %v5384_v40 = vadd.f32 %v5383_v0, %v5382_v52  ;;  %v5389_v41 = vsel %vm5359_vm5, %v5160_v33, 0.0 }
 0x518   : > { %v5385_v11 = vsel %vm5359_vm5, %v5152_v43, 0.0  ;;  %5304 = vxpose.xlu0.b32.cont [12/16] (narrow) %v5144_v26, 8 }
 0x519   : > { %v5386_v60 = vadd.f32 %v5385_v11, %v5384_v40 }
 0x51a   : > { %v6104_v3 = vpop.f32.mrb[32].mxu0 }
 0x51b   : > { %v5388_v4 = vadd.f32 %v5387_v63, %v5386_v60  ;;  %v5164_v12 = vpop.f32.mrb[33].mxu0  ;;  %v5173_v32 = vadd.f32 %v6104_v3, %v9115_v48 }
 0x51c   : > { %v5165_v13 = vadd.f32 %v9115_v48, %v5164_v12  ;;  %v6105_v37 = vpop.f32.mrb[34].mxu0  ;;  %5305 = vxpose.xlu0.b32.cont [13/16] (narrow) %v5149_v54, 8 }
 0x51d   : > { %v5390_v55 = vadd.f32 %v5389_v41, %v5388_v4  ;;  %v5167_v18 = vpop.f32.mrb[35].mxu0  ;;  %v5176_v39 = vadd.f32 %v6105_v37, %v9115_v48  ;;  %v5395_v46 = vsel %vm5359_vm5, %v5173_v32, 0.0 }
 0x51e   : > { %v5391_v2 = vsel %vm5359_vm5, %v5165_v13, 0.0  ;;  %v5168_v30 = vadd.f32 %v9115_v48, %v5167_v18  ;;  %5325 = vxpose.xlu1.b32.start [1/16] (narrow) %v5165_v13, 8 }
 0x51f   : > { %v5392_v24 = vadd.f32 %v5391_v2, %v5390_v55  ;;  %v5397_v25 = vsel %vm5359_vm5, %v5176_v39, 0.0 }
 0x520   : > { %v5393_v36 = vsel %vm5359_vm5, %v5168_v30, 0.0  ;;  %5306 = vxpose.xlu0.b32.cont [14/16] (narrow) %v5152_v43, 8 }
 0x521   : > { %v5394_v47 = vadd.f32 %v5393_v36, %v5392_v24 }
 0x522   : > { %v6108_v20 = vpop.f32.mrb[36].mxu0  ;;  %5326 = vxpose.xlu1.b32.cont [2/16] (narrow) %v5168_v30, 8 }
 0x523   : > { %v5396_v5 = vadd.f32 %v5395_v46, %v5394_v47  ;;  %v5180_v21 = vpop.f32.mrb[37].mxu0  ;;  %v5189_v59 = vadd.f32 %v6108_v20, %v9115_v48 }
 0x524   : > { %v5181_v17 = vadd.f32 %v9115_v48, %v5180_v21  ;;  %5307 = vxpose.xlu0.b32.cont [15/16] (narrow) %v5157_v62, 8  ;;  %v6109_v31 = vpop.f32.mrb[38].mxu0 }
 0x525   : > { %v5398_v58 = vadd.f32 %v5397_v25, %v5396_v5  ;;  %v5183_v1 = vpop.f32.mrb[39].mxu0  ;;  %v5192_v27 = vadd.f32 %v6109_v31, %v9115_v48  ;;  %v5403_v57 = vsel %vm5359_vm5, %v5189_v59, 0.0 }
 0x526   : > { %v5399_v6 = vsel %vm5359_vm5, %v5181_v17, 0.0  ;;  %v5184_v19 = vadd.f32 %v9115_v48, %v5183_v1  ;;  %5327 = vxpose.xlu1.b32.cont [3/16] (narrow) %v5173_v32, 8 }
 0x527   : > { %v5400_v51 = vadd.f32 %v5399_v6, %v5398_v58  ;;  %v5405_v38 = vsel %vm5359_vm5, %v5192_v27, 0.0 }
 0x528   : > { %v5401_v14 = vsel %vm5359_vm5, %v5184_v19, 0.0  ;;  %5308 = vxpose.xlu0.b32.end [16/16] (narrow) %v5160_v33, 8 }
 0x529   : > { %v5402_v56 = vadd.f32 %v5401_v14, %v5400_v51 }
 0x52a   : > { %5328 = vxpose.xlu1.b32.cont [4/16] (narrow) %v5176_v39, 8 }
 0x52b   : > { %v5404_v34 = vadd.f32 %v5403_v57, %v5402_v56 }
 0x52d   : > { %v5406_v23 = vadd.f32 %v5405_v38, %v5404_v34 }
 0x52e   : > { %5329 = vxpose.xlu1.b32.cont [5/16] (narrow) %v5181_v17, 8 }
 0x532   : > { %5330 = vxpose.xlu1.b32.cont [6/16] (narrow) %v5184_v19, 8 }
 0x536   : > { %5331 = vxpose.xlu1.b32.cont [7/16] (narrow) %v5189_v59, 8 }
 0x538   : > { %v6112_v45 = vpop.f32.mrb[40].mxu0 }
 0x539   : > { %v5196_v22 = vpop.f32.mrb[41].mxu0  ;;  %v5205_v44 = vadd.f32 %v6112_v45, %v9115_v48 }
 0x53a   : > { %v5197_v16 = vadd.f32 %v9115_v48, %v5196_v22  ;;  %v6113_v61 = vpop.f32.mrb[42].mxu0  ;;  %5332 = vxpose.xlu1.b32.cont [8/16] (narrow) %v5192_v27, 8 }
 0x53b   : > { %v5199_v8 = vpop.f32.mrb[43].mxu0  ;;  %v5208_v29 = vadd.f32 %v6113_v61, %v9115_v48  ;;  %v5411_v28 = vsel %vm5359_vm5, %v5205_v44, 0.0 }
 0x53c   : > { %v5407_v35 = vsel %vm5359_vm5, %v5197_v16, 0.0  ;;  %v5200_v50 = vadd.f32 %v9115_v48, %v5199_v8 }
 0x53d   : > { %v5408_v26 = vadd.f32 %v5407_v35, %v5406_v23  ;;  %v5413_v42 = vsel %vm5359_vm5, %v5208_v29, 0.0 }
 0x53e   : > { %v5409_v15 = vsel %vm5359_vm5, %v5200_v50, 0.0  ;;  %5333 = vxpose.xlu1.b32.cont [9/16] (narrow) %v5197_v16, 8 }
 0x53f   : > { %v5410_v53 = vadd.f32 %v5409_v15, %v5408_v26 }
 0x541   : > { %v5412_v7 = vadd.f32 %v5411_v28, %v5410_v53 }
 0x542   : > { %5334 = vxpose.xlu1.b32.cont [10/16] (narrow) %v5200_v50, 8 }
 0x543   : > { %v5414_v9 = vadd.f32 %v5413_v42, %v5412_v7 }
 0x546   : > { %5335 = vxpose.xlu1.b32.cont [11/16] (narrow) %v5205_v44, 8 }
 0x54a   : > { %5336 = vxpose.xlu1.b32.cont [12/16] (narrow) %v5208_v29, 8 }
 0x55b   : > { %v6116_v52 = vpop.f32.mrb[44].mxu0 }
 0x55c   : > { %v5212_v54 = vpop.f32.mrb[45].mxu0  ;;  %v5221_v0 = vadd.f32 %v6116_v52, %v9115_v48 }
 0x55d   : > { %v5213_v49 = vadd.f32 %v9115_v48, %v5212_v54  ;;  %v6117_v10 = vpop.f32.mrb[46].mxu0 }
 0x55e   : > { %v5215_v62 = vpop.f32.mrb[47].mxu0  ;;  %v5224_v11 = vadd.f32 %v6117_v10, %v9115_v48  ;;  %v5419_v3 = vsel %vm5359_vm5, %v5221_v0, 0.0 }
 0x55f   : > { %v5415_v43 = vsel %vm5359_vm5, %v5213_v49, 0.0  ;;  %v5216_v40 = vadd.f32 %v9115_v48, %v5215_v62  ;;  %5337 = vxpose.xlu1.b32.cont [13/16] (narrow) %v5213_v49, 8 }
 0x560   : > { %v5416_v33 = vadd.f32 %v5415_v43, %v5414_v9  ;;  %v5421_v12 = vsel %vm5359_vm5, %v5224_v11, 0.0 }
 0x561   : > { %v5417_v60 = vsel %vm5359_vm5, %v5216_v40, 0.0 }
 0x562   : > { %v5418_v63 = vadd.f32 %v5417_v60, %v5416_v33 }
 0x563   : > { %5338 = vxpose.xlu1.b32.cont [14/16] (narrow) %v5216_v40, 8 }
 0x564   : > { %v5420_v4 = vadd.f32 %v5419_v3, %v5418_v63 }
 0x566   : > { %v5422_v41 = vadd.f32 %v5421_v12, %v5420_v4 }
 0x567   : > { %5339 = vxpose.xlu1.b32.cont [15/16] (narrow) %v5221_v0, 8 }
 0x568   : > { %v5423_v13 = vrot.slane %v5422_v41, 4 }
 0x56a   : > { %v5424_v37 = vadd.f32 %v5423_v13, %v5422_v41 }
 0x56b   : > { %5340 = vxpose.xlu1.b32.end [16/16] (narrow) %v5224_v11, 8 }
 0x56c   : > { %v5425_v48 = vrot.slane %v5424_v37, 2  ;;  %v5309_v55 = vpop.trf.xlu0 }
 0x56d   : > { %5357 = vst [vmem:[%s9192_s24] sm:$0x3f] %v5309_v55 }
 0x56e   : > { %v5426_v18 = vadd.f32 %v5425_v48, %v5424_v37 }
 0x570   : > { %v5427_v32 = vrot.slane %v5426_v18, 1 }
 0x572   : > { %v5428_v2 = vadd.f32 %v5427_v32, %v5426_v18 }
 0x574   : > { %v5430_v30 = vmul.f32 0.00390625, %v5428_v2 }
 0x576   : > { %5432 = vst.msk [vmem:[%s393_s30] sm:$0x1] %vm5431_vm14, %v5430_v30 }
 0x577   : > { %6239 = shalt.err (!%p6236_p3)
}
 0x578   : > { %s6240_s25 = scalar_lea.hbm %s9200_s13, 16  ;;  %s6244_s29 = scalar_lea.hbm %s9253_s10, 32 }
 0x579   : > { %p6241_p4 = scmp.ne.s32.totalorder %s9200_s13, %s6240_s25  ;;  %p6245_p9 = scmp.lt.u32.totalorder %s9200_s13, %s9253_s10 }
 0x57a   : > { %p6246_p10 = scmp.lt.u32.totalorder %s6244_s29, %s6240_s25  ;;  %p6248_p12 = scmp.lt.u32.totalorder %s6240_s25, %s9200_s13 }
 0x57b   : > { %p6242_p7 = pnand %p6241_p4, %p6402_p5 }
 0x57c   : > { %p6247_p11 = por %p6246_p10, %p6245_p9 }
 0x57d   : > { %p6243_p8 = pneg %p6242_p7 }
 0x57e   : > { %p6249_p13 = por %p6248_p12, %p6247_p11 }
 0x580   : > { %p6250_p0 = pnand %p6249_p13, %p6243_p8 }
 0x582   : > { %6253 = shalt.err (!%p6250_p0)
}
 0x583   : > { %6128 = dma.vmem_to_hbm [thread:$0]  (%p6402_p5), %s9202_s22, 16, %s9200_s13, %s5515_s12  }
 0x5af   : > { %v5341_v24 = vpop.trf.xlu1 }
 0x5b0   : > { %5358 = vst [vmem:[%s9192_s24 + $0x8] sm:$0x3f] %v5341_v24 }
 0x5b1 PF: > { %p6134_p1 = scmp.ge.s32.totalorder %s6288_s20, 2  ;;  %s5567_s1 = sand.u32 1, %s6276_s17  }
 0x5b2   : > { %s5568_s14 = scalar_lea.sflag [#allocation5], %s5567_s1 }
 0x5b3   : > { %p6131_p2 = pnand %p6134_p1, %p6406_p6 }
 0x5b5   : > { %6271 = dma.done.wait (!%p6131_p2), %s5568_s14, 16  }
 0x5b6   : > { %6273 = vsyncadd (!%p6131_p2), %s5568_s14, 4294967280  ;;  %p22_p3 = scmp.ge.s32.totalorder %s6389_s23, 4   ;;  %s9353_s17 = smov %s6280_s18 }
 0x5b7   : > { %s9354_s18 = smov %s6284_s19  ;;  %s9355_s19 = smov %s6400_s26 }
 0x5b8   : > { %s9356_s20 = smov %s6389_s23  ;;  %24 = sbr.rel (!%p22_p3) target bundleno = 6 (0x6), region = 127 }
 0x5bf   :  { %5578 = vsyncpa [#allocation5], 1 }
 0x5c0   :  { %5580 = vsyncpa [#allocation5 + $0x1], 1 }

</bundles_post_ra>
